<compile_context>
chip_gen: v7x
topology: tpu7x:2x2x1
jax: 0.10.0
libtpu: 0.0.40
codegen_flags: <defaults>
</compile_context>

<pallas_src>
import jax
import jax.numpy as jnp
from jax import lax
from jax.experimental import pallas as pl
from jax.experimental.pallas import tpu as pltpu

LANE = 128          # fc lane padding target
NUM_CLASSES = 10
C1P = 8             # conv1 output channels padded 6 -> 8 (sublane multiple)
KSIZE = 5


# ----------------------------------------------------------------------------
# small helpers
# ----------------------------------------------------------------------------
def _pad_axis(x, axis, target):
    pad = target - x.shape[axis]
    if pad <= 0:
        return x
    cfg = [(0, 0)] * x.ndim
    cfg[axis] = (0, pad)
    return jnp.pad(x, cfg)


def _pick_tile(m, tmax=1024):
    """Largest tile <= tmax that divides m exactly.

    Returns m itself when m <= tmax (single full tile); otherwise the largest
    multiple-of-8 divisor, so blocks never need row padding and always satisfy
    the (8, 128) sublane rule.  Falls back to m (grid=1) if no divisor exists.
    """
    if m <= tmax:
        return m
    for t in range(tmax - tmax % 8, 7, -8):
        if m % t == 0:
            return t
    return m


def _cparams():
    return pltpu.CompilerParams(
        dimension_semantics=("parallel",),       # row / batch tiles independent
        vmem_limit_bytes=32 * 1024 * 1024,       # safe on v5e/v6e (128 MiB) & v7x (64 MiB)
    )


# ----------------------------------------------------------------------------
# Pallas kernels
# ----------------------------------------------------------------------------
def _conv_kernel(p_ref, w_ref, b_ref, o_ref):
    # p: (tm, K) bf16, w: (K, C) bf16, b: (1, C) f32 -> relu(p @ w + b) bf16
    acc = jnp.dot(p_ref[...], w_ref[...], preferred_element_type=jnp.float32)
    o_ref[...] = jnp.maximum(acc + b_ref[...], 0.0).astype(o_ref.dtype)


def _conv_pool_kernel(q0_ref, q1_ref, q2_ref, q3_ref, w_ref, b_ref, o_ref):
    # q0..q3: (tm, K) bf16 -- the 4 conv-output positions feeding each 2x2
    # maxpool window.  max_q(relu(q @ w + b)) == relu(max_q(q @ w) + b)
    # (bias identical across quadrants, ReLU monotone), so the pool fuses
    # into the matmul epilogue.
    w = w_ref[...]
    acc = jnp.dot(q0_ref[...], w, preferred_element_type=jnp.float32)
    for q_ref in (q1_ref, q2_ref, q3_ref):
        acc = jnp.maximum(
            acc, jnp.dot(q_ref[...], w, preferred_element_type=jnp.float32))
    o_ref[...] = jnp.maximum(acc + b_ref[...], 0.0).astype(o_ref.dtype)


def _conv3_fc_kernel(q0_ref, q1_ref, q2_ref, q3_ref, w3_ref, b3_ref,
                     w1_ref, b1_ref, w2_ref, b2_ref, wo_ref, bo_ref, o_ref):
    # Fused conv3 + 2x2 maxpool + fc1 + relu + fc2 + relu + fc3 + softmax.
    # q*: (9, tb, K3) bf16 -- for each of the 9 pooled spatial positions, the
    # conv3 im2col rows of one pool quadrant.  fc1 is a sum over the 9
    # positions of (32 -> 128) sub-matmuls -> no in-kernel reshape needed.
    w3 = w3_ref[...]                       # (400, 32) bf16
    b3 = b3_ref[...]                       # (1, 32)  f32
    w1 = w1_ref[...]                       # (288, 128) bf16
    fc1_acc = jnp.zeros(o_ref.shape, jnp.float32)        # (tb, 128)
    for p in range(9):
        acc = jnp.dot(q0_ref[p], w3, preferred_element_type=jnp.float32)
        for q_ref in (q1_ref, q2_ref, q3_ref):
            acc = jnp.maximum(
                acc, jnp.dot(q_ref[p], w3, preferred_element_type=jnp.float32))
        h = jnp.maximum(acc + b3, 0.0).astype(w1.dtype)   # (tb, 32) bf16
        fc1_acc += jnp.dot(h, w1[p * 32:(p + 1) * 32, :],
                           preferred_element_type=jnp.float32)
    h = jnp.maximum(fc1_acc + b1_ref[...], 0.0).astype(w1.dtype)
    h = jnp.dot(h, w2_ref[...], preferred_element_type=jnp.float32) + b2_ref[...]
    h = jnp.maximum(h, 0.0).astype(w1.dtype)
    # Padded fc3 weight columns are zero and padded bias lanes are -1e30, so
    # lanes >= NUM_CLASSES contribute exp(...) == 0 with no explicit mask.
    logits = jnp.dot(h, wo_ref[...], preferred_element_type=jnp.float32) + bo_ref[...]
    m = jnp.max(logits, axis=-1, keepdims=True)
    e = jnp.exp(logits - m)
    s = jnp.sum(e, axis=-1, keepdims=True)
    o_ref[...] = (e / s).astype(o_ref.dtype)     # exact divide: rows sum to 1


# ----------------------------------------------------------------------------
# XLA glue: im2col / pool-quadrant patch construction (overlapping-window
# gathers; kept outside the kernels)
# ----------------------------------------------------------------------------
def _im2col_nhwc(x, ksize):
    """(N, H, W, C) -> (N, OH, OW, KH*KW*C), feature order (kh, kw, c)."""
    n, h, w, c = x.shape
    oh, ow = h - ksize + 1, w - ksize + 1
    cols = [x[:, i:i + oh, j:j + ow, :]
            for i in range(ksize) for j in range(ksize)]
    return jnp.concatenate(cols, axis=-1)


def _pool_quadrant_patches(x, ksize):
    """(N, H, W, C) -> 4 arrays (N, OHP, OWP, KH*KW*C), one per 2x2 maxpool
    quadrant, built directly with stride-2 slices (single glue pass; no full
    im2col + stack double materialization)."""
    n, h, w, c = x.shape
    ohp, owp = (h - ksize + 1) // 2, (w - ksize + 1) // 2
    quads = []
    for dh in (0, 1):
        for dw in (0, 1):
            cols = [x[:, dh + i:dh + i + 2 * ohp:2,
                        dw + j:dw + j + 2 * owp:2, :]
                    for i in range(ksize) for j in range(ksize)]
            quads.append(jnp.concatenate(cols, axis=-1))
    return quads


# ----------------------------------------------------------------------------
# kernel wrappers (3 pallas_calls per forward)
# ----------------------------------------------------------------------------
def conv1_relu(x, w_mat, bias):
    n, h, w, _ = x.shape
    oh, ow = h - KSIZE + 1, w - KSIZE + 1
    patches = _im2col_nhwc(x, KSIZE).reshape(n * oh * ow, -1)
    m, k = patches.shape
    cout = w_mat.shape[1]
    tm = _pick_tile(m)                      # 576 per image -> grid=2 at batch 2
    out = pl.pallas_call(
        _conv_kernel,
        grid=(m // tm,),
        in_specs=[
            pl.BlockSpec((tm, k), lambda i: (i, 0)),
            pl.BlockSpec((k, cout), lambda i: (0, 0)),   # weights resident
            pl.BlockSpec((1, cout), lambda i: (0, 0)),   # bias resident
        ],
        out_specs=pl.BlockSpec((tm, cout), lambda i: (i, 0)),
        out_shape=jax.ShapeDtypeStruct((m, cout), jnp.bfloat16),
        compiler_params=_cparams(),
    )(patches, w_mat, bias)
    return out.reshape(n, oh, ow, cout)


def conv2_relu_pool(x, w_mat, bias):
    n = x.shape[0]
    quads = _pool_quadrant_patches(x, KSIZE)             # 4 x (N, 10, 10, K)
    _, ohp, owp, k = quads[0].shape
    m = n * ohp * owp
    quads = [q.reshape(m, k) for q in quads]
    cout = w_mat.shape[1]
    tm = _pick_tile(m)
    row_spec = pl.BlockSpec((tm, k), lambda i: (i, 0))
    out = pl.pallas_call(
        _conv_pool_kernel,
        grid=(m // tm,),
        in_specs=[row_spec] * 4 + [
            pl.BlockSpec((k, cout), lambda i: (0, 0)),
            pl.BlockSpec((1, cout), lambda i: (0, 0)),
        ],
        out_specs=pl.BlockSpec((tm, cout), lambda i: (i, 0)),
        out_shape=jax.ShapeDtypeStruct((m, cout), jnp.bfloat16),
        compiler_params=_cparams(),
    )(*quads, w_mat, bias)
    return out.reshape(n, ohp, owp, cout)


def conv3_fc_head(x, params):
    """x: (N, 10, 10, 16) bf16 -> (N, 10) f32 softmax probs (one pallas_call)."""
    n = x.shape[0]
    quads = _pool_quadrant_patches(x, KSIZE)             # 4 x (N, 3, 3, 400)
    k3 = quads[0].shape[-1]
    # (N, 3, 3, K) -> (9, N, K): pooled position on the leading (untiled) axis
    # so the kernel reads it with a cheap static ref[p].
    quads = [q.reshape(n, 9, k3).transpose(1, 0, 2) for q in quads]
    tb = _pick_tile(n, tmax=512)

    def full(shape):
        return pl.BlockSpec(shape, lambda i: (0,) * len(shape))

    out = pl.pallas_call(
        _conv3_fc_kernel,
        grid=(n // tb,),
        in_specs=[pl.BlockSpec((9, tb, k3), lambda i: (0, i, 0))] * 4 + [
            full((k3, 32)), full((1, 32)),          # conv3 w, b
            full((9 * 32, LANE)), full((1, LANE)),  # fc1 w, b
            full((LANE, LANE)), full((1, LANE)),    # fc2 w, b
            full((LANE, LANE)), full((1, LANE)),    # fc3 w, b (mask baked in b)
        ],
        out_specs=pl.BlockSpec((tb, LANE), lambda i: (i, 0)),
        out_shape=jax.ShapeDtypeStruct((n, LANE), jnp.float32),
        compiler_params=_cparams(),
    )(*quads, params["conv3_w"], params["conv3_b"],
      params["fc1_w"], params["fc1_b"], params["fc2_w"], params["fc2_b"],
      params["fc3_w"], params["fc3_b"])
    return out[:, :NUM_CLASSES]


# ----------------------------------------------------------------------------
# parameters: PyTorch-layout init + one-time (hoisted) kernel-layout prep
# ----------------------------------------------------------------------------
def _uniform(key, shape, fan_in):
    bound = 1.0 / float(fan_in) ** 0.5
    return jax.random.uniform(key, shape, jnp.float32, -bound, bound)


def init_params(key):
    """Raw params in PyTorch layouts (Conv2d: (OC,C,KH,KW); Linear: (out,in))."""
    keys = jax.random.split(key, 12)
    p = {}
    p["conv1_w"] = _uniform(keys[0], (6, 1, 5, 5), 1 * 25)
    p["conv1_b"] = _uniform(keys[1], (6,), 1 * 25)
    p["conv2_w"] = _uniform(keys[2], (16, 6, 5, 5), 6 * 25)
    p["conv2_b"] = _uniform(keys[3], (16,), 6 * 25)
    p["conv3_w"] = _uniform(keys[4], (32, 16, 5, 5), 16 * 25)
    p["conv3_b"] = _uniform(keys[5], (32,), 16 * 25)
    p["fc1_w"] = _uniform(keys[6], (120, 32 * 3 * 3), 32 * 9)
    p["fc1_b"] = _uniform(keys[7], (120,), 32 * 9)
    p["fc2_w"] = _uniform(keys[8], (84, 120), 120)
    p["fc2_b"] = _uniform(keys[9], (84,), 120)
    p["fc3_w"] = _uniform(keys[10], (10, 84), 84)
    p["fc3_b"] = _uniform(keys[11], (10,), 84)
    return p


def _conv_w_to_mat(w, c_pad, oc_pad):
    """(OC, C, KH, KW) -> (KH*KW*c_pad, oc_pad) bf16, feature order (kh, kw, c)."""
    oc, c, kh, kw = w.shape
    m = w.transpose(2, 3, 1, 0)                  # (kh, kw, c, oc)
    m = _pad_axis(_pad_axis(m, 2, c_pad), 3, oc_pad)
    return m.reshape(kh * kw * c_pad, oc_pad).astype(jnp.bfloat16)


def prepare_params(raw):
    """One-time layout / padding / bf16 prep (hoisted out of the forward pass)."""
    p = {}
    # Conv weights -> bf16 matmul form; biases stay f32 row vectors.
    p["conv1_w"] = _conv_w_to_mat(raw["conv1_w"], 1, C1P)             # (25, 8)
    p["conv1_b"] = _pad_axis(raw["conv1_b"].reshape(1, -1), 1, C1P)   # (1, 8)
    p["conv2_w"] = _conv_w_to_mat(raw["conv2_w"], C1P, 16)            # (200, 16)
    p["conv2_b"] = raw["conv2_b"].reshape(1, -1)                      # (1, 16)
    p["conv3_w"] = _conv_w_to_mat(raw["conv3_w"], 16, 32)             # (400, 32)
    p["conv3_b"] = raw["conv3_b"].reshape(1, -1)                      # (1, 32)
    # fc1: PyTorch's x.view(-1, 288) flattens CHW; the kernel consumes the
    # pooled map per spatial position with channels minor (HWC).  Permute the
    # fc1 input dimension once here so semantics match exactly.
    fc1 = raw["fc1_w"].reshape(120, 32, 3, 3).transpose(0, 2, 3, 1).reshape(120, 288)
    p["fc1_w"] = _pad_axis(fc1.T, 1, LANE).astype(jnp.bfloat16)       # (288, 128)
    p["fc1_b"] = _pad_axis(raw["fc1_b"].reshape(1, -1), 1, LANE)
    p["fc2_w"] = _pad_axis(_pad_axis(raw["fc2_w"].T, 0, LANE), 1, LANE).astype(jnp.bfloat16)
    p["fc2_b"] = _pad_axis(raw["fc2_b"].reshape(1, -1), 1, LANE)
    p["fc3_w"] = _pad_axis(_pad_axis(raw["fc3_w"].T, 0, LANE), 1, LANE).astype(jnp.bfloat16)
    # Bake the class mask into fc3's padded bias lanes: padded weight columns
    # are zero, so a -1e30 bias drives those logits to exp(...) == 0.
    b3 = _pad_axis(raw["fc3_b"].reshape(1, -1), 1, LANE)
    lane = jnp.arange(LANE)[None, :]
    p["fc3_b"] = jnp.where(lane < NUM_CLASSES, b3, -1e30).astype(jnp.float32)
    return p


# ----------------------------------------------------------------------------
# Net1 forward (3 pallas_calls)
# ----------------------------------------------------------------------------
def net1_forward(params, x):
    """x: (N, 1, 28, 28) NCHW f32 (PyTorch convention) -> (N, 10) probabilities."""
    x = x.transpose(0, 2, 3, 1).astype(jnp.bfloat16)                 # NHWC bf16
    x = conv1_relu(x, params["conv1_w"], params["conv1_b"])          # (N,24,24,8)
    x = conv2_relu_pool(x, params["conv2_w"], params["conv2_b"])     # (N,10,10,16)
    return conv3_fc_head(x, params)                                  # (N,10)


# ----------------------------------------------------------------------------
# pure-JAX reference (PyTorch semantics) for a sanity check
# ----------------------------------------------------------------------------
def net1_reference(raw, x):
    def conv(x, w, b):
        y = lax.conv_general_dilated(x, w, (1, 1), "VALID",
                                     dimension_numbers=("NCHW", "OIHW", "NCHW"))
        return jax.nn.relu(y + b[None, :, None, None])

    def pool(x):
        return lax.reduce_window(x, -jnp.inf, lax.max,
                                 (1, 1, 2, 2), (1, 1, 2, 2), "VALID")

    x = conv(x, raw["conv1_w"], raw["conv1_b"])
    x = pool(conv(x, raw["conv2_w"], raw["conv2_b"]))
    x = pool(conv(x, raw["conv3_w"], raw["conv3_b"]))
    x = x.reshape(x.shape[0], -1)                                    # CHW flatten
    x = jax.nn.relu(x @ raw["fc1_w"].T + raw["fc1_b"])
    x = jax.nn.relu(x @ raw["fc2_w"].T + raw["fc2_b"])
    x = x @ raw["fc3_w"].T + raw["fc3_b"]
    return jax.nn.softmax(x, axis=1)


if __name__ == "__main__":
    key = jax.random.PRNGKey(0)
    pkey, xkey = jax.random.split(key)
    raw_params = init_params(pkey)
    params = prepare_params(raw_params)                 # hoisted, one-time
    x = jax.random.normal(xkey, (2, 1, 28, 28), jnp.float32)

    out = jax.block_until_ready(jax.jit(net1_forward)(params, x))

    assert out.shape == (2, 10)
    assert bool(jnp.all(out >= 0.0))
    # exact softmax divide -> rows sum to 1 up to f32 rounding
    assert jnp.allclose(jnp.sum(out, axis=1), 1.0, atol=1e-3)
    # bf16 streamed operands with f32 accumulation vs f32 reference -> small drift
    ref = jax.block_until_ready(jax.jit(net1_reference)(raw_params, x))
    assert jnp.allclose(out, ref, atol=3e-2)

    print("KERNEL_OK")
</pallas_src>

<mosaic_0001>
module attributes {stable_mosaic.version = 11 : i64} {
  func.func @_conv_kernel(%arg0: i32, %arg1: memref<576x25xbf16, #tpu.memory_space<vmem>>, %arg2: memref<25x8xbf16, #tpu.memory_space<vmem>>, %arg3: memref<1x8xf32, #tpu.memory_space<vmem>>, %arg4: memref<576x8xbf16, #tpu.memory_space<vmem>>) attributes {dimension_semantics = [#tpu.dimension_semantics<parallel>], iteration_bounds = array<i64: 2>, scalar_prefetch = 0 : i64, scratch_operands = 0 : i64, tpu.core_type = #tpu.core_type<tc>, window_params = [{transform_indices = @transform_0, window_bounds = array<i64: 576, 25>}, {pipeline_mode = #tpu.pipeline_mode<synchronous>, transform_indices = @transform_1, window_bounds = array<i64: 25, 8>}, {pipeline_mode = #tpu.pipeline_mode<synchronous>, transform_indices = @transform_2, window_bounds = array<i64: 1, 8>}, {transform_indices = @transform_3, window_bounds = array<i64: 576, 8>}]} {
    %c0 = arith.constant 0 : index
    %c0_0 = arith.constant 0 : index
    %0 = vector.load %arg1[%c0, %c0_0] : memref<576x25xbf16, #tpu.memory_space<vmem>>, vector<576x25xbf16>
    %c0_1 = arith.constant 0 : index
    %c0_2 = arith.constant 0 : index
    %1 = vector.load %arg2[%c0_1, %c0_2] : memref<25x8xbf16, #tpu.memory_space<vmem>>, vector<25x8xbf16>
    %cst = arith.constant dense<0.000000e+00> : vector<576x8xf32>
    %2 = tpu.matmul %0, %1, %cst {dimension_numbers = #tpu.dot_dimension_numbers<[1], [0], [0], [1], [0, 0, 1, 1], [], []>} : vector<576x25xbf16>, vector<25x8xbf16>, vector<576x8xf32> -> vector<576x8xf32>
    %c0_3 = arith.constant 0 : index
    %c0_4 = arith.constant 0 : index
    %3 = vector.load %arg3[%c0_3, %c0_4] : memref<1x8xf32, #tpu.memory_space<vmem>>, vector<1x8xf32>
    %4 = vector.broadcast %3 : vector<1x8xf32> to vector<576x8xf32>
    %5 = arith.addf %2, %4 : vector<576x8xf32>
    %cst_5 = arith.constant 0.000000e+00 : f32
    %6 = vector.broadcast %cst_5 : f32 to vector<576x8xf32>
    %7 = arith.maximumf %5, %6 : vector<576x8xf32>
    %8 = arith.truncf %7 : vector<576x8xf32> to vector<576x8xbf16>
    %c0_6 = arith.constant 0 : index
    %c0_7 = arith.constant 0 : index
    %9 = vector.load %arg4[%c0_6, %c0_7] : memref<576x8xbf16, #tpu.memory_space<vmem>>, vector<576x8xbf16>
    tpu.vector_store %arg4[%c0_6, %c0_7], %8 {strides = array<i32>} : memref<576x8xbf16, #tpu.memory_space<vmem>>, vector<576x8xbf16>,
    return
  }
  func.func @transform_0(%arg0: i32) -> (i32, i32) {
    %c0_i32 = arith.constant 0 : i32
    %c0_i32_0 = arith.constant 0 : i32
    return %arg0, %c0_i32 : i32, i32
  }
  func.func @transform_1(%arg0: i32) -> (i32, i32) {
    %c0_i32 = arith.constant 0 : i32
    %c0_i32_0 = arith.constant 0 : i32
    %c0_i32_1 = arith.constant 0 : i32
    return %c0_i32, %c0_i32_0 : i32, i32
  }
  func.func @transform_2(%arg0: i32) -> (i32, i32) {
    %c0_i32 = arith.constant 0 : i32
    %c0_i32_0 = arith.constant 0 : i32
    %c0_i32_1 = arith.constant 0 : i32
    return %c0_i32, %c0_i32_0 : i32, i32
  }
  func.func @transform_3(%arg0: i32) -> (i32, i32) {
    %c0_i32 = arith.constant 0 : i32
    %c0_i32_0 = arith.constant 0 : i32
    return %arg0, %c0_i32 : i32, i32
  }
}

module attributes {stable_mosaic.version = 11 : i64} {
  func.func @_conv_pool_kernel(%arg0: i32, %arg1: memref<200x200xbf16, #tpu.memory_space<vmem>>, %arg2: memref<200x200xbf16, #tpu.memory_space<vmem>>, %arg3: memref<200x200xbf16, #tpu.memory_space<vmem>>, %arg4: memref<200x200xbf16, #tpu.memory_space<vmem>>, %arg5: memref<200x16xbf16, #tpu.memory_space<vmem>>, %arg6: memref<1x16xf32, #tpu.memory_space<vmem>>, %arg7: memref<200x16xbf16, #tpu.memory_space<vmem>>) attributes {dimension_semantics = [#tpu.dimension_semantics<parallel>], iteration_bounds = array<i64: 1>, scalar_prefetch = 0 : i64, scratch_operands = 0 : i64, tpu.core_type = #tpu.core_type<tc>, window_params = [{transform_indices = @transform_0, window_bounds = array<i64: 200, 200>}, {transform_indices = @transform_1, window_bounds = array<i64: 200, 200>}, {transform_indices = @transform_2, window_bounds = array<i64: 200, 200>}, {transform_indices = @transform_3, window_bounds = array<i64: 200, 200>}, {pipeline_mode = #tpu.pipeline_mode<synchronous>, transform_indices = @transform_4, window_bounds = array<i64: 200, 16>}, {pipeline_mode = #tpu.pipeline_mode<synchronous>, transform_indices = @transform_5, window_bounds = array<i64: 1, 16>}, {transform_indices = @transform_6, window_bounds = array<i64: 200, 16>}]} {
    %c0 = arith.constant 0 : index
    %c0_0 = arith.constant 0 : index
    %0 = vector.load %arg5[%c0, %c0_0] : memref<200x16xbf16, #tpu.memory_space<vmem>>, vector<200x16xbf16>
    %c0_1 = arith.constant 0 : index
    %c0_2 = arith.constant 0 : index
    %1 = vector.load %arg1[%c0_1, %c0_2] : memref<200x200xbf16, #tpu.memory_space<vmem>>, vector<200x200xbf16>
    %cst = arith.constant dense<0.000000e+00> : vector<200x16xf32>
    %2 = tpu.matmul %1, %0, %cst {dimension_numbers = #tpu.dot_dimension_numbers<[1], [0], [0], [1], [0, 0, 1, 1], [], []>} : vector<200x200xbf16>, vector<200x16xbf16>, vector<200x16xf32> -> vector<200x16xf32>
    %c0_3 = arith.constant 0 : index
    %c0_4 = arith.constant 0 : index
    %3 = vector.load %arg2[%c0_3, %c0_4] : memref<200x200xbf16, #tpu.memory_space<vmem>>, vector<200x200xbf16>
    %cst_5 = arith.constant dense<0.000000e+00> : vector<200x16xf32>
    %4 = tpu.matmul %3, %0, %cst_5 {dimension_numbers = #tpu.dot_dimension_numbers<[1], [0], [0], [1], [0, 0, 1, 1], [], []>} : vector<200x200xbf16>, vector<200x16xbf16>, vector<200x16xf32> -> vector<200x16xf32>
    %5 = arith.maximumf %2, %4 : vector<200x16xf32>
    %c0_6 = arith.constant 0 : index
    %c0_7 = arith.constant 0 : index
    %6 = vector.load %arg3[%c0_6, %c0_7] : memref<200x200xbf16, #tpu.memory_space<vmem>>, vector<200x200xbf16>
    %cst_8 = arith.constant dense<0.000000e+00> : vector<200x16xf32>
    %7 = tpu.matmul %6, %0, %cst_8 {dimension_numbers = #tpu.dot_dimension_numbers<[1], [0], [0], [1], [0, 0, 1, 1], [], []>} : vector<200x200xbf16>, vector<200x16xbf16>, vector<200x16xf32> -> vector<200x16xf32>
    %8 = arith.maximumf %5, %7 : vector<200x16xf32>
    %c0_9 = arith.constant 0 : index
    %c0_10 = arith.constant 0 : index
    %9 = vector.load %arg4[%c0_9, %c0_10] : memref<200x200xbf16, #tpu.memory_space<vmem>>, vector<200x200xbf16>
    %cst_11 = arith.constant dense<0.000000e+00> : vector<200x16xf32>
    %10 = tpu.matmul %9, %0, %cst_11 {dimension_numbers = #tpu.dot_dimension_numbers<[1], [0], [0], [1], [0, 0, 1, 1], [], []>} : vector<200x200xbf16>, vector<200x16xbf16>, vector<200x16xf32> -> vector<200x16xf32>
    %11 = arith.maximumf %8, %10 : vector<200x16xf32>
    %c0_12 = arith.constant 0 : index
    %c0_13 = arith.constant 0 : index
    %12 = vector.load %arg6[%c0_12, %c0_13] : memref<1x16xf32, #tpu.memory_space<vmem>>, vector<1x16xf32>
    %13 = vector.broadcast %12 : vector<1x16xf32> to vector<200x16xf32>
    %14 = arith.addf %11, %13 : vector<200x16xf32>
    %cst_14 = arith.constant 0.000000e+00 : f32
    %15 = vector.broadcast %cst_14 : f32 to vector<200x16xf32>
    %16 = arith.maximumf %14, %15 : vector<200x16xf32>
    %17 = arith.truncf %16 : vector<200x16xf32> to vector<200x16xbf16>
    %c0_15 = arith.constant 0 : index
    %c0_16 = arith.constant 0 : index
    %18 = vector.load %arg7[%c0_15, %c0_16] : memref<200x16xbf16, #tpu.memory_space<vmem>>, vector<200x16xbf16>
    tpu.vector_store %arg7[%c0_15, %c0_16], %17 {strides = array<i32>} : memref<200x16xbf16, #tpu.memory_space<vmem>>, vector<200x16xbf16>,
    return
  }
  func.func @transform_0(%arg0: i32) -> (i32, i32) {
    %c0_i32 = arith.constant 0 : i32
    %c0_i32_0 = arith.constant 0 : i32
    return %arg0, %c0_i32 : i32, i32
  }
  func.func @transform_1(%arg0: i32) -> (i32, i32) {
    %c0_i32 = arith.constant 0 : i32
    %c0_i32_0 = arith.constant 0 : i32
    return %arg0, %c0_i32 : i32, i32
  }
  func.func @transform_2(%arg0: i32) -> (i32, i32) {
    %c0_i32 = arith.constant 0 : i32
    %c0_i32_0 = arith.constant 0 : i32
    return %arg0, %c0_i32 : i32, i32
  }
  func.func @transform_3(%arg0: i32) -> (i32, i32) {
    %c0_i32 = arith.constant 0 : i32
    %c0_i32_0 = arith.constant 0 : i32
    return %arg0, %c0_i32 : i32, i32
  }
  func.func @transform_4(%arg0: i32) -> (i32, i32) {
    %c0_i32 = arith.constant 0 : i32
    %c0_i32_0 = arith.constant 0 : i32
    %c0_i32_1 = arith.constant 0 : i32
    return %c0_i32, %c0_i32_0 : i32, i32
  }
  func.func @transform_5(%arg0: i32) -> (i32, i32) {
    %c0_i32 = arith.constant 0 : i32
    %c0_i32_0 = arith.constant 0 : i32
    %c0_i32_1 = arith.constant 0 : i32
    return %c0_i32, %c0_i32_0 : i32, i32
  }
  func.func @transform_6(%arg0: i32) -> (i32, i32) {
    %c0_i32 = arith.constant 0 : i32
    %c0_i32_0 = arith.constant 0 : i32
    return %arg0, %c0_i32 : i32, i32
  }
}

module attributes {stable_mosaic.version = 11 : i64} {
  func.func @_conv3_fc_kernel(%arg0: i32, %arg1: memref<9x2x400xbf16, #tpu.memory_space<vmem>>, %arg2: memref<9x2x400xbf16, #tpu.memory_space<vmem>>, %arg3: memref<9x2x400xbf16, #tpu.memory_space<vmem>>, %arg4: memref<9x2x400xbf16, #tpu.memory_space<vmem>>, %arg5: memref<400x32xbf16, #tpu.memory_space<vmem>>, %arg6: memref<1x32xf32, #tpu.memory_space<vmem>>, %arg7: memref<288x128xbf16, #tpu.memory_space<vmem>>, %arg8: memref<1x128xf32, #tpu.memory_space<vmem>>, %arg9: memref<128x128xbf16, #tpu.memory_space<vmem>>, %arg10: memref<1x128xf32, #tpu.memory_space<vmem>>, %arg11: memref<128x128xbf16, #tpu.memory_space<vmem>>, %arg12: memref<1x128xf32, #tpu.memory_space<vmem>>, %arg13: memref<2x128xf32, #tpu.memory_space<vmem>>) attributes {dimension_semantics = [#tpu.dimension_semantics<parallel>], iteration_bounds = array<i64: 1>, scalar_prefetch = 0 : i64, scratch_operands = 0 : i64, tpu.core_type = #tpu.core_type<tc>, window_params = [{transform_indices = @transform_0, window_bounds = array<i64: 9, 2, 400>}, {transform_indices = @transform_1, window_bounds = array<i64: 9, 2, 400>}, {transform_indices = @transform_2, window_bounds = array<i64: 9, 2, 400>}, {transform_indices = @transform_3, window_bounds = array<i64: 9, 2, 400>}, {pipeline_mode = #tpu.pipeline_mode<synchronous>, transform_indices = @transform_4, window_bounds = array<i64: 400, 32>}, {pipeline_mode = #tpu.pipeline_mode<synchronous>, transform_indices = @transform_5, window_bounds = array<i64: 1, 32>}, {pipeline_mode = #tpu.pipeline_mode<synchronous>, transform_indices = @transform_6, window_bounds = array<i64: 288, 128>}, {pipeline_mode = #tpu.pipeline_mode<synchronous>, transform_indices = @transform_7, window_bounds = array<i64: 1, 128>}, {pipeline_mode = #tpu.pipeline_mode<synchronous>, transform_indices = @transform_8, window_bounds = array<i64: 128, 128>}, {pipeline_mode = #tpu.pipeline_mode<synchronous>, transform_indices = @transform_9, window_bounds = array<i64: 1, 128>}, {pipeline_mode = #tpu.pipeline_mode<synchronous>, transform_indices = @transform_10, window_bounds = array<i64: 128, 128>}, {pipeline_mode = #tpu.pipeline_mode<synchronous>, transform_indices = @transform_11, window_bounds = array<i64: 1, 128>}, {transform_indices = @transform_12, window_bounds = array<i64: 2, 128>}]} {
    %c0 = arith.constant 0 : index
    %c0_0 = arith.constant 0 : index
    %0 = vector.load %arg5[%c0, %c0_0] : memref<400x32xbf16, #tpu.memory_space<vmem>>, vector<400x32xbf16>
    %c0_1 = arith.constant 0 : index
    %c0_2 = arith.constant 0 : index
    %1 = vector.load %arg6[%c0_1, %c0_2] : memref<1x32xf32, #tpu.memory_space<vmem>>, vector<1x32xf32>
    %c0_3 = arith.constant 0 : index
    %c0_4 = arith.constant 0 : index
    %2 = vector.load %arg7[%c0_3, %c0_4] : memref<288x128xbf16, #tpu.memory_space<vmem>>, vector<288x128xbf16>
    %cst = arith.constant 0.000000e+00 : f32
    %3 = vector.broadcast %cst : f32 to vector<2x128xf32>
    %c0_5 = arith.constant 0 : index
    %c0_6 = arith.constant 0 : index
    %c0_7 = arith.constant 0 : index
    %4 = vector.load %arg1[%c0_5, %c0_6, %c0_7] : memref<9x2x400xbf16, #tpu.memory_space<vmem>>, vector<1x2x400xbf16>
    %5 = vector.shape_cast %4 : vector<1x2x400xbf16> to vector<2x400xbf16>
    %cst_8 = arith.constant dense<0.000000e+00> : vector<2x32xf32>
    %6 = tpu.matmul %5, %0, %cst_8 {dimension_numbers = #tpu.dot_dimension_numbers<[1], [0], [0], [1], [0, 0, 1, 1], [], []>} : vector<2x400xbf16>, vector<400x32xbf16>, vector<2x32xf32> -> vector<2x32xf32>
    %c0_9 = arith.constant 0 : index
    %c0_10 = arith.constant 0 : index
    %c0_11 = arith.constant 0 : index
    %7 = vector.load %arg2[%c0_9, %c0_10, %c0_11] : memref<9x2x400xbf16, #tpu.memory_space<vmem>>, vector<1x2x400xbf16>
    %8 = vector.shape_cast %7 : vector<1x2x400xbf16> to vector<2x400xbf16>
    %cst_12 = arith.constant dense<0.000000e+00> : vector<2x32xf32>
    %9 = tpu.matmul %8, %0, %cst_12 {dimension_numbers = #tpu.dot_dimension_numbers<[1], [0], [0], [1], [0, 0, 1, 1], [], []>} : vector<2x400xbf16>, vector<400x32xbf16>, vector<2x32xf32> -> vector<2x32xf32>
    %10 = arith.maximumf %6, %9 : vector<2x32xf32>
    %c0_13 = arith.constant 0 : index
    %c0_14 = arith.constant 0 : index
    %c0_15 = arith.constant 0 : index
    %11 = vector.load %arg3[%c0_13, %c0_14, %c0_15] : memref<9x2x400xbf16, #tpu.memory_space<vmem>>, vector<1x2x400xbf16>
    %12 = vector.shape_cast %11 : vector<1x2x400xbf16> to vector<2x400xbf16>
    %cst_16 = arith.constant dense<0.000000e+00> : vector<2x32xf32>
    %13 = tpu.matmul %12, %0, %cst_16 {dimension_numbers = #tpu.dot_dimension_numbers<[1], [0], [0], [1], [0, 0, 1, 1], [], []>} : vector<2x400xbf16>, vector<400x32xbf16>, vector<2x32xf32> -> vector<2x32xf32>
    %14 = arith.maximumf %10, %13 : vector<2x32xf32>
    %c0_17 = arith.constant 0 : index
    %c0_18 = arith.constant 0 : index
    %c0_19 = arith.constant 0 : index
    %15 = vector.load %arg4[%c0_17, %c0_18, %c0_19] : memref<9x2x400xbf16, #tpu.memory_space<vmem>>, vector<1x2x400xbf16>
    %16 = vector.shape_cast %15 : vector<1x2x400xbf16> to vector<2x400xbf16>
    %cst_20 = arith.constant dense<0.000000e+00> : vector<2x32xf32>
    %17 = tpu.matmul %16, %0, %cst_20 {dimension_numbers = #tpu.dot_dimension_numbers<[1], [0], [0], [1], [0, 0, 1, 1], [], []>} : vector<2x400xbf16>, vector<400x32xbf16>, vector<2x32xf32> -> vector<2x32xf32>
    %18 = arith.maximumf %14, %17 : vector<2x32xf32>
    %19 = vector.broadcast %1 : vector<1x32xf32> to vector<2x32xf32>
    %20 = arith.addf %18, %19 : vector<2x32xf32>
    %cst_21 = arith.constant 0.000000e+00 : f32
    %21 = vector.broadcast %cst_21 : f32 to vector<2x32xf32>
    %22 = arith.maximumf %20, %21 : vector<2x32xf32>
    %23 = arith.truncf %22 : vector<2x32xf32> to vector<2x32xbf16>
    %24 = vector.extract_strided_slice %2 {offsets = [0, 0], sizes = [32, 128], strides = [1, 1]} : vector<288x128xbf16> to vector<32x128xbf16>
    %cst_22 = arith.constant dense<0.000000e+00> : vector<2x128xf32>
    %25 = tpu.matmul %23, %24, %cst_22 {dimension_numbers = #tpu.dot_dimension_numbers<[1], [0], [0], [1], [0, 0, 1, 1], [], []>} : vector<2x32xbf16>, vector<32x128xbf16>, vector<2x128xf32> -> vector<2x128xf32>
    %26 = arith.addf %3, %25 : vector<2x128xf32>
    %c1 = arith.constant 1 : index
    %c0_23 = arith.constant 0 : index
    %c0_24 = arith.constant 0 : index
    %27 = vector.load %arg1[%c1, %c0_23, %c0_24] : memref<9x2x400xbf16, #tpu.memory_space<vmem>>, vector<1x2x400xbf16>
    %28 = vector.shape_cast %27 : vector<1x2x400xbf16> to vector<2x400xbf16>
    %cst_25 = arith.constant dense<0.000000e+00> : vector<2x32xf32>
    %29 = tpu.matmul %28, %0, %cst_25 {dimension_numbers = #tpu.dot_dimension_numbers<[1], [0], [0], [1], [0, 0, 1, 1], [], []>} : vector<2x400xbf16>, vector<400x32xbf16>, vector<2x32xf32> -> vector<2x32xf32>
    %c1_26 = arith.constant 1 : index
    %c0_27 = arith.constant 0 : index
    %c0_28 = arith.constant 0 : index
    %30 = vector.load %arg2[%c1_26, %c0_27, %c0_28] : memref<9x2x400xbf16, #tpu.memory_space<vmem>>, vector<1x2x400xbf16>
    %31 = vector.shape_cast %30 : vector<1x2x400xbf16> to vector<2x400xbf16>
    %cst_29 = arith.constant dense<0.000000e+00> : vector<2x32xf32>
    %32 = tpu.matmul %31, %0, %cst_29 {dimension_numbers = #tpu.dot_dimension_numbers<[1], [0], [0], [1], [0, 0, 1, 1], [], []>} : vector<2x400xbf16>, vector<400x32xbf16>, vector<2x32xf32> -> vector<2x32xf32>
    %33 = arith.maximumf %29, %32 : vector<2x32xf32>
    %c1_30 = arith.constant 1 : index
    %c0_31 = arith.constant 0 : index
    %c0_32 = arith.constant 0 : index
    %34 = vector.load %arg3[%c1_30, %c0_31, %c0_32] : memref<9x2x400xbf16, #tpu.memory_space<vmem>>, vector<1x2x400xbf16>
    %35 = vector.shape_cast %34 : vector<1x2x400xbf16> to vector<2x400xbf16>
    %cst_33 = arith.constant dense<0.000000e+00> : vector<2x32xf32>
    %36 = tpu.matmul %35, %0, %cst_33 {dimension_numbers = #tpu.dot_dimension_numbers<[1], [0], [0], [1], [0, 0, 1, 1], [], []>} : vector<2x400xbf16>, vector<400x32xbf16>, vector<2x32xf32> -> vector<2x32xf32>
    %37 = arith.maximumf %33, %36 : vector<2x32xf32>
    %c1_34 = arith.constant 1 : index
    %c0_35 = arith.constant 0 : index
    %c0_36 = arith.constant 0 : index
    %38 = vector.load %arg4[%c1_34, %c0_35, %c0_36] : memref<9x2x400xbf16, #tpu.memory_space<vmem>>, vector<1x2x400xbf16>
    %39 = vector.shape_cast %38 : vector<1x2x400xbf16> to vector<2x400xbf16>
    %cst_37 = arith.constant dense<0.000000e+00> : vector<2x32xf32>
    %40 = tpu.matmul %39, %0, %cst_37 {dimension_numbers = #tpu.dot_dimension_numbers<[1], [0], [0], [1], [0, 0, 1, 1], [], []>} : vector<2x400xbf16>, vector<400x32xbf16>, vector<2x32xf32> -> vector<2x32xf32>
    %41 = arith.maximumf %37, %40 : vector<2x32xf32>
    %42 = vector.broadcast %1 : vector<1x32xf32> to vector<2x32xf32>
    %43 = arith.addf %41, %42 : vector<2x32xf32>
    %cst_38 = arith.constant 0.000000e+00 : f32
    %44 = vector.broadcast %cst_38 : f32 to vector<2x32xf32>
    %45 = arith.maximumf %43, %44 : vector<2x32xf32>
    %46 = arith.truncf %45 : vector<2x32xf32> to vector<2x32xbf16>
    %47 = vector.extract_strided_slice %2 {offsets = [32, 0], sizes = [32, 128], strides = [1, 1]} : vector<288x128xbf16> to vector<32x128xbf16>
    %cst_39 = arith.constant dense<0.000000e+00> : vector<2x128xf32>
    %48 = tpu.matmul %46, %47, %cst_39 {dimension_numbers = #tpu.dot_dimension_numbers<[1], [0], [0], [1], [0, 0, 1, 1], [], []>} : vector<2x32xbf16>, vector<32x128xbf16>, vector<2x128xf32> -> vector<2x128xf32>
    %49 = arith.addf %26, %48 : vector<2x128xf32>
    %c2 = arith.constant 2 : index
    %c0_40 = arith.constant 0 : index
    %c0_41 = arith.constant 0 : index
    %50 = vector.load %arg1[%c2, %c0_40, %c0_41] : memref<9x2x400xbf16, #tpu.memory_space<vmem>>, vector<1x2x400xbf16>
    %51 = vector.shape_cast %50 : vector<1x2x400xbf16> to vector<2x400xbf16>
    %cst_42 = arith.constant dense<0.000000e+00> : vector<2x32xf32>
    %52 = tpu.matmul %51, %0, %cst_42 {dimension_numbers = #tpu.dot_dimension_numbers<[1], [0], [0], [1], [0, 0, 1, 1], [], []>} : vector<2x400xbf16>, vector<400x32xbf16>, vector<2x32xf32> -> vector<2x32xf32>
    %c2_43 = arith.constant 2 : index
    %c0_44 = arith.constant 0 : index
    %c0_45 = arith.constant 0 : index
    %53 = vector.load %arg2[%c2_43, %c0_44, %c0_45] : memref<9x2x400xbf16, #tpu.memory_space<vmem>>, vector<1x2x400xbf16>
    %54 = vector.shape_cast %53 : vector<1x2x400xbf16> to vector<2x400xbf16>
    %cst_46 = arith.constant dense<0.000000e+00> : vector<2x32xf32>
    %55 = tpu.matmul %54, %0, %cst_46 {dimension_numbers = #tpu.dot_dimension_numbers<[1], [0], [0], [1], [0, 0, 1, 1], [], []>} : vector<2x400xbf16>, vector<400x32xbf16>, vector<2x32xf32> -> vector<2x32xf32>
    %56 = arith.maximumf %52, %55 : vector<2x32xf32>
    %c2_47 = arith.constant 2 : index
    %c0_48 = arith.constant 0 : index
    %c0_49 = arith.constant 0 : index
    %57 = vector.load %arg3[%c2_47, %c0_48, %c0_49] : memref<9x2x400xbf16, #tpu.memory_space<vmem>>, vector<1x2x400xbf16>
    %58 = vector.shape_cast %57 : vector<1x2x400xbf16> to vector<2x400xbf16>
    %cst_50 = arith.constant dense<0.000000e+00> : vector<2x32xf32>
    %59 = tpu.matmul %58, %0, %cst_50 {dimension_numbers = #tpu.dot_dimension_numbers<[1], [0], [0], [1], [0, 0, 1, 1], [], []>} : vector<2x400xbf16>, vector<400x32xbf16>, vector<2x32xf32> -> vector<2x32xf32>
    %60 = arith.maximumf %56, %59 : vector<2x32xf32>
    %c2_51 = arith.constant 2 : index
    %c0_52 = arith.constant 0 : index
    %c0_53 = arith.constant 0 : index
    %61 = vector.load %arg4[%c2_51, %c0_52, %c0_53] : memref<9x2x400xbf16, #tpu.memory_space<vmem>>, vector<1x2x400xbf16>
    %62 = vector.shape_cast %61 : vector<1x2x400xbf16> to vector<2x400xbf16>
    %cst_54 = arith.constant dense<0.000000e+00> : vector<2x32xf32>
    %63 = tpu.matmul %62, %0, %cst_54 {dimension_numbers = #tpu.dot_dimension_numbers<[1], [0], [0], [1], [0, 0, 1, 1], [], []>} : vector<2x400xbf16>, vector<400x32xbf16>, vector<2x32xf32> -> vector<2x32xf32>
    %64 = arith.maximumf %60, %63 : vector<2x32xf32>
    %65 = vector.broadcast %1 : vector<1x32xf32> to vector<2x32xf32>
    %66 = arith.addf %64, %65 : vector<2x32xf32>
    %cst_55 = arith.constant 0.000000e+00 : f32
    %67 = vector.broadcast %cst_55 : f32 to vector<2x32xf32>
    %68 = arith.maximumf %66, %67 : vector<2x32xf32>
    %69 = arith.truncf %68 : vector<2x32xf32> to vector<2x32xbf16>
    %70 = vector.extract_strided_slice %2 {offsets = [64, 0], sizes = [32, 128], strides = [1, 1]} : vector<288x128xbf16> to vector<32x128xbf16>
    %cst_56 = arith.constant dense<0.000000e+00> : vector<2x128xf32>
    %71 = tpu.matmul %69, %70, %cst_56 {dimension_numbers = #tpu.dot_dimension_numbers<[1], [0], [0], [1], [0, 0, 1, 1], [], []>} : vector<2x32xbf16>, vector<32x128xbf16>, vector<2x128xf32> -> vector<2x128xf32>
    %72 = arith.addf %49, %71 : vector<2x128xf32>
    %c3 = arith.constant 3 : index
    %c0_57 = arith.constant 0 : index
    %c0_58 = arith.constant 0 : index
    %73 = vector.load %arg1[%c3, %c0_57, %c0_58] : memref<9x2x400xbf16, #tpu.memory_space<vmem>>, vector<1x2x400xbf16>
    %74 = vector.shape_cast %73 : vector<1x2x400xbf16> to vector<2x400xbf16>
    %cst_59 = arith.constant dense<0.000000e+00> : vector<2x32xf32>
    %75 = tpu.matmul %74, %0, %cst_59 {dimension_numbers = #tpu.dot_dimension_numbers<[1], [0], [0], [1], [0, 0, 1, 1], [], []>} : vector<2x400xbf16>, vector<400x32xbf16>, vector<2x32xf32> -> vector<2x32xf32>
    %c3_60 = arith.constant 3 : index
    %c0_61 = arith.constant 0 : index
    %c0_62 = arith.constant 0 : index
    %76 = vector.load %arg2[%c3_60, %c0_61, %c0_62] : memref<9x2x400xbf16, #tpu.memory_space<vmem>>, vector<1x2x400xbf16>
    %77 = vector.shape_cast %76 : vector<1x2x400xbf16> to vector<2x400xbf16>
    %cst_63 = arith.constant dense<0.000000e+00> : vector<2x32xf32>
    %78 = tpu.matmul %77, %0, %cst_63 {dimension_numbers = #tpu.dot_dimension_numbers<[1], [0], [0], [1], [0, 0, 1, 1], [], []>} : vector<2x400xbf16>, vector<400x32xbf16>, vector<2x32xf32> -> vector<2x32xf32>
    %79 = arith.maximumf %75, %78 : vector<2x32xf32>
    %c3_64 = arith.constant 3 : index
    %c0_65 = arith.constant 0 : index
    %c0_66 = arith.constant 0 : index
    %80 = vector.load %arg3[%c3_64, %c0_65, %c0_66] : memref<9x2x400xbf16, #tpu.memory_space<vmem>>, vector<1x2x400xbf16>
    %81 = vector.shape_cast %80 : vector<1x2x400xbf16> to vector<2x400xbf16>
    %cst_67 = arith.constant dense<0.000000e+00> : vector<2x32xf32>
    %82 = tpu.matmul %81, %0, %cst_67 {dimension_numbers = #tpu.dot_dimension_numbers<[1], [0], [0], [1], [0, 0, 1, 1], [], []>} : vector<2x400xbf16>, vector<400x32xbf16>, vector<2x32xf32> -> vector<2x32xf32>
    %83 = arith.maximumf %79, %82 : vector<2x32xf32>
    %c3_68 = arith.constant 3 : index
    %c0_69 = arith.constant 0 : index
    %c0_70 = arith.constant 0 : index
    %84 = vector.load %arg4[%c3_68, %c0_69, %c0_70] : memref<9x2x400xbf16, #tpu.memory_space<vmem>>, vector<1x2x400xbf16>
    %85 = vector.shape_cast %84 : vector<1x2x400xbf16> to vector<2x400xbf16>
    %cst_71 = arith.constant dense<0.000000e+00> : vector<2x32xf32>
    %86 = tpu.matmul %85, %0, %cst_71 {dimension_numbers = #tpu.dot_dimension_numbers<[1], [0], [0], [1], [0, 0, 1, 1], [], []>} : vector<2x400xbf16>, vector<400x32xbf16>, vector<2x32xf32> -> vector<2x32xf32>
    %87 = arith.maximumf %83, %86 : vector<2x32xf32>
    %88 = vector.broadcast %1 : vector<1x32xf32> to vector<2x32xf32>
    %89 = arith.addf %87, %88 : vector<2x32xf32>
    %cst_72 = arith.constant 0.000000e+00 : f32
    %90 = vector.broadcast %cst_72 : f32 to vector<2x32xf32>
    %91 = arith.maximumf %89, %90 : vector<2x32xf32>
    %92 = arith.truncf %91 : vector<2x32xf32> to vector<2x32xbf16>
    %93 = vector.extract_strided_slice %2 {offsets = [96, 0], sizes = [32, 128], strides = [1, 1]} : vector<288x128xbf16> to vector<32x128xbf16>
    %cst_73 = arith.constant dense<0.000000e+00> : vector<2x128xf32>
    %94 = tpu.matmul %92, %93, %cst_73 {dimension_numbers = #tpu.dot_dimension_numbers<[1], [0], [0], [1], [0, 0, 1, 1], [], []>} : vector<2x32xbf16>, vector<32x128xbf16>, vector<2x128xf32> -> vector<2x128xf32>
    %95 = arith.addf %72, %94 : vector<2x128xf32>
    %c4 = arith.constant 4 : index
    %c0_74 = arith.constant 0 : index
    %c0_75 = arith.constant 0 : index
    %96 = vector.load %arg1[%c4, %c0_74, %c0_75] : memref<9x2x400xbf16, #tpu.memory_space<vmem>>, vector<1x2x400xbf16>
    %97 = vector.shape_cast %96 : vector<1x2x400xbf16> to vector<2x400xbf16>
    %cst_76 = arith.constant dense<0.000000e+00> : vector<2x32xf32>
    %98 = tpu.matmul %97, %0, %cst_76 {dimension_numbers = #tpu.dot_dimension_numbers<[1], [0], [0], [1], [0, 0, 1, 1], [], []>} : vector<2x400xbf16>, vector<400x32xbf16>, vector<2x32xf32> -> vector<2x32xf32>
    %c4_77 = arith.constant 4 : index
    %c0_78 = arith.constant 0 : index
    %c0_79 = arith.constant 0 : index
    %99 = vector.load %arg2[%c4_77, %c0_78, %c0_79] : memref<9x2x400xbf16, #tpu.memory_space<vmem>>, vector<1x2x400xbf16>
    %100 = vector.shape_cast %99 : vector<1x2x400xbf16> to vector<2x400xbf16>
    %cst_80 = arith.constant dense<0.000000e+00> : vector<2x32xf32>
    %101 = tpu.matmul %100, %0, %cst_80 {dimension_numbers = #tpu.dot_dimension_numbers<[1], [0], [0], [1], [0, 0, 1, 1], [], []>} : vector<2x400xbf16>, vector<400x32xbf16>, vector<2x32xf32> -> vector<2x32xf32>
    %102 = arith.maximumf %98, %101 : vector<2x32xf32>
    %c4_81 = arith.constant 4 : index
    %c0_82 = arith.constant 0 : index
    %c0_83 = arith.constant 0 : index
    %103 = vector.load %arg3[%c4_81, %c0_82, %c0_83] : memref<9x2x400xbf16, #tpu.memory_space<vmem>>, vector<1x2x400xbf16>
    %104 = vector.shape_cast %103 : vector<1x2x400xbf16> to vector<2x400xbf16>
    %cst_84 = arith.constant dense<0.000000e+00> : vector<2x32xf32>
    %105 = tpu.matmul %104, %0, %cst_84 {dimension_numbers = #tpu.dot_dimension_numbers<[1], [0], [0], [1], [0, 0, 1, 1], [], []>} : vector<2x400xbf16>, vector<400x32xbf16>, vector<2x32xf32> -> vector<2x32xf32>
    %106 = arith.maximumf %102, %105 : vector<2x32xf32>
    %c4_85 = arith.constant 4 : index
    %c0_86 = arith.constant 0 : index
    %c0_87 = arith.constant 0 : index
    %107 = vector.load %arg4[%c4_85, %c0_86, %c0_87] : memref<9x2x400xbf16, #tpu.memory_space<vmem>>, vector<1x2x400xbf16>
    %108 = vector.shape_cast %107 : vector<1x2x400xbf16> to vector<2x400xbf16>
    %cst_88 = arith.constant dense<0.000000e+00> : vector<2x32xf32>
    %109 = tpu.matmul %108, %0, %cst_88 {dimension_numbers = #tpu.dot_dimension_numbers<[1], [0], [0], [1], [0, 0, 1, 1], [], []>} : vector<2x400xbf16>, vector<400x32xbf16>, vector<2x32xf32> -> vector<2x32xf32>
    %110 = arith.maximumf %106, %109 : vector<2x32xf32>
    %111 = vector.broadcast %1 : vector<1x32xf32> to vector<2x32xf32>
    %112 = arith.addf %110, %111 : vector<2x32xf32>
    %cst_89 = arith.constant 0.000000e+00 : f32
    %113 = vector.broadcast %cst_89 : f32 to vector<2x32xf32>
    %114 = arith.maximumf %112, %113 : vector<2x32xf32>
    %115 = arith.truncf %114 : vector<2x32xf32> to vector<2x32xbf16>
    %116 = vector.extract_strided_slice %2 {offsets = [128, 0], sizes = [32, 128], strides = [1, 1]} : vector<288x128xbf16> to vector<32x128xbf16>
    %cst_90 = arith.constant dense<0.000000e+00> : vector<2x128xf32>
    %117 = tpu.matmul %115, %116, %cst_90 {dimension_numbers = #tpu.dot_dimension_numbers<[1], [0], [0], [1], [0, 0, 1, 1], [], []>} : vector<2x32xbf16>, vector<32x128xbf16>, vector<2x128xf32> -> vector<2x128xf32>
    %118 = arith.addf %95, %117 : vector<2x128xf32>
    %c5 = arith.constant 5 : index
    %c0_91 = arith.constant 0 : index
    %c0_92 = arith.constant 0 : index
    %119 = vector.load %arg1[%c5, %c0_91, %c0_92] : memref<9x2x400xbf16, #tpu.memory_space<vmem>>, vector<1x2x400xbf16>
    %120 = vector.shape_cast %119 : vector<1x2x400xbf16> to vector<2x400xbf16>
    %cst_93 = arith.constant dense<0.000000e+00> : vector<2x32xf32>
    %121 = tpu.matmul %120, %0, %cst_93 {dimension_numbers = #tpu.dot_dimension_numbers<[1], [0], [0], [1], [0, 0, 1, 1], [], []>} : vector<2x400xbf16>, vector<400x32xbf16>, vector<2x32xf32> -> vector<2x32xf32>
    %c5_94 = arith.constant 5 : index
    %c0_95 = arith.constant 0 : index
    %c0_96 = arith.constant 0 : index
    %122 = vector.load %arg2[%c5_94, %c0_95, %c0_96] : memref<9x2x400xbf16, #tpu.memory_space<vmem>>, vector<1x2x400xbf16>
    %123 = vector.shape_cast %122 : vector<1x2x400xbf16> to vector<2x400xbf16>
    %cst_97 = arith.constant dense<0.000000e+00> : vector<2x32xf32>
    %124 = tpu.matmul %123, %0, %cst_97 {dimension_numbers = #tpu.dot_dimension_numbers<[1], [0], [0], [1], [0, 0, 1, 1], [], []>} : vector<2x400xbf16>, vector<400x32xbf16>, vector<2x32xf32> -> vector<2x32xf32>
    %125 = arith.maximumf %121, %124 : vector<2x32xf32>
    %c5_98 = arith.constant 5 : index
    %c0_99 = arith.constant 0 : index
    %c0_100 = arith.constant 0 : index
    %126 = vector.load %arg3[%c5_98, %c0_99, %c0_100] : memref<9x2x400xbf16, #tpu.memory_space<vmem>>, vector<1x2x400xbf16>
    %127 = vector.shape_cast %126 : vector<1x2x400xbf16> to vector<2x400xbf16>
    %cst_101 = arith.constant dense<0.000000e+00> : vector<2x32xf32>
    %128 = tpu.matmul %127, %0, %cst_101 {dimension_numbers = #tpu.dot_dimension_numbers<[1], [0], [0], [1], [0, 0, 1, 1], [], []>} : vector<2x400xbf16>, vector<400x32xbf16>, vector<2x32xf32> -> vector<2x32xf32>
    %129 = arith.maximumf %125, %128 : vector<2x32xf32>
    %c5_102 = arith.constant 5 : index
    %c0_103 = arith.constant 0 : index
    %c0_104 = arith.constant 0 : index
    %130 = vector.load %arg4[%c5_102, %c0_103, %c0_104] : memref<9x2x400xbf16, #tpu.memory_space<vmem>>, vector<1x2x400xbf16>
    %131 = vector.shape_cast %130 : vector<1x2x400xbf16> to vector<2x400xbf16>
    %cst_105 = arith.constant dense<0.000000e+00> : vector<2x32xf32>
    %132 = tpu.matmul %131, %0, %cst_105 {dimension_numbers = #tpu.dot_dimension_numbers<[1], [0], [0], [1], [0, 0, 1, 1], [], []>} : vector<2x400xbf16>, vector<400x32xbf16>, vector<2x32xf32> -> vector<2x32xf32>
    %133 = arith.maximumf %129, %132 : vector<2x32xf32>
    %134 = vector.broadcast %1 : vector<1x32xf32> to vector<2x32xf32>
    %135 = arith.addf %133, %134 : vector<2x32xf32>
    %cst_106 = arith.constant 0.000000e+00 : f32
    %136 = vector.broadcast %cst_106 : f32 to vector<2x32xf32>
    %137 = arith.maximumf %135, %136 : vector<2x32xf32>
    %138 = arith.truncf %137 : vector<2x32xf32> to vector<2x32xbf16>
    %139 = vector.extract_strided_slice %2 {offsets = [160, 0], sizes = [32, 128], strides = [1, 1]} : vector<288x128xbf16> to vector<32x128xbf16>
    %cst_107 = arith.constant dense<0.000000e+00> : vector<2x128xf32>
    %140 = tpu.matmul %138, %139, %cst_107 {dimension_numbers = #tpu.dot_dimension_numbers<[1], [0], [0], [1], [0, 0, 1, 1], [], []>} : vector<2x32xbf16>, vector<32x128xbf16>, vector<2x128xf32> -> vector<2x128xf32>
    %141 = arith.addf %118, %140 : vector<2x128xf32>
    %c6 = arith.constant 6 : index
    %c0_108 = arith.constant 0 : index
    %c0_109 = arith.constant 0 : index
    %142 = vector.load %arg1[%c6, %c0_108, %c0_109] : memref<9x2x400xbf16, #tpu.memory_space<vmem>>, vector<1x2x400xbf16>
    %143 = vector.shape_cast %142 : vector<1x2x400xbf16> to vector<2x400xbf16>
    %cst_110 = arith.constant dense<0.000000e+00> : vector<2x32xf32>
    %144 = tpu.matmul %143, %0, %cst_110 {dimension_numbers = #tpu.dot_dimension_numbers<[1], [0], [0], [1], [0, 0, 1, 1], [], []>} : vector<2x400xbf16>, vector<400x32xbf16>, vector<2x32xf32> -> vector<2x32xf32>
    %c6_111 = arith.constant 6 : index
    %c0_112 = arith.constant 0 : index
    %c0_113 = arith.constant 0 : index
    %145 = vector.load %arg2[%c6_111, %c0_112, %c0_113] : memref<9x2x400xbf16, #tpu.memory_space<vmem>>, vector<1x2x400xbf16>
    %146 = vector.shape_cast %145 : vector<1x2x400xbf16> to vector<2x400xbf16>
    %cst_114 = arith.constant dense<0.000000e+00> : vector<2x32xf32>
    %147 = tpu.matmul %146, %0, %cst_114 {dimension_numbers = #tpu.dot_dimension_numbers<[1], [0], [0], [1], [0, 0, 1, 1], [], []>} : vector<2x400xbf16>, vector<400x32xbf16>, vector<2x32xf32> -> vector<2x32xf32>
    %148 = arith.maximumf %144, %147 : vector<2x32xf32>
    %c6_115 = arith.constant 6 : index
    %c0_116 = arith.constant 0 : index
    %c0_117 = arith.constant 0 : index
    %149 = vector.load %arg3[%c6_115, %c0_116, %c0_117] : memref<9x2x400xbf16, #tpu.memory_space<vmem>>, vector<1x2x400xbf16>
    %150 = vector.shape_cast %149 : vector<1x2x400xbf16> to vector<2x400xbf16>
    %cst_118 = arith.constant dense<0.000000e+00> : vector<2x32xf32>
    %151 = tpu.matmul %150, %0, %cst_118 {dimension_numbers = #tpu.dot_dimension_numbers<[1], [0], [0], [1], [0, 0, 1, 1], [], []>} : vector<2x400xbf16>, vector<400x32xbf16>, vector<2x32xf32> -> vector<2x32xf32>
    %152 = arith.maximumf %148, %151 : vector<2x32xf32>
    %c6_119 = arith.constant 6 : index
    %c0_120 = arith.constant 0 : index
    %c0_121 = arith.constant 0 : index
    %153 = vector.load %arg4[%c6_119, %c0_120, %c0_121] : memref<9x2x400xbf16, #tpu.memory_space<vmem>>, vector<1x2x400xbf16>
    %154 = vector.shape_cast %153 : vector<1x2x400xbf16> to vector<2x400xbf16>
    %cst_122 = arith.constant dense<0.000000e+00> : vector<2x32xf32>
    %155 = tpu.matmul %154, %0, %cst_122 {dimension_numbers = #tpu.dot_dimension_numbers<[1], [0], [0], [1], [0, 0, 1, 1], [], []>} : vector<2x400xbf16>, vector<400x32xbf16>, vector<2x32xf32> -> vector<2x32xf32>
    %156 = arith.maximumf %152, %155 : vector<2x32xf32>
    %157 = vector.broadcast %1 : vector<1x32xf32> to vector<2x32xf32>
    %158 = arith.addf %156, %157 : vector<2x32xf32>
    %cst_123 = arith.constant 0.000000e+00 : f32
    %159 = vector.broadcast %cst_123 : f32 to vector<2x32xf32>
    %160 = arith.maximumf %158, %159 : vector<2x32xf32>
    %161 = arith.truncf %160 : vector<2x32xf32> to vector<2x32xbf16>
    %162 = vector.extract_strided_slice %2 {offsets = [192, 0], sizes = [32, 128], strides = [1, 1]} : vector<288x128xbf16> to vector<32x128xbf16>
    %cst_124 = arith.constant dense<0.000000e+00> : vector<2x128xf32>
    %163 = tpu.matmul %161, %162, %cst_124 {dimension_numbers = #tpu.dot_dimension_numbers<[1], [0], [0], [1], [0, 0, 1, 1], [], []>} : vector<2x32xbf16>, vector<32x128xbf16>, vector<2x128xf32> -> vector<2x128xf32>
    %164 = arith.addf %141, %163 : vector<2x128xf32>
    %c7 = arith.constant 7 : index
    %c0_125 = arith.constant 0 : index
    %c0_126 = arith.constant 0 : index
    %165 = vector.load %arg1[%c7, %c0_125, %c0_126] : memref<9x2x400xbf16, #tpu.memory_space<vmem>>, vector<1x2x400xbf16>
    %166 = vector.shape_cast %165 : vector<1x2x400xbf16> to vector<2x400xbf16>
    %cst_127 = arith.constant dense<0.000000e+00> : vector<2x32xf32>
    %167 = tpu.matmul %166, %0, %cst_127 {dimension_numbers = #tpu.dot_dimension_numbers<[1], [0], [0], [1], [0, 0, 1, 1], [], []>} : vector<2x400xbf16>, vector<400x32xbf16>, vector<2x32xf32> -> vector<2x32xf32>
    %c7_128 = arith.constant 7 : index
    %c0_129 = arith.constant 0 : index
    %c0_130 = arith.constant 0 : index
    %168 = vector.load %arg2[%c7_128, %c0_129, %c0_130] : memref<9x2x400xbf16, #tpu.memory_space<vmem>>, vector<1x2x400xbf16>
    %169 = vector.shape_cast %168 : vector<1x2x400xbf16> to vector<2x400xbf16>
    %cst_131 = arith.constant dense<0.000000e+00> : vector<2x32xf32>
    %170 = tpu.matmul %169, %0, %cst_131 {dimension_numbers = #tpu.dot_dimension_numbers<[1], [0], [0], [1], [0, 0, 1, 1], [], []>} : vector<2x400xbf16>, vector<400x32xbf16>, vector<2x32xf32> -> vector<2x32xf32>
    %171 = arith.maximumf %167, %170 : vector<2x32xf32>
    %c7_132 = arith.constant 7 : index
    %c0_133 = arith.constant 0 : index
    %c0_134 = arith.constant 0 : index
    %172 = vector.load %arg3[%c7_132, %c0_133, %c0_134] : memref<9x2x400xbf16, #tpu.memory_space<vmem>>, vector<1x2x400xbf16>
    %173 = vector.shape_cast %172 : vector<1x2x400xbf16> to vector<2x400xbf16>
    %cst_135 = arith.constant dense<0.000000e+00> : vector<2x32xf32>
    %174 = tpu.matmul %173, %0, %cst_135 {dimension_numbers = #tpu.dot_dimension_numbers<[1], [0], [0], [1], [0, 0, 1, 1], [], []>} : vector<2x400xbf16>, vector<400x32xbf16>, vector<2x32xf32> -> vector<2x32xf32>
    %175 = arith.maximumf %171, %174 : vector<2x32xf32>
    %c7_136 = arith.constant 7 : index
    %c0_137 = arith.constant 0 : index
    %c0_138 = arith.constant 0 : index
    %176 = vector.load %arg4[%c7_136, %c0_137, %c0_138] : memref<9x2x400xbf16, #tpu.memory_space<vmem>>, vector<1x2x400xbf16>
    %177 = vector.shape_cast %176 : vector<1x2x400xbf16> to vector<2x400xbf16>
    %cst_139 = arith.constant dense<0.000000e+00> : vector<2x32xf32>
    %178 = tpu.matmul %177, %0, %cst_139 {dimension_numbers = #tpu.dot_dimension_numbers<[1], [0], [0], [1], [0, 0, 1, 1], [], []>} : vector<2x400xbf16>, vector<400x32xbf16>, vector<2x32xf32> -> vector<2x32xf32>
    %179 = arith.maximumf %175, %178 : vector<2x32xf32>
    %180 = vector.broadcast %1 : vector<1x32xf32> to vector<2x32xf32>
    %181 = arith.addf %179, %180 : vector<2x32xf32>
    %cst_140 = arith.constant 0.000000e+00 : f32
    %182 = vector.broadcast %cst_140 : f32 to vector<2x32xf32>
    %183 = arith.maximumf %181, %182 : vector<2x32xf32>
    %184 = arith.truncf %183 : vector<2x32xf32> to vector<2x32xbf16>
    %185 = vector.extract_strided_slice %2 {offsets = [224, 0], sizes = [32, 128], strides = [1, 1]} : vector<288x128xbf16> to vector<32x128xbf16>
    %cst_141 = arith.constant dense<0.000000e+00> : vector<2x128xf32>
    %186 = tpu.matmul %184, %185, %cst_141 {dimension_numbers = #tpu.dot_dimension_numbers<[1], [0], [0], [1], [0, 0, 1, 1], [], []>} : vector<2x32xbf16>, vector<32x128xbf16>, vector<2x128xf32> -> vector<2x128xf32>
    %187 = arith.addf %164, %186 : vector<2x128xf32>
    %c8 = arith.constant 8 : index
    %c0_142 = arith.constant 0 : index
    %c0_143 = arith.constant 0 : index
    %188 = vector.load %arg1[%c8, %c0_142, %c0_143] : memref<9x2x400xbf16, #tpu.memory_space<vmem>>, vector<1x2x400xbf16>
    %189 = vector.shape_cast %188 : vector<1x2x400xbf16> to vector<2x400xbf16>
    %cst_144 = arith.constant dense<0.000000e+00> : vector<2x32xf32>
    %190 = tpu.matmul %189, %0, %cst_144 {dimension_numbers = #tpu.dot_dimension_numbers<[1], [0], [0], [1], [0, 0, 1, 1], [], []>} : vector<2x400xbf16>, vector<400x32xbf16>, vector<2x32xf32> -> vector<2x32xf32>
    %c8_145 = arith.constant 8 : index
    %c0_146 = arith.constant 0 : index
    %c0_147 = arith.constant 0 : index
    %191 = vector.load %arg2[%c8_145, %c0_146, %c0_147] : memref<9x2x400xbf16, #tpu.memory_space<vmem>>, vector<1x2x400xbf16>
    %192 = vector.shape_cast %191 : vector<1x2x400xbf16> to vector<2x400xbf16>
    %cst_148 = arith.constant dense<0.000000e+00> : vector<2x32xf32>
    %193 = tpu.matmul %192, %0, %cst_148 {dimension_numbers = #tpu.dot_dimension_numbers<[1], [0], [0], [1], [0, 0, 1, 1], [], []>} : vector<2x400xbf16>, vector<400x32xbf16>, vector<2x32xf32> -> vector<2x32xf32>
    %194 = arith.maximumf %190, %193 : vector<2x32xf32>
    %c8_149 = arith.constant 8 : index
    %c0_150 = arith.constant 0 : index
    %c0_151 = arith.constant 0 : index
    %195 = vector.load %arg3[%c8_149, %c0_150, %c0_151] : memref<9x2x400xbf16, #tpu.memory_space<vmem>>, vector<1x2x400xbf16>
    %196 = vector.shape_cast %195 : vector<1x2x400xbf16> to vector<2x400xbf16>
    %cst_152 = arith.constant dense<0.000000e+00> : vector<2x32xf32>
    %197 = tpu.matmul %196, %0, %cst_152 {dimension_numbers = #tpu.dot_dimension_numbers<[1], [0], [0], [1], [0, 0, 1, 1], [], []>} : vector<2x400xbf16>, vector<400x32xbf16>, vector<2x32xf32> -> vector<2x32xf32>
    %198 = arith.maximumf %194, %197 : vector<2x32xf32>
    %c8_153 = arith.constant 8 : index
    %c0_154 = arith.constant 0 : index
    %c0_155 = arith.constant 0 : index
    %199 = vector.load %arg4[%c8_153, %c0_154, %c0_155] : memref<9x2x400xbf16, #tpu.memory_space<vmem>>, vector<1x2x400xbf16>
    %200 = vector.shape_cast %199 : vector<1x2x400xbf16> to vector<2x400xbf16>
    %cst_156 = arith.constant dense<0.000000e+00> : vector<2x32xf32>
    %201 = tpu.matmul %200, %0, %cst_156 {dimension_numbers = #tpu.dot_dimension_numbers<[1], [0], [0], [1], [0, 0, 1, 1], [], []>} : vector<2x400xbf16>, vector<400x32xbf16>, vector<2x32xf32> -> vector<2x32xf32>
    %202 = arith.maximumf %198, %201 : vector<2x32xf32>
    %203 = vector.broadcast %1 : vector<1x32xf32> to vector<2x32xf32>
    %204 = arith.addf %202, %203 : vector<2x32xf32>
    %cst_157 = arith.constant 0.000000e+00 : f32
    %205 = vector.broadcast %cst_157 : f32 to vector<2x32xf32>
    %206 = arith.maximumf %204, %205 : vector<2x32xf32>
    %207 = arith.truncf %206 : vector<2x32xf32> to vector<2x32xbf16>
    %208 = vector.extract_strided_slice %2 {offsets = [256, 0], sizes = [32, 128], strides = [1, 1]} : vector<288x128xbf16> to vector<32x128xbf16>
    %cst_158 = arith.constant dense<0.000000e+00> : vector<2x128xf32>
    %209 = tpu.matmul %207, %208, %cst_158 {dimension_numbers = #tpu.dot_dimension_numbers<[1], [0], [0], [1], [0, 0, 1, 1], [], []>} : vector<2x32xbf16>, vector<32x128xbf16>, vector<2x128xf32> -> vector<2x128xf32>
    %210 = arith.addf %187, %209 : vector<2x128xf32>
    %c0_159 = arith.constant 0 : index
    %c0_160 = arith.constant 0 : index
    %211 = vector.load %arg8[%c0_159, %c0_160] : memref<1x128xf32, #tpu.memory_space<vmem>>, vector<1x128xf32>
    %212 = vector.broadcast %211 : vector<1x128xf32> to vector<2x128xf32>
    %213 = arith.addf %210, %212 : vector<2x128xf32>
    %cst_161 = arith.constant 0.000000e+00 : f32
    %214 = vector.broadcast %cst_161 : f32 to vector<2x128xf32>
    %215 = arith.maximumf %213, %214 : vector<2x128xf32>
    %216 = arith.truncf %215 : vector<2x128xf32> to vector<2x128xbf16>
    %c0_162 = arith.constant 0 : index
    %c0_163 = arith.constant 0 : index
    %217 = vector.load %arg9[%c0_162, %c0_163] : memref<128x128xbf16, #tpu.memory_space<vmem>>, vector<128x128xbf16>
    %cst_164 = arith.constant dense<0.000000e+00> : vector<2x128xf32>
    %218 = tpu.matmul %216, %217, %cst_164 {dimension_numbers = #tpu.dot_dimension_numbers<[1], [0], [0], [1], [0, 0, 1, 1], [], []>} : vector<2x128xbf16>, vector<128x128xbf16>, vector<2x128xf32> -> vector<2x128xf32>
    %c0_165 = arith.constant 0 : index
    %c0_166 = arith.constant 0 : index
    %219 = vector.load %arg10[%c0_165, %c0_166] : memref<1x128xf32, #tpu.memory_space<vmem>>, vector<1x128xf32>
    %220 = vector.broadcast %219 : vector<1x128xf32> to vector<2x128xf32>
    %221 = arith.addf %218, %220 : vector<2x128xf32>
    %cst_167 = arith.constant 0.000000e+00 : f32
    %222 = vector.broadcast %cst_167 : f32 to vector<2x128xf32>
    %223 = arith.maximumf %221, %222 : vector<2x128xf32>
    %224 = arith.truncf %223 : vector<2x128xf32> to vector<2x128xbf16>
    %c0_168 = arith.constant 0 : index
    %c0_169 = arith.constant 0 : index
    %225 = vector.load %arg11[%c0_168, %c0_169] : memref<128x128xbf16, #tpu.memory_space<vmem>>, vector<128x128xbf16>
    %cst_170 = arith.constant dense<0.000000e+00> : vector<2x128xf32>
    %226 = tpu.matmul %224, %225, %cst_170 {dimension_numbers = #tpu.dot_dimension_numbers<[1], [0], [0], [1], [0, 0, 1, 1], [], []>} : vector<2x128xbf16>, vector<128x128xbf16>, vector<2x128xf32> -> vector<2x128xf32>
    %c0_171 = arith.constant 0 : index
    %c0_172 = arith.constant 0 : index
    %227 = vector.load %arg12[%c0_171, %c0_172] : memref<1x128xf32, #tpu.memory_space<vmem>>, vector<1x128xf32>
    %228 = vector.broadcast %227 : vector<1x128xf32> to vector<2x128xf32>
    %229 = arith.addf %226, %228 : vector<2x128xf32>
    %cst_173 = arith.constant dense<0xFF800000> : vector<2xf32>
    %230 = vector.multi_reduction <maximumf>, %229, %cst_173 [1] : vector<2x128xf32> to vector<2xf32>
    %231 = vector.shape_cast %230 : vector<2xf32> to vector<2x1xf32>
    %232 = vector.broadcast %231 : vector<2x1xf32> to vector<2x128xf32>
    %233 = arith.subf %229, %232 : vector<2x128xf32>
    %234 = math.exp %233 : vector<2x128xf32>
    %cst_174 = arith.constant dense<0.000000e+00> : vector<2xf32>
    %235 = vector.multi_reduction <add>, %234, %cst_174 [1] : vector<2x128xf32> to vector<2xf32>
    %236 = vector.shape_cast %235 : vector<2xf32> to vector<2x1xf32>
    %237 = vector.broadcast %236 : vector<2x1xf32> to vector<2x128xf32>
    %238 = arith.divf %234, %237 : vector<2x128xf32>
    %c0_175 = arith.constant 0 : index
    %c0_176 = arith.constant 0 : index
    %239 = vector.load %arg13[%c0_175, %c0_176] : memref<2x128xf32, #tpu.memory_space<vmem>>, vector<2x128xf32>
    tpu.vector_store %arg13[%c0_175, %c0_176], %238 {strides = array<i32>} : memref<2x128xf32, #tpu.memory_space<vmem>>, vector<2x128xf32>,
    return
  }
  func.func @transform_0(%arg0: i32) -> (i32, i32, i32) {
    %c0_i32 = arith.constant 0 : i32
    %c0_i32_0 = arith.constant 0 : i32
    %c0_i32_1 = arith.constant 0 : i32
    return %c0_i32, %arg0, %c0_i32_0 : i32, i32, i32
  }
  func.func @transform_1(%arg0: i32) -> (i32, i32, i32) {
    %c0_i32 = arith.constant 0 : i32
    %c0_i32_0 = arith.constant 0 : i32
    %c0_i32_1 = arith.constant 0 : i32
    return %c0_i32, %arg0, %c0_i32_0 : i32, i32, i32
  }
  func.func @transform_2(%arg0: i32) -> (i32, i32, i32) {
    %c0_i32 = arith.constant 0 : i32
    %c0_i32_0 = arith.constant 0 : i32
    %c0_i32_1 = arith.constant 0 : i32
    return %c0_i32, %arg0, %c0_i32_0 : i32, i32, i32
  }
  func.func @transform_3(%arg0: i32) -> (i32, i32, i32) {
    %c0_i32 = arith.constant 0 : i32
    %c0_i32_0 = arith.constant 0 : i32
    %c0_i32_1 = arith.constant 0 : i32
    return %c0_i32, %arg0, %c0_i32_0 : i32, i32, i32
  }
  func.func @transform_4(%arg0: i32) -> (i32, i32) {
    %c0_i32 = arith.constant 0 : i32
    %c0_i32_0 = arith.constant 0 : i32
    %c0_i32_1 = arith.constant 0 : i32
    return %c0_i32, %c0_i32_0 : i32, i32
  }
  func.func @transform_5(%arg0: i32) -> (i32, i32) {
    %c0_i32 = arith.constant 0 : i32
    %c0_i32_0 = arith.constant 0 : i32
    %c0_i32_1 = arith.constant 0 : i32
    return %c0_i32, %c0_i32_0 : i32, i32
  }
  func.func @transform_6(%arg0: i32) -> (i32, i32) {
    %c0_i32 = arith.constant 0 : i32
    %c0_i32_0 = arith.constant 0 : i32
    %c0_i32_1 = arith.constant 0 : i32
    return %c0_i32, %c0_i32_0 : i32, i32
  }
  func.func @transform_7(%arg0: i32) -> (i32, i32) {
    %c0_i32 = arith.constant 0 : i32
    %c0_i32_0 = arith.constant 0 : i32
    %c0_i32_1 = arith.constant 0 : i32
    return %c0_i32, %c0_i32_0 : i32, i32
  }
  func.func @transform_8(%arg0: i32) -> (i32, i32) {
    %c0_i32 = arith.constant 0 : i32
    %c0_i32_0 = arith.constant 0 : i32
    %c0_i32_1 = arith.constant 0 : i32
    return %c0_i32, %c0_i32_0 : i32, i32
  }
  func.func @transform_9(%arg0: i32) -> (i32, i32) {
    %c0_i32 = arith.constant 0 : i32
    %c0_i32_0 = arith.constant 0 : i32
    %c0_i32_1 = arith.constant 0 : i32
    return %c0_i32, %c0_i32_0 : i32, i32
  }
  func.func @transform_10(%arg0: i32) -> (i32, i32) {
    %c0_i32 = arith.constant 0 : i32
    %c0_i32_0 = arith.constant 0 : i32
    %c0_i32_1 = arith.constant 0 : i32
    return %c0_i32, %c0_i32_0 : i32, i32
  }
  func.func @transform_11(%arg0: i32) -> (i32, i32) {
    %c0_i32 = arith.constant 0 : i32
    %c0_i32_0 = arith.constant 0 : i32
    %c0_i32_1 = arith.constant 0 : i32
    return %c0_i32, %c0_i32_0 : i32, i32
  }
  func.func @transform_12(%arg0: i32) -> (i32, i32) {
    %c0_i32 = arith.constant 0 : i32
    %c0_i32_0 = arith.constant 0 : i32
    return %arg0, %c0_i32 : i32, i32
  }
}

</mosaic_0001>

<bundles_post_ra>
// kernel: net1_forward.3
= control target key start
LH: loop header
LB: loop body
LE: loop exit
PB: predicated region body
PF: predicated region fallthrough
CT: control target
= control target key end

     0   :  { %s1797_s12 = smov 0   ;;  %s2124_s0 = inlined_call_operand.vmem [shape: bf16[1152,25], index: 0, kind: input, shape index: {}]   ;;  %s2125_s1 = inlined_call_operand.vmem [shape: bf16[25,8], index: 1, kind: input, shape index: {}]   ;;  %s2126_s2 = inlined_call_operand.vmem [shape: f32[1,8], index: 2, kind: input, shape index: {}]   ;;  %s2127_s3 = inlined_call_operand.vmem [shape: bf16[1152,8], index: 3, kind: output, shape index: {}]  }
   0x1 LB: > { %s1375_s13 = sadd.s32 4294967295, %s1774_s12   ;;  %p1379_p0 = scmp.ge.s32.totalorder %s1774_s12, 1  ;;  %s1774_s12 = sphi %s1797_s12, %s13_s12  }
   0x2   : > { %p138_p1 = scmp.lt.s32.totalorder %s1774_s12, 3 }
   0x4   : > { %p139_p2 = pnand %p1379_p0, %p138_p1 }
   0x5   : > { %v1730_v0 = vld [vmem:[%s2125_s1] sm:$0xff] (!%p139_p2)   ;;  %vm558_vm0 = vcmask (!%p139_p2), 1043456   ;;  %v1731_v1 = vld [vmem:[%s2125_s1 + $0x8] sm:$0x1f] (!%p139_p2)   ;;  %vm559_vm1 = vcmask (!%p139_p2), 1044480   ;;  %s162_s18 = smul.u32 (!%p139_p2), 72, %s1375_s13 }
   0x6   : > { %142 = sbr.rel (%p139_p2) target bundleno = 304 (0x130), region = 32  ;;  %1641 = vmatprep.subr.bf16.mxu0 (!%p139_p2), %v1730_v0  ;;  %1717 = vmatprep.subr.bf16.mxu1 (!%p139_p2), %v1730_v0  ;;  %v1776_v2 = vmov (!%p139_p2), 65535   ;;  %vm449_vm2 = vcmask (!%p139_p2), 203776   ;;  %v1896_v42 = vld [vmem:[%s2126_s2] ss:$0 sm:$0xff] (!%p139_p2)  ;;  %vm1246_vm3 = vcmask (!%p139_p2), 60416  }
   0x7   : > { %1642 = vmatpush3.bf16.msra.mxu0 (!%p139_p2), %v1730_v0  ;;  %1719 = vmatpush3.bf16.msra.mxu1 (!%p139_p2), %v1730_v0  ;;  %v560_v3 = vsel (!%p139_p2), %vm558_vm0, 4294967295, %v1776_v2  ;;  %p163_p3 = scmp.lt.s32.totalorder (!%p139_p2), %s162_s18, 143 }
   0x8   : > { %v561_v4 = vsel (!%p139_p2), %vm559_vm1, %v560_v3, 0 }
   0x9   : > { %v563_v5 = vand.u32 (!%p139_p2), %v1731_v1, %v561_v4 }
   0xb   : > { %1643 = vmatprep.subr.bf16.mxu0 (!%p139_p2), %v563_v5  ;;  %1718 = vmatprep.subr.bf16.mxu1 (!%p139_p2), %v563_v5 }
   0xc   : > { %1644 = vmatpush3.bf16.msra.mxu0 (!%p139_p2), %v563_v5  ;;  %1720 = vmatpush3.bf16.msra.mxu1 (!%p139_p2), %v563_v5 }
   0xd   : > { %s2129_s18 = smov (!%p163_p3, %s162_s18), 143 }
   0xe   : > { %s1380_s19 = sshll.u32 %s2129_s18, 2 }
   0xf   : > { %s1819_s22 = scalar_lea.vmem %s2124_s0, %s1380_s19  ;;  %s1908_s27 = scalar_lea.vmem %s2127_s3, %s1380_s19 }
  0x10   : > { %v1732_v6 = vld [vmem:[%s1819_s22] sm:$0xff]   ;;  %v1733_v7 = vld [vmem:[%s1819_s22 + $0x90] sm:$0xff]   ;;  %v1734_v8 = vld [vmem:[%s1819_s22 + $0x8] sm:$0xff]  }
  0x11   : > { %1645 = vmatprep.mubr.msk.bf16.mxu0 %vm449_vm2, %v1732_v6  ;;  %1681 = vmatprep.mubr.msk.bf16.mxu1 %vm449_vm2, %v1733_v7  ;;  %v1735_v9 = vld [vmem:[%s1819_s22 + $0x98] sm:$0xff]   ;;  %v1736_v10 = vld [vmem:[%s1819_s22 + $0x10] sm:$0xff]   ;;  %v1737_v11 = vld [vmem:[%s1819_s22 + $0xa0] sm:$0xff]  }
  0x12   : > { %1646 = vmatmul.mubr.msk.bf16.vlgmr.msra.gmra.mrb[0].mxu0 %vm449_vm2, %v1734_v8  ;;  %1682 = vmatmul.mubr.msk.bf16.vlgmr.msra.gmra.mrb[0].mxu1 %vm449_vm2, %v1735_v9  ;;  %v1738_v12 = vld [vmem:[%s1819_s22 + $0x18] sm:$0xff]   ;;  %v1739_v13 = vld [vmem:[%s1819_s22 + $0xa8] sm:$0xff]   ;;  %v1740_v14 = vld [vmem:[%s1819_s22 + $0x20] sm:$0xff]  }
  0x13   : > { %1649 = vmatprep.mubr.msk.bf16.mxu0 %vm449_vm2, %v1736_v10  ;;  %1685 = vmatprep.mubr.msk.bf16.mxu1 %vm449_vm2, %v1737_v11  ;;  %v1741_v15 = vld [vmem:[%s1819_s22 + $0xb0] sm:$0xff]   ;;  %v1742_v16 = vld [vmem:[%s1819_s22 + $0x28] sm:$0xff]   ;;  %v1743_v17 = vld [vmem:[%s1819_s22 + $0xb8] sm:$0xff]  }
  0x14   : > { %v1744_v18 = vld [vmem:[%s1819_s22 + $0x30] sm:$0xff]   ;;  %v1745_v19 = vld [vmem:[%s1819_s22 + $0xc0] sm:$0xff]   ;;  %v1746_v20 = vld [vmem:[%s1819_s22 + $0x38] sm:$0xff]  }
  0x15   : > { %v1747_v21 = vld [vmem:[%s1819_s22 + $0xc8] sm:$0xff]   ;;  %v1748_v22 = vld [vmem:[%s1819_s22 + $0x40] sm:$0xff]   ;;  %v1749_v23 = vld [vmem:[%s1819_s22 + $0xd0] sm:$0xff]  }
  0x16   : > { %v1750_v24 = vld [vmem:[%s1819_s22 + $0x48] sm:$0xff]   ;;  %v1751_v25 = vld [vmem:[%s1819_s22 + $0xd8] sm:$0xff]   ;;  %v1752_v26 = vld [vmem:[%s1819_s22 + $0x50] sm:$0xff]  }
  0x17   : > { %v1753_v27 = vld [vmem:[%s1819_s22 + $0xe0] sm:$0xff]   ;;  %v1754_v28 = vld [vmem:[%s1819_s22 + $0x58] sm:$0xff]   ;;  %v1755_v29 = vld [vmem:[%s1819_s22 + $0xe8] sm:$0xff]  }
  0x18   : > { %v1756_v30 = vld [vmem:[%s1819_s22 + $0x60] sm:$0xff]   ;;  %v1757_v31 = vld [vmem:[%s1819_s22 + $0xf0] sm:$0xff]   ;;  %v1758_v32 = vld [vmem:[%s1819_s22 + $0x68] sm:$0xff]  }
  0x19   : > { %v1759_v33 = vld [vmem:[%s1819_s22 + $0xf8] sm:$0xff]   ;;  %v1760_v34 = vld [vmem:[%s1819_s22 + $0x70] sm:$0xff]   ;;  %v1761_v35 = vld [vmem:[%s1819_s22 + $0x100] sm:$0xff]  }
  0x1a   : > { %1650 = vmatmul.mubr.msk.bf16.gmra.mrb[4].mxu0 %vm449_vm2, %v1738_v12  ;;  %1686 = vmatmul.mubr.msk.bf16.gmra.mrb[4].mxu1 %vm449_vm2, %v1739_v13  ;;  %v1762_v36 = vld [vmem:[%s1819_s22 + $0x78] sm:$0xff]   ;;  %v1763_v37 = vld [vmem:[%s1819_s22 + $0x108] sm:$0xff]   ;;  %v1764_v38 = vld [vmem:[%s1819_s22 + $0x80] sm:$0xff]  }
  0x1b   : > { %1653 = vmatprep.mubr.msk.bf16.mxu0 %vm449_vm2, %v1740_v14  ;;  %1689 = vmatprep.mubr.msk.bf16.mxu1 %vm449_vm2, %v1741_v15  ;;  %v1765_v39 = vld [vmem:[%s1819_s22 + $0x110] sm:$0xff]   ;;  %v1766_v40 = vld [vmem:[%s1819_s22 + $0x88] sm:$0xff]   ;;  %v1767_v41 = vld [vmem:[%s1819_s22 + $0x118] sm:$0xff]  }
  0x22   : > { %1654 = vmatmul.mubr.msk.bf16.gmra.mrb[8].mxu0 %vm449_vm2, %v1742_v16  ;;  %1690 = vmatmul.mubr.msk.bf16.gmra.mrb[8].mxu1 %vm449_vm2, %v1743_v17 }
  0x23   : > { %1657 = vmatprep.mubr.msk.bf16.mxu0 %vm449_vm2, %v1744_v18  ;;  %1693 = vmatprep.mubr.msk.bf16.mxu1 %vm449_vm2, %v1745_v19 }
  0x2a   : > { %1658 = vmatmul.mubr.msk.bf16.gmra.mrb[12].mxu0 %vm449_vm2, %v1746_v20  ;;  %1694 = vmatmul.mubr.msk.bf16.gmra.mrb[12].mxu1 %vm449_vm2, %v1747_v21 }
  0x2b   : > { %1661 = vmatprep.mubr.msk.bf16.mxu0 %vm449_vm2, %v1748_v22  ;;  %1697 = vmatprep.mubr.msk.bf16.mxu1 %vm449_vm2, %v1749_v23 }
  0x32   : > { %1662 = vmatmul.mubr.msk.bf16.gmra.mrb[16].mxu0 %vm449_vm2, %v1750_v24  ;;  %1698 = vmatmul.mubr.msk.bf16.gmra.mrb[16].mxu1 %vm449_vm2, %v1751_v25 }
  0x33   : > { %1665 = vmatprep.mubr.msk.bf16.mxu0 %vm449_vm2, %v1752_v26  ;;  %1701 = vmatprep.mubr.msk.bf16.mxu1 %vm449_vm2, %v1753_v27 }
  0x3a   : > { %1666 = vmatmul.mubr.msk.bf16.gmra.mrb[20].mxu0 %vm449_vm2, %v1754_v28  ;;  %1702 = vmatmul.mubr.msk.bf16.gmra.mrb[20].mxu1 %vm449_vm2, %v1755_v29 }
  0x3b   : > { %1669 = vmatprep.mubr.msk.bf16.mxu0 %vm449_vm2, %v1756_v30  ;;  %1705 = vmatprep.mubr.msk.bf16.mxu1 %vm449_vm2, %v1757_v31 }
  0x42   : > { %1670 = vmatmul.mubr.msk.bf16.gmra.mrb[24].mxu0 %vm449_vm2, %v1758_v32  ;;  %1706 = vmatmul.mubr.msk.bf16.gmra.mrb[24].mxu1 %vm449_vm2, %v1759_v33 }
  0x43   : > { %1673 = vmatprep.mubr.msk.bf16.mxu0 %vm449_vm2, %v1760_v34  ;;  %1709 = vmatprep.mubr.msk.bf16.mxu1 %vm449_vm2, %v1761_v35 }
  0x4a   : > { %1674 = vmatmul.mubr.msk.bf16.gmra.mrb[28].mxu0 %vm449_vm2, %v1762_v36  ;;  %1710 = vmatmul.mubr.msk.bf16.gmra.mrb[28].mxu1 %vm449_vm2, %v1763_v37 }
  0x4b   : > { %1677 = vmatprep.mubr.msk.bf16.mxu0 %vm449_vm2, %v1764_v38  ;;  %1713 = vmatprep.mubr.msk.bf16.mxu1 %vm449_vm2, %v1765_v39 }
  0x52   : > { %1678 = vmatmul.mubr.msk.bf16.gmra.mrb[32].mxu0 %vm449_vm2, %v1766_v40  ;;  %1714 = vmatmul.mubr.msk.bf16.gmra.mrb[32].mxu1 %vm449_vm2, %v1767_v41 }
  0xe5   : > { %v1647_v43 = vpop.f32.mrb[0].mxu0  ;;  %v1683_v45 = vpop.f32.mrb[0].mxu1 }
  0xe6   : > { %v608_v44 = vadd.f32 %v1647_v43, %v1896_v42  ;;  %v599_v46 = vpop.f32.mrb[1].mxu0  ;;  %v752_v47 = vadd.f32 %v1683_v45, %v1896_v42  ;;  %v743_v49 = vpop.f32.mrb[1].mxu1 }
  0xe7   : > { %v600_v48 = vadd.f32 %v1896_v42, %v599_v46  ;;  %v1648_v50 = vpop.f32.mrb[2].mxu0  ;;  %v744_v52 = vadd.f32 %v1896_v42, %v743_v49  ;;  %v1684_v54 = vpop.f32.mrb[2].mxu1 }
  0xe8   : > { %v888_v51 = vmax.f32 %v608_v44, 0.0  ;;  %v611_v53 = vadd.f32 %v1648_v50, %v1896_v42  ;;  %v602_v55 = vpop.f32.mrb[3].mxu0  ;;  %v924_v56 = vmax.f32 %v752_v47, 0.0  ;;  %v755_v58 = vadd.f32 %v1684_v54, %v1896_v42  ;;  %v746_v60 = vpop.f32.mrb[3].mxu1 }
  0xe9   : > { %v886_v57 = vmax.f32 %v600_v48, 0.0  ;;  %v603_v59 = vadd.f32 %v1896_v42, %v602_v55  ;;  %v922_v62 = vmax.f32 %v744_v52, 0.0  ;;  %v747_v0 = vadd.f32 %v1896_v42, %v746_v60 }
  0xea   : > { %v1533_v61 = vpack.c.bf16 %v888_v51, %v888_v51  ;;  %v889_v63 = vmax.f32 %v611_v53, 0.0  ;;  %v1569_v1 = vpack.c.bf16 %v924_v56, %v924_v56  ;;  %v925_v3 = vmax.f32 %v755_v58, 0.0 }
  0xeb   : > { %v1531_v2 = vpack.c.bf16 %v886_v57, %v886_v57  ;;  %v887_v4 = vmax.f32 %v603_v59, 0.0  ;;  %v1567_v5 = vpack.c.bf16 %v922_v62, %v922_v62  ;;  %v923_v7 = vmax.f32 %v747_v0, 0.0 }
  0xec   : > { %1249 = vst.msk [vmem:[%s1908_s27 + $0x8] sm:$0xf] %vm1246_vm3, %v1533_v61  ;;  %v1534_v6 = vpack.c.bf16 %v889_v63, %v889_v63  ;;  %1285 = vst.msk [vmem:[%s1908_s27 + $0x98] sm:$0xf] %vm1246_vm3, %v1569_v1  ;;  %v1570_v8 = vpack.c.bf16 %v925_v3, %v925_v3 }
  0xed   : > { %1247 = vst.msk [vmem:[%s1908_s27] sm:$0xf] %vm1246_vm3, %v1531_v2  ;;  %v1532_v9 = vpack.c.bf16 %v887_v4, %v887_v4  ;;  %v1651_v10 = vpop.f32.mrb[4].mxu0  ;;  %1283 = vst.msk [vmem:[%s1908_s27 + $0x90] sm:$0xf] %vm1246_vm3, %v1567_v5  ;;  %v1568_v11 = vpack.c.bf16 %v923_v7, %v923_v7  ;;  %v1687_v13 = vpop.f32.mrb[4].mxu1 }
  0xee   : > { %1250 = vst.msk [vmem:[%s1908_s27 + $0xc] sm:$0xf] %vm1246_vm3, %v1534_v6  ;;  %v624_v12 = vadd.f32 %v1651_v10, %v1896_v42  ;;  %v615_v14 = vpop.f32.mrb[5].mxu0  ;;  %1286 = vst.msk [vmem:[%s1908_s27 + $0x9c] sm:$0xf] %vm1246_vm3, %v1570_v8  ;;  %v768_v15 = vadd.f32 %v1687_v13, %v1896_v42  ;;  %v759_v17 = vpop.f32.mrb[5].mxu1 }
  0xef   : > { %1248 = vst.msk [vmem:[%s1908_s27 + $0x4] sm:$0xf] %vm1246_vm3, %v1532_v9  ;;  %v616_v16 = vadd.f32 %v1896_v42, %v615_v14  ;;  %v1652_v18 = vpop.f32.mrb[6].mxu0  ;;  %1284 = vst.msk [vmem:[%s1908_s27 + $0x94] sm:$0xf] %vm1246_vm3, %v1568_v11  ;;  %v760_v20 = vadd.f32 %v1896_v42, %v759_v17  ;;  %v1688_v22 = vpop.f32.mrb[6].mxu1 }
  0xf0   : > { %v892_v19 = vmax.f32 %v624_v12, 0.0  ;;  %v627_v21 = vadd.f32 %v1652_v18, %v1896_v42  ;;  %v618_v23 = vpop.f32.mrb[7].mxu0  ;;  %v928_v24 = vmax.f32 %v768_v15, 0.0  ;;  %v771_v26 = vadd.f32 %v1688_v22, %v1896_v42  ;;  %v762_v28 = vpop.f32.mrb[7].mxu1 }
  0xf1   : > { %v890_v25 = vmax.f32 %v616_v16, 0.0  ;;  %v619_v27 = vadd.f32 %v1896_v42, %v618_v23  ;;  %v926_v30 = vmax.f32 %v760_v20, 0.0  ;;  %v763_v32 = vadd.f32 %v1896_v42, %v762_v28 }
  0xf2   : > { %v1537_v29 = vpack.c.bf16 %v892_v19, %v892_v19  ;;  %v893_v31 = vmax.f32 %v627_v21, 0.0  ;;  %v1573_v33 = vpack.c.bf16 %v928_v24, %v928_v24  ;;  %v929_v35 = vmax.f32 %v771_v26, 0.0 }
  0xf3   : > { %v1535_v34 = vpack.c.bf16 %v890_v25, %v890_v25  ;;  %v891_v36 = vmax.f32 %v619_v27, 0.0  ;;  %v1571_v37 = vpack.c.bf16 %v926_v30, %v926_v30  ;;  %v927_v39 = vmax.f32 %v763_v32, 0.0 }
  0xf4   : > { %1253 = vst.msk [vmem:[%s1908_s27 + $0x18] sm:$0xf] %vm1246_vm3, %v1537_v29  ;;  %v1538_v38 = vpack.c.bf16 %v893_v31, %v893_v31  ;;  %1289 = vst.msk [vmem:[%s1908_s27 + $0xa8] sm:$0xf] %vm1246_vm3, %v1573_v33  ;;  %v1574_v40 = vpack.c.bf16 %v929_v35, %v929_v35 }
  0xf5   : > { %1251 = vst.msk [vmem:[%s1908_s27 + $0x10] sm:$0xf] %vm1246_vm3, %v1535_v34  ;;  %v1536_v41 = vpack.c.bf16 %v891_v36, %v891_v36  ;;  %v1655_v43 = vpop.f32.mrb[8].mxu0  ;;  %1287 = vst.msk [vmem:[%s1908_s27 + $0xa0] sm:$0xf] %vm1246_vm3, %v1571_v37  ;;  %v1572_v44 = vpack.c.bf16 %v927_v39, %v927_v39  ;;  %v1691_v46 = vpop.f32.mrb[8].mxu1 }
  0xf6   : > { %1254 = vst.msk [vmem:[%s1908_s27 + $0x1c] sm:$0xf] %vm1246_vm3, %v1538_v38  ;;  %v640_v45 = vadd.f32 %v1655_v43, %v1896_v42  ;;  %v631_v47 = vpop.f32.mrb[9].mxu0  ;;  %1290 = vst.msk [vmem:[%s1908_s27 + $0xac] sm:$0xf] %vm1246_vm3, %v1574_v40  ;;  %v784_v48 = vadd.f32 %v1691_v46, %v1896_v42  ;;  %v775_v50 = vpop.f32.mrb[9].mxu1 }
  0xf7   : > { %1252 = vst.msk [vmem:[%s1908_s27 + $0x14] sm:$0xf] %vm1246_vm3, %v1536_v41  ;;  %v632_v49 = vadd.f32 %v1896_v42, %v631_v47  ;;  %v1656_v51 = vpop.f32.mrb[10].mxu0  ;;  %1288 = vst.msk [vmem:[%s1908_s27 + $0xa4] sm:$0xf] %vm1246_vm3, %v1572_v44  ;;  %v776_v53 = vadd.f32 %v1896_v42, %v775_v50  ;;  %v1692_v55 = vpop.f32.mrb[10].mxu1 }
  0xf8   : > { %v896_v52 = vmax.f32 %v640_v45, 0.0  ;;  %v643_v54 = vadd.f32 %v1656_v51, %v1896_v42  ;;  %v634_v56 = vpop.f32.mrb[11].mxu0  ;;  %v932_v57 = vmax.f32 %v784_v48, 0.0  ;;  %v787_v59 = vadd.f32 %v1692_v55, %v1896_v42  ;;  %v778_v61 = vpop.f32.mrb[11].mxu1 }
  0xf9   : > { %v894_v58 = vmax.f32 %v632_v49, 0.0  ;;  %v635_v60 = vadd.f32 %v1896_v42, %v634_v56  ;;  %v930_v63 = vmax.f32 %v776_v53, 0.0  ;;  %v779_v1 = vadd.f32 %v1896_v42, %v778_v61 }
  0xfa   : > { %v1541_v62 = vpack.c.bf16 %v896_v52, %v896_v52  ;;  %v897_v0 = vmax.f32 %v643_v54, 0.0  ;;  %v1577_v2 = vpack.c.bf16 %v932_v57, %v932_v57  ;;  %v933_v4 = vmax.f32 %v787_v59, 0.0 }
  0xfb   : > { %v1539_v3 = vpack.c.bf16 %v894_v58, %v894_v58  ;;  %v895_v5 = vmax.f32 %v635_v60, 0.0  ;;  %v1575_v6 = vpack.c.bf16 %v930_v63, %v930_v63  ;;  %v931_v8 = vmax.f32 %v779_v1, 0.0 }
  0xfc   : > { %1257 = vst.msk [vmem:[%s1908_s27 + $0x28] sm:$0xf] %vm1246_vm3, %v1541_v62  ;;  %v1542_v7 = vpack.c.bf16 %v897_v0, %v897_v0  ;;  %1293 = vst.msk [vmem:[%s1908_s27 + $0xb8] sm:$0xf] %vm1246_vm3, %v1577_v2  ;;  %v1578_v9 = vpack.c.bf16 %v933_v4, %v933_v4 }
  0xfd   : > { %1255 = vst.msk [vmem:[%s1908_s27 + $0x20] sm:$0xf] %vm1246_vm3, %v1539_v3  ;;  %v1540_v10 = vpack.c.bf16 %v895_v5, %v895_v5  ;;  %v1659_v11 = vpop.f32.mrb[12].mxu0  ;;  %1291 = vst.msk [vmem:[%s1908_s27 + $0xb0] sm:$0xf] %vm1246_vm3, %v1575_v6  ;;  %v1576_v12 = vpack.c.bf16 %v931_v8, %v931_v8  ;;  %v1695_v14 = vpop.f32.mrb[12].mxu1 }
  0xfe   : > { %1258 = vst.msk [vmem:[%s1908_s27 + $0x2c] sm:$0xf] %vm1246_vm3, %v1542_v7  ;;  %v656_v13 = vadd.f32 %v1659_v11, %v1896_v42  ;;  %v647_v15 = vpop.f32.mrb[13].mxu0  ;;  %1294 = vst.msk [vmem:[%s1908_s27 + $0xbc] sm:$0xf] %vm1246_vm3, %v1578_v9  ;;  %v800_v16 = vadd.f32 %v1695_v14, %v1896_v42  ;;  %v791_v18 = vpop.f32.mrb[13].mxu1 }
  0xff   : > { %1256 = vst.msk [vmem:[%s1908_s27 + $0x24] sm:$0xf] %vm1246_vm3, %v1540_v10  ;;  %v648_v17 = vadd.f32 %v1896_v42, %v647_v15  ;;  %v1660_v19 = vpop.f32.mrb[14].mxu0  ;;  %1292 = vst.msk [vmem:[%s1908_s27 + $0xb4] sm:$0xf] %vm1246_vm3, %v1576_v12  ;;  %v792_v21 = vadd.f32 %v1896_v42, %v791_v18  ;;  %v1696_v23 = vpop.f32.mrb[14].mxu1 }
 0x100   : > { %v900_v20 = vmax.f32 %v656_v13, 0.0  ;;  %v659_v22 = vadd.f32 %v1660_v19, %v1896_v42  ;;  %v650_v24 = vpop.f32.mrb[15].mxu0  ;;  %v936_v25 = vmax.f32 %v800_v16, 0.0  ;;  %v803_v27 = vadd.f32 %v1696_v23, %v1896_v42  ;;  %v794_v29 = vpop.f32.mrb[15].mxu1 }
 0x101   : > { %v898_v26 = vmax.f32 %v648_v17, 0.0  ;;  %v651_v28 = vadd.f32 %v1896_v42, %v650_v24  ;;  %v934_v31 = vmax.f32 %v792_v21, 0.0  ;;  %v795_v33 = vadd.f32 %v1896_v42, %v794_v29 }
 0x102   : > { %v1545_v30 = vpack.c.bf16 %v900_v20, %v900_v20  ;;  %v901_v32 = vmax.f32 %v659_v22, 0.0  ;;  %v1581_v34 = vpack.c.bf16 %v936_v25, %v936_v25  ;;  %v937_v36 = vmax.f32 %v803_v27, 0.0 }
 0x103   : > { %v1543_v35 = vpack.c.bf16 %v898_v26, %v898_v26  ;;  %v899_v37 = vmax.f32 %v651_v28, 0.0  ;;  %v1579_v38 = vpack.c.bf16 %v934_v31, %v934_v31  ;;  %v935_v40 = vmax.f32 %v795_v33, 0.0 }
 0x104   : > { %1261 = vst.msk [vmem:[%s1908_s27 + $0x38] sm:$0xf] %vm1246_vm3, %v1545_v30  ;;  %v1546_v39 = vpack.c.bf16 %v901_v32, %v901_v32  ;;  %1297 = vst.msk [vmem:[%s1908_s27 + $0xc8] sm:$0xf] %vm1246_vm3, %v1581_v34  ;;  %v1582_v41 = vpack.c.bf16 %v937_v36, %v937_v36 }
 0x105   : > { %1259 = vst.msk [vmem:[%s1908_s27 + $0x30] sm:$0xf] %vm1246_vm3, %v1543_v35  ;;  %v1544_v43 = vpack.c.bf16 %v899_v37, %v899_v37  ;;  %v1663_v44 = vpop.f32.mrb[16].mxu0  ;;  %1295 = vst.msk [vmem:[%s1908_s27 + $0xc0] sm:$0xf] %vm1246_vm3, %v1579_v38  ;;  %v1580_v45 = vpack.c.bf16 %v935_v40, %v935_v40  ;;  %v1699_v47 = vpop.f32.mrb[16].mxu1 }
 0x106   : > { %1262 = vst.msk [vmem:[%s1908_s27 + $0x3c] sm:$0xf] %vm1246_vm3, %v1546_v39  ;;  %v672_v46 = vadd.f32 %v1663_v44, %v1896_v42  ;;  %v663_v48 = vpop.f32.mrb[17].mxu0  ;;  %1298 = vst.msk [vmem:[%s1908_s27 + $0xcc] sm:$0xf] %vm1246_vm3, %v1582_v41  ;;  %v816_v49 = vadd.f32 %v1699_v47, %v1896_v42  ;;  %v807_v51 = vpop.f32.mrb[17].mxu1 }
 0x107   : > { %1260 = vst.msk [vmem:[%s1908_s27 + $0x34] sm:$0xf] %vm1246_vm3, %v1544_v43  ;;  %v664_v50 = vadd.f32 %v1896_v42, %v663_v48  ;;  %v1664_v52 = vpop.f32.mrb[18].mxu0  ;;  %1296 = vst.msk [vmem:[%s1908_s27 + $0xc4] sm:$0xf] %vm1246_vm3, %v1580_v45  ;;  %v808_v54 = vadd.f32 %v1896_v42, %v807_v51  ;;  %v1700_v56 = vpop.f32.mrb[18].mxu1 }
 0x108   : > { %v904_v53 = vmax.f32 %v672_v46, 0.0  ;;  %v675_v55 = vadd.f32 %v1664_v52, %v1896_v42  ;;  %v666_v57 = vpop.f32.mrb[19].mxu0  ;;  %v940_v58 = vmax.f32 %v816_v49, 0.0  ;;  %v819_v60 = vadd.f32 %v1700_v56, %v1896_v42  ;;  %v810_v62 = vpop.f32.mrb[19].mxu1 }
 0x109   : > { %v902_v59 = vmax.f32 %v664_v50, 0.0  ;;  %v667_v61 = vadd.f32 %v1896_v42, %v666_v57  ;;  %v938_v0 = vmax.f32 %v808_v54, 0.0  ;;  %v811_v2 = vadd.f32 %v1896_v42, %v810_v62 }
 0x10a   : > { %v1549_v63 = vpack.c.bf16 %v904_v53, %v904_v53  ;;  %v905_v1 = vmax.f32 %v675_v55, 0.0  ;;  %v1585_v3 = vpack.c.bf16 %v940_v58, %v940_v58  ;;  %v941_v5 = vmax.f32 %v819_v60, 0.0 }
 0x10b   : > { %v1547_v4 = vpack.c.bf16 %v902_v59, %v902_v59  ;;  %v903_v6 = vmax.f32 %v667_v61, 0.0  ;;  %v1583_v7 = vpack.c.bf16 %v938_v0, %v938_v0  ;;  %v939_v9 = vmax.f32 %v811_v2, 0.0 }
 0x10c   : > { %1265 = vst.msk [vmem:[%s1908_s27 + $0x48] sm:$0xf] %vm1246_vm3, %v1549_v63  ;;  %v1550_v8 = vpack.c.bf16 %v905_v1, %v905_v1  ;;  %1301 = vst.msk [vmem:[%s1908_s27 + $0xd8] sm:$0xf] %vm1246_vm3, %v1585_v3  ;;  %v1586_v10 = vpack.c.bf16 %v941_v5, %v941_v5 }
 0x10d   : > { %1263 = vst.msk [vmem:[%s1908_s27 + $0x40] sm:$0xf] %vm1246_vm3, %v1547_v4  ;;  %v1548_v11 = vpack.c.bf16 %v903_v6, %v903_v6  ;;  %v1667_v12 = vpop.f32.mrb[20].mxu0  ;;  %1299 = vst.msk [vmem:[%s1908_s27 + $0xd0] sm:$0xf] %vm1246_vm3, %v1583_v7  ;;  %v1584_v13 = vpack.c.bf16 %v939_v9, %v939_v9  ;;  %v1703_v15 = vpop.f32.mrb[20].mxu1 }
 0x10e   : > { %1266 = vst.msk [vmem:[%s1908_s27 + $0x4c] sm:$0xf] %vm1246_vm3, %v1550_v8  ;;  %v688_v14 = vadd.f32 %v1667_v12, %v1896_v42  ;;  %v679_v16 = vpop.f32.mrb[21].mxu0  ;;  %1302 = vst.msk [vmem:[%s1908_s27 + $0xdc] sm:$0xf] %vm1246_vm3, %v1586_v10  ;;  %v832_v17 = vadd.f32 %v1703_v15, %v1896_v42  ;;  %v823_v19 = vpop.f32.mrb[21].mxu1 }
 0x10f   : > { %1264 = vst.msk [vmem:[%s1908_s27 + $0x44] sm:$0xf] %vm1246_vm3, %v1548_v11  ;;  %v680_v18 = vadd.f32 %v1896_v42, %v679_v16  ;;  %v1668_v20 = vpop.f32.mrb[22].mxu0  ;;  %1300 = vst.msk [vmem:[%s1908_s27 + $0xd4] sm:$0xf] %vm1246_vm3, %v1584_v13  ;;  %v824_v22 = vadd.f32 %v1896_v42, %v823_v19  ;;  %v1704_v24 = vpop.f32.mrb[22].mxu1 }
 0x110   : > { %v908_v21 = vmax.f32 %v688_v14, 0.0  ;;  %v691_v23 = vadd.f32 %v1668_v20, %v1896_v42  ;;  %v682_v25 = vpop.f32.mrb[23].mxu0  ;;  %v944_v26 = vmax.f32 %v832_v17, 0.0  ;;  %v835_v28 = vadd.f32 %v1704_v24, %v1896_v42  ;;  %v826_v30 = vpop.f32.mrb[23].mxu1 }
 0x111   : > { %v906_v27 = vmax.f32 %v680_v18, 0.0  ;;  %v683_v29 = vadd.f32 %v1896_v42, %v682_v25  ;;  %v942_v32 = vmax.f32 %v824_v22, 0.0  ;;  %v827_v34 = vadd.f32 %v1896_v42, %v826_v30 }
 0x112   : > { %v1553_v31 = vpack.c.bf16 %v908_v21, %v908_v21  ;;  %v909_v33 = vmax.f32 %v691_v23, 0.0  ;;  %v1589_v35 = vpack.c.bf16 %v944_v26, %v944_v26  ;;  %v945_v37 = vmax.f32 %v835_v28, 0.0 }
 0x113   : > { %v1551_v36 = vpack.c.bf16 %v906_v27, %v906_v27  ;;  %v907_v38 = vmax.f32 %v683_v29, 0.0  ;;  %v1587_v39 = vpack.c.bf16 %v942_v32, %v942_v32  ;;  %v943_v41 = vmax.f32 %v827_v34, 0.0 }
 0x114   : > { %1269 = vst.msk [vmem:[%s1908_s27 + $0x58] sm:$0xf] %vm1246_vm3, %v1553_v31  ;;  %v1554_v40 = vpack.c.bf16 %v909_v33, %v909_v33  ;;  %1305 = vst.msk [vmem:[%s1908_s27 + $0xe8] sm:$0xf] %vm1246_vm3, %v1589_v35  ;;  %v1590_v43 = vpack.c.bf16 %v945_v37, %v945_v37 }
 0x115   : > { %1267 = vst.msk [vmem:[%s1908_s27 + $0x50] sm:$0xf] %vm1246_vm3, %v1551_v36  ;;  %v1552_v44 = vpack.c.bf16 %v907_v38, %v907_v38  ;;  %v1671_v45 = vpop.f32.mrb[24].mxu0  ;;  %1303 = vst.msk [vmem:[%s1908_s27 + $0xe0] sm:$0xf] %vm1246_vm3, %v1587_v39  ;;  %v1588_v46 = vpack.c.bf16 %v943_v41, %v943_v41  ;;  %v1707_v48 = vpop.f32.mrb[24].mxu1 }
 0x116   : > { %1270 = vst.msk [vmem:[%s1908_s27 + $0x5c] sm:$0xf] %vm1246_vm3, %v1554_v40  ;;  %v704_v47 = vadd.f32 %v1671_v45, %v1896_v42  ;;  %v695_v49 = vpop.f32.mrb[25].mxu0  ;;  %1306 = vst.msk [vmem:[%s1908_s27 + $0xec] sm:$0xf] %vm1246_vm3, %v1590_v43  ;;  %v848_v50 = vadd.f32 %v1707_v48, %v1896_v42  ;;  %v839_v52 = vpop.f32.mrb[25].mxu1 }
 0x117   : > { %1268 = vst.msk [vmem:[%s1908_s27 + $0x54] sm:$0xf] %vm1246_vm3, %v1552_v44  ;;  %v696_v51 = vadd.f32 %v1896_v42, %v695_v49  ;;  %v1672_v53 = vpop.f32.mrb[26].mxu0  ;;  %1304 = vst.msk [vmem:[%s1908_s27 + $0xe4] sm:$0xf] %vm1246_vm3, %v1588_v46  ;;  %v840_v55 = vadd.f32 %v1896_v42, %v839_v52  ;;  %v1708_v57 = vpop.f32.mrb[26].mxu1 }
 0x118   : > { %v912_v54 = vmax.f32 %v704_v47, 0.0  ;;  %v707_v56 = vadd.f32 %v1672_v53, %v1896_v42  ;;  %v698_v58 = vpop.f32.mrb[27].mxu0  ;;  %v948_v59 = vmax.f32 %v848_v50, 0.0  ;;  %v851_v61 = vadd.f32 %v1708_v57, %v1896_v42  ;;  %v842_v63 = vpop.f32.mrb[27].mxu1 }
 0x119   : > { %v910_v60 = vmax.f32 %v696_v51, 0.0  ;;  %v699_v62 = vadd.f32 %v1896_v42, %v698_v58  ;;  %v946_v1 = vmax.f32 %v840_v55, 0.0  ;;  %v843_v3 = vadd.f32 %v1896_v42, %v842_v63 }
 0x11a   : > { %v1557_v0 = vpack.c.bf16 %v912_v54, %v912_v54  ;;  %v913_v2 = vmax.f32 %v707_v56, 0.0  ;;  %v1593_v4 = vpack.c.bf16 %v948_v59, %v948_v59  ;;  %v949_v6 = vmax.f32 %v851_v61, 0.0 }
 0x11b   : > { %v1555_v5 = vpack.c.bf16 %v910_v60, %v910_v60  ;;  %v911_v7 = vmax.f32 %v699_v62, 0.0  ;;  %v1591_v8 = vpack.c.bf16 %v946_v1, %v946_v1  ;;  %v947_v10 = vmax.f32 %v843_v3, 0.0 }
 0x11c   : > { %1273 = vst.msk [vmem:[%s1908_s27 + $0x68] sm:$0xf] %vm1246_vm3, %v1557_v0  ;;  %v1558_v9 = vpack.c.bf16 %v913_v2, %v913_v2  ;;  %1309 = vst.msk [vmem:[%s1908_s27 + $0xf8] sm:$0xf] %vm1246_vm3, %v1593_v4  ;;  %v1594_v11 = vpack.c.bf16 %v949_v6, %v949_v6 }
 0x11d   : > { %1271 = vst.msk [vmem:[%s1908_s27 + $0x60] sm:$0xf] %vm1246_vm3, %v1555_v5  ;;  %v1556_v12 = vpack.c.bf16 %v911_v7, %v911_v7  ;;  %v1675_v13 = vpop.f32.mrb[28].mxu0  ;;  %1307 = vst.msk [vmem:[%s1908_s27 + $0xf0] sm:$0xf] %vm1246_vm3, %v1591_v8  ;;  %v1592_v14 = vpack.c.bf16 %v947_v10, %v947_v10  ;;  %v1711_v16 = vpop.f32.mrb[28].mxu1 }
 0x11e   : > { %1274 = vst.msk [vmem:[%s1908_s27 + $0x6c] sm:$0xf] %vm1246_vm3, %v1558_v9  ;;  %v720_v15 = vadd.f32 %v1675_v13, %v1896_v42  ;;  %v711_v17 = vpop.f32.mrb[29].mxu0  ;;  %1310 = vst.msk [vmem:[%s1908_s27 + $0xfc] sm:$0xf] %vm1246_vm3, %v1594_v11  ;;  %v864_v18 = vadd.f32 %v1711_v16, %v1896_v42  ;;  %v855_v20 = vpop.f32.mrb[29].mxu1 }
 0x11f   : > { %1272 = vst.msk [vmem:[%s1908_s27 + $0x64] sm:$0xf] %vm1246_vm3, %v1556_v12  ;;  %v712_v19 = vadd.f32 %v1896_v42, %v711_v17  ;;  %v1676_v21 = vpop.f32.mrb[30].mxu0  ;;  %1308 = vst.msk [vmem:[%s1908_s27 + $0xf4] sm:$0xf] %vm1246_vm3, %v1592_v14  ;;  %v856_v23 = vadd.f32 %v1896_v42, %v855_v20  ;;  %v1712_v25 = vpop.f32.mrb[30].mxu1 }
 0x120   : > { %v916_v22 = vmax.f32 %v720_v15, 0.0  ;;  %v723_v24 = vadd.f32 %v1676_v21, %v1896_v42  ;;  %v714_v26 = vpop.f32.mrb[31].mxu0  ;;  %v952_v27 = vmax.f32 %v864_v18, 0.0  ;;  %v867_v29 = vadd.f32 %v1712_v25, %v1896_v42  ;;  %v858_v31 = vpop.f32.mrb[31].mxu1 }
 0x121   : > { %v914_v28 = vmax.f32 %v712_v19, 0.0  ;;  %v715_v30 = vadd.f32 %v1896_v42, %v714_v26  ;;  %v950_v33 = vmax.f32 %v856_v23, 0.0  ;;  %v859_v35 = vadd.f32 %v1896_v42, %v858_v31 }
 0x122   : > { %v1561_v32 = vpack.c.bf16 %v916_v22, %v916_v22  ;;  %v917_v34 = vmax.f32 %v723_v24, 0.0  ;;  %v1597_v36 = vpack.c.bf16 %v952_v27, %v952_v27  ;;  %v953_v38 = vmax.f32 %v867_v29, 0.0 }
 0x123   : > { %v1559_v37 = vpack.c.bf16 %v914_v28, %v914_v28  ;;  %v915_v39 = vmax.f32 %v715_v30, 0.0  ;;  %v1595_v40 = vpack.c.bf16 %v950_v33, %v950_v33  ;;  %v951_v43 = vmax.f32 %v859_v35, 0.0 }
 0x124   : > { %1277 = vst.msk [vmem:[%s1908_s27 + $0x78] sm:$0xf] %vm1246_vm3, %v1561_v32  ;;  %v1562_v41 = vpack.c.bf16 %v917_v34, %v917_v34  ;;  %1313 = vst.msk [vmem:[%s1908_s27 + $0x108] sm:$0xf] %vm1246_vm3, %v1597_v36  ;;  %v1598_v44 = vpack.c.bf16 %v953_v38, %v953_v38 }
 0x125   : > { %1275 = vst.msk [vmem:[%s1908_s27 + $0x70] sm:$0xf] %vm1246_vm3, %v1559_v37  ;;  %v1560_v45 = vpack.c.bf16 %v915_v39, %v915_v39  ;;  %v1679_v46 = vpop.f32.mrb[32].mxu0  ;;  %1311 = vst.msk [vmem:[%s1908_s27 + $0x100] sm:$0xf] %vm1246_vm3, %v1595_v40  ;;  %v1596_v47 = vpack.c.bf16 %v951_v43, %v951_v43  ;;  %v1715_v49 = vpop.f32.mrb[32].mxu1 }
 0x126   : > { %1278 = vst.msk [vmem:[%s1908_s27 + $0x7c] sm:$0xf] %vm1246_vm3, %v1562_v41  ;;  %v736_v48 = vadd.f32 %v1679_v46, %v1896_v42  ;;  %v727_v50 = vpop.f32.mrb[33].mxu0  ;;  %1314 = vst.msk [vmem:[%s1908_s27 + $0x10c] sm:$0xf] %vm1246_vm3, %v1598_v44  ;;  %v880_v51 = vadd.f32 %v1715_v49, %v1896_v42  ;;  %v871_v53 = vpop.f32.mrb[33].mxu1 }
 0x127   : > { %1276 = vst.msk [vmem:[%s1908_s27 + $0x74] sm:$0xf] %vm1246_vm3, %v1560_v45  ;;  %v728_v52 = vadd.f32 %v1896_v42, %v727_v50  ;;  %v1680_v54 = vpop.f32.mrb[34].mxu0  ;;  %1312 = vst.msk [vmem:[%s1908_s27 + $0x104] sm:$0xf] %vm1246_vm3, %v1596_v47  ;;  %v872_v56 = vadd.f32 %v1896_v42, %v871_v53  ;;  %v1716_v58 = vpop.f32.mrb[34].mxu1 }
 0x128   : > { %v920_v55 = vmax.f32 %v736_v48, 0.0  ;;  %v739_v57 = vadd.f32 %v1680_v54, %v1896_v42  ;;  %v730_v59 = vpop.f32.mrb[35].mxu0  ;;  %v956_v60 = vmax.f32 %v880_v51, 0.0  ;;  %v883_v62 = vadd.f32 %v1716_v58, %v1896_v42  ;;  %v874_v0 = vpop.f32.mrb[35].mxu1 }
 0x129   : > { %v918_v61 = vmax.f32 %v728_v52, 0.0  ;;  %v731_v63 = vadd.f32 %v1896_v42, %v730_v59  ;;  %v954_v2 = vmax.f32 %v872_v56, 0.0  ;;  %v875_v4 = vadd.f32 %v1896_v42, %v874_v0 }
 0x12a   : > { %v1565_v1 = vpack.c.bf16 %v920_v55, %v920_v55  ;;  %v921_v3 = vmax.f32 %v739_v57, 0.0  ;;  %v1601_v5 = vpack.c.bf16 %v956_v60, %v956_v60  ;;  %v957_v7 = vmax.f32 %v883_v62, 0.0 }
 0x12b   : > { %v1563_v6 = vpack.c.bf16 %v918_v61, %v918_v61  ;;  %v919_v8 = vmax.f32 %v731_v63, 0.0  ;;  %v1599_v9 = vpack.c.bf16 %v954_v2, %v954_v2  ;;  %v955_v11 = vmax.f32 %v875_v4, 0.0 }
 0x12c   : > { %1281 = vst.msk [vmem:[%s1908_s27 + $0x88] sm:$0xf] %vm1246_vm3, %v1565_v1  ;;  %v1566_v10 = vpack.c.bf16 %v921_v3, %v921_v3  ;;  %1317 = vst.msk [vmem:[%s1908_s27 + $0x118] sm:$0xf] %vm1246_vm3, %v1601_v5  ;;  %v1602_v12 = vpack.c.bf16 %v957_v7, %v957_v7 }
 0x12d   : > { %1279 = vst.msk [vmem:[%s1908_s27 + $0x80] sm:$0xf] %vm1246_vm3, %v1563_v6  ;;  %v1564_v13 = vpack.c.bf16 %v919_v8, %v919_v8  ;;  %1315 = vst.msk [vmem:[%s1908_s27 + $0x110] sm:$0xf] %vm1246_vm3, %v1599_v9  ;;  %v1600_v42 = vpack.c.bf16 %v955_v11, %v955_v11 }
 0x12e   : > { %1282 = vst.msk [vmem:[%s1908_s27 + $0x8c] sm:$0xf] %vm1246_vm3, %v1566_v10  ;;  %1318 = vst.msk [vmem:[%s1908_s27 + $0x11c] sm:$0xf] %vm1246_vm3, %v1602_v12 }
 0x12f   : > { %1280 = vst.msk [vmem:[%s1908_s27 + $0x84] sm:$0xf] %vm1246_vm3, %v1564_v13  ;;  %1316 = vst.msk [vmem:[%s1908_s27 + $0x114] sm:$0xf] %vm1246_vm3, %v1600_v42 }
 0x130 PF: > { %s13_s12 = sadd.s32 1, %s1774_s12  }
 0x131   : > { %p10_p4 = scmp.ge.s32.totalorder %s13_s12, 4  }
 0x133   :  { %12 = sbr.rel (!%p10_p4) target bundleno = 1 (0x1), region = 62 }

// kernel: net1_forward.4
= control target key start
LH: loop header
LB: loop body
LE: loop exit
PB: predicated region body
PF: predicated region fallthrough
CT: control target
= control target key end

     0   :  { %v2034_v0 = vmov 0   ;;  %vm263_vm0 = vcmask 588800   ;;  %vm303_vm1 = vcmask 1043456   ;;  %vm1618_vm2 = vcmask 125952   ;;  %s2946_s4 = inlined_call_operand.vmem [shape: bf16[200,16], index: 4, kind: input, shape index: {}]   ;;  %s2947_s0 = inlined_call_operand.vmem [shape: bf16[200,200], index: 0, kind: input, shape index: {}]   ;;  %s2948_s1 = inlined_call_operand.vmem [shape: bf16[200,200], index: 1, kind: input, shape index: {}]   ;;  %s2949_s2 = inlined_call_operand.vmem [shape: bf16[200,200], index: 2, kind: input, shape index: {}]   ;;  %s2950_s3 = inlined_call_operand.vmem [shape: bf16[200,200], index: 3, kind: input, shape index: {}]   ;;  %s2951_s5 = inlined_call_operand.vmem [shape: f32[1,16], index: 5, kind: input, shape index: {}]   ;;  %s2952_s6 = inlined_call_operand.vmem [shape: bf16[200,16], index: 6, kind: output, shape index: {}]  }
   0x1   :  { %307 = vmatprep.subr.bf16.mxu0 %v2034_v0  ;;  %621 = vmatprep.subr.bf16.mxu1 %v2034_v0  ;;  %v2075_v1 = vld [vmem:[%s2946_s4] sm:$0xff]   ;;  %v2082_v2 = vld [vmem:[%s2946_s4 + $0x8] sm:$0xff]   ;;  %v2091_v3 = vld [vmem:[%s2946_s4 + $0x10] sm:$0xff]  }
   0x2   :  { %308 = vmatpush1.bf16.msra.mxu0 %v2075_v1  ;;  %622 = vmatpush1.bf16.msra.mxu1 %v2075_v1  ;;  %v2100_v4 = vld [vmem:[%s2946_s4 + $0x18] sm:$0xff]   ;;  %v1884_v5 = vld [vmem:[%s2947_s0 + $0x4] ss:$8 sps:$4 sm:$0xff]   ;;  %v2135_v9 = vld [vmem:[%s2946_s4 + $0x30] sm:$0xff]  }
   0x3   :  { %309 = vmatprep.subr.bf16.mxu0 %v2034_v0  ;;  %623 = vmatprep.subr.bf16.mxu1 %v2034_v0  ;;  %v2112_v6 = vld [vmem:[%s2946_s4 + $0x20] sm:$0xff]   ;;  %v2126_v8 = vld [vmem:[%s2946_s4 + $0x28] sm:$0xff]   ;;  %v2144_v10 = vld [vmem:[%s2946_s4 + $0x38] sm:$0xff]  }
   0x4   :  { %v1887_v7 = vld [vmem:[%s2948_s1 + $0x4] ss:$8 sps:$4 sm:$0xff]   ;;  %1687 = vmatprep.mubr.msk.bf16.mxu0 %vm263_vm0, %v1884_v5  ;;  %v2171_v13 = vld [vmem:[%s2946_s4 + $0x50] sm:$0xff]   ;;  %v2180_v14 = vld [vmem:[%s2946_s4 + $0x58] sm:$0xff]  }
   0x5   :  { %1726 = vmatprep.mubr.msk.bf16.mxu1 %vm263_vm0, %v1887_v7  ;;  %v2153_v11 = vld [vmem:[%s2946_s4 + $0x40] sm:$0xff]   ;;  %v2162_v12 = vld [vmem:[%s2946_s4 + $0x48] sm:$0xff]   ;;  %v1888_v19 = vld [vmem:[%s2947_s0 + $0x14] ss:$8 sps:$4 sm:$0xff]  }
   0x6   :  { %310 = vmatpush1.bf16.msra.mxu0 %v2082_v2  ;;  %624 = vmatpush1.bf16.msra.mxu1 %v2082_v2  ;;  %v1881_v15 = vld [vmem:[%s2946_s4 + $0x60] ss:$0 sps:$4 sm:$0xff]   ;;  %v1890_v20 = vld [vmem:[%s2948_s1 + $0x14] ss:$8 sps:$4 sm:$0xff]   ;;  %v1892_v21 = vld [vmem:[%s2947_s0 + $0x10] ss:$8 sps:$4 sm:$0xff]  }
   0x7   :  { %311 = vmatprep.subr.bf16.mxu0 %v2034_v0  ;;  %625 = vmatprep.subr.bf16.mxu1 %v2034_v0  ;;  %v2191_v16 = vsel %vm303_vm1, %v1881_v15, 0  ;;  %v1882_v17 = vld [vmem:[%s2947_s0] ss:$8 sps:$4 sm:$0xff]   ;;  %v1893_v22 = vld [vmem:[%s2948_s1 + $0x10] ss:$8 sps:$4 sm:$0xff]  }
   0x8   :  { %v1885_v18 = vld [vmem:[%s2948_s1] ss:$8 sps:$4 sm:$0xff]   ;;  %v1894_v23 = vld [vmem:[%s2947_s0 + $0x24] ss:$8 sps:$4 sm:$0xff]   ;;  %v1900_v27 = vld [vmem:[%s2947_s0 + $0x34] ss:$8 sps:$4 sm:$0xff]  }
   0x9   :  { %v1896_v24 = vld [vmem:[%s2948_s1 + $0x24] ss:$8 sps:$4 sm:$0xff]   ;;  %v1898_v25 = vld [vmem:[%s2947_s0 + $0x20] ss:$8 sps:$4 sm:$0xff]   ;;  %v1902_v28 = vld [vmem:[%s2948_s1 + $0x34] ss:$8 sps:$4 sm:$0xff]  }
   0xa   :  { %312 = vmatpush1.bf16.msra.mxu0 %v2091_v3  ;;  %626 = vmatpush1.bf16.msra.mxu1 %v2091_v3  ;;  %v1899_v26 = vld [vmem:[%s2948_s1 + $0x20] ss:$8 sps:$4 sm:$0xff]   ;;  %v1904_v29 = vld [vmem:[%s2947_s0 + $0x30] ss:$8 sps:$4 sm:$0xff]   ;;  %v1906_v31 = vld [vmem:[%s2947_s0 + $0x44] ss:$8 sps:$4 sm:$0xff]  }
   0xb   :  { %313 = vmatprep.subr.bf16.mxu0 %v2034_v0  ;;  %627 = vmatprep.subr.bf16.mxu1 %v2034_v0  ;;  %v1905_v30 = vld [vmem:[%s2948_s1 + $0x30] ss:$8 sps:$4 sm:$0xff]   ;;  %v1908_v32 = vld [vmem:[%s2948_s1 + $0x44] ss:$8 sps:$4 sm:$0xff]   ;;  %v1910_v33 = vld [vmem:[%s2947_s0 + $0x40] ss:$8 sps:$4 sm:$0xff]  }
   0xc   :  { %v1911_v34 = vld [vmem:[%s2948_s1 + $0x40] ss:$8 sps:$4 sm:$0xff]   ;;  %v1912_v35 = vld [vmem:[%s2947_s0 + $0x54] ss:$8 sps:$4 sm:$0xff]   ;;  %v1916_v37 = vld [vmem:[%s2947_s0 + $0x50] ss:$8 sps:$4 sm:$0xff]  }
   0xd   :  { %v1914_v36 = vld [vmem:[%s2948_s1 + $0x54] ss:$8 sps:$4 sm:$0xff]   ;;  %v1917_v38 = vld [vmem:[%s2948_s1 + $0x50] ss:$8 sps:$4 sm:$0xff]   ;;  %v1918_v39 = vld [vmem:[%s2947_s0 + $0x64] ss:$8 sps:$4 sm:$0xff]  }
   0xe   :  { %314 = vmatpush1.bf16.msra.mxu0 %v2100_v4  ;;  %628 = vmatpush1.bf16.msra.mxu1 %v2100_v4  ;;  %v1920_v40 = vld [vmem:[%s2948_s1 + $0x64] ss:$8 sps:$4 sm:$0xff]   ;;  %v1922_v41 = vld [vmem:[%s2947_s0 + $0x60] ss:$8 sps:$4 sm:$0xff]   ;;  %v1924_v43 = vld [vmem:[%s2947_s0 + $0x74] ss:$8 sps:$4 sm:$0xff]  }
   0xf   :  { %315 = vmatprep.subr.bf16.mxu0 %v2034_v0  ;;  %629 = vmatprep.subr.bf16.mxu1 %v2034_v0  ;;  %v1923_v42 = vld [vmem:[%s2948_s1 + $0x60] ss:$8 sps:$4 sm:$0xff]   ;;  %v1926_v44 = vld [vmem:[%s2948_s1 + $0x74] ss:$8 sps:$4 sm:$0xff]   ;;  %v1928_v45 = vld [vmem:[%s2947_s0 + $0x70] ss:$8 sps:$4 sm:$0xff]  }
  0x10   :  { %v1929_v46 = vld [vmem:[%s2948_s1 + $0x70] ss:$8 sps:$4 sm:$0xff]   ;;  %v1930_v47 = vld [vmem:[%s2947_s0 + $0x84] ss:$8 sps:$4 sm:$0xff]   ;;  %v1934_v49 = vld [vmem:[%s2947_s0 + $0x80] ss:$8 sps:$4 sm:$0xff]  }
  0x11   :  { %v1932_v48 = vld [vmem:[%s2948_s1 + $0x84] ss:$8 sps:$4 sm:$0xff]   ;;  %v1935_v50 = vld [vmem:[%s2948_s1 + $0x80] ss:$8 sps:$4 sm:$0xff]   ;;  %v1936_v51 = vld [vmem:[%s2947_s0 + $0x94] ss:$8 sps:$4 sm:$0xff]  }
  0x12   :  { %316 = vmatpush1.bf16.msra.mxu0 %v2112_v6  ;;  %630 = vmatpush1.bf16.msra.mxu1 %v2112_v6  ;;  %v1938_v52 = vld [vmem:[%s2948_s1 + $0x94] ss:$8 sps:$4 sm:$0xff]   ;;  %v1940_v53 = vld [vmem:[%s2947_s0 + $0x90] ss:$8 sps:$4 sm:$0xff]   ;;  %v1942_v55 = vld [vmem:[%s2947_s0 + $0xa4] ss:$8 sps:$4 sm:$0xff]  }
  0x13   :  { %317 = vmatprep.subr.bf16.mxu0 %v2034_v0  ;;  %631 = vmatprep.subr.bf16.mxu1 %v2034_v0  ;;  %v1941_v54 = vld [vmem:[%s2948_s1 + $0x90] ss:$8 sps:$4 sm:$0xff]   ;;  %v1944_v56 = vld [vmem:[%s2948_s1 + $0xa4] ss:$8 sps:$4 sm:$0xff]   ;;  %v1946_v57 = vld [vmem:[%s2947_s0 + $0xa0] ss:$8 sps:$4 sm:$0xff]  }
  0x14   :  { %v1947_v58 = vld [vmem:[%s2948_s1 + $0xa0] ss:$8 sps:$4 sm:$0xff]   ;;  %v1948_v59 = vld [vmem:[%s2947_s0 + $0xb4] ss:$8 sps:$4 sm:$0xff]   ;;  %v1952_v63 = vld [vmem:[%s2947_s0 + $0xb0] ss:$8 sps:$4 sm:$0xff]  }
  0x15   :  { %v1950_v60 = vld [vmem:[%s2948_s1 + $0xb4] ss:$8 sps:$4 sm:$0xff]   ;;  %v73_v61 = vld [vmem:[%s2947_s0 + $0xc0] sm:$0xff] }
  0x16   :  { %318 = vmatpush1.bf16.msra.mxu0 %v2126_v8  ;;  %632 = vmatpush1.bf16.msra.mxu1 %v2126_v8  ;;  %v467_v62 = vld [vmem:[%s2948_s1 + $0xc0] sm:$0xff] }
  0x17   :  { %319 = vmatprep.subr.bf16.mxu0 %v2034_v0  ;;  %633 = vmatprep.subr.bf16.mxu1 %v2034_v0  ;;  %v1960_v5 = vld [vmem:[%s2949_s2 + $0x4] ss:$8 sps:$4 sm:$0xff]   ;;  %v1958_v7 = vld [vmem:[%s2949_s2] ss:$8 sps:$4 sm:$0xff]  }
  0x18   :  { %v1974_v15 = vld [vmem:[%s2949_s2 + $0x20] ss:$8 sps:$4 sm:$0xff]  }
  0x1a   :  { %320 = vmatpush1.bf16.msra.mxu0 %v2135_v9  ;;  %634 = vmatpush1.bf16.msra.mxu1 %v2135_v9 }
  0x1b   :  { %321 = vmatprep.subr.bf16.mxu0 %v2034_v0  ;;  %635 = vmatprep.subr.bf16.mxu1 %v2034_v0 }
  0x1e   :  { %322 = vmatpush1.bf16.msra.mxu0 %v2144_v10  ;;  %636 = vmatpush1.bf16.msra.mxu1 %v2144_v10 }
  0x1f   :  { %323 = vmatprep.subr.bf16.mxu0 %v2034_v0  ;;  %637 = vmatprep.subr.bf16.mxu1 %v2034_v0 }
  0x22   :  { %324 = vmatpush1.bf16.msra.mxu0 %v2153_v11  ;;  %638 = vmatpush1.bf16.msra.mxu1 %v2153_v11 }
  0x23   :  { %325 = vmatprep.subr.bf16.mxu0 %v2034_v0  ;;  %639 = vmatprep.subr.bf16.mxu1 %v2034_v0 }
  0x26   :  { %326 = vmatpush1.bf16.msra.mxu0 %v2162_v12  ;;  %640 = vmatpush1.bf16.msra.mxu1 %v2162_v12 }
  0x27   :  { %327 = vmatprep.subr.bf16.mxu0 %v2034_v0  ;;  %641 = vmatprep.subr.bf16.mxu1 %v2034_v0 }
  0x2a   :  { %328 = vmatpush1.bf16.msra.mxu0 %v2171_v13  ;;  %642 = vmatpush1.bf16.msra.mxu1 %v2171_v13 }
  0x2b   :  { %329 = vmatprep.subr.bf16.mxu0 %v2034_v0  ;;  %643 = vmatprep.subr.bf16.mxu1 %v2034_v0 }
  0x2e   :  { %330 = vmatpush1.bf16.msra.mxu0 %v2180_v14  ;;  %644 = vmatpush1.bf16.msra.mxu1 %v2180_v14 }
  0x2f   :  { %331 = vmatprep.subr.bf16.mxu0 %v2034_v0  ;;  %645 = vmatprep.subr.bf16.mxu1 %v2034_v0 }
  0x32   :  { %332 = vmatpush1.bf16.msra.mxu0 %v2191_v16  ;;  %646 = vmatpush1.bf16.msra.mxu1 %v2191_v16 }
  0x33   :  { %960 = vmatprep.subr.bf16.mxu0 %v2034_v0  ;;  %1299 = vmatprep.subr.bf16.mxu1 %v2034_v0 }
  0x35   :  { %340 = vmatmul.mubr.bf16.vlgmr.msra.gmra.mrb[0].mxu0 %v1882_v17  ;;  %654 = vmatmul.mubr.bf16.vlgmr.msra.gmra.mrb[0].mxu1 %v1885_v18  ;;  %v1976_v17 = vld [vmem:[%s2949_s2 + $0x34] ss:$8 sps:$4 sm:$0xff]  }
  0x36   :  { %961 = vmatpush1.bf16.msra.mxu0 %v2075_v1  ;;  %1300 = vmatpush1.bf16.msra.mxu1 %v2075_v1  ;;  %v1673_v1 = vcombine.high %v73_v61, %v73_v61  ;;  %v1978_v18 = vld [vmem:[%s2950_s3 + $0x34] ss:$8 sps:$4 sm:$0xff]  }
  0x37   :  { %1688 = vmatprep.mubr.msk.bf16.mxu0 %vm263_vm0, %v1888_v19  ;;  %1727 = vmatprep.mubr.msk.bf16.mxu1 %vm263_vm0, %v1890_v20  ;;  %v1980_v19 = vld [vmem:[%s2949_s2 + $0x30] ss:$8 sps:$4 sm:$0xff]  }
  0x38   :  { %962 = vmatprep.subr.bf16.mxu0 %v2034_v0  ;;  %1301 = vmatprep.subr.bf16.mxu1 %v2034_v0  ;;  %v1981_v20 = vld [vmem:[%s2950_s3 + $0x30] ss:$8 sps:$4 sm:$0xff]  }
  0x3a   :  { %963 = vmatpush1.bf16.msra.mxu0 %v2082_v2  ;;  %1302 = vmatpush1.bf16.msra.mxu1 %v2082_v2  ;;  %v1725_v2 = vcombine.high %v467_v62, %v467_v62 }
  0x3b   :  { %964 = vmatprep.subr.bf16.mxu0 %v2034_v0  ;;  %1303 = vmatprep.subr.bf16.mxu1 %v2034_v0 }
  0x3d   :  { %348 = vmatmul.mubr.bf16.gmra.mrb[4].mxu0 %v1892_v21  ;;  %662 = vmatmul.mubr.bf16.gmra.mrb[4].mxu1 %v1893_v22  ;;  %v1982_v21 = vld [vmem:[%s2949_s2 + $0x44] ss:$8 sps:$4 sm:$0xff]  }
  0x3e   :  { %1689 = vmatprep.mubr.msk.bf16.mxu0 %vm263_vm0, %v1894_v23  ;;  %1728 = vmatprep.mubr.msk.bf16.mxu1 %vm263_vm0, %v1896_v24  ;;  %v1984_v22 = vld [vmem:[%s2950_s3 + $0x44] ss:$8 sps:$4 sm:$0xff]   ;;  %v1986_v23 = vld [vmem:[%s2949_s2 + $0x40] ss:$8 sps:$4 sm:$0xff]  }
  0x3f   :  { %965 = vmatpush1.bf16.msra.mxu0 %v2091_v3  ;;  %1304 = vmatpush1.bf16.msra.mxu1 %v2091_v3  ;;  %v1672_v3 = vcombine.low %v73_v61, %v73_v61  ;;  %v1987_v24 = vld [vmem:[%s2950_s3 + $0x40] ss:$8 sps:$4 sm:$0xff]  }
  0x40   :  { %966 = vmatprep.subr.bf16.mxu0 %v2034_v0  ;;  %1305 = vmatprep.subr.bf16.mxu1 %v2034_v0 }
  0x43   :  { %967 = vmatpush1.bf16.msra.mxu0 %v2100_v4  ;;  %1306 = vmatpush1.bf16.msra.mxu1 %v2100_v4  ;;  %v1724_v4 = vcombine.low %v467_v62, %v467_v62 }
  0x44   :  { %968 = vmatprep.subr.bf16.mxu0 %v2034_v0  ;;  %1307 = vmatprep.subr.bf16.mxu1 %v2034_v0 }
  0x45   :  { %356 = vmatmul.mubr.bf16.gmra.mrb[8].mxu0 %v1898_v25  ;;  %670 = vmatmul.mubr.bf16.gmra.mrb[8].mxu1 %v1899_v26  ;;  %v1988_v25 = vld [vmem:[%s2949_s2 + $0x54] ss:$8 sps:$4 sm:$0xff]  }
  0x46   :  { %1690 = vmatprep.mubr.msk.bf16.mxu0 %vm263_vm0, %v1900_v27  ;;  %1729 = vmatprep.mubr.msk.bf16.mxu1 %vm263_vm0, %v1902_v28  ;;  %v1990_v26 = vld [vmem:[%s2950_s3 + $0x54] ss:$8 sps:$4 sm:$0xff]   ;;  %v1992_v27 = vld [vmem:[%s2949_s2 + $0x50] ss:$8 sps:$4 sm:$0xff]  }
  0x47   :  { %969 = vmatpush1.bf16.msra.mxu0 %v2112_v6  ;;  %1308 = vmatpush1.bf16.msra.mxu1 %v2112_v6  ;;  %v1963_v6 = vld [vmem:[%s2950_s3 + $0x4] ss:$8 sps:$4 sm:$0xff]   ;;  %v1993_v28 = vld [vmem:[%s2950_s3 + $0x50] ss:$8 sps:$4 sm:$0xff]  }
  0x48   :  { %970 = vmatprep.subr.bf16.mxu0 %v2034_v0  ;;  %1309 = vmatprep.subr.bf16.mxu1 %v2034_v0 }
  0x4b   :  { %971 = vmatpush1.bf16.msra.mxu0 %v2126_v8  ;;  %1310 = vmatpush1.bf16.msra.mxu1 %v2126_v8  ;;  %v1961_v8 = vld [vmem:[%s2950_s3] ss:$8 sps:$4 sm:$0xff]  }
  0x4c   :  { %972 = vmatprep.subr.bf16.mxu0 %v2034_v0  ;;  %1311 = vmatprep.subr.bf16.mxu1 %v2034_v0 }
  0x4d   :  { %364 = vmatmul.mubr.bf16.gmra.mrb[12].mxu0 %v1904_v29  ;;  %678 = vmatmul.mubr.bf16.gmra.mrb[12].mxu1 %v1905_v30  ;;  %v1994_v29 = vld [vmem:[%s2949_s2 + $0x64] ss:$8 sps:$4 sm:$0xff]  }
  0x4e   :  { %1691 = vmatprep.mubr.msk.bf16.mxu0 %vm263_vm0, %v1906_v31  ;;  %1730 = vmatprep.mubr.msk.bf16.mxu1 %vm263_vm0, %v1908_v32  ;;  %v1996_v30 = vld [vmem:[%s2950_s3 + $0x64] ss:$8 sps:$4 sm:$0xff]   ;;  %v1998_v31 = vld [vmem:[%s2949_s2 + $0x60] ss:$8 sps:$4 sm:$0xff]  }
  0x4f   :  { %973 = vmatpush1.bf16.msra.mxu0 %v2135_v9  ;;  %1312 = vmatpush1.bf16.msra.mxu1 %v2135_v9  ;;  %v1964_v9 = vld [vmem:[%s2949_s2 + $0x14] ss:$8 sps:$4 sm:$0xff]   ;;  %v1999_v32 = vld [vmem:[%s2950_s3 + $0x60] ss:$8 sps:$4 sm:$0xff]  }
  0x50   :  { %974 = vmatprep.subr.bf16.mxu0 %v2034_v0  ;;  %1313 = vmatprep.subr.bf16.mxu1 %v2034_v0 }
  0x53   :  { %975 = vmatpush1.bf16.msra.mxu0 %v2144_v10  ;;  %1314 = vmatpush1.bf16.msra.mxu1 %v2144_v10  ;;  %v1966_v10 = vld [vmem:[%s2950_s3 + $0x14] ss:$8 sps:$4 sm:$0xff]  }
  0x54   :  { %976 = vmatprep.subr.bf16.mxu0 %v2034_v0  ;;  %1315 = vmatprep.subr.bf16.mxu1 %v2034_v0 }
  0x55   :  { %372 = vmatmul.mubr.bf16.gmra.mrb[16].mxu0 %v1910_v33  ;;  %686 = vmatmul.mubr.bf16.gmra.mrb[16].mxu1 %v1911_v34  ;;  %v2000_v33 = vld [vmem:[%s2949_s2 + $0x74] ss:$8 sps:$4 sm:$0xff]  }
  0x56   :  { %1692 = vmatprep.mubr.msk.bf16.mxu0 %vm263_vm0, %v1912_v35  ;;  %1731 = vmatprep.mubr.msk.bf16.mxu1 %vm263_vm0, %v1914_v36  ;;  %v2002_v34 = vld [vmem:[%s2950_s3 + $0x74] ss:$8 sps:$4 sm:$0xff]   ;;  %v2004_v35 = vld [vmem:[%s2949_s2 + $0x70] ss:$8 sps:$4 sm:$0xff]  }
  0x57   :  { %977 = vmatpush1.bf16.msra.mxu0 %v2153_v11  ;;  %1316 = vmatpush1.bf16.msra.mxu1 %v2153_v11  ;;  %v1968_v11 = vld [vmem:[%s2949_s2 + $0x10] ss:$8 sps:$4 sm:$0xff]  }
  0x58   :  { %978 = vmatprep.subr.bf16.mxu0 %v2034_v0  ;;  %1317 = vmatprep.subr.bf16.mxu1 %v2034_v0  ;;  %v2005_v36 = vld [vmem:[%s2950_s3 + $0x70] ss:$8 sps:$4 sm:$0xff]  }
  0x5b   :  { %979 = vmatpush1.bf16.msra.mxu0 %v2162_v12  ;;  %1318 = vmatpush1.bf16.msra.mxu1 %v2162_v12  ;;  %v1969_v12 = vld [vmem:[%s2950_s3 + $0x10] ss:$8 sps:$4 sm:$0xff]  }
  0x5c   :  { %980 = vmatprep.subr.bf16.mxu0 %v2034_v0  ;;  %1319 = vmatprep.subr.bf16.mxu1 %v2034_v0 }
  0x5d   :  { %380 = vmatmul.mubr.bf16.gmra.mrb[20].mxu0 %v1916_v37  ;;  %694 = vmatmul.mubr.bf16.gmra.mrb[20].mxu1 %v1917_v38  ;;  %v2006_v37 = vld [vmem:[%s2949_s2 + $0x84] ss:$8 sps:$4 sm:$0xff]  }
  0x5e   :  { %1693 = vmatprep.mubr.msk.bf16.mxu0 %vm263_vm0, %v1918_v39  ;;  %1732 = vmatprep.mubr.msk.bf16.mxu1 %vm263_vm0, %v1920_v40  ;;  %v2008_v38 = vld [vmem:[%s2950_s3 + $0x84] ss:$8 sps:$4 sm:$0xff]   ;;  %v2010_v39 = vld [vmem:[%s2949_s2 + $0x80] ss:$8 sps:$4 sm:$0xff]  }
  0x5f   :  { %981 = vmatpush1.bf16.msra.mxu0 %v2171_v13  ;;  %1320 = vmatpush1.bf16.msra.mxu1 %v2171_v13  ;;  %v1970_v13 = vld [vmem:[%s2949_s2 + $0x24] ss:$8 sps:$4 sm:$0xff]   ;;  %v2011_v40 = vld [vmem:[%s2950_s3 + $0x80] ss:$8 sps:$4 sm:$0xff]  }
  0x60   :  { %982 = vmatprep.subr.bf16.mxu0 %v2034_v0  ;;  %1321 = vmatprep.subr.bf16.mxu1 %v2034_v0 }
  0x63   :  { %983 = vmatpush1.bf16.msra.mxu0 %v2180_v14  ;;  %1322 = vmatpush1.bf16.msra.mxu1 %v2180_v14  ;;  %v1972_v14 = vld [vmem:[%s2950_s3 + $0x24] ss:$8 sps:$4 sm:$0xff]  }
  0x64   :  { %984 = vmatprep.subr.bf16.mxu0 %v2034_v0  ;;  %1323 = vmatprep.subr.bf16.mxu1 %v2034_v0  ;;  %v1953_v0 = vld [vmem:[%s2948_s1 + $0xb0] ss:$8 sps:$4 sm:$0xff]  }
  0x65   :  { %388 = vmatmul.mubr.bf16.gmra.mrb[24].mxu0 %v1922_v41  ;;  %702 = vmatmul.mubr.bf16.gmra.mrb[24].mxu1 %v1923_v42  ;;  %v2012_v41 = vld [vmem:[%s2949_s2 + $0x94] ss:$8 sps:$4 sm:$0xff]  }
  0x66   :  { %1694 = vmatprep.mubr.msk.bf16.mxu0 %vm263_vm0, %v1924_v43  ;;  %1733 = vmatprep.mubr.msk.bf16.mxu1 %vm263_vm0, %v1926_v44  ;;  %v2014_v42 = vld [vmem:[%s2950_s3 + $0x94] ss:$8 sps:$4 sm:$0xff]   ;;  %v2016_v43 = vld [vmem:[%s2949_s2 + $0x90] ss:$8 sps:$4 sm:$0xff]  }
  0x67   :  { %985 = vmatpush1.bf16.msra.mxu0 %v2191_v16  ;;  %1324 = vmatpush1.bf16.msra.mxu1 %v2191_v16  ;;  %v1975_v16 = vld [vmem:[%s2950_s3 + $0x20] ss:$8 sps:$4 sm:$0xff]   ;;  %v2017_v44 = vld [vmem:[%s2950_s3 + $0x90] ss:$8 sps:$4 sm:$0xff]  }
  0x6d   :  { %396 = vmatmul.mubr.bf16.gmra.mrb[28].mxu0 %v1928_v45  ;;  %710 = vmatmul.mubr.bf16.gmra.mrb[28].mxu1 %v1929_v46  ;;  %v2018_v45 = vld [vmem:[%s2949_s2 + $0xa4] ss:$8 sps:$4 sm:$0xff]  }
  0x6e   :  { %1695 = vmatprep.mubr.msk.bf16.mxu0 %vm263_vm0, %v1930_v47  ;;  %1734 = vmatprep.mubr.msk.bf16.mxu1 %vm263_vm0, %v1932_v48  ;;  %v2020_v46 = vld [vmem:[%s2950_s3 + $0xa4] ss:$8 sps:$4 sm:$0xff]   ;;  %v2022_v47 = vld [vmem:[%s2949_s2 + $0xa0] ss:$8 sps:$4 sm:$0xff]  }
  0x6f   :  { %v2023_v48 = vld [vmem:[%s2950_s3 + $0xa0] ss:$8 sps:$4 sm:$0xff]  }
  0x75   :  { %404 = vmatmul.mubr.bf16.gmra.mrb[32].mxu0 %v1934_v49  ;;  %718 = vmatmul.mubr.bf16.gmra.mrb[32].mxu1 %v1935_v50  ;;  %v2024_v49 = vld [vmem:[%s2949_s2 + $0xb4] ss:$8 sps:$4 sm:$0xff]  }
  0x76   :  { %1696 = vmatprep.mubr.msk.bf16.mxu0 %vm263_vm0, %v1936_v51  ;;  %1735 = vmatprep.mubr.msk.bf16.mxu1 %vm263_vm0, %v1938_v52  ;;  %v2026_v50 = vld [vmem:[%s2950_s3 + $0xb4] ss:$8 sps:$4 sm:$0xff]   ;;  %v806_v51 = vld [vmem:[%s2949_s2 + $0xc0] sm:$0xff] }
  0x77   :  { %v1145_v52 = vld [vmem:[%s2950_s3 + $0xc0] sm:$0xff] }
  0x7d   :  { %412 = vmatmul.mubr.bf16.gmra.mrb[36].mxu0 %v1940_v53  ;;  %726 = vmatmul.mubr.bf16.gmra.mrb[36].mxu1 %v1941_v54  ;;  %v2028_v53 = vld [vmem:[%s2949_s2 + $0xb0] ss:$8 sps:$4 sm:$0xff]  }
  0x7e   :  { %1697 = vmatprep.mubr.msk.bf16.mxu0 %vm263_vm0, %v1942_v55  ;;  %1736 = vmatprep.mubr.msk.bf16.mxu1 %vm263_vm0, %v1944_v56  ;;  %v2029_v54 = vld [vmem:[%s2950_s3 + $0xb0] ss:$8 sps:$4 sm:$0xff]   ;;  %v1764_v55 = vcombine.high %v806_v51, %v806_v51  ;;  %v1803_v56 = vcombine.high %v1145_v52, %v1145_v52 }
  0x85   :  { %420 = vmatmul.mubr.bf16.gmra.mrb[40].mxu0 %v1946_v57  ;;  %734 = vmatmul.mubr.bf16.gmra.mrb[40].mxu1 %v1947_v58  ;;  %v1763_v57 = vcombine.low %v806_v51, %v806_v51  ;;  %v1802_v58 = vcombine.low %v1145_v52, %v1145_v52 }
  0x86   :  { %1698 = vmatprep.mubr.msk.bf16.mxu0 %vm263_vm0, %v1948_v59  ;;  %1737 = vmatprep.mubr.msk.bf16.mxu1 %vm263_vm0, %v1950_v60 }
  0x8d   :  { %428 = vmatmul.mubr.bf16.gmra.mrb[44].mxu0 %v1952_v63  ;;  %742 = vmatmul.mubr.bf16.gmra.mrb[44].mxu1 %v1953_v0 }
  0x8e   :  { %1699 = vmatprep.mubr.msk.bf16.mxu0 %vm263_vm0, %v1673_v1  ;;  %1738 = vmatprep.mubr.msk.bf16.mxu1 %vm263_vm0, %v1725_v2  ;;  %v2747_v2 = vld [vmem:[%s2951_s5] ss:$0 sm:$0xff] }
  0x95   :  { %436 = vmatmul.mubr.bf16.gmra.mrb[48].mxu0 %v1672_v3  ;;  %750 = vmatmul.mubr.bf16.gmra.mrb[48].mxu1 %v1724_v4 }
  0x96   :  { %1765 = vmatprep.mubr.msk.bf16.mxu0 %vm263_vm0, %v1960_v5  ;;  %1804 = vmatprep.mubr.msk.bf16.mxu1 %vm263_vm0, %v1963_v6 }
  0x9d   :  { %993 = vmatmul.mubr.bf16.vlgmr.msra.gmra.mrb[52].mxu0 %v1958_v7  ;;  %1332 = vmatmul.mubr.bf16.vlgmr.msra.gmra.mrb[52].mxu1 %v1961_v8 }
  0x9e   :  { %1766 = vmatprep.mubr.msk.bf16.mxu0 %vm263_vm0, %v1964_v9  ;;  %1805 = vmatprep.mubr.msk.bf16.mxu1 %vm263_vm0, %v1966_v10 }
  0xa5   :  { %1001 = vmatmul.mubr.bf16.gmra.mrb[56].mxu0 %v1968_v11  ;;  %1340 = vmatmul.mubr.bf16.gmra.mrb[56].mxu1 %v1969_v12 }
  0xa6   :  { %1767 = vmatprep.mubr.msk.bf16.mxu0 %vm263_vm0, %v1970_v13  ;;  %1806 = vmatprep.mubr.msk.bf16.mxu1 %vm263_vm0, %v1972_v14 }
  0xad   :  { %1009 = vmatmul.mubr.bf16.gmra.mrb[60].mxu0 %v1974_v15  ;;  %1348 = vmatmul.mubr.bf16.gmra.mrb[60].mxu1 %v1975_v16 }
  0xae   :  { %1768 = vmatprep.mubr.msk.bf16.mxu0 %vm263_vm0, %v1976_v17  ;;  %1807 = vmatprep.mubr.msk.bf16.mxu1 %vm263_vm0, %v1978_v18 }
  0xb5   :  { %1017 = vmatmul.mubr.bf16.gmra.mrb[64].mxu0 %v1980_v19  ;;  %1356 = vmatmul.mubr.bf16.gmra.mrb[64].mxu1 %v1981_v20 }
  0xb6   :  { %1769 = vmatprep.mubr.msk.bf16.mxu0 %vm263_vm0, %v1982_v21  ;;  %1808 = vmatprep.mubr.msk.bf16.mxu1 %vm263_vm0, %v1984_v22 }
  0xbd   :  { %1025 = vmatmul.mubr.bf16.gmra.mrb[68].mxu0 %v1986_v23  ;;  %1364 = vmatmul.mubr.bf16.gmra.mrb[68].mxu1 %v1987_v24 }
  0xbe   :  { %1770 = vmatprep.mubr.msk.bf16.mxu0 %vm263_vm0, %v1988_v25  ;;  %1809 = vmatprep.mubr.msk.bf16.mxu1 %vm263_vm0, %v1990_v26 }
  0xc5   :  { %1033 = vmatmul.mubr.bf16.gmra.mrb[72].mxu0 %v1992_v27  ;;  %1372 = vmatmul.mubr.bf16.gmra.mrb[72].mxu1 %v1993_v28 }
  0xc6   :  { %1771 = vmatprep.mubr.msk.bf16.mxu0 %vm263_vm0, %v1994_v29  ;;  %1810 = vmatprep.mubr.msk.bf16.mxu1 %vm263_vm0, %v1996_v30 }
  0xcd   :  { %1041 = vmatmul.mubr.bf16.gmra.mrb[76].mxu0 %v1998_v31  ;;  %1380 = vmatmul.mubr.bf16.gmra.mrb[76].mxu1 %v1999_v32 }
  0xce   :  { %1772 = vmatprep.mubr.msk.bf16.mxu0 %vm263_vm0, %v2000_v33  ;;  %1811 = vmatprep.mubr.msk.bf16.mxu1 %vm263_vm0, %v2002_v34 }
  0xd5   :  { %1049 = vmatmul.mubr.bf16.gmra.mrb[80].mxu0 %v2004_v35  ;;  %1388 = vmatmul.mubr.bf16.gmra.mrb[80].mxu1 %v2005_v36 }
  0xd6   :  { %1773 = vmatprep.mubr.msk.bf16.mxu0 %vm263_vm0, %v2006_v37  ;;  %1812 = vmatprep.mubr.msk.bf16.mxu1 %vm263_vm0, %v2008_v38 }
  0xdd   :  { %1057 = vmatmul.mubr.bf16.gmra.mrb[84].mxu0 %v2010_v39  ;;  %1396 = vmatmul.mubr.bf16.gmra.mrb[84].mxu1 %v2011_v40 }
  0xde   :  { %1774 = vmatprep.mubr.msk.bf16.mxu0 %vm263_vm0, %v2012_v41  ;;  %1813 = vmatprep.mubr.msk.bf16.mxu1 %vm263_vm0, %v2014_v42 }
  0xe5   :  { %1065 = vmatmul.mubr.bf16.gmra.mrb[88].mxu0 %v2016_v43  ;;  %1404 = vmatmul.mubr.bf16.gmra.mrb[88].mxu1 %v2017_v44 }
  0xe6   :  { %1775 = vmatprep.mubr.msk.bf16.mxu0 %vm263_vm0, %v2018_v45  ;;  %1814 = vmatprep.mubr.msk.bf16.mxu1 %vm263_vm0, %v2020_v46 }
  0xed   :  { %1073 = vmatmul.mubr.bf16.gmra.mrb[92].mxu0 %v2022_v47  ;;  %1412 = vmatmul.mubr.bf16.gmra.mrb[92].mxu1 %v2023_v48 }
  0xee   :  { %1776 = vmatprep.mubr.msk.bf16.mxu0 %vm263_vm0, %v2024_v49  ;;  %1815 = vmatprep.mubr.msk.bf16.mxu1 %vm263_vm0, %v2026_v50 }
  0xf5   :  { %1081 = vmatmul.mubr.bf16.gmra.mrb[96].mxu0 %v2028_v53  ;;  %1420 = vmatmul.mubr.bf16.gmra.mrb[96].mxu1 %v2029_v54 }
  0xf6   :  { %1777 = vmatprep.mubr.msk.bf16.mxu0 %vm263_vm0, %v1764_v55  ;;  %1816 = vmatprep.mubr.msk.bf16.mxu1 %vm263_vm0, %v1803_v56 }
  0xfd   :  { %1089 = vmatmul.mubr.bf16.gmra.mrb[100].mxu0 %v1763_v57  ;;  %1428 = vmatmul.mubr.bf16.gmra.mrb[100].mxu1 %v1802_v58 }
 0x108   :  { %v2591_v59 = vpop.f32.mrb[0].mxu0  ;;  %v2593_v60 = vpop.f32.mrb[0].mxu1 }
 0x109   :  { %v757_v61 = vmax.f32 %v2591_v59, %v2593_v60  ;;  %v343_v62 = vpop.f32.mrb[1].mxu0  ;;  %v657_v63 = vpop.f32.mrb[1].mxu1 }
 0x10a   :  { %v2597_v0 = vpop.f32.mrb[2].mxu0  ;;  %v2599_v1 = vpop.f32.mrb[2].mxu1 }
 0x10b   :  { %v346_v3 = vpop.f32.mrb[3].mxu0  ;;  %v660_v4 = vpop.f32.mrb[3].mxu1 }
 0x110   :  { %v2603_v5 = vpop.f32.mrb[4].mxu0  ;;  %v2605_v6 = vpop.f32.mrb[4].mxu1 }
 0x111   :  { %v351_v8 = vpop.f32.mrb[5].mxu0  ;;  %v665_v9 = vpop.f32.mrb[5].mxu1 }
 0x112   :  { %v2609_v10 = vpop.f32.mrb[6].mxu0  ;;  %v2611_v11 = vpop.f32.mrb[6].mxu1 }
 0x113   :  { %v354_v13 = vpop.f32.mrb[7].mxu0  ;;  %v668_v14 = vpop.f32.mrb[7].mxu1 }
 0x118   :  { %v2615_v15 = vpop.f32.mrb[8].mxu0  ;;  %v2617_v16 = vpop.f32.mrb[8].mxu1 }
 0x119   :  { %v359_v18 = vpop.f32.mrb[9].mxu0  ;;  %v673_v19 = vpop.f32.mrb[9].mxu1 }
 0x11a   :  { %v2621_v20 = vpop.f32.mrb[10].mxu0  ;;  %v2623_v21 = vpop.f32.mrb[10].mxu1 }
 0x11b   :  { %v362_v23 = vpop.f32.mrb[11].mxu0  ;;  %v676_v24 = vpop.f32.mrb[11].mxu1 }
 0x120   :  { %v2627_v25 = vpop.f32.mrb[12].mxu0  ;;  %v2629_v26 = vpop.f32.mrb[12].mxu1 }
 0x121   :  { %v367_v28 = vpop.f32.mrb[13].mxu0  ;;  %v681_v29 = vpop.f32.mrb[13].mxu1 }
 0x122   :  { %v2633_v30 = vpop.f32.mrb[14].mxu0  ;;  %v2635_v31 = vpop.f32.mrb[14].mxu1 }
 0x123   :  { %v370_v33 = vpop.f32.mrb[15].mxu0  ;;  %v684_v34 = vpop.f32.mrb[15].mxu1 }
 0x128   :  { %v2639_v35 = vpop.f32.mrb[16].mxu0  ;;  %v2641_v36 = vpop.f32.mrb[16].mxu1 }
 0x129   :  { %v375_v38 = vpop.f32.mrb[17].mxu0  ;;  %v689_v39 = vpop.f32.mrb[17].mxu1 }
 0x12a   :  { %v2645_v40 = vpop.f32.mrb[18].mxu0  ;;  %v2647_v41 = vpop.f32.mrb[18].mxu1 }
 0x12b   :  { %v378_v43 = vpop.f32.mrb[19].mxu0  ;;  %v692_v44 = vpop.f32.mrb[19].mxu1 }
 0x130   :  { %v2651_v45 = vpop.f32.mrb[20].mxu0  ;;  %v2653_v46 = vpop.f32.mrb[20].mxu1 }
 0x131   :  { %v383_v48 = vpop.f32.mrb[21].mxu0  ;;  %v697_v49 = vpop.f32.mrb[21].mxu1 }
 0x132   :  { %v2657_v50 = vpop.f32.mrb[22].mxu0  ;;  %v2659_v51 = vpop.f32.mrb[22].mxu1 }
 0x133   :  { %v386_v53 = vpop.f32.mrb[23].mxu0  ;;  %v700_v54 = vpop.f32.mrb[23].mxu1 }
 0x138   :  { %v2663_v55 = vpop.f32.mrb[24].mxu0  ;;  %v2665_v56 = vpop.f32.mrb[24].mxu1 }
 0x139   :  { %v391_v58 = vpop.f32.mrb[25].mxu0  ;;  %v705_v62 = vpop.f32.mrb[25].mxu1 }
 0x13a   :  { %v2669_v63 = vpop.f32.mrb[26].mxu0  ;;  %v2671_v3 = vpop.f32.mrb[26].mxu1 }
 0x13b   :  { %v394_v8 = vpop.f32.mrb[27].mxu0  ;;  %v708_v9 = vpop.f32.mrb[27].mxu1 }
 0x140   :  { %v2675_v13 = vpop.f32.mrb[28].mxu0  ;;  %v2677_v14 = vpop.f32.mrb[28].mxu1 }
 0x141   :  { %v399_v19 = vpop.f32.mrb[29].mxu0  ;;  %v713_v23 = vpop.f32.mrb[29].mxu1 }
 0x142   :  { %v2681_v24 = vpop.f32.mrb[30].mxu0  ;;  %v2683_v28 = vpop.f32.mrb[30].mxu1 }
 0x143   :  { %v402_v33 = vpop.f32.mrb[31].mxu0  ;;  %v716_v34 = vpop.f32.mrb[31].mxu1 }
 0x148   :  { %v2687_v38 = vpop.f32.mrb[32].mxu0  ;;  %v2689_v39 = vpop.f32.mrb[32].mxu1 }
 0x149   :  { %v407_v44 = vpop.f32.mrb[33].mxu0  ;;  %v721_v48 = vpop.f32.mrb[33].mxu1 }
 0x14a   :  { %v2693_v49 = vpop.f32.mrb[34].mxu0  ;;  %v2695_v53 = vpop.f32.mrb[34].mxu1 }
 0x14b   :  { %v410_v58 = vpop.f32.mrb[35].mxu0  ;;  %v724_v62 = vpop.f32.mrb[35].mxu1 }
 0x150   :  { %v2699_v8 = vpop.f32.mrb[36].mxu0  ;;  %v2701_v9 = vpop.f32.mrb[36].mxu1 }
 0x151   :  { %v415_v23 = vpop.f32.mrb[37].mxu0  ;;  %v729_v33 = vpop.f32.mrb[37].mxu1 }
 0x152   :  { %v2705_v34 = vpop.f32.mrb[38].mxu0  ;;  %v2707_v44 = vpop.f32.mrb[38].mxu1 }
 0x153   :  { %v418_v43 = vpop.f32.mrb[39].mxu0  ;;  %v732_v54 = vpop.f32.mrb[39].mxu1 }
 0x158   :  { %v2711_v58 = vpop.f32.mrb[40].mxu0  ;;  %v2713_v62 = vpop.f32.mrb[40].mxu1 }
 0x159   :  { %v423_v18 = vpop.f32.mrb[41].mxu0  ;;  %v737_v19 = vpop.f32.mrb[41].mxu1 }
 0x15a   :  { %v2717_v23 = vpop.f32.mrb[42].mxu0  ;;  %v2719_v33 = vpop.f32.mrb[42].mxu1 }
 0x15b   :  { %v426_v57 = vpop.f32.mrb[43].mxu0  ;;  %v740_v48 = vpop.f32.mrb[43].mxu1 }
 0x160   :  { %v2723_v43 = vpop.f32.mrb[44].mxu0  ;;  %v2725_v54 = vpop.f32.mrb[44].mxu1 }
 0x161   :  { %v431_v47 = vpop.f32.mrb[45].mxu0  ;;  %v745_v29 = vpop.f32.mrb[45].mxu1 }
 0x162   :  { %v2729_v18 = vpop.f32.mrb[46].mxu0  ;;  %v2731_v19 = vpop.f32.mrb[46].mxu1 }
 0x163   :  { %2956 = vst [vmem:[#allocation2_spill] sm:$0xff] %v2731_v19  ;;  %v434_v37 = vpop.f32.mrb[47].mxu0  ;;  %v748_v4 = vpop.f32.mrb[47].mxu1 }
 0x168   :  { %v2735_v57 = vpop.f32.mrb[48].mxu0  ;;  %v2737_v48 = vpop.f32.mrb[48].mxu1 }
 0x169   :  { %2957 = vst [vmem:[#allocation3_spill] sm:$0xff] %v2735_v57  ;;  %2958 = vst [vmem:[#allocation4_spill] sm:$0xff] %v2737_v48  ;;  %v439_v27 = vpop.f32.mrb[49].mxu0  ;;  %v753_v52 = vpop.f32.mrb[49].mxu1 }
 0x16a   :  { %v440_v47 = vpop.f32.mrb[50].mxu0  ;;  %v754_v29 = vpop.f32.mrb[50].mxu1 }
 0x16b   :  { %v441_v22 = vpop.f32.mrb[51].mxu0  ;;  %v755_v17 = vpop.f32.mrb[51].mxu1 }
 0x16c   :  { %v2959_v22 = vmax.f32 %v2597_v0, %v2599_v1 }
 0x170   :  { %v994_v12 = vpop.f32.mrb[52].mxu0  ;;  %v1333_v7 = vpop.f32.mrb[52].mxu1 }
 0x171   :  { %v1096_v37 = vmax.f32 %v757_v61, %v994_v12  ;;  %v996_v4 = vpop.f32.mrb[53].mxu0  ;;  %v1335_v42 = vpop.f32.mrb[53].mxu1 }
 0x172   :  { %v997_v32 = vpop.f32.mrb[54].mxu0  ;;  %v1336_v27 = vpop.f32.mrb[54].mxu1 }
 0x173   :  { %v1435_v52 = vmax.f32 %v1096_v37, %v1333_v7  ;;  %v1097_v17 = vmax.f32 %v2959_v22, %v997_v32  ;;  %v999_v47 = vpop.f32.mrb[55].mxu0  ;;  %v1338_v29 = vpop.f32.mrb[55].mxu1  ;;  %v2960_v7 = vmax.f32 %v2603_v5, %v2605_v6 }
 0x175   :  { %v1467_v48 = vadd.f32 %v2747_v2, %v1435_v52  ;;  %v1436_v59 = vmax.f32 %v1097_v17, %v1336_v27  ;;  %v2961_v52 = vmax.f32 %v2609_v10, %v2611_v11  ;;  %v2962_v10 = vmax.f32 %v2615_v15, %v2617_v16 }
 0x177   :  { %v1492_v60 = vmax.f32 %v1467_v48, 0.0  ;;  %v1468_v61 = vadd.f32 %v2747_v2, %v1436_v59 }
 0x178   :  { %v1002_v12 = vpop.f32.mrb[56].mxu0  ;;  %v1341_v42 = vpop.f32.mrb[56].mxu1 }
 0x179   :  { %v1843_v4 = vpack.c.bf16 %v1492_v60, %v1492_v60  ;;  %v1493_v57 = vmax.f32 %v1468_v61, 0.0  ;;  %v1098_v37 = vmax.f32 %v2960_v7, %v1002_v12  ;;  %v1004_v19 = vpop.f32.mrb[57].mxu0  ;;  %v1343_v0 = vpop.f32.mrb[57].mxu1 }
 0x17a   :  { %v1005_v1 = vpop.f32.mrb[58].mxu0  ;;  %v1344_v32 = vpop.f32.mrb[58].mxu1 }
 0x17b   :  { %1619 = vst.msk [vmem:[%s2952_s6] sm:$0xf] %vm1618_vm2, %v1843_v4  ;;  %v1844_v48 = vpack.c.bf16 %v1493_v57, %v1493_v57  ;;  %v1437_v27 = vmax.f32 %v1098_v37, %v1341_v42  ;;  %v1099_v22 = vmax.f32 %v2961_v52, %v1005_v1  ;;  %v1007_v17 = vpop.f32.mrb[59].mxu0  ;;  %v1346_v47 = vpop.f32.mrb[59].mxu1  ;;  %v2963_v1 = vmax.f32 %v2621_v20, %v2623_v21 }
 0x17c   :  { %v2964_v20 = vmax.f32 %v2627_v25, %v2629_v26 }
 0x17d   :  { %1620 = vst.msk [vmem:[%s2952_s6 + $0x4] sm:$0xf] %vm1618_vm2, %v1844_v48  ;;  %v1469_v5 = vadd.f32 %v2747_v2, %v1437_v27  ;;  %v1438_v6 = vmax.f32 %v1099_v22, %v1344_v32 }
 0x17f   :  { %v1494_v19 = vmax.f32 %v1469_v5, 0.0  ;;  %v1470_v29 = vadd.f32 %v2747_v2, %v1438_v6 }
 0x180   :  { %v1010_v59 = vpop.f32.mrb[60].mxu0  ;;  %v1349_v57 = vpop.f32.mrb[60].mxu1 }
 0x181   :  { %v1845_v60 = vpack.c.bf16 %v1494_v19, %v1494_v19  ;;  %v1495_v61 = vmax.f32 %v1470_v29, 0.0  ;;  %v1100_v11 = vmax.f32 %v2962_v10, %v1010_v59  ;;  %v1012_v12 = vpop.f32.mrb[61].mxu0  ;;  %v1351_v42 = vpop.f32.mrb[61].mxu1  ;;  %v2965_v10 = vmax.f32 %v2633_v30, %v2635_v31 }
 0x182   :  { %v1013_v4 = vpop.f32.mrb[62].mxu0  ;;  %v1352_v7 = vpop.f32.mrb[62].mxu1  ;;  %v2966_v30 = vmax.f32 %v2639_v35, %v2641_v36 }
 0x183   :  { %1621 = vst.msk [vmem:[%s2952_s6 + $0x8] sm:$0xf] %vm1618_vm2, %v1845_v60  ;;  %v1846_v37 = vpack.c.bf16 %v1495_v61, %v1495_v61  ;;  %v1439_v0 = vmax.f32 %v1100_v11, %v1349_v57  ;;  %v1101_v32 = vmax.f32 %v2963_v1, %v1013_v4  ;;  %v1015_v48 = vpop.f32.mrb[63].mxu0  ;;  %v1354_v27 = vpop.f32.mrb[63].mxu1 }
 0x185   :  { %1622 = vst.msk [vmem:[%s2952_s6 + $0xc] sm:$0xf] %vm1618_vm2, %v1846_v37  ;;  %v1471_v15 = vadd.f32 %v2747_v2, %v1439_v0  ;;  %v1440_v16 = vmax.f32 %v1101_v32, %v1352_v7 }
 0x187   :  { %v1496_v52 = vmax.f32 %v1471_v15, 0.0  ;;  %v1472_v22 = vadd.f32 %v2747_v2, %v1440_v16 }
 0x188   :  { %v1018_v17 = vpop.f32.mrb[64].mxu0  ;;  %v1357_v47 = vpop.f32.mrb[64].mxu1 }
 0x189   :  { %v1847_v5 = vpack.c.bf16 %v1496_v52, %v1496_v52  ;;  %v1497_v6 = vmax.f32 %v1472_v22, 0.0  ;;  %v1102_v21 = vmax.f32 %v2964_v20, %v1018_v17  ;;  %v1020_v19 = vpop.f32.mrb[65].mxu0  ;;  %v1359_v29 = vpop.f32.mrb[65].mxu1  ;;  %v2967_v17 = vmax.f32 %v2645_v40, %v2647_v41 }
 0x18a   :  { %v1021_v59 = vpop.f32.mrb[66].mxu0  ;;  %v1360_v57 = vpop.f32.mrb[66].mxu1  ;;  %v2968_v40 = vmax.f32 %v2651_v45, %v2653_v46 }
 0x18b   :  { %1623 = vst.msk [vmem:[%s2952_s6 + $0x10] sm:$0xf] %vm1618_vm2, %v1847_v5  ;;  %v1848_v60 = vpack.c.bf16 %v1497_v6, %v1497_v6  ;;  %v1441_v61 = vmax.f32 %v1102_v21, %v1357_v47  ;;  %v1103_v11 = vmax.f32 %v2965_v10, %v1021_v59  ;;  %v1023_v12 = vpop.f32.mrb[67].mxu0  ;;  %v1362_v42 = vpop.f32.mrb[67].mxu1 }
 0x18d   :  { %1624 = vst.msk [vmem:[%s2952_s6 + $0x14] sm:$0xf] %vm1618_vm2, %v1848_v60  ;;  %v1473_v25 = vadd.f32 %v2747_v2, %v1441_v61  ;;  %v1442_v26 = vmax.f32 %v1103_v11, %v1360_v57 }
 0x18f   :  { %v1498_v4 = vmax.f32 %v1473_v25, 0.0  ;;  %v1474_v7 = vadd.f32 %v2747_v2, %v1442_v26  ;;  %v2969_v25 = vmax.f32 %v2657_v50, %v2659_v51  ;;  %v2970_v50 = vmax.f32 %v2663_v55, %v2665_v56 }
 0x190   :  { %v1026_v37 = vpop.f32.mrb[68].mxu0  ;;  %v1365_v0 = vpop.f32.mrb[68].mxu1 }
 0x191   :  { %v1849_v1 = vpack.c.bf16 %v1498_v4, %v1498_v4  ;;  %v1499_v32 = vmax.f32 %v1474_v7, 0.0  ;;  %v1104_v31 = vmax.f32 %v2966_v30, %v1026_v37  ;;  %v1028_v48 = vpop.f32.mrb[69].mxu0  ;;  %v1367_v27 = vpop.f32.mrb[69].mxu1 }
 0x192   :  { %v1029_v15 = vpop.f32.mrb[70].mxu0  ;;  %v1368_v16 = vpop.f32.mrb[70].mxu1 }
 0x193   :  { %1625 = vst.msk [vmem:[%s2952_s6 + $0x18] sm:$0xf] %vm1618_vm2, %v1849_v1  ;;  %v1850_v52 = vpack.c.bf16 %v1499_v32, %v1499_v32  ;;  %v1443_v22 = vmax.f32 %v1104_v31, %v1365_v0  ;;  %v1105_v47 = vmax.f32 %v2967_v17, %v1029_v15  ;;  %v1031_v5 = vpop.f32.mrb[71].mxu0  ;;  %v1370_v6 = vpop.f32.mrb[71].mxu1  ;;  %v2971_v17 = vmax.f32 %v2669_v63, %v2671_v3 }
 0x194   :  { %v2972_v63 = vmax.f32 %v2675_v13, %v2677_v14 }
 0x195   :  { %1626 = vst.msk [vmem:[%s2952_s6 + $0x1c] sm:$0xf] %vm1618_vm2, %v1850_v52  ;;  %v1475_v35 = vadd.f32 %v2747_v2, %v1443_v22  ;;  %v1444_v36 = vmax.f32 %v1105_v47, %v1368_v16 }
 0x197   :  { %v1500_v20 = vmax.f32 %v1475_v35, 0.0  ;;  %v1476_v21 = vadd.f32 %v2747_v2, %v1444_v36 }
 0x198   :  { %v1034_v19 = vpop.f32.mrb[72].mxu0  ;;  %v1373_v29 = vpop.f32.mrb[72].mxu1 }
 0x199   :  { %v1851_v59 = vpack.c.bf16 %v1500_v20, %v1500_v20  ;;  %v1501_v57 = vmax.f32 %v1476_v21, 0.0  ;;  %v1106_v41 = vmax.f32 %v2968_v40, %v1034_v19  ;;  %v1036_v60 = vpop.f32.mrb[73].mxu0  ;;  %v1375_v61 = vpop.f32.mrb[73].mxu1 }
 0x19a   :  { %v1037_v10 = vpop.f32.mrb[74].mxu0  ;;  %v1376_v11 = vpop.f32.mrb[74].mxu1 }
 0x19b   :  { %1627 = vst.msk [vmem:[%s2952_s6 + $0x20] sm:$0xf] %vm1618_vm2, %v1851_v59  ;;  %v1852_v12 = vpack.c.bf16 %v1501_v57, %v1501_v57  ;;  %v1445_v42 = vmax.f32 %v1106_v41, %v1373_v29  ;;  %v1107_v26 = vmax.f32 %v2969_v25, %v1037_v10  ;;  %v1039_v4 = vpop.f32.mrb[75].mxu0  ;;  %v1378_v7 = vpop.f32.mrb[75].mxu1  ;;  %v2973_v10 = vmax.f32 %v2681_v24, %v2683_v28 }
 0x19c   :  { %v2974_v24 = vmax.f32 %v2687_v38, %v2689_v39 }
 0x19d   :  { %1628 = vst.msk [vmem:[%s2952_s6 + $0x24] sm:$0xf] %vm1618_vm2, %v1852_v12  ;;  %v1477_v45 = vadd.f32 %v2747_v2, %v1445_v42  ;;  %v1446_v46 = vmax.f32 %v1107_v26, %v1376_v11 }
 0x19f   :  { %v1502_v37 = vmax.f32 %v1477_v45, 0.0  ;;  %v1478_v0 = vadd.f32 %v2747_v2, %v1446_v46 }
 0x1a0   :  { %v1042_v1 = vpop.f32.mrb[76].mxu0  ;;  %v1381_v32 = vpop.f32.mrb[76].mxu1 }
 0x1a1   :  { %v1853_v30 = vpack.c.bf16 %v1502_v37, %v1502_v37  ;;  %v1503_v31 = vmax.f32 %v1478_v0, 0.0  ;;  %v1108_v51 = vmax.f32 %v2970_v50, %v1042_v1  ;;  %v1044_v48 = vpop.f32.mrb[77].mxu0  ;;  %v1383_v27 = vpop.f32.mrb[77].mxu1  ;;  %v2975_v50 = vmax.f32 %v2693_v49, %v2695_v53 }
 0x1a2   :  { %v1045_v15 = vpop.f32.mrb[78].mxu0  ;;  %v1384_v16 = vpop.f32.mrb[78].mxu1  ;;  %v2976_v49 = vmax.f32 %v2699_v8, %v2701_v9 }
 0x1a3   :  { %1629 = vst.msk [vmem:[%s2952_s6 + $0x28] sm:$0xf] %vm1618_vm2, %v1853_v30  ;;  %v1854_v52 = vpack.c.bf16 %v1503_v31, %v1503_v31  ;;  %v1447_v22 = vmax.f32 %v1108_v51, %v1381_v32  ;;  %v1109_v47 = vmax.f32 %v2971_v17, %v1045_v15  ;;  %v1047_v5 = vpop.f32.mrb[79].mxu0  ;;  %v1386_v6 = vpop.f32.mrb[79].mxu1 }
 0x1a5   :  { %1630 = vst.msk [vmem:[%s2952_s6 + $0x2c] sm:$0xf] %vm1618_vm2, %v1854_v52  ;;  %v1479_v55 = vadd.f32 %v2747_v2, %v1447_v22  ;;  %v1448_v56 = vmax.f32 %v1109_v47, %v1384_v16 }
 0x1a7   :  { %v1504_v35 = vmax.f32 %v1479_v55, 0.0  ;;  %v1480_v36 = vadd.f32 %v2747_v2, %v1448_v56 }
 0x1a8   :  { %v1050_v20 = vpop.f32.mrb[80].mxu0  ;;  %v1389_v21 = vpop.f32.mrb[80].mxu1 }
 0x1a9   :  { %v1855_v19 = vpack.c.bf16 %v1504_v35, %v1504_v35  ;;  %v1505_v29 = vmax.f32 %v1480_v36, 0.0  ;;  %v1110_v3 = vmax.f32 %v2972_v63, %v1050_v20  ;;  %v1052_v59 = vpop.f32.mrb[81].mxu0  ;;  %v1391_v57 = vpop.f32.mrb[81].mxu1  ;;  %v2977_v20 = vmax.f32 %v2705_v34, %v2707_v44 }
 0x1aa   :  { %v1053_v40 = vpop.f32.mrb[82].mxu0  ;;  %v1392_v41 = vpop.f32.mrb[82].mxu1  ;;  %v2978_v34 = vmax.f32 %v2711_v58, %v2713_v62 }
 0x1ab   :  { %1631 = vst.msk [vmem:[%s2952_s6 + $0x30] sm:$0xf] %vm1618_vm2, %v1855_v19  ;;  %v1856_v60 = vpack.c.bf16 %v1505_v29, %v1505_v29  ;;  %v1449_v61 = vmax.f32 %v1110_v3, %v1389_v21  ;;  %v1111_v11 = vmax.f32 %v2973_v10, %v1053_v40  ;;  %v1055_v12 = vpop.f32.mrb[83].mxu0  ;;  %v1394_v42 = vpop.f32.mrb[83].mxu1 }
 0x1ad   :  { %1632 = vst.msk [vmem:[%s2952_s6 + $0x34] sm:$0xf] %vm1618_vm2, %v1856_v60  ;;  %v1481_v13 = vadd.f32 %v2747_v2, %v1449_v61  ;;  %v1450_v14 = vmax.f32 %v1111_v11, %v1392_v41 }
 0x1af   :  { %v1506_v25 = vmax.f32 %v1481_v13, 0.0  ;;  %v1482_v26 = vadd.f32 %v2747_v2, %v1450_v14  ;;  %v2979_v13 = vmax.f32 %v2717_v23, %v2719_v33  ;;  %v2980_v23 = vmax.f32 %v2723_v43, %v2725_v54 }
 0x1b0   :  { %v1058_v4 = vpop.f32.mrb[84].mxu0  ;;  %v1397_v7 = vpop.f32.mrb[84].mxu1 }
 0x1b1   :  { %v1857_v45 = vpack.c.bf16 %v1506_v25, %v1506_v25  ;;  %v1507_v46 = vmax.f32 %v1482_v26, 0.0  ;;  %v1112_v28 = vmax.f32 %v2974_v24, %v1058_v4  ;;  %v1060_v37 = vpop.f32.mrb[85].mxu0  ;;  %v1399_v0 = vpop.f32.mrb[85].mxu1 }
 0x1b2   :  { %v1061_v1 = vpop.f32.mrb[86].mxu0  ;;  %v1400_v32 = vpop.f32.mrb[86].mxu1 }
 0x1b3   :  { %1633 = vst.msk [vmem:[%s2952_s6 + $0x38] sm:$0xf] %vm1618_vm2, %v1857_v45  ;;  %v1858_v30 = vpack.c.bf16 %v1507_v46, %v1507_v46  ;;  %v1451_v31 = vmax.f32 %v1112_v28, %v1397_v7  ;;  %v1113_v51 = vmax.f32 %v2975_v50, %v1061_v1  ;;  %v1063_v48 = vpop.f32.mrb[87].mxu0  ;;  %v1402_v27 = vpop.f32.mrb[87].mxu1  ;;  %v2981_v50 = vld [vmem:[#allocation2_spill] sm:$0xff] }
 0x1b5   :  { %1634 = vst.msk [vmem:[%s2952_s6 + $0x3c] sm:$0xf] %vm1618_vm2, %v1858_v30  ;;  %v1483_v38 = vadd.f32 %v2747_v2, %v1451_v31  ;;  %v1452_v39 = vmax.f32 %v1113_v51, %v1400_v32  ;;  %v2982_v51 = vmax.f32 %v2729_v18, %v2981_v50  ;;  %v2984_v18 = vld [vmem:[#allocation4_spill] sm:$0xff] }
 0x1b7   :  { %v1508_v15 = vmax.f32 %v1483_v38, 0.0  ;;  %v1484_v16 = vadd.f32 %v2747_v2, %v1452_v39 }
 0x1b8   :  { %v1066_v52 = vpop.f32.mrb[88].mxu0  ;;  %v1405_v22 = vpop.f32.mrb[88].mxu1 }
 0x1b9   :  { %v1859_v17 = vpack.c.bf16 %v1508_v15, %v1508_v15  ;;  %v1509_v47 = vmax.f32 %v1484_v16, 0.0  ;;  %v1114_v53 = vmax.f32 %v2976_v49, %v1066_v52  ;;  %v1068_v5 = vpop.f32.mrb[89].mxu0  ;;  %v1407_v6 = vpop.f32.mrb[89].mxu1 }
 0x1ba   :  { %v1069_v55 = vpop.f32.mrb[90].mxu0  ;;  %v1408_v56 = vpop.f32.mrb[90].mxu1 }
 0x1bb   :  { %1635 = vst.msk [vmem:[%s2952_s6 + $0x40] sm:$0xf] %vm1618_vm2, %v1859_v17  ;;  %v1860_v35 = vpack.c.bf16 %v1509_v47, %v1509_v47  ;;  %v1453_v36 = vmax.f32 %v1114_v53, %v1405_v22  ;;  %v1115_v21 = vmax.f32 %v2977_v20, %v1069_v55  ;;  %v1071_v19 = vpop.f32.mrb[91].mxu0  ;;  %v1410_v29 = vpop.f32.mrb[91].mxu1  ;;  %v2983_v47 = vld [vmem:[#allocation3_spill] sm:$0xff] }
 0x1bc   :  { %v2985_v49 = vmax.f32 %v2983_v47, %v2984_v18 }
 0x1bd   :  { %1636 = vst.msk [vmem:[%s2952_s6 + $0x44] sm:$0xf] %vm1618_vm2, %v1860_v35  ;;  %v1485_v8 = vadd.f32 %v2747_v2, %v1453_v36  ;;  %v1454_v9 = vmax.f32 %v1115_v21, %v1408_v56 }
 0x1bf   :  { %v1510_v63 = vmax.f32 %v1485_v8, 0.0  ;;  %v1486_v3 = vadd.f32 %v2747_v2, %v1454_v9 }
 0x1c0   :  { %v1074_v59 = vpop.f32.mrb[92].mxu0  ;;  %v1413_v57 = vpop.f32.mrb[92].mxu1 }
 0x1c1   :  { %v1861_v40 = vpack.c.bf16 %v1510_v63, %v1510_v63  ;;  %v1511_v41 = vmax.f32 %v1486_v3, 0.0  ;;  %v1116_v44 = vmax.f32 %v2978_v34, %v1074_v59  ;;  %v1076_v60 = vpop.f32.mrb[93].mxu0  ;;  %v1415_v61 = vpop.f32.mrb[93].mxu1 }
 0x1c2   :  { %v1077_v10 = vpop.f32.mrb[94].mxu0  ;;  %v1416_v11 = vpop.f32.mrb[94].mxu1 }
 0x1c3   :  { %1637 = vst.msk [vmem:[%s2952_s6 + $0x48] sm:$0xf] %vm1618_vm2, %v1861_v40  ;;  %v1862_v12 = vpack.c.bf16 %v1511_v41, %v1511_v41  ;;  %v1455_v42 = vmax.f32 %v1116_v44, %v1413_v57  ;;  %v1117_v14 = vmax.f32 %v2979_v13, %v1077_v10  ;;  %v1079_v25 = vpop.f32.mrb[95].mxu0  ;;  %v1418_v26 = vpop.f32.mrb[95].mxu1 }
 0x1c5   :  { %1638 = vst.msk [vmem:[%s2952_s6 + $0x4c] sm:$0xf] %vm1618_vm2, %v1862_v12  ;;  %v1487_v58 = vadd.f32 %v2747_v2, %v1455_v42  ;;  %v1456_v62 = vmax.f32 %v1117_v14, %v1416_v11 }
 0x1c7   :  { %v1512_v4 = vmax.f32 %v1487_v58, 0.0  ;;  %v1488_v7 = vadd.f32 %v2747_v2, %v1456_v62 }
 0x1c8   :  { %v1082_v45 = vpop.f32.mrb[96].mxu0  ;;  %v1421_v46 = vpop.f32.mrb[96].mxu1 }
 0x1c9   :  { %v1863_v24 = vpack.c.bf16 %v1512_v4, %v1512_v4  ;;  %v1513_v28 = vmax.f32 %v1488_v7, 0.0  ;;  %v1118_v33 = vmax.f32 %v2980_v23, %v1082_v45  ;;  %v1084_v37 = vpop.f32.mrb[97].mxu0  ;;  %v1423_v0 = vpop.f32.mrb[97].mxu1 }
 0x1ca   :  { %v1085_v1 = vpop.f32.mrb[98].mxu0  ;;  %v1424_v32 = vpop.f32.mrb[98].mxu1 }
 0x1cb   :  { %1639 = vst.msk [vmem:[%s2952_s6 + $0x50] sm:$0xf] %vm1618_vm2, %v1863_v24  ;;  %v1864_v30 = vpack.c.bf16 %v1513_v28, %v1513_v28  ;;  %v1457_v31 = vmax.f32 %v1118_v33, %v1421_v46  ;;  %v1119_v48 = vmax.f32 %v2982_v51, %v1085_v1  ;;  %v1087_v27 = vpop.f32.mrb[99].mxu0  ;;  %v1426_v38 = vpop.f32.mrb[99].mxu1 }
 0x1cd   :  { %1640 = vst.msk [vmem:[%s2952_s6 + $0x54] sm:$0xf] %vm1618_vm2, %v1864_v30  ;;  %v1489_v43 = vadd.f32 %v2747_v2, %v1457_v31  ;;  %v1458_v54 = vmax.f32 %v1119_v48, %v1424_v32 }
 0x1cf   :  { %v1514_v39 = vmax.f32 %v1489_v43, 0.0  ;;  %v1490_v15 = vadd.f32 %v2747_v2, %v1458_v54 }
 0x1d0   :  { %v1090_v16 = vpop.f32.mrb[100].mxu0  ;;  %v1429_v52 = vpop.f32.mrb[100].mxu1 }
 0x1d1   :  { %v1865_v22 = vpack.c.bf16 %v1514_v39, %v1514_v39  ;;  %v1515_v17 = vmax.f32 %v1490_v15, 0.0  ;;  %v1120_v53 = vmax.f32 %v2985_v49, %v1090_v16  ;;  %v1092_v5 = vpop.f32.mrb[101].mxu0  ;;  %v1431_v6 = vpop.f32.mrb[101].mxu1 }
 0x1d2   :  { %v1093_v55 = vpop.f32.mrb[102].mxu0  ;;  %v1432_v56 = vpop.f32.mrb[102].mxu1 }
 0x1d3   :  { %1641 = vst.msk [vmem:[%s2952_s6 + $0x58] sm:$0xf] %vm1618_vm2, %v1865_v22  ;;  %v1866_v35 = vpack.c.bf16 %v1515_v17, %v1515_v17  ;;  %v1459_v36 = vmax.f32 %v1120_v53, %v1429_v52  ;;  %v1094_v20 = vpop.f32.mrb[103].mxu0  ;;  %v1433_v21 = vpop.f32.mrb[103].mxu1 }
 0x1d5   :  { %1642 = vst.msk [vmem:[%s2952_s6 + $0x5c] sm:$0xf] %vm1618_vm2, %v1866_v35  ;;  %v1491_v19 = vadd.f32 %v2747_v2, %v1459_v36 }
 0x1d7   :  { %v1516_v29 = vmax.f32 %v1491_v19, 0.0 }
 0x1d9   :  { %v1867_v8 = vpack.c.bf16 %v1516_v29, %v1516_v29 }
 0x1db   :  { %1643 = vst.msk [vmem:[%s2952_s6 + $0x60] sm:$0xf] %vm1618_vm2, %v1867_v8 }

// kernel: net1_forward.5
= control target key start
LH: loop header
LB: loop body
LE: loop exit
PB: predicated region body
PF: predicated region fallthrough
CT: control target
= control target key end

     0   :  { %v6465_v1 = vmov 0   ;;  %v143_v20 = vlaneseq  ;;  %v6466_v26 = vmov 1966171168   ;;  %vm309_vm0 = vcmask 130048   ;;  %s8973_s0 = inlined_call_operand.vmem [shape: bf16[9,2,400], index: 0, kind: input, shape index: {}]   ;;  %s8974_s1 = inlined_call_operand.vmem [shape: bf16[9,2,400], index: 1, kind: input, shape index: {}]   ;;  %s8975_s2 = inlined_call_operand.vmem [shape: bf16[9,2,400], index: 2, kind: input, shape index: {}]   ;;  %s8976_s3 = inlined_call_operand.vmem [shape: bf16[9,2,400], index: 3, kind: input, shape index: {}]   ;;  %s8977_s4 = inlined_call_operand.vmem [shape: bf16[400,32], index: 4, kind: input, shape index: {}]   ;;  %s8978_s5 = inlined_call_operand.vmem [shape: f32[1,32], index: 5, kind: input, shape index: {}]   ;;  %s8979_s6 = inlined_call_operand.vmem [shape: bf16[288,128], index: 6, kind: input, shape index: {}]   ;;  %s8980_s7 = inlined_call_operand.vmem [shape: f32[1,128], index: 7, kind: input, shape index: {}]   ;;  %s8981_s8 = inlined_call_operand.vmem [shape: bf16[128,128], index: 8, kind: input, shape index: {}]   ;;  %s8982_s9 = inlined_call_operand.vmem [shape: f32[1,128], index: 9, kind: input, shape index: {}]   ;;  %s8983_s10 = inlined_call_operand.vmem [shape: bf16[128,128], index: 10, kind: input, shape index: {}]   ;;  %s8984_s11 = inlined_call_operand.vmem [shape: f32[1,128], index: 11, kind: input, shape index: {}]   ;;  %s8985_s12 = inlined_call_operand.hbm [shape: f32[2,128], index: 12, kind: output, shape index: {}]  }
   0x1   :  { %v6538_v0 = vld [vmem:[%s8977_s4 + $0x80] sm:$0xff]   ;;  %353 = vmatprep.subr.bf16.mxu1 %v6465_v1  ;;  %v6557_v4 = vld [vmem:[%s8977_s4 + $0x88] sm:$0xff]   ;;  %v6575_v7 = vld [vmem:[%s8977_s4 + $0x90] sm:$0xff]   ;;  %v141_v27 = vunpack.c.l.s4 %v6466_v26 }
   0x2   :  { %v6544_v2 = vld [vmem:[%s8977_s4 + $0x40] sm:$0xff]   ;;  %354 = vmatpush1.bf16.msra.mxu1 %v6538_v0  ;;  %v6563_v5 = vld [vmem:[%s8977_s4 + $0x48] sm:$0xff]   ;;  %v6581_v8 = vld [vmem:[%s8977_s4 + $0x50] sm:$0xff]   ;;  %v144_v28 = vshrl.u32 %v143_v20, 7 }
   0x3   :  { %v6550_v3 = vld [vmem:[%s8977_s4] sm:$0xff]   ;;  %5345 = vmatprep.subr.bf16.mxu0 %v6544_v2  ;;  %355 = vmatprep.subr.bf16.mxu1 %v6465_v1  ;;  %v6568_v6 = vld [vmem:[%s8977_s4 + $0x8] sm:$0xff]   ;;  %v6587_v9 = vld [vmem:[%s8977_s4 + $0x10] sm:$0xff]   ;;  %v142_v31 = vunpack.c.0.s8 %v141_v27 }
   0x4   :  { %5346 = vmatpush3.bf16.msra.mxu0 %v6550_v3  ;;  %v6593_v10 = vld [vmem:[%s8977_s4 + $0x98] sm:$0xff]   ;;  %v6612_v13 = vld [vmem:[%s8977_s4 + $0x60] sm:$0xff]   ;;  %v6631_v16 = vld [vmem:[%s8977_s4 + $0x68] sm:$0xff]  }
   0x5   :  { %5347 = vmatprep.subr.bf16.mxu0 %v6563_v5  ;;  %v6599_v11 = vld [vmem:[%s8977_s4 + $0x58] sm:$0xff]   ;;  %v6618_v14 = vld [vmem:[%s8977_s4 + $0xa0] sm:$0xff]   ;;  %v6637_v17 = vld [vmem:[%s8977_s4 + $0xa8] sm:$0xff]   ;;  %v6696_v35 = vsub.s32 %v142_v31, %v144_v28 }
   0x6   :  { %356 = vmatpush1.bf16.msra.mxu1 %v6557_v4  ;;  %v6606_v12 = vld [vmem:[%s8977_s4 + $0x18] sm:$0xff]   ;;  %v6625_v15 = vld [vmem:[%s8977_s4 + $0x20] sm:$0xff]   ;;  %v6644_v18 = vld [vmem:[%s8977_s4 + $0x28] sm:$0xff]  }
   0x7   :  { %357 = vmatprep.subr.bf16.mxu1 %v6465_v1  ;;  %v6650_v19 = vld [vmem:[%s8977_s4 + $0x70] sm:$0xff]   ;;  %v6668_v23 = vld [vmem:[%s8977_s4 + $0xb8] sm:$0xff]   ;;  %v5169_v24 = vld.sshfl [vmem:[%s8973_s0] sm:$0x33 pattern:$0x75316420] }
   0x8   :  { %5348 = vmatpush3.bf16.msra.mxu0 %v6568_v6  ;;  %v6656_v21 = vld [vmem:[%s8977_s4 + $0xb0] sm:$0xff]   ;;  %v6677_v25 = vld [vmem:[%s8977_s4 + $0x78] sm:$0xff]   ;;  %v5196_v29 = vld.sshfl [vmem:[%s8974_s1] sm:$0x33 pattern:$0x75316420]  ;;  %v139_v30 = vcombine.high %v5169_v24, %v5169_v24  ;;  %v146_v37 = vrot.slane %v5169_v24, %v6696_v35 }
   0x9   :  { %5349 = vmatprep.subr.bf16.mxu0 %v6581_v8  ;;  %v6662_v22 = vld [vmem:[%s8977_s4 + $0x30] sm:$0xff]   ;;  %v402_v32 = vcombine.high %v5196_v29, %v5196_v29  ;;  %v6688_v33 = vld [vmem:[%s8977_s4 + $0x38] sm:$0xff]   ;;  %v6693_v34 = vld [vmem:[%s8977_s4 + $0xc0] sm:$0xff]  }
   0xa   :  { %358 = vmatpush1.bf16.msra.mxu1 %v6575_v7  ;;  %v153_v36 = vrot.slane %v139_v30, %v6696_v35  ;;  %v154_v40 = vcombine.high %v146_v37, %v146_v37 }
   0xb   :  { %359 = vmatprep.subr.bf16.mxu1 %v6465_v1  ;;  %v416_v38 = vrot.slane %v402_v32, %v6696_v35 }
   0xc   :  { %5350 = vmatpush3.bf16.msra.mxu0 %v6587_v9  ;;  %345 = vmatprep.mubr.bf16.mxu0 %v153_v36  ;;  %v155_v39 = vcombine.high %v153_v36, %v153_v36 }
   0xd   :  { %5351 = vmatprep.subr.bf16.mxu0 %v6599_v11  ;;  %v418_v41 = vcombine.high %v416_v38, %v416_v38 }
   0xe   :  { %360 = vmatpush1.bf16.msra.mxu1 %v6593_v10  ;;  %5195 = vmatprep.mubr.msk.bf16.mxu1 %vm309_vm0, %v155_v39 }
   0xf   :  { %361 = vmatprep.subr.bf16.mxu1 %v6465_v1 }
  0x10   :  { %5352 = vmatpush3.bf16.msra.mxu0 %v6606_v12 }
  0x11   :  { %5353 = vmatprep.subr.bf16.mxu0 %v6612_v13 }
  0x12   :  { %362 = vmatpush1.bf16.msra.mxu1 %v6618_v14 }
  0x13   :  { %363 = vmatprep.subr.bf16.mxu1 %v6465_v1 }
  0x14   :  { %5354 = vmatpush3.bf16.msra.mxu0 %v6625_v15 }
  0x15   :  { %5355 = vmatprep.subr.bf16.mxu0 %v6631_v16 }
  0x16   :  { %364 = vmatpush1.bf16.msra.mxu1 %v6637_v17 }
  0x17   :  { %365 = vmatprep.subr.bf16.mxu1 %v6465_v1 }
  0x18   :  { %5356 = vmatpush3.bf16.msra.mxu0 %v6644_v18 }
  0x19   :  { %5357 = vmatprep.subr.bf16.mxu0 %v6650_v19 }
  0x1a   :  { %366 = vmatpush1.bf16.msra.mxu1 %v6656_v21 }
  0x1b   :  { %367 = vmatprep.subr.bf16.mxu1 %v6465_v1 }
  0x1c   :  { %5358 = vmatpush3.bf16.msra.mxu0 %v6662_v22 }
  0x1d   :  { %5359 = vmatprep.subr.bf16.mxu0 %v6677_v25 }
  0x1e   :  { %368 = vmatpush1.bf16.msra.mxu1 %v6668_v23 }
  0x1f   :  { %369 = vmatprep.subr.bf16.mxu1 %v6465_v1 }
  0x20   :  { %5360 = vmatpush3.bf16.msra.mxu0 %v6688_v33 }
  0x21   :  { %5367 = vmatprep.subr.bf16.mxu0 %v6544_v2 }
  0x22   :  { %370 = vmatpush1.bf16.msra.mxu1 %v6693_v34 }
  0x23   :  { %346 = vmatmul.mubr.bf16.vlgmr.msra.gmra.mrb[0].mxu0 %v146_v37  ;;  %465 = vmatprep.subr.bf16.mxu1 %v6465_v1 }
  0x24   :  { %5368 = vmatpush3.bf16.msra.mxu0 %v6550_v3  ;;  %457 = vmatprep.mubr.bf16.mxu0 %v416_v38 }
  0x25   :  { %386 = vmatmul.mubr.bf16.vlgmr.msra.gmra.mrb[0].mxu1 %v154_v40  ;;  %5369 = vmatprep.subr.bf16.mxu0 %v6563_v5 }
  0x26   :  { %466 = vmatpush1.bf16.msra.mxu1 %v6538_v0  ;;  %5197 = vmatprep.mubr.msk.bf16.mxu1 %vm309_vm0, %v418_v41 }
  0x27   :  { %467 = vmatprep.subr.bf16.mxu1 %v6465_v1 }
  0x28   :  { %5370 = vmatpush3.bf16.msra.mxu0 %v6568_v6 }
  0x29   :  { %5371 = vmatprep.subr.bf16.mxu0 %v6581_v8 }
  0x2a   :  { %468 = vmatpush1.bf16.msra.mxu1 %v6557_v4 }
  0x2b   :  { %469 = vmatprep.subr.bf16.mxu1 %v6465_v1 }
  0x2c   :  { %5372 = vmatpush3.bf16.msra.mxu0 %v6587_v9 }
  0x2d   :  { %5373 = vmatprep.subr.bf16.mxu0 %v6599_v11 }
  0x2e   :  { %470 = vmatpush1.bf16.msra.mxu1 %v6575_v7 }
  0x2f   :  { %471 = vmatprep.subr.bf16.mxu1 %v6465_v1 }
  0x30   :  { %5374 = vmatpush3.bf16.msra.mxu0 %v6606_v12 }
  0x31   :  { %5375 = vmatprep.subr.bf16.mxu0 %v6612_v13 }
  0x32   :  { %472 = vmatpush1.bf16.msra.mxu1 %v6593_v10 }
  0x33   :  { %473 = vmatprep.subr.bf16.mxu1 %v6465_v1 }
  0x34   :  { %17 = vsyncpa [#allocation3], 0  ;;  %5376 = vmatpush3.bf16.msra.mxu0 %v6625_v15  ;;  %v5198_v42 = vld.sshfl [vmem:[%s8975_s2] sm:$0x33 pattern:$0x75316420]  ;;  %v409_v44 = vrot.slane %v5196_v29, %v6696_v35 }
  0x35   :  { %5377 = vmatprep.subr.bf16.mxu0 %v6631_v16  ;;  %v515_v43 = vcombine.high %v5198_v42, %v5198_v42  ;;  %v5200_v48 = vld.sshfl [vmem:[%s8976_s3] sm:$0x33 pattern:$0x75316420]  ;;  %v522_v50 = vrot.slane %v5198_v42, %v6696_v35  ;;  %vm6468_vm1 = vmmov 0   ;;  %vm1211_vm2 = vcmask 261120  }
  0x36   :  { %474 = vmatpush1.bf16.msra.mxu1 %v6618_v14  ;;  %v417_v46 = vcombine.high %v409_v44, %v409_v44  ;;  %v628_v49 = vcombine.high %v5200_v48, %v5200_v48  ;;  %v5204_v54 = vld.sshfl [vmem:[%s8973_s0 + $0x4] sm:$0x33 pattern:$0x75316420]  ;;  %v635_v56 = vrot.slane %v5200_v48, %v6696_v35  ;;  %vm5142_vm3 = vcmask 1041408  }
  0x37   :  { %475 = vmatprep.subr.bf16.mxu1 %v6465_v1  ;;  %v529_v45 = vrot.slane %v515_v43, %v6696_v35  ;;  %v530_v52 = vcombine.high %v522_v50, %v522_v50  ;;  %v751_v55 = vcombine.high %v5204_v54, %v5204_v54  ;;  %v5207_v60 = vld.sshfl [vmem:[%s8974_s1 + $0x4] sm:$0x33 pattern:$0x75316420]  ;;  %v758_v62 = vrot.slane %v5204_v54, %v6696_v35 }
  0x38   :  { %5378 = vmatpush3.bf16.msra.mxu0 %v6644_v18  ;;  %v642_v51 = vrot.slane %v628_v49, %v6696_v35  ;;  %v643_v58 = vcombine.high %v635_v56, %v635_v56  ;;  %v864_v61 = vcombine.high %v5207_v60, %v5207_v60  ;;  %v5210_v26 = vld.sshfl [vmem:[%s8975_s2 + $0x4] sm:$0x33 pattern:$0x75316420]  ;;  %v871_v28 = vrot.slane %v5207_v60, %v6696_v35 }
  0x39   :  { %5379 = vmatprep.subr.bf16.mxu0 %v6650_v19  ;;  %v531_v47 = vcombine.high %v529_v45, %v529_v45  ;;  %v765_v57 = vrot.slane %v751_v55, %v6696_v35  ;;  %v766_v20 = vcombine.high %v758_v62, %v758_v62  ;;  %v978_v27 = vcombine.high %v5210_v26, %v5210_v26  ;;  %v5213_v32 = vld.sshfl [vmem:[%s8976_s3 + $0x4] sm:$0x33 pattern:$0x75316420] }
  0x3a   :  { %476 = vmatpush1.bf16.msra.mxu1 %v6637_v17  ;;  %v644_v53 = vcombine.high %v642_v51, %v642_v51  ;;  %v878_v63 = vrot.slane %v864_v61, %v6696_v35  ;;  %v879_v30 = vcombine.high %v871_v28, %v871_v28  ;;  %v1092_v36 = vcombine.high %v5213_v32, %v5213_v32 }
  0x3b   :  { %477 = vmatprep.subr.bf16.mxu1 %v6465_v1  ;;  %v767_v59 = vcombine.high %v765_v57, %v765_v57  ;;  %v992_v29 = vrot.slane %v978_v27, %v6696_v35  ;;  %v985_v37 = vrot.slane %v5210_v26, %v6696_v35 }
  0x3c   :  { %5380 = vmatpush3.bf16.msra.mxu0 %v6662_v22  ;;  %v880_v24 = vcombine.high %v878_v63, %v878_v63  ;;  %v1106_v38 = vrot.slane %v1092_v36, %v6696_v35 }
  0x3d   :  { %5381 = vmatprep.subr.bf16.mxu0 %v6677_v25  ;;  %v994_v31 = vcombine.high %v992_v29, %v992_v29 }
  0x3e   :  { %478 = vmatpush1.bf16.msra.mxu1 %v6656_v21 }
  0x3f   :  { %479 = vmatprep.subr.bf16.mxu1 %v6465_v1 }
  0x40   :  { %5382 = vmatpush3.bf16.msra.mxu0 %v6688_v33 }
  0x41   :  { %5389 = vmatprep.subr.bf16.mxu0 %v6544_v2 }
  0x42   :  { %480 = vmatpush1.bf16.msra.mxu1 %v6668_v23 }
  0x43   :  { %481 = vmatprep.subr.bf16.mxu1 %v6465_v1  ;;  %458 = vmatmul.mubr.bf16.vlgmr.msra.gmra.mrb[4].mxu0 %v409_v44 }
  0x44   :  { %5390 = vmatpush3.bf16.msra.mxu0 %v6550_v3  ;;  %570 = vmatprep.mubr.bf16.mxu0 %v529_v45 }
  0x45   :  { %5391 = vmatprep.subr.bf16.mxu0 %v6563_v5 }
  0x46   :  { %482 = vmatpush1.bf16.msra.mxu1 %v6693_v34 }
  0x47   :  { %578 = vmatprep.subr.bf16.mxu1 %v6465_v1 }
  0x48   :  { %5392 = vmatpush3.bf16.msra.mxu0 %v6568_v6 }
  0x49   :  { %498 = vmatmul.mubr.bf16.vlgmr.msra.gmra.mrb[4].mxu1 %v417_v46  ;;  %5393 = vmatprep.subr.bf16.mxu0 %v6581_v8  ;;  %v6989_v46 = vld [vmem:[%s8977_s4 + $0x80] sm:$0xff]  }
  0x4a   :  { %579 = vmatpush1.bf16.msra.mxu1 %v6538_v0  ;;  %5199 = vmatprep.mubr.msk.bf16.mxu1 %vm309_vm0, %v531_v47  ;;  %v6996_v47 = vld [vmem:[%s8977_s4 + $0x88] sm:$0xff]  }
  0x4b   :  { %580 = vmatprep.subr.bf16.mxu1 %v6465_v1 }
  0x4c   :  { %5394 = vmatpush3.bf16.msra.mxu0 %v6587_v9 }
  0x4d   :  { %5395 = vmatprep.subr.bf16.mxu0 %v6599_v11 }
  0x4e   :  { %581 = vmatpush1.bf16.msra.mxu1 %v6557_v4 }
  0x4f   :  { %582 = vmatprep.subr.bf16.mxu1 %v6465_v1 }
  0x50   :  { %5396 = vmatpush3.bf16.msra.mxu0 %v6606_v12 }
  0x51   :  { %5397 = vmatprep.subr.bf16.mxu0 %v6612_v13 }
  0x52   :  { %583 = vmatpush1.bf16.msra.mxu1 %v6575_v7 }
  0x53   :  { %584 = vmatprep.subr.bf16.mxu1 %v6465_v1 }
  0x54   :  { %5398 = vmatpush3.bf16.msra.mxu0 %v6625_v15 }
  0x55   :  { %5399 = vmatprep.subr.bf16.mxu0 %v6631_v16 }
  0x56   :  { %585 = vmatpush1.bf16.msra.mxu1 %v6593_v10 }
  0x57   :  { %586 = vmatprep.subr.bf16.mxu1 %v6465_v1 }
  0x58   :  { %5400 = vmatpush3.bf16.msra.mxu0 %v6644_v18 }
  0x59   :  { %5401 = vmatprep.subr.bf16.mxu0 %v6650_v19 }
  0x5a   :  { %587 = vmatpush1.bf16.msra.mxu1 %v6618_v14 }
  0x5b   :  { %588 = vmatprep.subr.bf16.mxu1 %v6465_v1 }
  0x5c   :  { %5402 = vmatpush3.bf16.msra.mxu0 %v6662_v22 }
  0x5d   :  { %5403 = vmatprep.subr.bf16.mxu0 %v6677_v25 }
  0x5e   :  { %589 = vmatpush1.bf16.msra.mxu1 %v6637_v17 }
  0x5f   :  { %590 = vmatprep.subr.bf16.mxu1 %v6465_v1 }
  0x60   :  { %5404 = vmatpush3.bf16.msra.mxu0 %v6688_v33 }
  0x61   :  { %5411 = vmatprep.subr.bf16.mxu0 %v6544_v2 }
  0x62   :  { %591 = vmatpush1.bf16.msra.mxu1 %v6656_v21 }
  0x63   :  { %592 = vmatprep.subr.bf16.mxu1 %v6465_v1  ;;  %571 = vmatmul.mubr.bf16.vlgmr.msra.gmra.mrb[8].mxu0 %v522_v50 }
  0x64   :  { %5412 = vmatpush3.bf16.msra.mxu0 %v6550_v3  ;;  %683 = vmatprep.mubr.bf16.mxu0 %v642_v51 }
  0x65   :  { %5413 = vmatprep.subr.bf16.mxu0 %v6563_v5 }
  0x66   :  { %593 = vmatpush1.bf16.msra.mxu1 %v6668_v23 }
  0x67   :  { %594 = vmatprep.subr.bf16.mxu1 %v6465_v1 }
  0x68   :  { %5414 = vmatpush3.bf16.msra.mxu0 %v6568_v6 }
  0x69   :  { %5415 = vmatprep.subr.bf16.mxu0 %v6581_v8 }
  0x6a   :  { %595 = vmatpush1.bf16.msra.mxu1 %v6693_v34 }
  0x6b   :  { %691 = vmatprep.subr.bf16.mxu1 %v6465_v1 }
  0x6c   :  { %5416 = vmatpush3.bf16.msra.mxu0 %v6587_v9 }
  0x6d   :  { %611 = vmatmul.mubr.bf16.vlgmr.msra.gmra.mrb[8].mxu1 %v530_v52  ;;  %5417 = vmatprep.subr.bf16.mxu0 %v6599_v11 }
  0x6e   :  { %692 = vmatpush1.bf16.msra.mxu1 %v6538_v0  ;;  %5201 = vmatprep.mubr.msk.bf16.mxu1 %vm309_vm0, %v644_v53 }
  0x6f   :  { %693 = vmatprep.subr.bf16.mxu1 %v6465_v1 }
  0x70   :  { %5418 = vmatpush3.bf16.msra.mxu0 %v6606_v12 }
  0x71   :  { %5419 = vmatprep.subr.bf16.mxu0 %v6612_v13 }
  0x72   :  { %694 = vmatpush1.bf16.msra.mxu1 %v6557_v4 }
  0x73   :  { %695 = vmatprep.subr.bf16.mxu1 %v6465_v1 }
  0x74   :  { %5420 = vmatpush3.bf16.msra.mxu0 %v6625_v15 }
  0x75   :  { %5421 = vmatprep.subr.bf16.mxu0 %v6631_v16 }
  0x76   :  { %696 = vmatpush1.bf16.msra.mxu1 %v6575_v7 }
  0x77   :  { %697 = vmatprep.subr.bf16.mxu1 %v6465_v1 }
  0x78   :  { %5422 = vmatpush3.bf16.msra.mxu0 %v6644_v18 }
  0x79   :  { %5423 = vmatprep.subr.bf16.mxu0 %v6650_v19 }
  0x7a   :  { %698 = vmatpush1.bf16.msra.mxu1 %v6593_v10 }
  0x7b   :  { %699 = vmatprep.subr.bf16.mxu1 %v6465_v1 }
  0x7c   :  { %5424 = vmatpush3.bf16.msra.mxu0 %v6662_v22 }
  0x7d   :  { %5425 = vmatprep.subr.bf16.mxu0 %v6677_v25 }
  0x7e   :  { %700 = vmatpush1.bf16.msra.mxu1 %v6618_v14 }
  0x7f   :  { %701 = vmatprep.subr.bf16.mxu1 %v6465_v1 }
  0x80   :  { %5426 = vmatpush3.bf16.msra.mxu0 %v6688_v33 }
  0x81   :  { %5433 = vmatprep.subr.bf16.mxu0 %v6544_v2 }
  0x82   :  { %702 = vmatpush1.bf16.msra.mxu1 %v6637_v17 }
  0x83   :  { %703 = vmatprep.subr.bf16.mxu1 %v6465_v1  ;;  %684 = vmatmul.mubr.bf16.vlgmr.msra.gmra.mrb[12].mxu0 %v635_v56 }
  0x84   :  { %5434 = vmatpush3.bf16.msra.mxu0 %v6550_v3  ;;  %806 = vmatprep.mubr.bf16.mxu0 %v765_v57 }
  0x85   :  { %5435 = vmatprep.subr.bf16.mxu0 %v6563_v5 }
  0x86   :  { %704 = vmatpush1.bf16.msra.mxu1 %v6656_v21 }
  0x87   :  { %705 = vmatprep.subr.bf16.mxu1 %v6465_v1 }
  0x88   :  { %5436 = vmatpush3.bf16.msra.mxu0 %v6568_v6 }
  0x89   :  { %5437 = vmatprep.subr.bf16.mxu0 %v6581_v8 }
  0x8a   :  { %706 = vmatpush1.bf16.msra.mxu1 %v6668_v23 }
  0x8b   :  { %707 = vmatprep.subr.bf16.mxu1 %v6465_v1 }
  0x8c   :  { %5438 = vmatpush3.bf16.msra.mxu0 %v6587_v9 }
  0x8d   :  { %5439 = vmatprep.subr.bf16.mxu0 %v6599_v11 }
  0x8e   :  { %708 = vmatpush1.bf16.msra.mxu1 %v6693_v34 }
  0x8f   :  { %814 = vmatprep.subr.bf16.mxu1 %v6465_v1 }
  0x90   :  { %5440 = vmatpush3.bf16.msra.mxu0 %v6606_v12 }
  0x91   :  { %724 = vmatmul.mubr.bf16.vlgmr.msra.gmra.mrb[12].mxu1 %v643_v58  ;;  %5441 = vmatprep.subr.bf16.mxu0 %v6612_v13 }
  0x92   :  { %815 = vmatpush1.bf16.msra.mxu1 %v6538_v0  ;;  %5205 = vmatprep.mubr.msk.bf16.mxu1 %vm309_vm0, %v767_v59 }
  0x93   :  { %816 = vmatprep.subr.bf16.mxu1 %v6465_v1 }
  0x94   :  { %5442 = vmatpush3.bf16.msra.mxu0 %v6625_v15 }
  0x95   :  { %5443 = vmatprep.subr.bf16.mxu0 %v6631_v16 }
  0x96   :  { %817 = vmatpush1.bf16.msra.mxu1 %v6557_v4 }
  0x97   :  { %818 = vmatprep.subr.bf16.mxu1 %v6465_v1 }
  0x98   :  { %5444 = vmatpush3.bf16.msra.mxu0 %v6644_v18 }
  0x99   :  { %5445 = vmatprep.subr.bf16.mxu0 %v6650_v19 }
  0x9a   :  { %819 = vmatpush1.bf16.msra.mxu1 %v6575_v7 }
  0x9b   :  { %820 = vmatprep.subr.bf16.mxu1 %v6465_v1 }
  0x9c   :  { %5446 = vmatpush3.bf16.msra.mxu0 %v6662_v22 }
  0x9d   :  { %5447 = vmatprep.subr.bf16.mxu0 %v6677_v25 }
  0x9e   :  { %821 = vmatpush1.bf16.msra.mxu1 %v6593_v10 }
  0x9f   :  { %822 = vmatprep.subr.bf16.mxu1 %v6465_v1 }
  0xa0   :  { %5448 = vmatpush3.bf16.msra.mxu0 %v6688_v33 }
  0xa1   :  { %5455 = vmatprep.subr.bf16.mxu0 %v6544_v2 }
  0xa2   :  { %823 = vmatpush1.bf16.msra.mxu1 %v6618_v14 }
  0xa3   :  { %824 = vmatprep.subr.bf16.mxu1 %v6465_v1  ;;  %807 = vmatmul.mubr.bf16.vlgmr.msra.gmra.mrb[16].mxu0 %v758_v62 }
  0xa4   :  { %5456 = vmatpush3.bf16.msra.mxu0 %v6550_v3  ;;  %919 = vmatprep.mubr.bf16.mxu0 %v878_v63 }
  0xa5   :  { %5457 = vmatprep.subr.bf16.mxu0 %v6563_v5 }
  0xa6   :  { %825 = vmatpush1.bf16.msra.mxu1 %v6637_v17 }
  0xa7   :  { %826 = vmatprep.subr.bf16.mxu1 %v6465_v1 }
  0xa8   :  { %5458 = vmatpush3.bf16.msra.mxu0 %v6568_v6 }
  0xa9   :  { %5459 = vmatprep.subr.bf16.mxu0 %v6581_v8 }
  0xaa   :  { %827 = vmatpush1.bf16.msra.mxu1 %v6656_v21 }
  0xab   :  { %828 = vmatprep.subr.bf16.mxu1 %v6465_v1 }
  0xac   :  { %5460 = vmatpush3.bf16.msra.mxu0 %v6587_v9 }
  0xad   :  { %5461 = vmatprep.subr.bf16.mxu0 %v6599_v11 }
  0xae   :  { %829 = vmatpush1.bf16.msra.mxu1 %v6668_v23 }
  0xaf   :  { %830 = vmatprep.subr.bf16.mxu1 %v6465_v1 }
  0xb0   :  { %5462 = vmatpush3.bf16.msra.mxu0 %v6606_v12 }
  0xb1   :  { %5463 = vmatprep.subr.bf16.mxu0 %v6612_v13 }
  0xb2   :  { %831 = vmatpush1.bf16.msra.mxu1 %v6693_v34 }
  0xb3   :  { %927 = vmatprep.subr.bf16.mxu1 %v6465_v1 }
  0xb4   :  { %5464 = vmatpush3.bf16.msra.mxu0 %v6625_v15 }
  0xb5   :  { %847 = vmatmul.mubr.bf16.vlgmr.msra.gmra.mrb[16].mxu1 %v766_v20  ;;  %5465 = vmatprep.subr.bf16.mxu0 %v6631_v16 }
  0xb6   :  { %928 = vmatpush1.bf16.msra.mxu1 %v6538_v0  ;;  %5208 = vmatprep.mubr.msk.bf16.mxu1 %vm309_vm0, %v880_v24  ;;  %v6467_v24 = vmov 0.0  }
  0xb7   :  { %929 = vmatprep.subr.bf16.mxu1 %v6465_v1 }
  0xb8   :  { %5466 = vmatpush3.bf16.msra.mxu0 %v6644_v18 }
  0xb9   :  { %5467 = vmatprep.subr.bf16.mxu0 %v6650_v19 }
  0xba   :  { %930 = vmatpush1.bf16.msra.mxu1 %v6557_v4 }
  0xbb   :  { %931 = vmatprep.subr.bf16.mxu1 %v6465_v1 }
  0xbc   :  { %5468 = vmatpush3.bf16.msra.mxu0 %v6662_v22 }
  0xbd   :  { %5469 = vmatprep.subr.bf16.mxu0 %v6677_v25 }
  0xbe   :  { %932 = vmatpush1.bf16.msra.mxu1 %v6575_v7 }
  0xbf   :  { %933 = vmatprep.subr.bf16.mxu1 %v6465_v1 }
  0xc0   :  { %5470 = vmatpush3.bf16.msra.mxu0 %v6688_v33 }
  0xc1   :  { %5477 = vmatprep.subr.bf16.mxu0 %v6544_v2 }
  0xc2   :  { %934 = vmatpush1.bf16.msra.mxu1 %v6593_v10 }
  0xc3   :  { %935 = vmatprep.subr.bf16.mxu1 %v6465_v1  ;;  %920 = vmatmul.mubr.bf16.vlgmr.msra.gmra.mrb[20].mxu0 %v871_v28 }
  0xc4   :  { %5478 = vmatpush3.bf16.msra.mxu0 %v6550_v3  ;;  %1033 = vmatprep.mubr.bf16.mxu0 %v992_v29 }
  0xc5   :  { %5479 = vmatprep.subr.bf16.mxu0 %v6563_v5 }
  0xc6   :  { %936 = vmatpush1.bf16.msra.mxu1 %v6618_v14 }
  0xc7   :  { %937 = vmatprep.subr.bf16.mxu1 %v6465_v1 }
  0xc8   :  { %5480 = vmatpush3.bf16.msra.mxu0 %v6568_v6 }
  0xc9   :  { %5481 = vmatprep.subr.bf16.mxu0 %v6581_v8 }
  0xca   :  { %938 = vmatpush1.bf16.msra.mxu1 %v6637_v17 }
  0xcb   :  { %939 = vmatprep.subr.bf16.mxu1 %v6465_v1 }
  0xcc   :  { %5482 = vmatpush3.bf16.msra.mxu0 %v6587_v9 }
  0xcd   :  { %5483 = vmatprep.subr.bf16.mxu0 %v6599_v11 }
  0xce   :  { %940 = vmatpush1.bf16.msra.mxu1 %v6656_v21 }
  0xcf   :  { %941 = vmatprep.subr.bf16.mxu1 %v6465_v1 }
  0xd0   :  { %5484 = vmatpush3.bf16.msra.mxu0 %v6606_v12 }
  0xd1   :  { %5485 = vmatprep.subr.bf16.mxu0 %v6612_v13 }
  0xd2   :  { %942 = vmatpush1.bf16.msra.mxu1 %v6668_v23 }
  0xd3   :  { %943 = vmatprep.subr.bf16.mxu1 %v6465_v1 }
  0xd4   :  { %5486 = vmatpush3.bf16.msra.mxu0 %v6625_v15 }
  0xd5   :  { %5487 = vmatprep.subr.bf16.mxu0 %v6631_v16 }
  0xd6   :  { %944 = vmatpush1.bf16.msra.mxu1 %v6693_v34 }
  0xd7   :  { %1041 = vmatprep.subr.bf16.mxu1 %v6465_v1 }
  0xd8   :  { %5488 = vmatpush3.bf16.msra.mxu0 %v6644_v18 }
  0xd9   :  { %960 = vmatmul.mubr.bf16.vlgmr.msra.gmra.mrb[20].mxu1 %v879_v30  ;;  %5489 = vmatprep.subr.bf16.mxu0 %v6650_v19  ;;  %v6325_v30 = vld [vmem:[%s8979_s6 + $0x18] sm:$0xff]  }
  0xda   :  { %1042 = vmatpush1.bf16.msra.mxu1 %v6538_v0  ;;  %5211 = vmatprep.mubr.msk.bf16.mxu1 %vm309_vm0, %v994_v31 }
  0xdb   :  { %1043 = vmatprep.subr.bf16.mxu1 %v6465_v1 }
  0xdc   :  { %5490 = vmatpush3.bf16.msra.mxu0 %v6662_v22 }
  0xdd   :  { %5491 = vmatprep.subr.bf16.mxu0 %v6677_v25 }
  0xde   :  { %1044 = vmatpush1.bf16.msra.mxu1 %v6557_v4 }
  0xdf   :  { %1045 = vmatprep.subr.bf16.mxu1 %v6465_v1 }
  0xe0   :  { %5492 = vmatpush3.bf16.msra.mxu0 %v6688_v33 }
  0xe1   :  { %5499 = vmatprep.subr.bf16.mxu0 %v6544_v2 }
  0xe2   :  { %1046 = vmatpush1.bf16.msra.mxu1 %v6575_v7 }
  0xe3   :  { %1047 = vmatprep.subr.bf16.mxu1 %v6465_v1  ;;  %1034 = vmatmul.mubr.bf16.vlgmr.msra.gmra.mrb[24].mxu0 %v985_v37 }
  0xe4   :  { %5500 = vmatpush3.bf16.msra.mxu0 %v6550_v3  ;;  %1147 = vmatprep.mubr.bf16.mxu0 %v1106_v38 }
  0xe5   :  { %5501 = vmatprep.subr.bf16.mxu0 %v6563_v5 }
  0xe6   :  { %1048 = vmatpush1.bf16.msra.mxu1 %v6593_v10 }
  0xe7   :  { %1049 = vmatprep.subr.bf16.mxu1 %v6465_v1 }
  0xe8   :  { %5502 = vmatpush3.bf16.msra.mxu0 %v6568_v6 }
  0xe9   :  { %5503 = vmatprep.subr.bf16.mxu0 %v6581_v8 }
  0xea   :  { %1050 = vmatpush1.bf16.msra.mxu1 %v6618_v14 }
  0xeb   :  { %1051 = vmatprep.subr.bf16.mxu1 %v6465_v1 }
  0xec   :  { %5504 = vmatpush3.bf16.msra.mxu0 %v6587_v9 }
  0xed   :  { %5505 = vmatprep.subr.bf16.mxu0 %v6599_v11  ;;  %v993_v11 = vcombine.high %v985_v37, %v985_v37 }
  0xee   :  { %1052 = vmatpush1.bf16.msra.mxu1 %v6637_v17 }
  0xef   :  { %1053 = vmatprep.subr.bf16.mxu1 %v6465_v1 }
  0xf0   :  { %5506 = vmatpush3.bf16.msra.mxu0 %v6606_v12 }
  0xf1   :  { %5507 = vmatprep.subr.bf16.mxu0 %v6612_v13 }
  0xf2   :  { %1054 = vmatpush1.bf16.msra.mxu1 %v6656_v21 }
  0xf3   :  { %1055 = vmatprep.subr.bf16.mxu1 %v6465_v1 }
  0xf4   :  { %5508 = vmatpush3.bf16.msra.mxu0 %v6625_v15 }
  0xf5   :  { %5509 = vmatprep.subr.bf16.mxu0 %v6631_v16  ;;  %v1108_v16 = vcombine.high %v1106_v38, %v1106_v38 }
  0xf6   :  { %v5361_v2 = vpop.f32.mrb[0].mxu0  ;;  %1056 = vmatpush1.bf16.msra.mxu1 %v6668_v23 }
  0xf7   :  { %v5362_v3 = vpop.f32.mrb[1].mxu0  ;;  %1057 = vmatprep.subr.bf16.mxu1 %v6465_v1 }
  0xf8   :  { %v5363_v5 = vadd.f32 %v5362_v3, %v5361_v2  ;;  %v387_v6 = vpop.f32.mrb[0].mxu1  ;;  %5510 = vmatpush3.bf16.msra.mxu0 %v6644_v18  ;;  %v5364_v8 = vpop.f32.mrb[2].mxu0  ;;  %v1099_v18 = vrot.slane %v5213_v32, %v6696_v35  ;;  %v5222_v2 = vld.sshfl [vmem:[%s8973_s0 + $0x8] sm:$0x33 pattern:$0x75316420] }
  0xf9   :  { %v389_v9 = vpop.f32.mrb[1].mxu1  ;;  %v5365_v12 = vpop.f32.mrb[3].mxu0  ;;  %5511 = vmatprep.subr.bf16.mxu0 %v6650_v19  ;;  %v1320_v3 = vcombine.high %v5222_v2, %v5222_v2 }
  0xfa   :  { %v6958_v13 = vadd.f32 %v5363_v5, %v387_v6  ;;  %v390_v15 = vpop.f32.mrb[2].mxu1  ;;  %1058 = vmatpush1.bf16.msra.mxu1 %v6693_v34  ;;  %v1107_v42 = vcombine.high %v1099_v18, %v1099_v18  ;;  %v7040_v12 = vrot.slane %v5222_v2, %v6696_v35 }
  0xfb   :  { %v391_v39 = vpop.f32.mrb[3].mxu1  ;;  %1155 = vmatprep.subr.bf16.mxu1 %v6465_v1  ;;  %v7037_v8 = vrot.slane %v1320_v3, %v6696_v35 }
  0xfc   :  { %5512 = vmatpush3.bf16.msra.mxu0 %v6662_v22  ;;  %v7054_v39 = vld [vmem:[%s8977_s4 + $0x90] sm:$0xff]  }
  0xfd   :  { %1074 = vmatmul.mubr.bf16.vlgmr.msra.gmra.mrb[24].mxu1 %v993_v11  ;;  %5513 = vmatprep.subr.bf16.mxu0 %v6677_v25  ;;  %v1336_v15 = vcombine.high %v7037_v8, %v7037_v8 }
  0xfe   :  { %1156 = vmatpush1.bf16.msra.mxu1 %v6538_v0  ;;  %5214 = vmatprep.mubr.msk.bf16.mxu1 %vm309_vm0, %v1108_v16  ;;  %v1335_v16 = vcombine.high %v7040_v12, %v7040_v12 }
  0xff   :  { %1157 = vmatprep.subr.bf16.mxu1 %v6465_v1 }
 0x100   :  { %5514 = vmatpush3.bf16.msra.mxu0 %v6688_v33 }
 0x101   :  { %6182 = vmatprep.subr.bf16.mxu0 %v6467_v24 }
 0x102   :  { %1158 = vmatpush1.bf16.msra.mxu1 %v6557_v4 }
 0x103   :  { %1159 = vmatprep.subr.bf16.mxu1 %v6465_v1  ;;  %1148 = vmatmul.mubr.bf16.vlgmr.msra.gmra.mrb[28].mxu0 %v1099_v18  ;;  %v7061_v18 = vld [vmem:[%s8977_s4 + $0x98] sm:$0xff]  }
 0x104   :  { %6186 = vmatprep.mubr.msk.bf16.mxu0 %vm6468_vm1, %v6467_v24 }
 0x106   :  { %1160 = vmatpush1.bf16.msra.mxu1 %v6575_v7 }
 0x107   :  { %1161 = vmatprep.subr.bf16.mxu1 %v6465_v1 }
 0x10a   :  { %1162 = vmatpush1.bf16.msra.mxu1 %v6593_v10 }
 0x10b   :  { %1163 = vmatprep.subr.bf16.mxu1 %v6465_v1 }
 0x10e   :  { %1164 = vmatpush1.bf16.msra.mxu1 %v6618_v14 }
 0x10f   :  { %1165 = vmatprep.subr.bf16.mxu1 %v6465_v1 }
 0x112   :  { %1166 = vmatpush1.bf16.msra.mxu1 %v6637_v17 }
 0x113   :  { %1167 = vmatprep.subr.bf16.mxu1 %v6465_v1 }
 0x116   :  { %1168 = vmatpush1.bf16.msra.mxu1 %v6656_v21  ;;  %v5383_v0 = vpop.f32.mrb[4].mxu0 }
 0x117   :  { %1169 = vmatprep.subr.bf16.mxu1 %v6465_v1  ;;  %v5384_v4 = vpop.f32.mrb[5].mxu0 }
 0x118   :  { %v5385_v19 = vadd.f32 %v5384_v4, %v5383_v0  ;;  %v5386_v22 = vpop.f32.mrb[6].mxu0 }
 0x119   :  { %v5387_v25 = vpop.f32.mrb[7].mxu0  ;;  %v7068_v22 = vld [vmem:[%s8977_s4 + $0xa0] sm:$0xff]  }
 0x11a   :  { %1170 = vmatpush1.bf16.msra.mxu1 %v6668_v23 }
 0x11b   :  { %1171 = vmatprep.subr.bf16.mxu1 %v6465_v1 }
 0x11c   :  { %v499_v33 = vpop.f32.mrb[4].mxu1 }
 0x11d   :  { %v500_v40 = vadd.f32 %v5385_v19, %v499_v33  ;;  %v501_v41 = vpop.f32.mrb[5].mxu1 }
 0x11e   :  { %v502_v43 = vpop.f32.mrb[6].mxu1  ;;  %1172 = vmatpush1.bf16.msra.mxu1 %v6693_v34  ;;  %v7076_v41 = vld [vmem:[%s8977_s4 + $0xa8] sm:$0xff]  }
 0x11f   :  { %v505_v44 = vmax.f32 %v6958_v13, %v500_v40  ;;  %v503_v45 = vpop.f32.mrb[7].mxu1  ;;  %1383 = vmatprep.subr.bf16.mxu1 %v6465_v1 }
 0x121   :  { %1188 = vmatmul.mubr.bf16.vlgmr.msra.gmra.mrb[28].mxu1 %v1107_v42  ;;  %v7083_v42 = vld [vmem:[%s8977_s4 + $0xb0] sm:$0xff]  }
 0x122   :  { %1384 = vmatpush1.bf16.msra.mxu1 %v6989_v46  ;;  %5223 = vmatprep.mubr.msk.bf16.mxu1 %vm309_vm0, %v1336_v15 }
 0x123   :  { %1385 = vmatprep.subr.bf16.mxu1 %v6465_v1 }
 0x126   :  { %1386 = vmatpush1.bf16.msra.mxu1 %v6996_v47 }
 0x127   :  { %1387 = vmatprep.subr.bf16.mxu1 %v6465_v1 }
 0x12a   :  { %1388 = vmatpush1.bf16.msra.mxu1 %v6575_v7 }
 0x12b   :  { %1389 = vmatprep.subr.bf16.mxu1 %v6465_v1 }
 0x12e   :  { %1390 = vmatpush1.bf16.msra.mxu1 %v6593_v10 }
 0x12f   :  { %1391 = vmatprep.subr.bf16.mxu1 %v6465_v1 }
 0x132   :  { %1392 = vmatpush1.bf16.msra.mxu1 %v6618_v14 }
 0x133   :  { %1393 = vmatprep.subr.bf16.mxu1 %v6465_v1 }
 0x136   :  { %v5405_v48 = vpop.f32.mrb[8].mxu0  ;;  %1394 = vmatpush1.bf16.msra.mxu1 %v6637_v17 }
 0x137   :  { %v5406_v49 = vpop.f32.mrb[9].mxu0  ;;  %1395 = vmatprep.subr.bf16.mxu1 %v6465_v1 }
 0x138   :  { %v5407_v50 = vadd.f32 %v5406_v49, %v5405_v48  ;;  %v5408_v51 = vpop.f32.mrb[10].mxu0  ;;  %v5225_v49 = vld.sshfl [vmem:[%s8974_s1 + $0x8] sm:$0x33 pattern:$0x75316420] }
 0x139   :  { %v5409_v52 = vpop.f32.mrb[11].mxu0  ;;  %v7093_v51 = vld [vmem:[%s8977_s4 + $0xb8] sm:$0xff]  }
 0x13a   :  { %1396 = vmatpush1.bf16.msra.mxu1 %v6656_v21  ;;  %v1433_v52 = vcombine.high %v5225_v49, %v5225_v49 }
 0x13b   :  { %1397 = vmatprep.subr.bf16.mxu1 %v6465_v1 }
 0x13e   :  { %1398 = vmatpush1.bf16.msra.mxu1 %v6668_v23 }
 0x13f   :  { %1399 = vmatprep.subr.bf16.mxu1 %v6465_v1 }
 0x140   :  { %v612_v7 = vpop.f32.mrb[8].mxu1 }
 0x141   :  { %v613_v10 = vadd.f32 %v5407_v50, %v612_v7  ;;  %v614_v14 = vpop.f32.mrb[9].mxu1  ;;  %v7098_v7 = vrot.slane %v1433_v52, %v6696_v35  ;;  %v7258_v52 = vld [vmem:[%s8977_s4 + $0x60] sm:$0xff]  }
 0x142   :  { %v615_v53 = vpop.f32.mrb[10].mxu1  ;;  %1400 = vmatpush1.bf16.msra.mxu1 %v6693_v34  ;;  %v6324_v34 = vld [vmem:[%s8979_s6 + $0x10] sm:$0xff]   ;;  %v7106_v14 = vld [vmem:[%s8977_s4 + $0xc0] sm:$0xff]  }
 0x143   :  { %v7013_v17 = vmax.f32 %v505_v44, %v613_v10  ;;  %v616_v54 = vpop.f32.mrb[11].mxu1  ;;  %1496 = vmatprep.subr.bf16.mxu1 %v6465_v1  ;;  %6183 = vmatpush3.bf16.msra.mxu0 %v6324_v34  ;;  %v7101_v10 = vrot.slane %v5225_v49, %v6696_v35  ;;  %v1449_v53 = vcombine.high %v7098_v7, %v7098_v7  ;;  %v7244_v49 = vld [vmem:[%s8977_s4 + $0x58] sm:$0xff]  }
 0x144   :  { %6184 = vmatprep.subr.bf16.mxu0 %v6467_v24 }
 0x145   :  { %1416 = vmatmul.mubr.bf16.vlgmr.msra.gmra.mrb[32].mxu1 %v1335_v16  ;;  %v1448_v54 = vcombine.high %v7101_v10, %v7101_v10  ;;  %v5231_v16 = vld.sshfl [vmem:[%s8976_s3 + $0x8] sm:$0x33 pattern:$0x75316420] }
 0x146   :  { %1497 = vmatpush1.bf16.msra.mxu1 %v6989_v46  ;;  %5226 = vmatprep.mubr.msk.bf16.mxu1 %vm309_vm0, %v1449_v53  ;;  %v7266_v53 = vld [vmem:[%s8977_s4 + $0x20] sm:$0xff]  }
 0x147   :  { %6185 = vmatpush3.bf16.msra.mxu0 %v6325_v30  ;;  %1498 = vmatprep.subr.bf16.mxu1 %v6465_v1 }
 0x148   :  { %6190 = vmatprep.subr.bf16.mxu0 %v6467_v24 }
 0x14a   :  { %1499 = vmatpush1.bf16.msra.mxu1 %v6996_v47 }
 0x14b   :  { %1500 = vmatprep.subr.bf16.mxu1 %v6465_v1 }
 0x14e   :  { %1501 = vmatpush1.bf16.msra.mxu1 %v7054_v39 }
 0x14f   :  { %1502 = vmatprep.subr.bf16.mxu1 %v6465_v1 }
 0x152   :  { %1503 = vmatpush1.bf16.msra.mxu1 %v7061_v18 }
 0x153   :  { %1504 = vmatprep.subr.bf16.mxu1 %v6465_v1 }
 0x156   :  { %v5427_v55 = vpop.f32.mrb[12].mxu0  ;;  %1505 = vmatpush1.bf16.msra.mxu1 %v7068_v22 }
 0x157   :  { %v5428_v56 = vpop.f32.mrb[13].mxu0  ;;  %1506 = vmatprep.subr.bf16.mxu1 %v6465_v1 }
 0x158   :  { %v5429_v21 = vadd.f32 %v5428_v56, %v5427_v55  ;;  %v5430_v57 = vpop.f32.mrb[14].mxu0 }
 0x159   :  { %v5431_v58 = vpop.f32.mrb[15].mxu0 }
 0x15a   :  { %1507 = vmatpush1.bf16.msra.mxu1 %v7076_v41 }
 0x15b   :  { %1508 = vmatprep.subr.bf16.mxu1 %v6465_v1 }
 0x15e   :  { %1509 = vmatpush1.bf16.msra.mxu1 %v7083_v42 }
 0x15f   :  { %1510 = vmatprep.subr.bf16.mxu1 %v6465_v1 }
 0x162   :  { %1511 = vmatpush1.bf16.msra.mxu1 %v7093_v51 }
 0x163   :  { %1512 = vmatprep.subr.bf16.mxu1 %v6465_v1 }
 0x164   :  { %v725_v59 = vpop.f32.mrb[12].mxu1 }
 0x165   :  { %v7016_v23 = vadd.f32 %v5429_v21, %v725_v59  ;;  %v727_v60 = vpop.f32.mrb[13].mxu1 }
 0x166   :  { %v728_v61 = vpop.f32.mrb[14].mxu1  ;;  %1513 = vmatpush1.bf16.msra.mxu1 %v7106_v14 }
 0x167   :  { %v731_v62 = vmax.f32 %v7013_v17, %v7016_v23  ;;  %v729_v63 = vpop.f32.mrb[15].mxu1  ;;  %1610 = vmatprep.subr.bf16.mxu1 %v6465_v1  ;;  %v1661_v17 = vcombine.high %v5231_v16, %v5231_v16 }
 0x169   :  { %1529 = vmatmul.mubr.bf16.vlgmr.msra.gmra.mrb[36].mxu1 %v1448_v54  ;;  %v7272_v54 = vld [vmem:[%s8977_s4 + $0x68] sm:$0xff]  }
 0x16a   :  { %1611 = vmatpush1.bf16.msra.mxu1 %v6989_v46 }
 0x16b   :  { %1612 = vmatprep.subr.bf16.mxu1 %v6465_v1 }
 0x16e   :  { %1613 = vmatpush1.bf16.msra.mxu1 %v6996_v47 }
 0x16f   :  { %1614 = vmatprep.subr.bf16.mxu1 %v6465_v1 }
 0x172   :  { %1615 = vmatpush1.bf16.msra.mxu1 %v7054_v39 }
 0x173   :  { %1616 = vmatprep.subr.bf16.mxu1 %v6465_v1 }
 0x176   :  { %v5449_v20 = vpop.f32.mrb[16].mxu0  ;;  %1617 = vmatpush1.bf16.msra.mxu1 %v7061_v18 }
 0x177   :  { %v5450_v26 = vpop.f32.mrb[17].mxu0  ;;  %1618 = vmatprep.subr.bf16.mxu1 %v6465_v1 }
 0x178   :  { %v5451_v27 = vadd.f32 %v5450_v26, %v5449_v20  ;;  %v5452_v28 = vpop.f32.mrb[18].mxu0  ;;  %v5228_v26 = vld.sshfl [vmem:[%s8975_s2 + $0x8] sm:$0x33 pattern:$0x75316420] }
 0x179   :  { %v5453_v29 = vpop.f32.mrb[19].mxu0 }
 0x17a   :  { %1619 = vmatpush1.bf16.msra.mxu1 %v7068_v22  ;;  %v7138_v29 = vrot.slane %v5228_v26, %v6696_v35 }
 0x17b   :  { %1620 = vmatprep.subr.bf16.mxu1 %v6465_v1 }
 0x17e   :  { %1621 = vmatpush1.bf16.msra.mxu1 %v7076_v41 }
 0x17f   :  { %1622 = vmatprep.subr.bf16.mxu1 %v6465_v1 }
 0x182   :  { %1623 = vmatpush1.bf16.msra.mxu1 %v7083_v42 }
 0x183   :  { %1624 = vmatprep.subr.bf16.mxu1 %v6465_v1 }
 0x186   :  { %1625 = vmatpush1.bf16.msra.mxu1 %v7093_v51 }
 0x187   :  { %1626 = vmatprep.subr.bf16.mxu1 %v6465_v1 }
 0x188   :  { %v848_v31 = vpop.f32.mrb[16].mxu1 }
 0x189   :  { %v7031_v32 = vadd.f32 %v5451_v27, %v848_v31  ;;  %v850_v36 = vpop.f32.mrb[17].mxu1  ;;  %v1547_v27 = vcombine.high %v5228_v26, %v5228_v26  ;;  %v1562_v31 = vcombine.high %v7138_v29, %v7138_v29 }
 0x18a   :  { %v851_v37 = vpop.f32.mrb[18].mxu1  ;;  %1627 = vmatpush1.bf16.msra.mxu1 %v7106_v14 }
 0x18b   :  { %v852_v38 = vpop.f32.mrb[19].mxu1  ;;  %v7135_v28 = vrot.slane %v1547_v27, %v6696_v35  ;;  %1724 = vmatprep.subr.bf16.mxu1 %v6465_v1 }
 0x18d   :  { %v1563_v30 = vcombine.high %v7135_v28, %v7135_v28 }
 0x18f   :  { %5229 = vmatprep.mubr.msk.bf16.mxu1 %vm309_vm0, %v1563_v30 }
 0x190   :  { %1643 = vmatmul.mubr.bf16.vlgmr.msra.gmra.mrb[40].mxu1 %v1562_v31 }
 0x191   :  { %1725 = vmatpush1.bf16.msra.mxu1 %v6989_v46 }
 0x192   :  { %1726 = vmatprep.subr.bf16.mxu1 %v6465_v1 }
 0x195   :  { %1727 = vmatpush1.bf16.msra.mxu1 %v6996_v47 }
 0x196   :  { %v5471_v5 = vpop.f32.mrb[20].mxu0  ;;  %1728 = vmatprep.subr.bf16.mxu1 %v6465_v1 }
 0x197   :  { %v5472_v6 = vpop.f32.mrb[21].mxu0 }
 0x198   :  { %v5473_v9 = vadd.f32 %v5472_v6, %v5471_v5  ;;  %v5474_v11 = vpop.f32.mrb[22].mxu0  ;;  %v7160_v5 = vld [vmem:[%s8978_s5] ss:$0 sm:$0xff] }
 0x199   :  { %v5475_v13 = vpop.f32.mrb[23].mxu0  ;;  %1729 = vmatpush1.bf16.msra.mxu1 %v7054_v39  ;;  %v6326_v11 = vld [vmem:[%s8979_s6] sm:$0xff]  }
 0x19a   :  { %1730 = vmatprep.subr.bf16.mxu1 %v6465_v1  ;;  %v738_v13 = vadd.f32 %v7160_v5, %v731_v62  ;;  %v7187_v62 = vrot.slane %v1661_v17, %v6696_v35 }
 0x19c   :  { %v739_v23 = vmax.f32 %v738_v13, 0.0 }
 0x19d   :  { %1731 = vmatpush1.bf16.msra.mxu1 %v7061_v18 }
 0x19e   :  { %1732 = vmatprep.subr.bf16.mxu1 %v6465_v1 }
 0x1a1   :  { %1733 = vmatpush1.bf16.msra.mxu1 %v7068_v22 }
 0x1a2   :  { %1734 = vmatprep.subr.bf16.mxu1 %v6465_v1 }
 0x1a5   :  { %1735 = vmatpush1.bf16.msra.mxu1 %v7076_v41 }
 0x1a6   :  { %1736 = vmatprep.subr.bf16.mxu1 %v6465_v1 }
 0x1a9   :  { %1737 = vmatpush1.bf16.msra.mxu1 %v7083_v42 }
 0x1aa   :  { %1738 = vmatprep.subr.bf16.mxu1 %v6465_v1 }
 0x1ac   :  { %v961_v0 = vpop.f32.mrb[20].mxu1 }
 0x1ad   :  { %v962_v4 = vadd.f32 %v5473_v9, %v961_v0  ;;  %v963_v19 = vpop.f32.mrb[21].mxu1  ;;  %v6327_v0 = vld [vmem:[%s8979_s6 + $0x8] sm:$0xff]   ;;  %1739 = vmatpush1.bf16.msra.mxu1 %v7093_v51 }
 0x1ae   :  { %v964_v25 = vpop.f32.mrb[22].mxu1  ;;  %1740 = vmatprep.subr.bf16.mxu1 %v6465_v1  ;;  %v1677_v19 = vcombine.high %v7187_v62, %v7187_v62 }
 0x1af   :  { %v967_v33 = vmax.f32 %v7031_v32, %v962_v4  ;;  %v965_v40 = vpop.f32.mrb[23].mxu1  ;;  %v7190_v4 = vrot.slane %v5231_v16, %v6696_v35  ;;  %v740_v25 = vpack.c.bf16 %v739_v23, %v739_v23 }
 0x1b0   :  { %5232 = vmatprep.mubr.msk.bf16.mxu1 %vm309_vm0, %v1677_v19 }
 0x1b1   :  { %1741 = vmatpush1.bf16.msra.mxu1 %v7106_v14  ;;  %v1676_v40 = vcombine.high %v7190_v4, %v7190_v4 }
 0x1b2   :  { %1897 = vmatprep.subr.bf16.mxu1 %v6465_v1 }
 0x1b4   :  { %1757 = vmatmul.mubr.bf16.vlgmr.msra.gmra.mrb[44].mxu1 %v1676_v40 }
 0x1b5   :  { %1898 = vmatpush1.bf16.msra.mxu1 %v6989_v46 }
 0x1b6   :  { %v5493_v43 = vpop.f32.mrb[24].mxu0  ;;  %1899 = vmatprep.subr.bf16.mxu1 %v6465_v1 }
 0x1b7   :  { %v5494_v44 = vpop.f32.mrb[25].mxu0 }
 0x1b8   :  { %v5495_v45 = vadd.f32 %v5494_v44, %v5493_v43  ;;  %v5496_v48 = vpop.f32.mrb[26].mxu0  ;;  %v7209_v43 = vld [vmem:[%s8977_s4] sm:$0xff]   ;;  %v7216_v44 = vld [vmem:[%s8977_s4 + $0x48] sm:$0xff]  }
 0x1b9   :  { %v5497_v50 = vpop.f32.mrb[27].mxu0  ;;  %1900 = vmatpush1.bf16.msra.mxu1 %v6996_v47  ;;  %v7238_v48 = vld [vmem:[%s8977_s4 + $0x10] sm:$0xff]  }
 0x1ba   :  { %1901 = vmatprep.subr.bf16.mxu1 %v6465_v1  ;;  %v7252_v50 = vld [vmem:[%s8977_s4 + $0x18] sm:$0xff]  }
 0x1bd   :  { %1902 = vmatpush1.bf16.msra.mxu1 %v7054_v39 }
 0x1be   :  { %1903 = vmatprep.subr.bf16.mxu1 %v6465_v1 }
 0x1c1   :  { %1904 = vmatpush1.bf16.msra.mxu1 %v7061_v18 }
 0x1c2   :  { %1905 = vmatprep.subr.bf16.mxu1 %v6465_v1 }
 0x1c5   :  { %1906 = vmatpush1.bf16.msra.mxu1 %v7068_v22 }
 0x1c6   :  { %1907 = vmatprep.subr.bf16.mxu1 %v6465_v1 }
 0x1c9   :  { %1908 = vmatpush1.bf16.msra.mxu1 %v7076_v41 }
 0x1ca   :  { %1909 = vmatprep.subr.bf16.mxu1 %v6465_v1 }
 0x1cd   :  { %1910 = vmatpush1.bf16.msra.mxu1 %v7083_v42 }
 0x1ce   :  { %1911 = vmatprep.subr.bf16.mxu1 %v6465_v1 }
 0x1d0   :  { %v1075_v55 = vpop.f32.mrb[24].mxu1 }
 0x1d1   :  { %v1076_v56 = vadd.f32 %v5495_v45, %v1075_v55  ;;  %v1077_v21 = vpop.f32.mrb[25].mxu1  ;;  %v7224_v45 = vld [vmem:[%s8977_s4 + $0x8] sm:$0xff]   ;;  %1912 = vmatpush1.bf16.msra.mxu1 %v7093_v51 }
 0x1d2   :  { %v1078_v57 = vpop.f32.mrb[26].mxu1  ;;  %v7280_v55 = vld [vmem:[%s8977_s4 + $0x28] sm:$0xff]   ;;  %v7294_v21 = vld [vmem:[%s8977_s4 + $0x30] sm:$0xff]   ;;  %1913 = vmatprep.subr.bf16.mxu1 %v6465_v1 }
 0x1d3   :  { %v1081_v58 = vmax.f32 %v967_v33, %v1076_v56  ;;  %v1079_v59 = vpop.f32.mrb[27].mxu1  ;;  %v7197_v33 = vld [vmem:[%s8977_s4 + $0x40] sm:$0xff]   ;;  %v7286_v56 = vld [vmem:[%s8977_s4 + $0x70] sm:$0xff]   ;;  %v7300_v57 = vld [vmem:[%s8977_s4 + $0x78] sm:$0xff]  }
 0x1d5   :  { %1914 = vmatpush1.bf16.msra.mxu1 %v7106_v14 }
 0x1d6   :  { %v5515_v60 = vpop.f32.mrb[28].mxu0  ;;  %2010 = vmatprep.subr.bf16.mxu1 %v6465_v1 }
 0x1d7   :  { %v5516_v61 = vpop.f32.mrb[29].mxu0 }
 0x1d8   :  { %v5517_v63 = vadd.f32 %v5516_v61, %v5515_v60  ;;  %v5518_v34 = vpop.f32.mrb[30].mxu0 }
 0x1d9   :  { %v5519_v20 = vpop.f32.mrb[31].mxu0 }
 0x1f4   :  { %v1189_v32 = vpop.f32.mrb[28].mxu1 }
 0x1f5   :  { %v1190_v36 = vadd.f32 %v5517_v63, %v1189_v32  ;;  %v1191_v37 = vpop.f32.mrb[29].mxu1 }
 0x1f6   :  { %v1192_v38 = vpop.f32.mrb[30].mxu1 }
 0x1f7   :  { %v1195_v2 = vmax.f32 %v1081_v58, %v1190_v36  ;;  %v1193_v3 = vpop.f32.mrb[31].mxu1  ;;  %v7308_v58 = vld [vmem:[%s8977_s4 + $0x38] sm:$0xff]  }
 0x1f9   :  { %v1196_v6 = vadd.f32 %v7160_v5, %v1195_v2 }
 0x1fb   :  { %v1197_v9 = vmax.f32 %v1196_v6, 0.0 }
 0x1fd   :  { %v1198_v15 = vpack.c.bf16 %v1197_v9, %v1197_v9 }
 0x1ff   :  { %6187 = vmatmul.mubr.msk.bf16.vlgmr.msra.gmra.mrb[32].mxu0 %vm1211_vm2, %v1198_v15  ;;  %v6328_v15 = vld [vmem:[%s8979_s6 + $0x20] sm:$0xff]  }
 0x200   :  { %6191 = vmatpush3.bf16.msra.mxu0 %v6326_v11  ;;  %6194 = vmatprep.mubr.msk.bf16.mxu0 %vm6468_vm1, %v6467_v24  ;;  %v5237_v11 = vld.sshfl [vmem:[%s8973_s0 + $0xc] sm:$0x33 pattern:$0x75316420] }
 0x201   :  { %6192 = vmatprep.subr.bf16.mxu0 %v6467_v24  ;;  %v1834_v16 = vcombine.high %v5237_v11, %v5237_v11  ;;  %v7394_v23 = vrot.slane %v5237_v11, %v6696_v35 }
 0x203   :  { %v7390_v17 = vrot.slane %v1834_v16, %v6696_v35  ;;  %v1849_v19 = vcombine.high %v7394_v23, %v7394_v23 }
 0x204   :  { %6193 = vmatpush3.bf16.msra.mxu0 %v6327_v0 }
 0x205   :  { %5527 = vmatprep.subr.bf16.mxu0 %v7197_v33 }
 0x207   :  { %6195 = vmatmul.mubr.msk.bf16.vlgmr.msra.gmra.mrb[36].mxu0 %vm1211_vm2, %v740_v25 }
 0x208   :  { %5528 = vmatpush3.bf16.msra.mxu0 %v7209_v43  ;;  %1375 = vmatprep.mubr.bf16.mxu0 %v7037_v8  ;;  %v7230_v8 = vld [vmem:[%s8977_s4 + $0x50] sm:$0xff]  }
 0x209   :  { %5529 = vmatprep.subr.bf16.mxu0 %v7216_v44 }
 0x20c   :  { %5530 = vmatpush3.bf16.msra.mxu0 %v7224_v45 }
 0x20d   :  { %5531 = vmatprep.subr.bf16.mxu0 %v7230_v8 }
 0x210   :  { %5532 = vmatpush3.bf16.msra.mxu0 %v7238_v48 }
 0x211   :  { %5533 = vmatprep.subr.bf16.mxu0 %v7244_v49 }
 0x214   :  { %5534 = vmatpush3.bf16.msra.mxu0 %v7252_v50 }
 0x215   :  { %5535 = vmatprep.subr.bf16.mxu0 %v7258_v52 }
 0x218   :  { %5536 = vmatpush3.bf16.msra.mxu0 %v7266_v53 }
 0x219   :  { %5537 = vmatprep.subr.bf16.mxu0 %v7272_v54 }
 0x21c   :  { %5538 = vmatpush3.bf16.msra.mxu0 %v7280_v55 }
 0x21d   :  { %5539 = vmatprep.subr.bf16.mxu0 %v7286_v56 }
 0x220   :  { %5540 = vmatpush3.bf16.msra.mxu0 %v7294_v21 }
 0x221   :  { %5541 = vmatprep.subr.bf16.mxu0 %v7300_v57 }
 0x224   :  { %5542 = vmatpush3.bf16.msra.mxu0 %v7308_v58 }
 0x225   :  { %5549 = vmatprep.subr.bf16.mxu0 %v7197_v33 }
 0x227   :  { %1376 = vmatmul.mubr.bf16.vlgmr.msra.gmra.mrb[40].mxu0 %v7040_v12  ;;  %v7358_v12 = vpop.f32.mrb[32].mxu1 }
 0x228   :  { %5550 = vmatpush3.bf16.msra.mxu0 %v7209_v43  ;;  %1488 = vmatprep.mubr.bf16.mxu0 %v7098_v7  ;;  %v1419_v7 = vpop.f32.mrb[33].mxu1 }
 0x229   :  { %5551 = vmatprep.subr.bf16.mxu0 %v7216_v44 }
 0x22c   :  { %5552 = vmatpush3.bf16.msra.mxu0 %v7224_v45 }
 0x22d   :  { %5553 = vmatprep.subr.bf16.mxu0 %v7230_v8 }
 0x230   :  { %5554 = vmatpush3.bf16.msra.mxu0 %v7238_v48 }
 0x231   :  { %5555 = vmatprep.subr.bf16.mxu0 %v7244_v49 }
 0x234   :  { %5556 = vmatpush3.bf16.msra.mxu0 %v7252_v50 }
 0x235   :  { %5557 = vmatprep.subr.bf16.mxu0 %v7258_v52 }
 0x238   :  { %5558 = vmatpush3.bf16.msra.mxu0 %v7266_v53 }
 0x239   :  { %5559 = vmatprep.subr.bf16.mxu0 %v7272_v54 }
 0x23c   :  { %5560 = vmatpush3.bf16.msra.mxu0 %v7280_v55 }
 0x23d   :  { %5561 = vmatprep.subr.bf16.mxu0 %v7286_v56 }
 0x240   :  { %5562 = vmatpush3.bf16.msra.mxu0 %v7294_v21 }
 0x241   :  { %5563 = vmatprep.subr.bf16.mxu0 %v7300_v57 }
 0x244   :  { %5564 = vmatpush3.bf16.msra.mxu0 %v7308_v58 }
 0x245   :  { %5571 = vmatprep.subr.bf16.mxu0 %v7197_v33 }
 0x247   :  { %1489 = vmatmul.mubr.bf16.vlgmr.msra.gmra.mrb[44].mxu0 %v7101_v10  ;;  %v1420_v10 = vpop.f32.mrb[34].mxu1 }
 0x248   :  { %5572 = vmatpush3.bf16.msra.mxu0 %v7209_v43  ;;  %1602 = vmatprep.mubr.bf16.mxu0 %v7135_v28  ;;  %v1421_v59 = vpop.f32.mrb[35].mxu1 }
 0x249   :  { %5573 = vmatprep.subr.bf16.mxu0 %v7216_v44  ;;  %v7375_v60 = vpop.f32.mrb[36].mxu1 }
 0x24a   :  { %v1532_v61 = vpop.f32.mrb[37].mxu1 }
 0x24b   :  { %v1533_v63 = vpop.f32.mrb[38].mxu1 }
 0x24c   :  { %5574 = vmatpush3.bf16.msra.mxu0 %v7224_v45  ;;  %v1534_v34 = vpop.f32.mrb[39].mxu1  ;;  %v5240_v63 = vld.sshfl [vmem:[%s8974_s1 + $0xc] sm:$0x33 pattern:$0x75316420] }
 0x24d   :  { %5575 = vmatprep.subr.bf16.mxu0 %v7230_v8  ;;  %v1947_v34 = vcombine.high %v5240_v63, %v5240_v63 }
 0x250   :  { %5576 = vmatpush3.bf16.msra.mxu0 %v7238_v48 }
 0x251   :  { %5577 = vmatprep.subr.bf16.mxu0 %v7244_v49 }
 0x254   :  { %5578 = vmatpush3.bf16.msra.mxu0 %v7252_v50 }
 0x255   :  { %5579 = vmatprep.subr.bf16.mxu0 %v7258_v52 }
 0x258   :  { %5580 = vmatpush3.bf16.msra.mxu0 %v7266_v53 }
 0x259   :  { %5581 = vmatprep.subr.bf16.mxu0 %v7272_v54 }
 0x25c   :  { %5582 = vmatpush3.bf16.msra.mxu0 %v7280_v55 }
 0x25d   :  { %5583 = vmatprep.subr.bf16.mxu0 %v7286_v56 }
 0x260   :  { %5584 = vmatpush3.bf16.msra.mxu0 %v7294_v21 }
 0x261   :  { %5585 = vmatprep.subr.bf16.mxu0 %v7300_v57 }
 0x263   :  { %v7377_v20 = vpop.f32.mrb[40].mxu1 }
 0x264   :  { %5586 = vmatpush3.bf16.msra.mxu0 %v7308_v58  ;;  %v1646_v26 = vpop.f32.mrb[41].mxu1 }
 0x265   :  { %5593 = vmatprep.subr.bf16.mxu0 %v7197_v33  ;;  %v1647_v27 = vpop.f32.mrb[42].mxu1  ;;  %v7428_v26 = vrot.slane %v1947_v34, %v6696_v35 }
 0x266   :  { %v1648_v28 = vpop.f32.mrb[43].mxu1 }
 0x267   :  { %1603 = vmatmul.mubr.bf16.vlgmr.msra.gmra.mrb[48].mxu0 %v7138_v29  ;;  %v1963_v27 = vcombine.high %v7428_v26, %v7428_v26 }
 0x268   :  { %5594 = vmatpush3.bf16.msra.mxu0 %v7209_v43  ;;  %1716 = vmatprep.mubr.bf16.mxu0 %v7187_v62  ;;  %v6329_v62 = vld [vmem:[%s8979_s6 + $0x28] sm:$0xff]  }
 0x269   :  { %5595 = vmatprep.subr.bf16.mxu0 %v7216_v44 }
 0x26c   :  { %5596 = vmatpush3.bf16.msra.mxu0 %v7224_v45 }
 0x26d   :  { %5597 = vmatprep.subr.bf16.mxu0 %v7230_v8 }
 0x270   :  { %5598 = vmatpush3.bf16.msra.mxu0 %v7238_v48 }
 0x271   :  { %5599 = vmatprep.subr.bf16.mxu0 %v7244_v49 }
 0x274   :  { %5600 = vmatpush3.bf16.msra.mxu0 %v7252_v50 }
 0x275   :  { %5601 = vmatprep.subr.bf16.mxu0 %v7258_v52 }
 0x278   :  { %5602 = vmatpush3.bf16.msra.mxu0 %v7266_v53 }
 0x279   :  { %5603 = vmatprep.subr.bf16.mxu0 %v7272_v54 }
 0x27c   :  { %5604 = vmatpush3.bf16.msra.mxu0 %v7280_v55 }
 0x27d   :  { %5605 = vmatprep.subr.bf16.mxu0 %v7286_v56 }
 0x280   :  { %5606 = vmatpush3.bf16.msra.mxu0 %v7294_v21 }
 0x281   :  { %5607 = vmatprep.subr.bf16.mxu0 %v7300_v57 }
 0x284   :  { %5608 = vmatpush3.bf16.msra.mxu0 %v7308_v58 }
 0x285   :  { %6198 = vmatprep.subr.bf16.mxu0 %v6467_v24 }
 0x287   :  { %1717 = vmatmul.mubr.bf16.vlgmr.msra.gmra.mrb[52].mxu0 %v7190_v4  ;;  %v7381_v3 = vpop.f32.mrb[44].mxu1  ;;  %v1850_v4 = vcombine.high %v7390_v17, %v7390_v17 }
 0x288   :  { %6202 = vmatprep.mubr.msk.bf16.mxu0 %vm6468_vm1, %v6467_v24  ;;  %v1760_v9 = vpop.f32.mrb[45].mxu1  ;;  %6199 = vmatpush3.bf16.msra.mxu0 %v6328_v15 }
 0x289   :  { %v1761_v13 = vpop.f32.mrb[46].mxu1  ;;  %6200 = vmatprep.subr.bf16.mxu0 %v6467_v24  ;;  %5238 = vmatprep.mubr.msk.bf16.mxu1 %vm309_vm0, %v1850_v4 }
 0x28a   :  { %v1762_v0 = vpop.f32.mrb[47].mxu1  ;;  %1930 = vmatmul.mubr.bf16.vlgmr.msra.gmra.mrb[48].mxu1 %v1849_v19 }
 0x28b   :  { %2011 = vmatpush1.bf16.msra.mxu1 %v6989_v46  ;;  %5241 = vmatprep.mubr.msk.bf16.mxu1 %vm309_vm0, %v1963_v27 }
 0x28c   :  { %6201 = vmatpush3.bf16.msra.mxu0 %v6329_v62  ;;  %2012 = vmatprep.subr.bf16.mxu1 %v6465_v1 }
 0x28d   :  { %5618 = vmatprep.subr.bf16.mxu0 %v7197_v33 }
 0x28f   :  { %2013 = vmatpush1.bf16.msra.mxu1 %v6996_v47 }
 0x290   :  { %2014 = vmatprep.subr.bf16.mxu1 %v6465_v1 }
 0x293   :  { %2015 = vmatpush1.bf16.msra.mxu1 %v7054_v39 }
 0x294   :  { %2016 = vmatprep.subr.bf16.mxu1 %v6465_v1 }
 0x297   :  { %2017 = vmatpush1.bf16.msra.mxu1 %v7061_v18 }
 0x298   :  { %2018 = vmatprep.subr.bf16.mxu1 %v6465_v1 }
 0x29b   :  { %2019 = vmatpush1.bf16.msra.mxu1 %v7068_v22 }
 0x29c   :  { %2020 = vmatprep.subr.bf16.mxu1 %v6465_v1 }
 0x29f   :  { %2021 = vmatpush1.bf16.msra.mxu1 %v7076_v41 }
 0x2a0   :  { %2022 = vmatprep.subr.bf16.mxu1 %v6465_v1 }
 0x2a3   :  { %2023 = vmatpush1.bf16.msra.mxu1 %v7083_v42 }
 0x2a4   :  { %2024 = vmatprep.subr.bf16.mxu1 %v6465_v1 }
 0x2a7   :  { %2025 = vmatpush1.bf16.msra.mxu1 %v7093_v51 }
 0x2a8   :  { %2026 = vmatprep.subr.bf16.mxu1 %v6465_v1 }
 0x2ab   :  { %2027 = vmatpush1.bf16.msra.mxu1 %v7106_v14 }
 0x2ac   :  { %5684 = vmatprep.subr.bf16.mxu1 %v7197_v33 }
 0x2d2   :  { %v1249_v29 = vpop.f32.mrb[32].mxu0 }
 0x2d3   :  { %v6188_v30 = vpop.f32.mrb[33].mxu0 }
 0x2d4   :  { %v1252_v31 = vpop.f32.mrb[34].mxu0 }
 0x2d5   :  { %v6189_v32 = vpop.f32.mrb[35].mxu0 }
 0x2da   :  { %v1304_v36 = vpop.f32.mrb[36].mxu0 }
 0x2db   :  { %v7379_v37 = vadd.f32 %v1304_v36, %v1249_v29  ;;  %v6196_v38 = vpop.f32.mrb[37].mxu0 }
 0x2dc   :  { %v1307_v2 = vpop.f32.mrb[38].mxu0 }
 0x2dd   :  { %v6197_v6 = vpop.f32.mrb[39].mxu0 }
 0x2de   :  { %v5246_v6 = vld.sshfl [vmem:[%s8976_s3 + $0xc] sm:$0x33 pattern:$0x75316420] }
 0x2df   :  { %v2175_v9 = vcombine.high %v5246_v6, %v5246_v6 }
 0x2e1   :  { %v2189_v11 = vrot.slane %v2175_v9, %v6696_v35 }
 0x2e3   :  { %v2191_v13 = vcombine.high %v2189_v11, %v2189_v11 }
 0x2fa   :  { %v5543_v25 = vpop.f32.mrb[40].mxu0 }
 0x2fb   :  { %v5544_v40 = vpop.f32.mrb[41].mxu0 }
 0x2fc   :  { %v5545_v7 = vadd.f32 %v5544_v40, %v5543_v25  ;;  %v5546_v10 = vpop.f32.mrb[42].mxu0 }
 0x2fd   :  { %v5547_v59 = vpop.f32.mrb[43].mxu0 }
 0x2fe   :  { %v7418_v61 = vadd.f32 %v5545_v7, %v7358_v12  ;;  %v7432_v12 = vrot.slane %v5240_v63, %v6696_v35 }
 0x300   :  { %v1962_v28 = vcombine.high %v7432_v12, %v7432_v12 }
 0x302   :  { %2043 = vmatmul.mubr.bf16.vlgmr.msra.gmra.mrb[52].mxu1 %v1962_v28 }
 0x303   :  { %5685 = vmatpush3.bf16.msra.mxu1 %v7209_v43  ;;  %2230 = vmatprep.mubr.bf16.mxu1 %v2189_v11 }
 0x304   :  { %5686 = vmatprep.subr.bf16.mxu1 %v7216_v44 }
 0x307   :  { %5687 = vmatpush3.bf16.msra.mxu1 %v7224_v45 }
 0x308   :  { %5688 = vmatprep.subr.bf16.mxu1 %v7230_v8 }
 0x30b   :  { %5689 = vmatpush3.bf16.msra.mxu1 %v7238_v48 }
 0x30c   :  { %5690 = vmatprep.subr.bf16.mxu1 %v7244_v49 }
 0x30f   :  { %5691 = vmatpush3.bf16.msra.mxu1 %v7252_v50 }
 0x310   :  { %5692 = vmatprep.subr.bf16.mxu1 %v7258_v52 }
 0x313   :  { %5693 = vmatpush3.bf16.msra.mxu1 %v7266_v53 }
 0x314   :  { %5694 = vmatprep.subr.bf16.mxu1 %v7272_v54 }
 0x317   :  { %5695 = vmatpush3.bf16.msra.mxu1 %v7280_v55 }
 0x318   :  { %5696 = vmatprep.subr.bf16.mxu1 %v7286_v56 }
 0x31a   :  { %v5565_v29 = vpop.f32.mrb[44].mxu0 }
 0x31b   :  { %v5566_v30 = vpop.f32.mrb[45].mxu0  ;;  %5697 = vmatpush3.bf16.msra.mxu1 %v7294_v21 }
 0x31c   :  { %v5567_v31 = vadd.f32 %v5566_v30, %v5565_v29  ;;  %v5568_v32 = vpop.f32.mrb[46].mxu0  ;;  %5698 = vmatprep.subr.bf16.mxu1 %v7300_v57 }
 0x31d   :  { %v5569_v36 = vpop.f32.mrb[47].mxu0 }
 0x31e   :  { %v1531_v38 = vadd.f32 %v5567_v31, %v7375_v60  ;;  %v2182_v60 = vrot.slane %v5246_v6, %v6696_v35 }
 0x31f   :  { %5699 = vmatpush3.bf16.msra.mxu1 %v7308_v58 }
 0x320   :  { %v1536_v2 = vmax.f32 %v7418_v61, %v1531_v38  ;;  %2238 = vmatprep.subr.bf16.mxu1 %v6465_v1  ;;  %v2190_v40 = vcombine.high %v2182_v60, %v2182_v60 }
 0x322   :  { %2231 = vmatmul.mubr.bf16.vlgmr.msra.gmra.mrb[56].mxu1 %v2182_v60 }
 0x323   :  { %2239 = vmatpush1.bf16.msra.mxu1 %v6989_v46  ;;  %5247 = vmatprep.mubr.msk.bf16.mxu1 %vm309_vm0, %v2191_v13 }
 0x324   :  { %2240 = vmatprep.subr.bf16.mxu1 %v6465_v1 }
 0x327   :  { %2241 = vmatpush1.bf16.msra.mxu1 %v6996_v47 }
 0x328   :  { %2242 = vmatprep.subr.bf16.mxu1 %v6465_v1 }
 0x32b   :  { %2243 = vmatpush1.bf16.msra.mxu1 %v7054_v39 }
 0x32c   :  { %2244 = vmatprep.subr.bf16.mxu1 %v6465_v1 }
 0x32f   :  { %2245 = vmatpush1.bf16.msra.mxu1 %v7061_v18 }
 0x330   :  { %2246 = vmatprep.subr.bf16.mxu1 %v6465_v1 }
 0x333   :  { %2247 = vmatpush1.bf16.msra.mxu1 %v7068_v22 }
 0x334   :  { %2248 = vmatprep.subr.bf16.mxu1 %v6465_v1 }
 0x337   :  { %2249 = vmatpush1.bf16.msra.mxu1 %v7076_v41 }
 0x338   :  { %2250 = vmatprep.subr.bf16.mxu1 %v6465_v1 }
 0x33a   :  { %v5587_v15 = vpop.f32.mrb[48].mxu0 }
 0x33b   :  { %v5588_v16 = vpop.f32.mrb[49].mxu0  ;;  %2251 = vmatpush1.bf16.msra.mxu1 %v7083_v42 }
 0x33c   :  { %v5589_v0 = vadd.f32 %v5588_v16, %v5587_v15  ;;  %v5590_v62 = vpop.f32.mrb[50].mxu0  ;;  %2252 = vmatprep.subr.bf16.mxu1 %v6465_v1 }
 0x33d   :  { %v5591_v4 = vpop.f32.mrb[51].mxu0 }
 0x33e   :  { %v1645_v19 = vadd.f32 %v5589_v0, %v7377_v20 }
 0x33f   :  { %2253 = vmatpush1.bf16.msra.mxu1 %v7093_v51 }
 0x340   :  { %v1650_v25 = vmax.f32 %v1536_v2, %v1645_v19  ;;  %2254 = vmatprep.subr.bf16.mxu1 %v6465_v1 }
 0x343   :  { %2255 = vmatpush1.bf16.msra.mxu1 %v7106_v14 }
 0x344   :  { %2411 = vmatprep.subr.bf16.mxu1 %v6465_v1 }
 0x346   :  { %2271 = vmatmul.mubr.bf16.vlgmr.msra.gmra.mrb[60].mxu1 %v2190_v40 }
 0x347   :  { %2412 = vmatpush1.bf16.msra.mxu1 %v6989_v46 }
 0x348   :  { %2413 = vmatprep.subr.bf16.mxu1 %v6465_v1 }
 0x34b   :  { %2414 = vmatpush1.bf16.msra.mxu1 %v6996_v47 }
 0x34c   :  { %2415 = vmatprep.subr.bf16.mxu1 %v6465_v1 }
 0x34f   :  { %2416 = vmatpush1.bf16.msra.mxu1 %v7054_v39 }
 0x350   :  { %2417 = vmatprep.subr.bf16.mxu1 %v6465_v1 }
 0x353   :  { %2418 = vmatpush1.bf16.msra.mxu1 %v7061_v18 }
 0x354   :  { %2419 = vmatprep.subr.bf16.mxu1 %v6465_v1 }
 0x357   :  { %2420 = vmatpush1.bf16.msra.mxu1 %v7068_v22 }
 0x358   :  { %2421 = vmatprep.subr.bf16.mxu1 %v6465_v1 }
 0x35a   :  { %v5609_v20 = vpop.f32.mrb[52].mxu0 }
 0x35b   :  { %v5610_v7 = vpop.f32.mrb[53].mxu0  ;;  %2422 = vmatpush1.bf16.msra.mxu1 %v7076_v41 }
 0x35c   :  { %v5611_v10 = vadd.f32 %v5610_v7, %v5609_v20  ;;  %v5612_v59 = vpop.f32.mrb[54].mxu0  ;;  %2423 = vmatprep.subr.bf16.mxu1 %v6465_v1 }
 0x35d   :  { %v5613_v61 = vpop.f32.mrb[55].mxu0  ;;  %v5252_v59 = vld.sshfl [vmem:[%s8973_s0 + $0x10] sm:$0x33 pattern:$0x75316420] }
 0x35e   :  { %v1759_v63 = vadd.f32 %v5611_v10, %v7381_v3  ;;  %v5243_v3 = vld.sshfl [vmem:[%s8975_s2 + $0xc] sm:$0x33 pattern:$0x75316420]  ;;  %v6330_v61 = vld [vmem:[%s8979_s6 + $0x30] sm:$0xff]  }
 0x35f   :  { %2424 = vmatpush1.bf16.msra.mxu1 %v7083_v42  ;;  %v2068_v32 = vrot.slane %v5243_v3, %v6696_v35 }
 0x360   :  { %v1764_v34 = vmax.f32 %v1650_v25, %v1759_v63  ;;  %2425 = vmatprep.subr.bf16.mxu1 %v6465_v1  ;;  %v2348_v63 = vcombine.high %v5252_v59, %v5252_v59 }
 0x362   :  { %v1765_v27 = vadd.f32 %v7160_v5, %v1764_v34  ;;  %v7598_v34 = vrot.slane %v2348_v63, %v6696_v35  ;;  %v7727_v63 = vld [vmem:[%s8977_s4 + $0xb8] sm:$0xff]  }
 0x363   :  { %2426 = vmatpush1.bf16.msra.mxu1 %v7093_v51 }
 0x364   :  { %v1766_v28 = vmax.f32 %v1765_v27, 0.0  ;;  %2427 = vmatprep.subr.bf16.mxu1 %v6465_v1  ;;  %v6331_v27 = vld [vmem:[%s8979_s6 + $0x38] sm:$0xff]  }
 0x366   :  { %v1767_v29 = vpack.c.bf16 %v1766_v28, %v1766_v28  ;;  %v2364_v28 = vcombine.high %v7598_v34, %v7598_v34 }
 0x367   :  { %2428 = vmatpush1.bf16.msra.mxu1 %v7106_v14 }
 0x368   :  { %6203 = vmatmul.mubr.msk.bf16.vlgmr.msra.gmra.mrb[56].mxu0 %vm1211_vm2, %v1767_v29  ;;  %2524 = vmatprep.subr.bf16.mxu1 %v6465_v1 }
 0x369   :  { %5619 = vmatpush3.bf16.msra.mxu0 %v7209_v43  ;;  %1889 = vmatprep.mubr.bf16.mxu0 %v7390_v17  ;;  %v2061_v17 = vcombine.high %v5243_v3, %v5243_v3  ;;  %v7616_v3 = vld [vmem:[%s8977_s4 + $0x80] sm:$0xff]  }
 0x36a   :  { %5620 = vmatprep.subr.bf16.mxu0 %v7216_v44  ;;  %5253 = vmatprep.mubr.msk.bf16.mxu1 %vm309_vm0, %v2364_v28 }
 0x36d   :  { %5621 = vmatpush3.bf16.msra.mxu0 %v7224_v45 }
 0x36e   :  { %5622 = vmatprep.subr.bf16.mxu0 %v7230_v8 }
 0x371   :  { %5623 = vmatpush3.bf16.msra.mxu0 %v7238_v48 }
 0x372   :  { %5624 = vmatprep.subr.bf16.mxu0 %v7244_v49 }
 0x375   :  { %5625 = vmatpush3.bf16.msra.mxu0 %v7252_v50 }
 0x376   :  { %5626 = vmatprep.subr.bf16.mxu0 %v7258_v52 }
 0x379   :  { %5627 = vmatpush3.bf16.msra.mxu0 %v7266_v53 }
 0x37a   :  { %5628 = vmatprep.subr.bf16.mxu0 %v7272_v54 }
 0x37d   :  { %5629 = vmatpush3.bf16.msra.mxu0 %v7280_v55 }
 0x37e   :  { %5630 = vmatprep.subr.bf16.mxu0 %v7286_v56 }
 0x381   :  { %5631 = vmatpush3.bf16.msra.mxu0 %v7294_v21 }
 0x382   :  { %5632 = vmatprep.subr.bf16.mxu0 %v7300_v57 }
 0x385   :  { %5633 = vmatpush3.bf16.msra.mxu0 %v7308_v58 }
 0x386   :  { %5640 = vmatprep.subr.bf16.mxu0 %v7197_v33 }
 0x388   :  { %1890 = vmatmul.mubr.bf16.vlgmr.msra.gmra.mrb[60].mxu0 %v7394_v23  ;;  %v2075_v23 = vrot.slane %v2061_v17, %v6696_v35  ;;  %v7623_v17 = vld [vmem:[%s8977_s4 + $0x88] sm:$0xff]  }
 0x389   :  { %5641 = vmatpush3.bf16.msra.mxu0 %v7209_v43  ;;  %2002 = vmatprep.mubr.bf16.mxu0 %v7428_v26  ;;  %v7556_v26 = vpop.f32.mrb[48].mxu1 }
 0x38a   :  { %5642 = vmatprep.subr.bf16.mxu0 %v7216_v44  ;;  %v2077_v36 = vcombine.high %v2075_v23, %v2075_v23 }
 0x38d   :  { %5643 = vmatpush3.bf16.msra.mxu0 %v7224_v45 }
 0x38e   :  { %5644 = vmatprep.subr.bf16.mxu0 %v7230_v8 }
 0x391   :  { %5645 = vmatpush3.bf16.msra.mxu0 %v7238_v48 }
 0x392   :  { %5646 = vmatprep.subr.bf16.mxu0 %v7244_v49 }
 0x395   :  { %5647 = vmatpush3.bf16.msra.mxu0 %v7252_v50 }
 0x396   :  { %5648 = vmatprep.subr.bf16.mxu0 %v7258_v52 }
 0x399   :  { %5649 = vmatpush3.bf16.msra.mxu0 %v7266_v53 }
 0x39a   :  { %5650 = vmatprep.subr.bf16.mxu0 %v7272_v54 }
 0x39d   :  { %5651 = vmatpush3.bf16.msra.mxu0 %v7280_v55 }
 0x39e   :  { %5652 = vmatprep.subr.bf16.mxu0 %v7286_v56 }
 0x3a1   :  { %5653 = vmatpush3.bf16.msra.mxu0 %v7294_v21 }
 0x3a2   :  { %5654 = vmatprep.subr.bf16.mxu0 %v7300_v57 }
 0x3a5   :  { %5655 = vmatpush3.bf16.msra.mxu0 %v7308_v58 }
 0x3a6   :  { %5662 = vmatprep.subr.bf16.mxu0 %v7197_v33 }
 0x3a8   :  { %2003 = vmatmul.mubr.bf16.vlgmr.msra.gmra.mrb[64].mxu0 %v7432_v12  ;;  %v1933_v12 = vpop.f32.mrb[49].mxu1 }
 0x3a9   :  { %5663 = vmatpush3.bf16.msra.mxu0 %v7209_v43  ;;  %2116 = vmatprep.mubr.bf16.mxu0 %v2075_v23  ;;  %v1934_v30 = vpop.f32.mrb[50].mxu1 }
 0x3aa   :  { %5664 = vmatprep.subr.bf16.mxu0 %v7216_v44  ;;  %v1935_v31 = vpop.f32.mrb[51].mxu1 }
 0x3ad   :  { %5665 = vmatpush3.bf16.msra.mxu0 %v7224_v45 }
 0x3ae   :  { %5666 = vmatprep.subr.bf16.mxu0 %v7230_v8 }
 0x3b1   :  { %5667 = vmatpush3.bf16.msra.mxu0 %v7238_v48 }
 0x3b2   :  { %5668 = vmatprep.subr.bf16.mxu0 %v7244_v49 }
 0x3b5   :  { %5669 = vmatpush3.bf16.msra.mxu0 %v7252_v50 }
 0x3b6   :  { %5670 = vmatprep.subr.bf16.mxu0 %v7258_v52 }
 0x3b9   :  { %5671 = vmatpush3.bf16.msra.mxu0 %v7266_v53 }
 0x3ba   :  { %5672 = vmatprep.subr.bf16.mxu0 %v7272_v54 }
 0x3bd   :  { %5673 = vmatpush3.bf16.msra.mxu0 %v7280_v55 }
 0x3be   :  { %5674 = vmatprep.subr.bf16.mxu0 %v7286_v56 }
 0x3c1   :  { %5675 = vmatpush3.bf16.msra.mxu0 %v7294_v21 }
 0x3c2   :  { %5676 = vmatprep.subr.bf16.mxu0 %v7300_v57 }
 0x3c5   :  { %5677 = vmatpush3.bf16.msra.mxu0 %v7308_v58 }
 0x3c6   :  { %2124 = vmatprep.subr.bf16.mxu0 %v6465_v1 }
 0x3c8   :  { %2117 = vmatmul.mubr.bf16.vlgmr.msra.gmra.mrb[68].mxu0 %v2068_v32 }
 0x3c9   :  { %2125 = vmatpush1.bf16.msra.mxu0 %v6989_v46  ;;  %5244 = vmatprep.mubr.msk.bf16.mxu0 %vm309_vm0, %v2077_v36  ;;  %v2076_v46 = vcombine.high %v2068_v32, %v2068_v32 }
 0x3ca   :  { %2126 = vmatprep.subr.bf16.mxu0 %v6465_v1 }
 0x3cd   :  { %2127 = vmatpush1.bf16.msra.mxu0 %v6996_v47 }
 0x3ce   :  { %2128 = vmatprep.subr.bf16.mxu0 %v6465_v1 }
 0x3d1   :  { %2129 = vmatpush1.bf16.msra.mxu0 %v7054_v39 }
 0x3d2   :  { %2130 = vmatprep.subr.bf16.mxu0 %v6465_v1 }
 0x3d5   :  { %2131 = vmatpush1.bf16.msra.mxu0 %v7061_v18  ;;  %v7584_v47 = vpop.f32.mrb[52].mxu1 }
 0x3d6   :  { %2132 = vmatprep.subr.bf16.mxu0 %v6465_v1  ;;  %v2046_v38 = vpop.f32.mrb[53].mxu1 }
 0x3d7   :  { %v2047_v2 = vpop.f32.mrb[54].mxu1 }
 0x3d8   :  { %v2048_v6 = vpop.f32.mrb[55].mxu1 }
 0x3d9   :  { %2133 = vmatpush1.bf16.msra.mxu0 %v7068_v22 }
 0x3da   :  { %2134 = vmatprep.subr.bf16.mxu0 %v6465_v1 }
 0x3dd   :  { %2135 = vmatpush1.bf16.msra.mxu0 %v7076_v41 }
 0x3de   :  { %2136 = vmatprep.subr.bf16.mxu0 %v6465_v1 }
 0x3e1   :  { %2137 = vmatpush1.bf16.msra.mxu0 %v7083_v42 }
 0x3e2   :  { %2138 = vmatprep.subr.bf16.mxu0 %v6465_v1 }
 0x3e5   :  { %2139 = vmatpush1.bf16.msra.mxu0 %v7093_v51 }
 0x3e6   :  { %2140 = vmatprep.subr.bf16.mxu0 %v6465_v1 }
 0x3e9   :  { %2141 = vmatpush1.bf16.msra.mxu0 %v7106_v14 }
 0x3ea   :  { %6206 = vmatprep.subr.bf16.mxu0 %v6467_v24 }
 0x3ec   :  { %2157 = vmatmul.mubr.bf16.vlgmr.msra.gmra.mrb[72].mxu0 %v2076_v46 }
 0x3ed   :  { %6210 = vmatprep.mubr.msk.bf16.mxu0 %vm6468_vm1, %v6467_v24  ;;  %6207 = vmatpush3.bf16.msra.mxu0 %v6330_v61  ;;  %v7720_v61 = vld [vmem:[%s8977_s4 + $0xb0] sm:$0xff]  }
 0x3ee   :  { %6208 = vmatprep.subr.bf16.mxu0 %v6467_v24 }
 0x3f1   :  { %6209 = vmatpush3.bf16.msra.mxu0 %v6331_v27  ;;  %v7734_v27 = vld [vmem:[%s8977_s4 + $0xc0] sm:$0xff]  }
 0x3f2   :  { %5709 = vmatprep.subr.bf16.mxu0 %v7197_v33 }
 0x3f5   :  { %v5700_v9 = vpop.f32.mrb[56].mxu1 }
 0x3f6   :  { %v5701_v11 = vpop.f32.mrb[57].mxu1 }
 0x3f7   :  { %v5702_v60 = vadd.f32 %v5701_v11, %v5700_v9  ;;  %v5703_v13 = vpop.f32.mrb[58].mxu1 }
 0x3f8   :  { %v5704_v15 = vpop.f32.mrb[59].mxu1 }
 0x419   :  { %v2272_v16 = vpop.f32.mrb[60].mxu1 }
 0x41a   :  { %v7586_v0 = vadd.f32 %v5702_v60, %v2272_v16  ;;  %v2274_v62 = vpop.f32.mrb[61].mxu1  ;;  %v7692_v16 = vld [vmem:[%s8977_s4 + $0x90] sm:$0xff]  }
 0x41b   :  { %v2275_v4 = vpop.f32.mrb[62].mxu1 }
 0x41c   :  { %v2276_v19 = vpop.f32.mrb[63].mxu1  ;;  %v7699_v4 = vld [vmem:[%s8977_s4 + $0x98] sm:$0xff]  }
 0x43b   :  { %v1817_v25 = vpop.f32.mrb[56].mxu0 }
 0x43c   :  { %v7589_v40 = vadd.f32 %v1817_v25, %v7379_v37  ;;  %v6204_v20 = vpop.f32.mrb[57].mxu0  ;;  %v7602_v37 = vrot.slane %v5252_v59, %v6696_v35  ;;  %v7713_v59 = vld [vmem:[%s8977_s4 + $0xa8] sm:$0xff]  }
 0x43d   :  { %v1820_v7 = vpop.f32.mrb[58].mxu0 }
 0x43e   :  { %v6205_v10 = vpop.f32.mrb[59].mxu0  ;;  %v2363_v29 = vcombine.high %v7602_v37, %v7602_v37 }
 0x43f   :  { %v7706_v10 = vld [vmem:[%s8977_s4 + $0xa0] sm:$0xff]  }
 0x440   :  { %2444 = vmatmul.mubr.bf16.vlgmr.msra.gmra.mrb[64].mxu1 %v2363_v29 }
 0x441   :  { %2525 = vmatpush1.bf16.msra.mxu1 %v7616_v3 }
 0x442   :  { %2526 = vmatprep.subr.bf16.mxu1 %v6465_v1 }
 0x445   :  { %2527 = vmatpush1.bf16.msra.mxu1 %v7623_v17 }
 0x446   :  { %2528 = vmatprep.subr.bf16.mxu1 %v6465_v1 }
 0x449   :  { %2529 = vmatpush1.bf16.msra.mxu1 %v7054_v39  ;;  %v5255_v39 = vld.sshfl [vmem:[%s8974_s1 + $0x10] sm:$0x33 pattern:$0x75316420] }
 0x44a   :  { %2530 = vmatprep.subr.bf16.mxu1 %v6465_v1 }
 0x44d   :  { %2531 = vmatpush1.bf16.msra.mxu1 %v7061_v18  ;;  %v2461_v18 = vcombine.high %v5255_v39, %v5255_v39 }
 0x44e   :  { %2532 = vmatprep.subr.bf16.mxu1 %v6465_v1 }
 0x451   :  { %2533 = vmatpush1.bf16.msra.mxu1 %v7068_v22  ;;  %v7646_v22 = vrot.slane %v2461_v18, %v6696_v35 }
 0x452   :  { %2534 = vmatprep.subr.bf16.mxu1 %v6465_v1 }
 0x455   :  { %2535 = vmatpush1.bf16.msra.mxu1 %v7076_v41  ;;  %v7650_v41 = vrot.slane %v5255_v39, %v6696_v35 }
 0x456   :  { %2536 = vmatprep.subr.bf16.mxu1 %v6465_v1 }
 0x459   :  { %2537 = vmatpush1.bf16.msra.mxu1 %v7083_v42  ;;  %v2477_v42 = vcombine.high %v7646_v22, %v7646_v22 }
 0x45a   :  { %2538 = vmatprep.subr.bf16.mxu1 %v6465_v1 }
 0x45b   :  { %v5634_v23 = vpop.f32.mrb[60].mxu0  ;;  %5256 = vmatprep.mubr.msk.bf16.mxu1 %vm309_vm0, %v2477_v42 }
 0x45c   :  { %v5635_v12 = vpop.f32.mrb[61].mxu0 }
 0x45d   :  { %v5636_v30 = vadd.f32 %v5635_v12, %v5634_v23  ;;  %v5637_v31 = vpop.f32.mrb[62].mxu0  ;;  %2539 = vmatpush1.bf16.msra.mxu1 %v7093_v51  ;;  %v2476_v51 = vcombine.high %v7650_v41, %v7650_v41 }
 0x45e   :  { %v5638_v32 = vpop.f32.mrb[63].mxu0  ;;  %2540 = vmatprep.subr.bf16.mxu1 %v6465_v1 }
 0x45f   :  { %v7635_v36 = vadd.f32 %v5636_v30, %v7556_v26 }
 0x461   :  { %2541 = vmatpush1.bf16.msra.mxu1 %v7106_v14 }
 0x462   :  { %5775 = vmatprep.subr.bf16.mxu1 %v7197_v33 }
 0x464   :  { %2557 = vmatmul.mubr.bf16.vlgmr.msra.gmra.mrb[68].mxu1 %v2476_v51 }
 0x465   :  { %5776 = vmatpush3.bf16.msra.mxu1 %v7209_v43 }
 0x466   :  { %5777 = vmatprep.subr.bf16.mxu1 %v7216_v44 }
 0x469   :  { %5778 = vmatpush3.bf16.msra.mxu1 %v7224_v45 }
 0x46a   :  { %5779 = vmatprep.subr.bf16.mxu1 %v7230_v8 }
 0x46d   :  { %5780 = vmatpush3.bf16.msra.mxu1 %v7238_v48 }
 0x46e   :  { %5781 = vmatprep.subr.bf16.mxu1 %v7244_v49 }
 0x471   :  { %5782 = vmatpush3.bf16.msra.mxu1 %v7252_v50 }
 0x472   :  { %5783 = vmatprep.subr.bf16.mxu1 %v7258_v52 }
 0x475   :  { %5784 = vmatpush3.bf16.msra.mxu1 %v7266_v53 }
 0x476   :  { %5785 = vmatprep.subr.bf16.mxu1 %v7272_v54 }
 0x479   :  { %5786 = vmatpush3.bf16.msra.mxu1 %v7280_v55 }
 0x47a   :  { %5787 = vmatprep.subr.bf16.mxu1 %v7286_v56 }
 0x47b   :  { %v5656_v14 = vpop.f32.mrb[64].mxu0 }
 0x47c   :  { %v5657_v26 = vpop.f32.mrb[65].mxu0 }
 0x47d   :  { %v5658_v46 = vadd.f32 %v5657_v26, %v5656_v14  ;;  %v5659_v38 = vpop.f32.mrb[66].mxu0  ;;  %5788 = vmatpush3.bf16.msra.mxu1 %v7294_v21  ;;  %v7894_v14 = vld [vmem:[%s8977_s4 + $0x38] sm:$0xff]  }
 0x47e   :  { %v5660_v2 = vpop.f32.mrb[67].mxu0  ;;  %5789 = vmatprep.subr.bf16.mxu1 %v7300_v57 }
 0x47f   :  { %v7667_v6 = vadd.f32 %v5658_v46, %v7584_v47  ;;  %v5261_v47 = vld.sshfl [vmem:[%s8976_s3 + $0x10] sm:$0x33 pattern:$0x75316420] }
 0x480   :  { %v2689_v11 = vcombine.high %v5261_v47, %v5261_v47  ;;  %v2696_v13 = vrot.slane %v5261_v47, %v6696_v35 }
 0x481   :  { %v2050_v9 = vmax.f32 %v7635_v36, %v7667_v6  ;;  %5790 = vmatpush3.bf16.msra.mxu1 %v7308_v58 }
 0x482   :  { %v2703_v60 = vrot.slane %v2689_v11, %v6696_v35  ;;  %2752 = vmatprep.subr.bf16.mxu1 %v6465_v1  ;;  %v2704_v28 = vcombine.high %v2696_v13, %v2696_v13 }
 0x484   :  { %v2705_v15 = vcombine.high %v2703_v60, %v2703_v60  ;;  %2744 = vmatprep.mubr.bf16.mxu1 %v2703_v60 }
 0x485   :  { %2745 = vmatmul.mubr.bf16.vlgmr.msra.gmra.mrb[72].mxu1 %v2696_v13 }
 0x486   :  { %2753 = vmatpush1.bf16.msra.mxu1 %v7616_v3  ;;  %5262 = vmatprep.mubr.msk.bf16.mxu1 %vm309_vm0, %v2705_v15 }
 0x487   :  { %2754 = vmatprep.subr.bf16.mxu1 %v6465_v1 }
 0x48a   :  { %2755 = vmatpush1.bf16.msra.mxu1 %v7623_v17 }
 0x48b   :  { %2756 = vmatprep.subr.bf16.mxu1 %v6465_v1 }
 0x48e   :  { %2757 = vmatpush1.bf16.msra.mxu1 %v7692_v16 }
 0x48f   :  { %2758 = vmatprep.subr.bf16.mxu1 %v6465_v1 }
 0x492   :  { %2759 = vmatpush1.bf16.msra.mxu1 %v7699_v4 }
 0x493   :  { %2760 = vmatprep.subr.bf16.mxu1 %v6465_v1 }
 0x496   :  { %2761 = vmatpush1.bf16.msra.mxu1 %v7706_v10 }
 0x497   :  { %2762 = vmatprep.subr.bf16.mxu1 %v6465_v1 }
 0x49a   :  { %2763 = vmatpush1.bf16.msra.mxu1 %v7713_v59 }
 0x49b   :  { %v5678_v62 = vpop.f32.mrb[68].mxu0  ;;  %2764 = vmatprep.subr.bf16.mxu1 %v6465_v1 }
 0x49c   :  { %v5679_v19 = vpop.f32.mrb[69].mxu0 }
 0x49d   :  { %v5680_v25 = vadd.f32 %v5679_v19, %v5678_v62  ;;  %v5681_v20 = vpop.f32.mrb[70].mxu0 }
 0x49e   :  { %v5682_v7 = vpop.f32.mrb[71].mxu0  ;;  %2765 = vmatpush1.bf16.msra.mxu1 %v7720_v61 }
 0x49f   :  { %2766 = vmatprep.subr.bf16.mxu1 %v6465_v1 }
 0x4a2   :  { %2767 = vmatpush1.bf16.msra.mxu1 %v7727_v63 }
 0x4a3   :  { %2768 = vmatprep.subr.bf16.mxu1 %v6465_v1 }
 0x4a6   :  { %2769 = vmatpush1.bf16.msra.mxu1 %v7734_v27 }
 0x4a7   :  { %2925 = vmatprep.subr.bf16.mxu1 %v6465_v1 }
 0x4a9   :  { %2785 = vmatmul.mubr.bf16.vlgmr.msra.gmra.mrb[76].mxu1 %v2704_v28 }
 0x4aa   :  { %2926 = vmatpush1.bf16.msra.mxu1 %v7616_v3 }
 0x4ab   :  { %2927 = vmatprep.subr.bf16.mxu1 %v6465_v1 }
 0x4ae   :  { %2928 = vmatpush1.bf16.msra.mxu1 %v7623_v17 }
 0x4af   :  { %2929 = vmatprep.subr.bf16.mxu1 %v6465_v1 }
 0x4b2   :  { %2930 = vmatpush1.bf16.msra.mxu1 %v7692_v16 }
 0x4b3   :  { %2931 = vmatprep.subr.bf16.mxu1 %v6465_v1 }
 0x4b6   :  { %2932 = vmatpush1.bf16.msra.mxu1 %v7699_v4 }
 0x4b7   :  { %2933 = vmatprep.subr.bf16.mxu1 %v6465_v1 }
 0x4ba   :  { %2934 = vmatpush1.bf16.msra.mxu1 %v7706_v10 }
 0x4bb   :  { %2935 = vmatprep.subr.bf16.mxu1 %v6465_v1 }
 0x4be   :  { %2936 = vmatpush1.bf16.msra.mxu1 %v7713_v59 }
 0x4bf   :  { %v2158_v29 = vpop.f32.mrb[72].mxu0  ;;  %2937 = vmatprep.subr.bf16.mxu1 %v6465_v1 }
 0x4c0   :  { %v2159_v23 = vadd.f32 %v5680_v25, %v2158_v29  ;;  %v2160_v12 = vpop.f32.mrb[73].mxu0 }
 0x4c1   :  { %v2161_v30 = vpop.f32.mrb[74].mxu0 }
 0x4c2   :  { %v2164_v31 = vmax.f32 %v2050_v9, %v2159_v23  ;;  %v2162_v32 = vpop.f32.mrb[75].mxu0  ;;  %2938 = vmatpush1.bf16.msra.mxu1 %v7720_v61 }
 0x4c3   :  { %2939 = vmatprep.subr.bf16.mxu1 %v6465_v1  ;;  %v6332_v32 = vld [vmem:[%s8979_s6 + $0x40] sm:$0xff]  }
 0x4c4   :  { %v2278_v36 = vmax.f32 %v2164_v31, %v7586_v0  ;;  %v5267_v31 = vld.sshfl [vmem:[%s8973_s0 + $0x14] sm:$0x33 pattern:$0x75316420] }
 0x4c6   :  { %v2279_v39 = vadd.f32 %v7160_v5, %v2278_v36  ;;  %2940 = vmatpush1.bf16.msra.mxu1 %v7727_v63  ;;  %v5258_v5 = vld.sshfl [vmem:[%s8975_s2 + $0x10] sm:$0x33 pattern:$0x75316420]  ;;  %v2862_v36 = vcombine.high %v5267_v31, %v5267_v31 }
 0x4c7   :  { %2941 = vmatprep.subr.bf16.mxu1 %v6465_v1  ;;  %v2582_v51 = vrot.slane %v5258_v5, %v6696_v35 }
 0x4c8   :  { %v2280_v18 = vmax.f32 %v2279_v39, 0.0  ;;  %v7933_v39 = vrot.slane %v2862_v36, %v6696_v35 }
 0x4c9   :  { %v2590_v46 = vcombine.high %v2582_v51, %v2582_v51 }
 0x4ca   :  { %v2281_v42 = vpack.c.bf16 %v2280_v18, %v2280_v18  ;;  %2942 = vmatpush1.bf16.msra.mxu1 %v7734_v27  ;;  %v6333_v18 = vld [vmem:[%s8979_s6 + $0x48] sm:$0xff]  }
 0x4cb   :  { %3038 = vmatprep.subr.bf16.mxu1 %v6465_v1 }
 0x4cc   :  { %6211 = vmatmul.mubr.msk.bf16.vlgmr.msra.gmra.mrb[76].mxu0 %vm1211_vm2, %v2281_v42  ;;  %v2878_v42 = vcombine.high %v7933_v39, %v7933_v39 }
 0x4cd   :  { %5710 = vmatpush3.bf16.msra.mxu0 %v7209_v43  ;;  %2403 = vmatprep.mubr.bf16.mxu0 %v7598_v34 }
 0x4ce   :  { %5711 = vmatprep.subr.bf16.mxu0 %v7216_v44  ;;  %5268 = vmatprep.mubr.msk.bf16.mxu1 %vm309_vm0, %v2878_v42 }
 0x4d1   :  { %5712 = vmatpush3.bf16.msra.mxu0 %v7224_v45 }
 0x4d2   :  { %5713 = vmatprep.subr.bf16.mxu0 %v7230_v8 }
 0x4d5   :  { %5714 = vmatpush3.bf16.msra.mxu0 %v7238_v48 }
 0x4d6   :  { %5715 = vmatprep.subr.bf16.mxu0 %v7244_v49 }
 0x4d9   :  { %5716 = vmatpush3.bf16.msra.mxu0 %v7252_v50 }
 0x4da   :  { %5717 = vmatprep.subr.bf16.mxu0 %v7258_v52 }
 0x4dd   :  { %5718 = vmatpush3.bf16.msra.mxu0 %v7266_v53 }
 0x4de   :  { %5719 = vmatprep.subr.bf16.mxu0 %v7272_v54 }
 0x4e1   :  { %5720 = vmatpush3.bf16.msra.mxu0 %v7280_v55 }
 0x4e2   :  { %5721 = vmatprep.subr.bf16.mxu0 %v7286_v56 }
 0x4e5   :  { %5722 = vmatpush3.bf16.msra.mxu0 %v7294_v21 }
 0x4e6   :  { %5723 = vmatprep.subr.bf16.mxu0 %v7300_v57 }
 0x4e9   :  { %5724 = vmatpush3.bf16.msra.mxu0 %v7308_v58 }
 0x4ea   :  { %5731 = vmatprep.subr.bf16.mxu0 %v7197_v33  ;;  %v2575_v33 = vcombine.high %v5258_v5, %v5258_v5 }
 0x4ec   :  { %2404 = vmatmul.mubr.bf16.vlgmr.msra.gmra.mrb[80].mxu0 %v7602_v37  ;;  %v7881_v37 = vld [vmem:[%s8977_s4 + $0x30] sm:$0xff]  }
 0x4ed   :  { %5732 = vmatpush3.bf16.msra.mxu0 %v7209_v43  ;;  %2516 = vmatprep.mubr.bf16.mxu0 %v7646_v22  ;;  %v2589_v43 = vrot.slane %v2575_v33, %v6696_v35 }
 0x4ee   :  { %5733 = vmatprep.subr.bf16.mxu0 %v7216_v44  ;;  %v7800_v44 = vld [vmem:[%s8977_s4 + $0x40] sm:$0xff]  }
 0x4ef   :  { %v2591_v26 = vcombine.high %v2589_v43, %v2589_v43 }
 0x4f1   :  { %5734 = vmatpush3.bf16.msra.mxu0 %v7224_v45  ;;  %v7807_v45 = vld [vmem:[%s8977_s4] sm:$0xff]  }
 0x4f2   :  { %5735 = vmatprep.subr.bf16.mxu0 %v7230_v8  ;;  %v7813_v8 = vld [vmem:[%s8977_s4 + $0x48] sm:$0xff]  }
 0x4f5   :  { %5736 = vmatpush3.bf16.msra.mxu0 %v7238_v48  ;;  %v7819_v48 = vld [vmem:[%s8977_s4 + $0x8] sm:$0xff]  }
 0x4f6   :  { %5737 = vmatprep.subr.bf16.mxu0 %v7244_v49  ;;  %v7825_v49 = vld [vmem:[%s8977_s4 + $0x50] sm:$0xff]  }
 0x4f9   :  { %5738 = vmatpush3.bf16.msra.mxu0 %v7252_v50  ;;  %v7831_v50 = vld [vmem:[%s8977_s4 + $0x10] sm:$0xff]  }
 0x4fa   :  { %5739 = vmatprep.subr.bf16.mxu0 %v7258_v52  ;;  %v7837_v52 = vld [vmem:[%s8977_s4 + $0x58] sm:$0xff]  }
 0x4fd   :  { %5740 = vmatpush3.bf16.msra.mxu0 %v7266_v53  ;;  %v7843_v53 = vld [vmem:[%s8977_s4 + $0x18] sm:$0xff]  }
 0x4fe   :  { %5741 = vmatprep.subr.bf16.mxu0 %v7272_v54  ;;  %v7849_v54 = vld [vmem:[%s8977_s4 + $0x60] sm:$0xff]  }
 0x501   :  { %5742 = vmatpush3.bf16.msra.mxu0 %v7280_v55  ;;  %v7855_v55 = vld [vmem:[%s8977_s4 + $0x20] sm:$0xff]  }
 0x502   :  { %5743 = vmatprep.subr.bf16.mxu0 %v7286_v56  ;;  %v7861_v56 = vld [vmem:[%s8977_s4 + $0x68] sm:$0xff]  }
 0x505   :  { %5744 = vmatpush3.bf16.msra.mxu0 %v7294_v21  ;;  %v7867_v21 = vld [vmem:[%s8977_s4 + $0x28] sm:$0xff]  }
 0x506   :  { %5745 = vmatprep.subr.bf16.mxu0 %v7300_v57  ;;  %v7873_v57 = vld [vmem:[%s8977_s4 + $0x70] sm:$0xff]  }
 0x509   :  { %5746 = vmatpush3.bf16.msra.mxu0 %v7308_v58 }
 0x50a   :  { %5753 = vmatprep.subr.bf16.mxu0 %v7800_v44 }
 0x50c   :  { %2517 = vmatmul.mubr.bf16.vlgmr.msra.gmra.mrb[84].mxu0 %v7650_v41  ;;  %v7887_v41 = vld [vmem:[%s8977_s4 + $0x78] sm:$0xff]  }
 0x50d   :  { %5754 = vmatpush3.bf16.msra.mxu0 %v7807_v45  ;;  %2630 = vmatprep.mubr.bf16.mxu0 %v2589_v43 }
 0x50e   :  { %5755 = vmatprep.subr.bf16.mxu0 %v7813_v8 }
 0x511   :  { %5756 = vmatpush3.bf16.msra.mxu0 %v7819_v48 }
 0x512   :  { %5757 = vmatprep.subr.bf16.mxu0 %v7825_v49 }
 0x513   :  { %v7876_v58 = vpop.f32.mrb[64].mxu1 }
 0x514   :  { %v2447_v0 = vpop.f32.mrb[65].mxu1 }
 0x515   :  { %5758 = vmatpush3.bf16.msra.mxu0 %v7831_v50  ;;  %v2448_v34 = vpop.f32.mrb[66].mxu1 }
 0x516   :  { %5759 = vmatprep.subr.bf16.mxu0 %v7837_v52  ;;  %v2449_v22 = vpop.f32.mrb[67].mxu1 }
 0x519   :  { %5760 = vmatpush3.bf16.msra.mxu0 %v7843_v53 }
 0x51a   :  { %5761 = vmatprep.subr.bf16.mxu0 %v7849_v54 }
 0x51d   :  { %5762 = vmatpush3.bf16.msra.mxu0 %v7855_v55 }
 0x51e   :  { %5763 = vmatprep.subr.bf16.mxu0 %v7861_v56 }
 0x521   :  { %5764 = vmatpush3.bf16.msra.mxu0 %v7867_v21 }
 0x522   :  { %5765 = vmatprep.subr.bf16.mxu0 %v7873_v57 }
 0x525   :  { %5766 = vmatpush3.bf16.msra.mxu0 %v7881_v37 }
 0x526   :  { %5767 = vmatprep.subr.bf16.mxu0 %v7887_v41 }
 0x529   :  { %5768 = vmatpush3.bf16.msra.mxu0 %v7894_v14 }
 0x52a   :  { %2638 = vmatprep.subr.bf16.mxu0 %v6465_v1 }
 0x52c   :  { %2631 = vmatmul.mubr.bf16.vlgmr.msra.gmra.mrb[88].mxu0 %v2582_v51 }
 0x52d   :  { %2639 = vmatpush1.bf16.msra.mxu0 %v7616_v3  ;;  %5259 = vmatprep.mubr.msk.bf16.mxu0 %vm309_vm0, %v2591_v26  ;;  %v5270_v26 = vld.sshfl [vmem:[%s8974_s1 + $0x14] sm:$0x33 pattern:$0x75316420] }
 0x52e   :  { %2640 = vmatprep.subr.bf16.mxu0 %v6465_v1 }
 0x531   :  { %2641 = vmatpush1.bf16.msra.mxu0 %v7623_v17 }
 0x532   :  { %2642 = vmatprep.subr.bf16.mxu0 %v6465_v1 }
 0x535   :  { %2643 = vmatpush1.bf16.msra.mxu0 %v7692_v16 }
 0x536   :  { %2644 = vmatprep.subr.bf16.mxu0 %v6465_v1 }
 0x537   :  { %v7919_v38 = vpop.f32.mrb[68].mxu1 }
 0x538   :  { %v2560_v2 = vpop.f32.mrb[69].mxu1 }
 0x539   :  { %2645 = vmatpush1.bf16.msra.mxu0 %v7699_v4  ;;  %v2561_v6 = vpop.f32.mrb[70].mxu1 }
 0x53a   :  { %2646 = vmatprep.subr.bf16.mxu0 %v6465_v1  ;;  %v2562_v9 = vpop.f32.mrb[71].mxu1 }
 0x53d   :  { %2647 = vmatpush1.bf16.msra.mxu0 %v7706_v10 }
 0x53e   :  { %2648 = vmatprep.subr.bf16.mxu0 %v6465_v1 }
 0x541   :  { %2649 = vmatpush1.bf16.msra.mxu0 %v7713_v59 }
 0x542   :  { %2650 = vmatprep.subr.bf16.mxu0 %v6465_v1 }
 0x545   :  { %2651 = vmatpush1.bf16.msra.mxu0 %v7720_v61 }
 0x546   :  { %2652 = vmatprep.subr.bf16.mxu0 %v6465_v1 }
 0x549   :  { %2653 = vmatpush1.bf16.msra.mxu0 %v7727_v63 }
 0x54a   :  { %2654 = vmatprep.subr.bf16.mxu0 %v6465_v1 }
 0x54d   :  { %2655 = vmatpush1.bf16.msra.mxu0 %v7734_v27 }
 0x54e   :  { %6214 = vmatprep.subr.bf16.mxu0 %v6467_v24 }
 0x550   :  { %2671 = vmatmul.mubr.bf16.vlgmr.msra.gmra.mrb[92].mxu0 %v2590_v46  ;;  %v2975_v46 = vcombine.high %v5270_v26, %v5270_v26 }
 0x551   :  { %6218 = vmatprep.mubr.msk.bf16.mxu0 %vm6468_vm1, %v6467_v24  ;;  %6215 = vmatpush3.bf16.msra.mxu0 %v6332_v32 }
 0x552   :  { %6216 = vmatprep.subr.bf16.mxu0 %v6467_v24  ;;  %v7971_v2 = vrot.slane %v2975_v46, %v6696_v35 }
 0x554   :  { %v2991_v6 = vcombine.high %v7971_v2, %v7971_v2 }
 0x555   :  { %6217 = vmatpush3.bf16.msra.mxu0 %v6333_v18 }
 0x556   :  { %5800 = vmatprep.subr.bf16.mxu0 %v7800_v44 }
 0x558   :  { %v5791_v47 = vpop.f32.mrb[72].mxu1 }
 0x559   :  { %v5792_v11 = vpop.f32.mrb[73].mxu1 }
 0x55a   :  { %v5793_v60 = vadd.f32 %v5792_v11, %v5791_v47  ;;  %v5794_v13 = vpop.f32.mrb[74].mxu1 }
 0x55b   :  { %v5795_v15 = vpop.f32.mrb[75].mxu1 }
 0x57c   :  { %v2786_v62 = vpop.f32.mrb[76].mxu1 }
 0x57d   :  { %v7921_v19 = vadd.f32 %v5793_v60, %v2786_v62  ;;  %v2788_v25 = vpop.f32.mrb[77].mxu1 }
 0x57e   :  { %v2789_v20 = vpop.f32.mrb[78].mxu1 }
 0x57f   :  { %v2790_v7 = vpop.f32.mrb[79].mxu1  ;;  %v5276_v20 = vld.sshfl [vmem:[%s8976_s3 + $0x14] sm:$0x33 pattern:$0x75316420] }
 0x580   :  { %v3203_v7 = vcombine.high %v5276_v20, %v5276_v20 }
 0x59f   :  { %v2331_v28 = vpop.f32.mrb[76].mxu0 }
 0x5a0   :  { %v7924_v29 = vadd.f32 %v2331_v28, %v7589_v40  ;;  %v6212_v23 = vpop.f32.mrb[77].mxu0  ;;  %v7937_v40 = vrot.slane %v5267_v31, %v6696_v35  ;;  %v3210_v28 = vrot.slane %v5276_v20, %v6696_v35 }
 0x5a1   :  { %v2334_v12 = vpop.f32.mrb[78].mxu0 }
 0x5a2   :  { %v6213_v30 = vpop.f32.mrb[79].mxu0  ;;  %v2877_v5 = vcombine.high %v7937_v40, %v7937_v40  ;;  %v3218_v18 = vcombine.high %v3210_v28, %v3210_v28 }
 0x5a4   :  { %2958 = vmatmul.mubr.bf16.vlgmr.msra.gmra.mrb[80].mxu1 %v2877_v5 }
 0x5a5   :  { %3039 = vmatpush1.bf16.msra.mxu1 %v7616_v3  ;;  %5271 = vmatprep.mubr.msk.bf16.mxu1 %vm309_vm0, %v2991_v6 }
 0x5a6   :  { %3040 = vmatprep.subr.bf16.mxu1 %v6465_v1 }
 0x5a9   :  { %3041 = vmatpush1.bf16.msra.mxu1 %v7623_v17 }
 0x5aa   :  { %3042 = vmatprep.subr.bf16.mxu1 %v6465_v1 }
 0x5ad   :  { %3043 = vmatpush1.bf16.msra.mxu1 %v7692_v16 }
 0x5ae   :  { %3044 = vmatprep.subr.bf16.mxu1 %v6465_v1 }
 0x5b1   :  { %3045 = vmatpush1.bf16.msra.mxu1 %v7699_v4 }
 0x5b2   :  { %3046 = vmatprep.subr.bf16.mxu1 %v6465_v1 }
 0x5b5   :  { %3047 = vmatpush1.bf16.msra.mxu1 %v7706_v10 }
 0x5b6   :  { %3048 = vmatprep.subr.bf16.mxu1 %v6465_v1 }
 0x5b9   :  { %3049 = vmatpush1.bf16.msra.mxu1 %v7713_v59 }
 0x5ba   :  { %3050 = vmatprep.subr.bf16.mxu1 %v6465_v1 }
 0x5bd   :  { %3051 = vmatpush1.bf16.msra.mxu1 %v7720_v61 }
 0x5be   :  { %3052 = vmatprep.subr.bf16.mxu1 %v6465_v1 }
 0x5bf   :  { %v5725_v33 = vpop.f32.mrb[80].mxu0 }
 0x5c0   :  { %v5726_v43 = vpop.f32.mrb[81].mxu0 }
 0x5c1   :  { %v5727_v0 = vadd.f32 %v5726_v43, %v5725_v33  ;;  %v5728_v34 = vpop.f32.mrb[82].mxu0  ;;  %3053 = vmatpush1.bf16.msra.mxu1 %v7727_v63 }
 0x5c2   :  { %v5729_v22 = vpop.f32.mrb[83].mxu0  ;;  %3054 = vmatprep.subr.bf16.mxu1 %v6465_v1 }
 0x5c3   :  { %v7960_v51 = vadd.f32 %v5727_v0, %v7876_v58  ;;  %v7975_v58 = vrot.slane %v5270_v26, %v6696_v35 }
 0x5c5   :  { %3055 = vmatpush1.bf16.msra.mxu1 %v7734_v27  ;;  %v2990_v9 = vcombine.high %v7975_v58, %v7975_v58 }
 0x5c6   :  { %5866 = vmatprep.subr.bf16.mxu1 %v7800_v44 }
 0x5c8   :  { %3071 = vmatmul.mubr.bf16.vlgmr.msra.gmra.mrb[84].mxu1 %v2990_v9 }
 0x5c9   :  { %5867 = vmatpush3.bf16.msra.mxu1 %v7807_v45 }
 0x5ca   :  { %5868 = vmatprep.subr.bf16.mxu1 %v7813_v8 }
 0x5cd   :  { %5869 = vmatpush3.bf16.msra.mxu1 %v7819_v48 }
 0x5ce   :  { %5870 = vmatprep.subr.bf16.mxu1 %v7825_v49 }
 0x5d1   :  { %5871 = vmatpush3.bf16.msra.mxu1 %v7831_v50 }
 0x5d2   :  { %5872 = vmatprep.subr.bf16.mxu1 %v7837_v52 }
 0x5d5   :  { %5873 = vmatpush3.bf16.msra.mxu1 %v7843_v53 }
 0x5d6   :  { %5874 = vmatprep.subr.bf16.mxu1 %v7849_v54 }
 0x5d9   :  { %5875 = vmatpush3.bf16.msra.mxu1 %v7855_v55 }
 0x5da   :  { %5876 = vmatprep.subr.bf16.mxu1 %v7861_v56 }
 0x5dd   :  { %5877 = vmatpush3.bf16.msra.mxu1 %v7867_v21 }
 0x5de   :  { %5878 = vmatprep.subr.bf16.mxu1 %v7873_v57 }
 0x5df   :  { %v5747_v47 = vpop.f32.mrb[84].mxu0 }
 0x5e0   :  { %v5748_v11 = vpop.f32.mrb[85].mxu0 }
 0x5e1   :  { %v5749_v60 = vadd.f32 %v5748_v11, %v5747_v47  ;;  %v5750_v13 = vpop.f32.mrb[86].mxu0  ;;  %5879 = vmatpush3.bf16.msra.mxu1 %v7881_v37 }
 0x5e2   :  { %v5751_v15 = vpop.f32.mrb[87].mxu0  ;;  %5880 = vmatprep.subr.bf16.mxu1 %v7887_v41 }
 0x5e3   :  { %v2559_v62 = vadd.f32 %v5749_v60, %v7919_v38  ;;  %v3217_v38 = vrot.slane %v3203_v7, %v6696_v35 }
 0x5e5   :  { %v2564_v25 = vmax.f32 %v7960_v51, %v2559_v62  ;;  %5881 = vmatpush3.bf16.msra.mxu1 %v7894_v14  ;;  %v3219_v23 = vcombine.high %v3217_v38, %v3217_v38  ;;  %3258 = vmatprep.mubr.bf16.mxu1 %v3217_v38  ;;  %v8039_v51 = vld [vmem:[%s8978_s5] ss:$0 sm:$0xff] }
 0x5e6   :  { %3266 = vmatprep.subr.bf16.mxu1 %v6465_v1 }
 0x5e8   :  { %3259 = vmatmul.mubr.bf16.vlgmr.msra.gmra.mrb[88].mxu1 %v3210_v28 }
 0x5e9   :  { %3267 = vmatpush1.bf16.msra.mxu1 %v7616_v3  ;;  %5277 = vmatprep.mubr.msk.bf16.mxu1 %vm309_vm0, %v3219_v23 }
 0x5ea   :  { %3268 = vmatprep.subr.bf16.mxu1 %v6465_v1 }
 0x5ed   :  { %3269 = vmatpush1.bf16.msra.mxu1 %v7623_v17 }
 0x5ee   :  { %3270 = vmatprep.subr.bf16.mxu1 %v6465_v1 }
 0x5f1   :  { %3271 = vmatpush1.bf16.msra.mxu1 %v7692_v16 }
 0x5f2   :  { %3272 = vmatprep.subr.bf16.mxu1 %v6465_v1 }
 0x5f5   :  { %3273 = vmatpush1.bf16.msra.mxu1 %v7699_v4 }
 0x5f6   :  { %3274 = vmatprep.subr.bf16.mxu1 %v6465_v1 }
 0x5f9   :  { %3275 = vmatpush1.bf16.msra.mxu1 %v7706_v10 }
 0x5fa   :  { %3276 = vmatprep.subr.bf16.mxu1 %v6465_v1 }
 0x5fd   :  { %3277 = vmatpush1.bf16.msra.mxu1 %v7713_v59 }
 0x5fe   :  { %3278 = vmatprep.subr.bf16.mxu1 %v6465_v1 }
 0x5ff   :  { %v5769_v12 = vpop.f32.mrb[88].mxu0 }
 0x600   :  { %v5770_v30 = vpop.f32.mrb[89].mxu0 }
 0x601   :  { %v5771_v31 = vadd.f32 %v5770_v30, %v5769_v12  ;;  %v5772_v32 = vpop.f32.mrb[90].mxu0  ;;  %3279 = vmatpush1.bf16.msra.mxu1 %v7720_v61 }
 0x602   :  { %v5773_v36 = vpop.f32.mrb[91].mxu0  ;;  %3280 = vmatprep.subr.bf16.mxu1 %v6465_v1 }
 0x605   :  { %3281 = vmatpush1.bf16.msra.mxu1 %v7727_v63 }
 0x606   :  { %3282 = vmatprep.subr.bf16.mxu1 %v6465_v1 }
 0x609   :  { %3283 = vmatpush1.bf16.msra.mxu1 %v7734_v27 }
 0x60a   :  { %3439 = vmatprep.subr.bf16.mxu1 %v6465_v1 }
 0x60c   :  { %3299 = vmatmul.mubr.bf16.vlgmr.msra.gmra.mrb[92].mxu1 %v3218_v18 }
 0x60d   :  { %3440 = vmatpush1.bf16.msra.mxu1 %v7616_v3 }
 0x60e   :  { %3441 = vmatprep.subr.bf16.mxu1 %v6465_v1 }
 0x611   :  { %3442 = vmatpush1.bf16.msra.mxu1 %v7623_v17 }
 0x612   :  { %3443 = vmatprep.subr.bf16.mxu1 %v6465_v1 }
 0x615   :  { %3444 = vmatpush1.bf16.msra.mxu1 %v7692_v16 }
 0x616   :  { %3445 = vmatprep.subr.bf16.mxu1 %v6465_v1 }
 0x619   :  { %3446 = vmatpush1.bf16.msra.mxu1 %v7699_v4 }
 0x61a   :  { %3447 = vmatprep.subr.bf16.mxu1 %v6465_v1 }
 0x61d   :  { %3448 = vmatpush1.bf16.msra.mxu1 %v7706_v10 }
 0x61e   :  { %3449 = vmatprep.subr.bf16.mxu1 %v6465_v1 }
 0x621   :  { %3450 = vmatpush1.bf16.msra.mxu1 %v7713_v59 }
 0x622   :  { %3451 = vmatprep.subr.bf16.mxu1 %v6465_v1 }
 0x623   :  { %v2672_v42 = vpop.f32.mrb[92].mxu0 }
 0x624   :  { %v2673_v5 = vadd.f32 %v5771_v31, %v2672_v42  ;;  %v2674_v33 = vpop.f32.mrb[93].mxu0 }
 0x625   :  { %v2675_v43 = vpop.f32.mrb[94].mxu0  ;;  %3452 = vmatpush1.bf16.msra.mxu1 %v7720_v61 }
 0x626   :  { %v2678_v0 = vmax.f32 %v2564_v25, %v2673_v5  ;;  %v2676_v34 = vpop.f32.mrb[95].mxu0  ;;  %3453 = vmatprep.subr.bf16.mxu1 %v6465_v1 }
 0x627   :  { %v5282_v34 = vld.sshfl [vmem:[%s8973_s0 + $0x18] sm:$0x33 pattern:$0x75316420] }
 0x628   :  { %v2792_v22 = vmax.f32 %v2678_v0, %v7921_v19  ;;  %v5273_v19 = vld.sshfl [vmem:[%s8975_s2 + $0x14] sm:$0x33 pattern:$0x75316420] }
 0x629   :  { %3454 = vmatpush1.bf16.msra.mxu1 %v7727_v63  ;;  %v3096_v11 = vrot.slane %v5273_v19, %v6696_v35 }
 0x62a   :  { %v2793_v26 = vadd.f32 %v8039_v51, %v2792_v22  ;;  %3455 = vmatprep.subr.bf16.mxu1 %v6465_v1  ;;  %v6334_v22 = vld [vmem:[%s8979_s6 + $0x50] sm:$0xff]  }
 0x62b   :  { %v3104_v13 = vcombine.high %v3096_v11, %v3096_v11 }
 0x62c   :  { %v2794_v46 = vmax.f32 %v2793_v26, 0.0  ;;  %v3376_v26 = vcombine.high %v5282_v34, %v5282_v34 }
 0x62d   :  { %3456 = vmatpush1.bf16.msra.mxu1 %v7734_v27 }
 0x62e   :  { %v2795_v6 = vpack.c.bf16 %v2794_v46, %v2794_v46  ;;  %3552 = vmatprep.subr.bf16.mxu1 %v6465_v1  ;;  %v8145_v46 = vrot.slane %v3376_v26, %v6696_v35 }
 0x630   :  { %6219 = vmatmul.mubr.msk.bf16.vlgmr.msra.gmra.mrb[96].mxu0 %vm1211_vm2, %v2795_v6  ;;  %v6335_v6 = vld [vmem:[%s8979_s6 + $0x58] sm:$0xff]  }
 0x631   :  { %5801 = vmatpush3.bf16.msra.mxu0 %v7807_v45  ;;  %2917 = vmatprep.mubr.bf16.mxu0 %v7933_v39  ;;  %v3089_v39 = vcombine.high %v5273_v19, %v5273_v19  ;;  %v3392_v19 = vcombine.high %v8145_v46, %v8145_v46 }
 0x632   :  { %5802 = vmatprep.subr.bf16.mxu0 %v7813_v8 }
 0x633   :  { %5283 = vmatprep.mubr.msk.bf16.mxu1 %vm309_vm0, %v3392_v19 }
 0x635   :  { %5803 = vmatpush3.bf16.msra.mxu0 %v7819_v48 }
 0x636   :  { %5804 = vmatprep.subr.bf16.mxu0 %v7825_v49 }
 0x639   :  { %5805 = vmatpush3.bf16.msra.mxu0 %v7831_v50 }
 0x63a   :  { %5806 = vmatprep.subr.bf16.mxu0 %v7837_v52 }
 0x63d   :  { %5807 = vmatpush3.bf16.msra.mxu0 %v7843_v53 }
 0x63e   :  { %5808 = vmatprep.subr.bf16.mxu0 %v7849_v54 }
 0x641   :  { %5809 = vmatpush3.bf16.msra.mxu0 %v7855_v55 }
 0x642   :  { %5810 = vmatprep.subr.bf16.mxu0 %v7861_v56 }
 0x645   :  { %5811 = vmatpush3.bf16.msra.mxu0 %v7867_v21 }
 0x646   :  { %5812 = vmatprep.subr.bf16.mxu0 %v7873_v57 }
 0x649   :  { %5813 = vmatpush3.bf16.msra.mxu0 %v7881_v37 }
 0x64a   :  { %5814 = vmatprep.subr.bf16.mxu0 %v7887_v41 }
 0x64d   :  { %5815 = vmatpush3.bf16.msra.mxu0 %v7894_v14 }
 0x64e   :  { %5822 = vmatprep.subr.bf16.mxu0 %v7800_v44 }
 0x650   :  { %2918 = vmatmul.mubr.bf16.vlgmr.msra.gmra.mrb[100].mxu0 %v7937_v40  ;;  %v3103_v40 = vrot.slane %v3089_v39, %v6696_v35 }
 0x651   :  { %5823 = vmatpush3.bf16.msra.mxu0 %v7807_v45  ;;  %3030 = vmatprep.mubr.bf16.mxu0 %v7971_v2 }
 0x652   :  { %5824 = vmatprep.subr.bf16.mxu0 %v7813_v8  ;;  %v3105_v60 = vcombine.high %v3103_v40, %v3103_v40 }
 0x655   :  { %5825 = vmatpush3.bf16.msra.mxu0 %v7819_v48 }
 0x656   :  { %5826 = vmatprep.subr.bf16.mxu0 %v7825_v49 }
 0x659   :  { %5827 = vmatpush3.bf16.msra.mxu0 %v7831_v50 }
 0x65a   :  { %5828 = vmatprep.subr.bf16.mxu0 %v7837_v52 }
 0x65d   :  { %5829 = vmatpush3.bf16.msra.mxu0 %v7843_v53 }
 0x65e   :  { %5830 = vmatprep.subr.bf16.mxu0 %v7849_v54 }
 0x661   :  { %5831 = vmatpush3.bf16.msra.mxu0 %v7855_v55 }
 0x662   :  { %5832 = vmatprep.subr.bf16.mxu0 %v7861_v56 }
 0x665   :  { %5833 = vmatpush3.bf16.msra.mxu0 %v7867_v21 }
 0x666   :  { %5834 = vmatprep.subr.bf16.mxu0 %v7873_v57 }
 0x669   :  { %5835 = vmatpush3.bf16.msra.mxu0 %v7881_v37 }
 0x66a   :  { %5836 = vmatprep.subr.bf16.mxu0 %v7887_v41 }
 0x66d   :  { %5837 = vmatpush3.bf16.msra.mxu0 %v7894_v14 }
 0x66e   :  { %5844 = vmatprep.subr.bf16.mxu0 %v7800_v44 }
 0x670   :  { %3031 = vmatmul.mubr.bf16.vlgmr.msra.gmra.mrb[104].mxu0 %v7975_v58 }
 0x671   :  { %5845 = vmatpush3.bf16.msra.mxu0 %v7807_v45  ;;  %3144 = vmatprep.mubr.bf16.mxu0 %v3103_v40 }
 0x672   :  { %5846 = vmatprep.subr.bf16.mxu0 %v7813_v8 }
 0x675   :  { %5847 = vmatpush3.bf16.msra.mxu0 %v7819_v48 }
 0x676   :  { %5848 = vmatprep.subr.bf16.mxu0 %v7825_v49 }
 0x677   :  { %v8103_v2 = vpop.f32.mrb[80].mxu1 }
 0x678   :  { %v2961_v58 = vpop.f32.mrb[81].mxu1 }
 0x679   :  { %5849 = vmatpush3.bf16.msra.mxu0 %v7831_v50  ;;  %v2962_v9 = vpop.f32.mrb[82].mxu1 }
 0x67a   :  { %5850 = vmatprep.subr.bf16.mxu0 %v7837_v52  ;;  %v2963_v47 = vpop.f32.mrb[83].mxu1 }
 0x67d   :  { %5851 = vmatpush3.bf16.msra.mxu0 %v7843_v53 }
 0x67e   :  { %5852 = vmatprep.subr.bf16.mxu0 %v7849_v54 }
 0x681   :  { %5853 = vmatpush3.bf16.msra.mxu0 %v7855_v55 }
 0x682   :  { %5854 = vmatprep.subr.bf16.mxu0 %v7861_v56 }
 0x685   :  { %5855 = vmatpush3.bf16.msra.mxu0 %v7867_v21 }
 0x686   :  { %5856 = vmatprep.subr.bf16.mxu0 %v7873_v57 }
 0x689   :  { %5857 = vmatpush3.bf16.msra.mxu0 %v7881_v37 }
 0x68a   :  { %5858 = vmatprep.subr.bf16.mxu0 %v7887_v41 }
 0x68d   :  { %5859 = vmatpush3.bf16.msra.mxu0 %v7894_v14 }
 0x68e   :  { %3152 = vmatprep.subr.bf16.mxu0 %v6465_v1 }
 0x690   :  { %3145 = vmatmul.mubr.bf16.vlgmr.msra.gmra.mrb[108].mxu0 %v3096_v11  ;;  %v5285_v11 = vld.sshfl [vmem:[%s8974_s1 + $0x18] sm:$0x33 pattern:$0x75316420] }
 0x691   :  { %3153 = vmatpush1.bf16.msra.mxu0 %v7616_v3  ;;  %5274 = vmatprep.mubr.msk.bf16.mxu0 %vm309_vm0, %v3105_v60  ;;  %v3489_v60 = vcombine.high %v5285_v11, %v5285_v11 }
 0x692   :  { %3154 = vmatprep.subr.bf16.mxu0 %v6465_v1 }
 0x695   :  { %3155 = vmatpush1.bf16.msra.mxu0 %v7623_v17 }
 0x696   :  { %3156 = vmatprep.subr.bf16.mxu0 %v6465_v1 }
 0x699   :  { %3157 = vmatpush1.bf16.msra.mxu0 %v7692_v16 }
 0x69a   :  { %3158 = vmatprep.subr.bf16.mxu0 %v6465_v1 }
 0x69b   :  { %v8131_v15 = vpop.f32.mrb[84].mxu1 }
 0x69c   :  { %v3074_v62 = vpop.f32.mrb[85].mxu1 }
 0x69d   :  { %3159 = vmatpush1.bf16.msra.mxu0 %v7699_v4  ;;  %v3075_v25 = vpop.f32.mrb[86].mxu1 }
 0x69e   :  { %3160 = vmatprep.subr.bf16.mxu0 %v6465_v1  ;;  %v3076_v20 = vpop.f32.mrb[87].mxu1 }
 0x6a1   :  { %3161 = vmatpush1.bf16.msra.mxu0 %v7706_v10 }
 0x6a2   :  { %3162 = vmatprep.subr.bf16.mxu0 %v6465_v1 }
 0x6a5   :  { %3163 = vmatpush1.bf16.msra.mxu0 %v7713_v59 }
 0x6a6   :  { %3164 = vmatprep.subr.bf16.mxu0 %v6465_v1 }
 0x6a9   :  { %3165 = vmatpush1.bf16.msra.mxu0 %v7720_v61 }
 0x6aa   :  { %3166 = vmatprep.subr.bf16.mxu0 %v6465_v1 }
 0x6ad   :  { %3167 = vmatpush1.bf16.msra.mxu0 %v7727_v63 }
 0x6ae   :  { %3168 = vmatprep.subr.bf16.mxu0 %v6465_v1 }
 0x6b1   :  { %3169 = vmatpush1.bf16.msra.mxu0 %v7734_v27 }
 0x6b2   :  { %6222 = vmatprep.subr.bf16.mxu0 %v6467_v24 }
 0x6b4   :  { %3185 = vmatmul.mubr.bf16.vlgmr.msra.gmra.mrb[112].mxu0 %v3104_v13  ;;  %v8183_v13 = vrot.slane %v3489_v60, %v6696_v35 }
 0x6b5   :  { %6226 = vmatprep.mubr.msk.bf16.mxu0 %vm6468_vm1, %v6467_v24  ;;  %6223 = vmatpush3.bf16.msra.mxu0 %v6334_v22 }
 0x6b6   :  { %6224 = vmatprep.subr.bf16.mxu0 %v6467_v24  ;;  %v3505_v62 = vcombine.high %v8183_v13, %v8183_v13 }
 0x6b9   :  { %6225 = vmatpush3.bf16.msra.mxu0 %v6335_v6 }
 0x6ba   :  { %5891 = vmatprep.subr.bf16.mxu0 %v7800_v44 }
 0x6bb   :  { %v5882_v7 = vpop.f32.mrb[88].mxu1 }
 0x6bc   :  { %v5883_v38 = vpop.f32.mrb[89].mxu1 }
 0x6bd   :  { %v5884_v28 = vadd.f32 %v5883_v38, %v5882_v7  ;;  %v5885_v23 = vpop.f32.mrb[90].mxu1 }
 0x6be   :  { %v5886_v12 = vpop.f32.mrb[91].mxu1 }
 0x6df   :  { %v3300_v30 = vpop.f32.mrb[92].mxu1 }
 0x6e0   :  { %v8133_v31 = vadd.f32 %v5884_v28, %v3300_v30  ;;  %v3302_v32 = vpop.f32.mrb[93].mxu1 }
 0x6e1   :  { %v3303_v36 = vpop.f32.mrb[94].mxu1  ;;  %v5291_v32 = vld.sshfl [vmem:[%s8976_s3 + $0x18] sm:$0x33 pattern:$0x75316420] }
 0x6e2   :  { %v3304_v18 = vpop.f32.mrb[95].mxu1  ;;  %v3717_v36 = vcombine.high %v5291_v32, %v5291_v32 }
 0x6e3   :  { %v3724_v18 = vrot.slane %v5291_v32, %v6696_v35  ;;  %v5297_v32 = vld.sshfl [vmem:[%s8973_s0 + $0x1c] sm:$0x33 pattern:$0x75316420] }
 0x6e5   :  { %v3732_v19 = vcombine.high %v3724_v18, %v3724_v18 }
 0x703   :  { %v2845_v42 = vpop.f32.mrb[96].mxu0 }
 0x704   :  { %v8136_v5 = vadd.f32 %v2845_v42, %v7924_v29  ;;  %v6220_v33 = vpop.f32.mrb[97].mxu0  ;;  %v8149_v29 = vrot.slane %v5282_v34, %v6696_v35 }
 0x705   :  { %v2848_v43 = vpop.f32.mrb[98].mxu0  ;;  %v8221_v33 = vld [vmem:[%s8977_s4 + $0x80] sm:$0xff]  }
 0x706   :  { %v6221_v0 = vpop.f32.mrb[99].mxu0  ;;  %v3391_v39 = vcombine.high %v8149_v29, %v8149_v29  ;;  %v8229_v43 = vld [vmem:[%s8977_s4 + $0x88] sm:$0xff]  }
 0x708   :  { %3472 = vmatmul.mubr.bf16.vlgmr.msra.gmra.mrb[96].mxu1 %v3391_v39 }
 0x709   :  { %3553 = vmatpush1.bf16.msra.mxu1 %v7616_v3  ;;  %5286 = vmatprep.mubr.msk.bf16.mxu1 %vm309_vm0, %v3505_v62 }
 0x70a   :  { %3554 = vmatprep.subr.bf16.mxu1 %v6465_v1 }
 0x70d   :  { %3555 = vmatpush1.bf16.msra.mxu1 %v7623_v17 }
 0x70e   :  { %3556 = vmatprep.subr.bf16.mxu1 %v6465_v1 }
 0x711   :  { %3557 = vmatpush1.bf16.msra.mxu1 %v7692_v16 }
 0x712   :  { %3558 = vmatprep.subr.bf16.mxu1 %v6465_v1 }
 0x715   :  { %3559 = vmatpush1.bf16.msra.mxu1 %v7699_v4 }
 0x716   :  { %3560 = vmatprep.subr.bf16.mxu1 %v6465_v1 }
 0x719   :  { %3561 = vmatpush1.bf16.msra.mxu1 %v7706_v10 }
 0x71a   :  { %3562 = vmatprep.subr.bf16.mxu1 %v6465_v1 }
 0x71d   :  { %3563 = vmatpush1.bf16.msra.mxu1 %v7713_v59 }
 0x71e   :  { %3564 = vmatprep.subr.bf16.mxu1 %v6465_v1 }
 0x721   :  { %3565 = vmatpush1.bf16.msra.mxu1 %v7720_v61 }
 0x722   :  { %3566 = vmatprep.subr.bf16.mxu1 %v6465_v1 }
 0x723   :  { %v5816_v40 = vpop.f32.mrb[100].mxu0 }
 0x724   :  { %v5817_v3 = vpop.f32.mrb[101].mxu0 }
 0x725   :  { %v5818_v58 = vadd.f32 %v5817_v3, %v5816_v40  ;;  %v5819_v9 = vpop.f32.mrb[102].mxu0  ;;  %3567 = vmatpush1.bf16.msra.mxu1 %v7727_v63 }
 0x726   :  { %v5820_v47 = vpop.f32.mrb[103].mxu0  ;;  %3568 = vmatprep.subr.bf16.mxu1 %v6465_v1 }
 0x727   :  { %v8172_v17 = vadd.f32 %v5818_v58, %v8103_v2  ;;  %v8187_v2 = vrot.slane %v5285_v11, %v6696_v35 }
 0x729   :  { %3569 = vmatpush1.bf16.msra.mxu1 %v7734_v27  ;;  %v3504_v25 = vcombine.high %v8187_v2, %v8187_v2 }
 0x72a   :  { %5957 = vmatprep.subr.bf16.mxu1 %v7800_v44 }
 0x72c   :  { %3585 = vmatmul.mubr.bf16.vlgmr.msra.gmra.mrb[100].mxu1 %v3504_v25 }
 0x72d   :  { %5958 = vmatpush3.bf16.msra.mxu1 %v7807_v45 }
 0x72e   :  { %5959 = vmatprep.subr.bf16.mxu1 %v7813_v8 }
 0x731   :  { %5960 = vmatpush3.bf16.msra.mxu1 %v7819_v48 }
 0x732   :  { %5961 = vmatprep.subr.bf16.mxu1 %v7825_v49 }
 0x735   :  { %5962 = vmatpush3.bf16.msra.mxu1 %v7831_v50 }
 0x736   :  { %5963 = vmatprep.subr.bf16.mxu1 %v7837_v52 }
 0x739   :  { %5964 = vmatpush3.bf16.msra.mxu1 %v7843_v53 }
 0x73a   :  { %5965 = vmatprep.subr.bf16.mxu1 %v7849_v54 }
 0x73d   :  { %5966 = vmatpush3.bf16.msra.mxu1 %v7855_v55 }
 0x73e   :  { %5967 = vmatprep.subr.bf16.mxu1 %v7861_v56 }
 0x741   :  { %5968 = vmatpush3.bf16.msra.mxu1 %v7867_v21 }
 0x742   :  { %5969 = vmatprep.subr.bf16.mxu1 %v7873_v57 }
 0x743   :  { %v5838_v20 = vpop.f32.mrb[104].mxu0 }
 0x744   :  { %v5839_v7 = vpop.f32.mrb[105].mxu0 }
 0x745   :  { %v5840_v38 = vadd.f32 %v5839_v7, %v5838_v20  ;;  %v5841_v28 = vpop.f32.mrb[106].mxu0  ;;  %5970 = vmatpush3.bf16.msra.mxu1 %v7881_v37 }
 0x746   :  { %v5842_v23 = vpop.f32.mrb[107].mxu0  ;;  %5971 = vmatprep.subr.bf16.mxu1 %v7887_v41 }
 0x747   :  { %v3073_v12 = vadd.f32 %v5840_v38, %v8131_v15  ;;  %v3731_v15 = vrot.slane %v3717_v36, %v6696_v35  ;;  %v6336_v36 = vld [vmem:[%s8979_s6 + $0x60] sm:$0xff]  }
 0x749   :  { %v3078_v30 = vmax.f32 %v8172_v17, %v3073_v12  ;;  %5972 = vmatpush3.bf16.msra.mxu1 %v7894_v14  ;;  %v3733_v42 = vcombine.high %v3731_v15, %v3731_v15  ;;  %3772 = vmatprep.mubr.bf16.mxu1 %v3731_v15  ;;  %v3890_v15 = vcombine.high %v5297_v32, %v5297_v32 }
 0x74a   :  { %3780 = vmatprep.subr.bf16.mxu1 %v6465_v1 }
 0x74c   :  { %3773 = vmatmul.mubr.bf16.vlgmr.msra.gmra.mrb[104].mxu1 %v3724_v18  ;;  %v8397_v18 = vrot.slane %v3890_v15, %v6696_v35 }
 0x74d   :  { %3781 = vmatpush1.bf16.msra.mxu1 %v8221_v33  ;;  %5292 = vmatprep.mubr.msk.bf16.mxu1 %vm309_vm0, %v3733_v42  ;;  %v6337_v42 = vld [vmem:[%s8979_s6 + $0x68] sm:$0xff]  }
 0x74e   :  { %3782 = vmatprep.subr.bf16.mxu1 %v6465_v1 }
 0x751   :  { %3783 = vmatpush1.bf16.msra.mxu1 %v8229_v43 }
 0x752   :  { %3784 = vmatprep.subr.bf16.mxu1 %v6465_v1 }
 0x755   :  { %3785 = vmatpush1.bf16.msra.mxu1 %v7692_v16 }
 0x756   :  { %3786 = vmatprep.subr.bf16.mxu1 %v6465_v1 }
 0x759   :  { %3787 = vmatpush1.bf16.msra.mxu1 %v7699_v4 }
 0x75a   :  { %3788 = vmatprep.subr.bf16.mxu1 %v6465_v1 }
 0x75d   :  { %3789 = vmatpush1.bf16.msra.mxu1 %v7706_v10 }
 0x75e   :  { %3790 = vmatprep.subr.bf16.mxu1 %v6465_v1 }
 0x761   :  { %3791 = vmatpush1.bf16.msra.mxu1 %v7713_v59 }
 0x762   :  { %3792 = vmatprep.subr.bf16.mxu1 %v6465_v1 }
 0x763   :  { %v5860_v0 = vpop.f32.mrb[108].mxu0 }
 0x764   :  { %v5861_v34 = vpop.f32.mrb[109].mxu0 }
 0x765   :  { %v5862_v22 = vadd.f32 %v5861_v34, %v5860_v0  ;;  %v5863_v26 = vpop.f32.mrb[110].mxu0  ;;  %3793 = vmatpush1.bf16.msra.mxu1 %v7720_v61  ;;  %v3906_v0 = vcombine.high %v8397_v18, %v8397_v18 }
 0x766   :  { %v5864_v6 = vpop.f32.mrb[111].mxu0  ;;  %3794 = vmatprep.subr.bf16.mxu1 %v6465_v1 }
 0x769   :  { %3795 = vmatpush1.bf16.msra.mxu1 %v7727_v63 }
 0x76a   :  { %3796 = vmatprep.subr.bf16.mxu1 %v6465_v1 }
 0x76d   :  { %3797 = vmatpush1.bf16.msra.mxu1 %v7734_v27 }
 0x76e   :  { %3953 = vmatprep.subr.bf16.mxu1 %v6465_v1 }
 0x770   :  { %3813 = vmatmul.mubr.bf16.vlgmr.msra.gmra.mrb[108].mxu1 %v3732_v19 }
 0x771   :  { %3954 = vmatpush1.bf16.msra.mxu1 %v8221_v33  ;;  %5298 = vmatprep.mubr.msk.bf16.mxu1 %vm309_vm0, %v3906_v0 }
 0x772   :  { %3955 = vmatprep.subr.bf16.mxu1 %v6465_v1 }
 0x775   :  { %3956 = vmatpush1.bf16.msra.mxu1 %v8229_v43 }
 0x776   :  { %3957 = vmatprep.subr.bf16.mxu1 %v6465_v1 }
 0x779   :  { %3958 = vmatpush1.bf16.msra.mxu1 %v7692_v16 }
 0x77a   :  { %3959 = vmatprep.subr.bf16.mxu1 %v6465_v1 }
 0x77d   :  { %3960 = vmatpush1.bf16.msra.mxu1 %v7699_v4 }
 0x77e   :  { %3961 = vmatprep.subr.bf16.mxu1 %v6465_v1 }
 0x781   :  { %3962 = vmatpush1.bf16.msra.mxu1 %v7706_v10  ;;  %v5288_v10 = vld.sshfl [vmem:[%s8975_s2 + $0x18] sm:$0x33 pattern:$0x75316420] }
 0x782   :  { %3963 = vmatprep.subr.bf16.mxu1 %v6465_v1 }
 0x785   :  { %3964 = vmatpush1.bf16.msra.mxu1 %v7713_v59  ;;  %v3603_v59 = vcombine.high %v5288_v10, %v5288_v10 }
 0x786   :  { %3965 = vmatprep.subr.bf16.mxu1 %v6465_v1 }
 0x787   :  { %v3186_v39 = vpop.f32.mrb[112].mxu0 }
 0x788   :  { %v3187_v40 = vadd.f32 %v5862_v22, %v3186_v39  ;;  %v3188_v3 = vpop.f32.mrb[113].mxu0  ;;  %v8414_v22 = vld [vmem:[%s8977_s4 + $0x40] sm:$0xff]  }
 0x789   :  { %v3189_v58 = vpop.f32.mrb[114].mxu0  ;;  %3966 = vmatpush1.bf16.msra.mxu1 %v7720_v61  ;;  %v3617_v61 = vrot.slane %v3603_v59, %v6696_v35  ;;  %v8467_v59 = vld [vmem:[%s8977_s4 + $0x8] sm:$0xff]  }
 0x78a   :  { %v3192_v9 = vmax.f32 %v3078_v30, %v3187_v40  ;;  %v3190_v47 = vpop.f32.mrb[115].mxu0  ;;  %3967 = vmatprep.subr.bf16.mxu1 %v6465_v1  ;;  %v5300_v58 = vld.sshfl [vmem:[%s8974_s1 + $0x1c] sm:$0x33 pattern:$0x75316420] }
 0x78c   :  { %v3306_v17 = vmax.f32 %v3192_v9, %v8133_v31  ;;  %v4003_v9 = vcombine.high %v5300_v58, %v5300_v58 }
 0x78d   :  { %3968 = vmatpush1.bf16.msra.mxu1 %v7727_v63 }
 0x78e   :  { %v3307_v16 = vadd.f32 %v8039_v51, %v3306_v17  ;;  %3969 = vmatprep.subr.bf16.mxu1 %v6465_v1  ;;  %v8440_v47 = vrot.slane %v4003_v9, %v6696_v35  ;;  %v8444_v17 = vrot.slane %v5300_v58, %v6696_v35 }
 0x790   :  { %v3308_v11 = vmax.f32 %v3307_v16, 0.0  ;;  %v4019_v16 = vcombine.high %v8440_v47, %v8440_v47 }
 0x791   :  { %3970 = vmatpush1.bf16.msra.mxu1 %v7734_v27 }
 0x792   :  { %v3309_v4 = vpack.c.bf16 %v3308_v11, %v3308_v11  ;;  %4066 = vmatprep.subr.bf16.mxu1 %v6465_v1  ;;  %v4018_v11 = vcombine.high %v8444_v17, %v8444_v17 }
 0x794   :  { %6227 = vmatmul.mubr.msk.bf16.vlgmr.msra.gmra.mrb[116].mxu0 %vm1211_vm2, %v3309_v4  ;;  %v8455_v4 = vld [vmem:[%s8977_s4] sm:$0xff]  }
 0x795   :  { %5892 = vmatpush3.bf16.msra.mxu0 %v7807_v45  ;;  %3431 = vmatprep.mubr.bf16.mxu0 %v8145_v46 }
 0x796   :  { %5893 = vmatprep.subr.bf16.mxu0 %v7813_v8 }
 0x799   :  { %5894 = vmatpush3.bf16.msra.mxu0 %v7819_v48 }
 0x79a   :  { %5895 = vmatprep.subr.bf16.mxu0 %v7825_v49 }
 0x79d   :  { %5896 = vmatpush3.bf16.msra.mxu0 %v7831_v50 }
 0x79e   :  { %5897 = vmatprep.subr.bf16.mxu0 %v7837_v52 }
 0x7a1   :  { %5898 = vmatpush3.bf16.msra.mxu0 %v7843_v53 }
 0x7a2   :  { %5899 = vmatprep.subr.bf16.mxu0 %v7849_v54 }
 0x7a5   :  { %5900 = vmatpush3.bf16.msra.mxu0 %v7855_v55 }
 0x7a6   :  { %5901 = vmatprep.subr.bf16.mxu0 %v7861_v56 }
 0x7a9   :  { %5902 = vmatpush3.bf16.msra.mxu0 %v7867_v21 }
 0x7aa   :  { %5903 = vmatprep.subr.bf16.mxu0 %v7873_v57 }
 0x7ad   :  { %5904 = vmatpush3.bf16.msra.mxu0 %v7881_v37 }
 0x7ae   :  { %5905 = vmatprep.subr.bf16.mxu0 %v7887_v41 }
 0x7b1   :  { %5906 = vmatpush3.bf16.msra.mxu0 %v7894_v14 }
 0x7b2   :  { %5913 = vmatprep.subr.bf16.mxu0 %v7800_v44 }
 0x7b4   :  { %3432 = vmatmul.mubr.bf16.vlgmr.msra.gmra.mrb[120].mxu0 %v8149_v29 }
 0x7b5   :  { %5914 = vmatpush3.bf16.msra.mxu0 %v7807_v45  ;;  %3544 = vmatprep.mubr.bf16.mxu0 %v8183_v13 }
 0x7b6   :  { %5915 = vmatprep.subr.bf16.mxu0 %v7813_v8 }
 0x7b9   :  { %5916 = vmatpush3.bf16.msra.mxu0 %v7819_v48 }
 0x7ba   :  { %5917 = vmatprep.subr.bf16.mxu0 %v7825_v49 }
 0x7bd   :  { %5918 = vmatpush3.bf16.msra.mxu0 %v7831_v50 }
 0x7be   :  { %5919 = vmatprep.subr.bf16.mxu0 %v7837_v52 }
 0x7c1   :  { %5920 = vmatpush3.bf16.msra.mxu0 %v7843_v53 }
 0x7c2   :  { %5921 = vmatprep.subr.bf16.mxu0 %v7849_v54 }
 0x7c5   :  { %5922 = vmatpush3.bf16.msra.mxu0 %v7855_v55 }
 0x7c6   :  { %5923 = vmatprep.subr.bf16.mxu0 %v7861_v56 }
 0x7c9   :  { %5924 = vmatpush3.bf16.msra.mxu0 %v7867_v21 }
 0x7ca   :  { %5925 = vmatprep.subr.bf16.mxu0 %v7873_v57 }
 0x7cd   :  { %5926 = vmatpush3.bf16.msra.mxu0 %v7881_v37 }
 0x7ce   :  { %5927 = vmatprep.subr.bf16.mxu0 %v7887_v41 }
 0x7d1   :  { %5928 = vmatpush3.bf16.msra.mxu0 %v7894_v14 }
 0x7d2   :  { %5935 = vmatprep.subr.bf16.mxu0 %v7800_v44 }
 0x7d4   :  { %3545 = vmatmul.mubr.bf16.vlgmr.msra.gmra.mrb[124].mxu0 %v8187_v2 }
 0x7d5   :  { %5936 = vmatpush3.bf16.msra.mxu0 %v7807_v45  ;;  %3658 = vmatprep.mubr.bf16.mxu0 %v3617_v61 }
 0x7d6   :  { %5937 = vmatprep.subr.bf16.mxu0 %v7813_v8  ;;  %v3610_v8 = vrot.slane %v5288_v10, %v6696_v35  ;;  %v8461_v10 = vld [vmem:[%s8977_s4 + $0x48] sm:$0xff]  }
 0x7d9   :  { %5938 = vmatpush3.bf16.msra.mxu0 %v7819_v48  ;;  %v3619_v48 = vcombine.high %v3617_v61, %v3617_v61  ;;  %v8473_v61 = vld [vmem:[%s8977_s4 + $0x50] sm:$0xff]  }
 0x7da   :  { %5939 = vmatprep.subr.bf16.mxu0 %v7825_v49  ;;  %v8335_v49 = vld [vmem:[%s8977_s4 + $0x90] sm:$0xff]  }
 0x7db   :  { %v8320_v63 = vpop.f32.mrb[96].mxu1 }
 0x7dc   :  { %v3475_v27 = vpop.f32.mrb[97].mxu1 }
 0x7dd   :  { %5940 = vmatpush3.bf16.msra.mxu0 %v7831_v50  ;;  %v3476_v44 = vpop.f32.mrb[98].mxu1  ;;  %v8342_v50 = vld [vmem:[%s8977_s4 + $0x98] sm:$0xff]  }
 0x7de   :  { %5941 = vmatprep.subr.bf16.mxu0 %v7837_v52  ;;  %v3477_v45 = vpop.f32.mrb[99].mxu1  ;;  %v8349_v52 = vld [vmem:[%s8977_s4 + $0xa0] sm:$0xff]   ;;  %v8485_v27 = vld [vmem:[%s8977_s4 + $0x58] sm:$0xff]  }
 0x7df   :  { %v8491_v45 = vld [vmem:[%s8977_s4 + $0x18] sm:$0xff]  }
 0x7e1   :  { %5942 = vmatpush3.bf16.msra.mxu0 %v7843_v53  ;;  %v8356_v53 = vld [vmem:[%s8977_s4 + $0xa8] sm:$0xff]  }
 0x7e2   :  { %5943 = vmatprep.subr.bf16.mxu0 %v7849_v54  ;;  %v8363_v54 = vld [vmem:[%s8977_s4 + $0xb0] sm:$0xff]  }
 0x7e5   :  { %5944 = vmatpush3.bf16.msra.mxu0 %v7855_v55  ;;  %v8370_v55 = vld [vmem:[%s8977_s4 + $0xb8] sm:$0xff]  }
 0x7e6   :  { %5945 = vmatprep.subr.bf16.mxu0 %v7861_v56  ;;  %v3618_v56 = vcombine.high %v3610_v8, %v3610_v8 }
 0x7e9   :  { %5946 = vmatpush3.bf16.msra.mxu0 %v7867_v21  ;;  %v8377_v21 = vld [vmem:[%s8977_s4 + $0xc0] sm:$0xff]  }
 0x7ea   :  { %5947 = vmatprep.subr.bf16.mxu0 %v7873_v57 }
 0x7ed   :  { %5948 = vmatpush3.bf16.msra.mxu0 %v7881_v37 }
 0x7ee   :  { %5949 = vmatprep.subr.bf16.mxu0 %v7887_v41 }
 0x7f1   :  { %5950 = vmatpush3.bf16.msra.mxu0 %v7894_v14 }
 0x7f2   :  { %3666 = vmatprep.subr.bf16.mxu0 %v6465_v1 }
 0x7f4   :  { %3659 = vmatmul.mubr.bf16.vlgmr.msra.gmra.mrb[128].mxu0 %v3610_v8 }
 0x7f5   :  { %3667 = vmatpush1.bf16.msra.mxu0 %v8221_v33  ;;  %5289 = vmatprep.mubr.msk.bf16.mxu0 %vm309_vm0, %v3619_v48  ;;  %v8497_v48 = vld [vmem:[%s8977_s4 + $0x60] sm:$0xff]  }
 0x7f6   :  { %3668 = vmatprep.subr.bf16.mxu0 %v6465_v1 }
 0x7f9   :  { %3669 = vmatpush1.bf16.msra.mxu0 %v8229_v43 }
 0x7fa   :  { %3670 = vmatprep.subr.bf16.mxu0 %v6465_v1 }
 0x7fd   :  { %3671 = vmatpush1.bf16.msra.mxu0 %v8335_v49 }
 0x7fe   :  { %3672 = vmatprep.subr.bf16.mxu0 %v6465_v1 }
 0x7ff   :  { %v8383_v57 = vpop.f32.mrb[100].mxu1 }
 0x800   :  { %v3588_v37 = vpop.f32.mrb[101].mxu1 }
 0x801   :  { %3673 = vmatpush1.bf16.msra.mxu0 %v8342_v50  ;;  %v3589_v41 = vpop.f32.mrb[102].mxu1 }
 0x802   :  { %3674 = vmatprep.subr.bf16.mxu0 %v6465_v1  ;;  %v3590_v14 = vpop.f32.mrb[103].mxu1 }
 0x805   :  { %3675 = vmatpush1.bf16.msra.mxu0 %v8349_v52 }
 0x806   :  { %3676 = vmatprep.subr.bf16.mxu0 %v6465_v1 }
 0x809   :  { %3677 = vmatpush1.bf16.msra.mxu0 %v8356_v53 }
 0x80a   :  { %3678 = vmatprep.subr.bf16.mxu0 %v6465_v1 }
 0x80d   :  { %3679 = vmatpush1.bf16.msra.mxu0 %v8363_v54 }
 0x80e   :  { %3680 = vmatprep.subr.bf16.mxu0 %v6465_v1 }
 0x811   :  { %3681 = vmatpush1.bf16.msra.mxu0 %v8370_v55 }
 0x812   :  { %3682 = vmatprep.subr.bf16.mxu0 %v6465_v1 }
 0x815   :  { %3683 = vmatpush1.bf16.msra.mxu0 %v8377_v21 }
 0x816   :  { %6230 = vmatprep.subr.bf16.mxu0 %v6467_v24 }
 0x818   :  { %3699 = vmatmul.mubr.bf16.vlgmr.msra.gmra.mrb[132].mxu0 %v3618_v56 }
 0x819   :  { %6234 = vmatprep.mubr.msk.bf16.mxu0 %vm6468_vm1, %v6467_v24  ;;  %6231 = vmatpush3.bf16.msra.mxu0 %v6336_v36 }
 0x81a   :  { %6232 = vmatprep.subr.bf16.mxu0 %v6467_v24 }
 0x81d   :  { %6233 = vmatpush3.bf16.msra.mxu0 %v6337_v42 }
 0x81e   :  { %5982 = vmatprep.subr.bf16.mxu0 %v8414_v22 }
 0x81f   :  { %v5973_v31 = vpop.f32.mrb[104].mxu1 }
 0x820   :  { %v5974_v46 = vpop.f32.mrb[105].mxu1 }
 0x821   :  { %v5975_v29 = vadd.f32 %v5974_v46, %v5973_v31  ;;  %v5976_v60 = vpop.f32.mrb[106].mxu1  ;;  %v8506_v31 = vld [vmem:[%s8977_s4 + $0x20] sm:$0xff]   ;;  %v8512_v46 = vld [vmem:[%s8977_s4 + $0x68] sm:$0xff]  }
 0x822   :  { %v5977_v13 = vpop.f32.mrb[107].mxu1  ;;  %v8526_v60 = vld [vmem:[%s8977_s4 + $0x70] sm:$0xff]  }
 0x823   :  { %v8532_v13 = vld [vmem:[%s8977_s4 + $0x30] sm:$0xff]  }
 0x843   :  { %v3814_v2 = vpop.f32.mrb[108].mxu1 }
 0x844   :  { %v8385_v62 = vadd.f32 %v5975_v29, %v3814_v2  ;;  %v3816_v25 = vpop.f32.mrb[109].mxu1  ;;  %v8538_v2 = vld [vmem:[%s8977_s4 + $0x78] sm:$0xff]  }
 0x845   :  { %v3817_v20 = vpop.f32.mrb[110].mxu1  ;;  %v5306_v25 = vld.sshfl [vmem:[%s8976_s3 + $0x1c] sm:$0x33 pattern:$0x75316420] }
 0x846   :  { %v3818_v7 = vpop.f32.mrb[111].mxu1  ;;  %v4231_v20 = vcombine.high %v5306_v25, %v5306_v25 }
 0x847   :  { %v8547_v7 = vld [vmem:[%s8977_s4 + $0x38] sm:$0xff]  }
 0x867   :  { %v3359_v38 = vpop.f32.mrb[116].mxu0 }
 0x868   :  { %v8388_v28 = vadd.f32 %v3359_v38, %v8136_v5  ;;  %v6228_v23 = vpop.f32.mrb[117].mxu0  ;;  %v8401_v5 = vrot.slane %v5297_v32, %v6696_v35  ;;  %v4245_v38 = vrot.slane %v4231_v20, %v6696_v35 }
 0x869   :  { %v3362_v12 = vpop.f32.mrb[118].mxu0  ;;  %v4238_v23 = vrot.slane %v5306_v25, %v6696_v35 }
 0x86a   :  { %v6229_v30 = vpop.f32.mrb[119].mxu0  ;;  %v3905_v34 = vcombine.high %v8401_v5, %v8401_v5  ;;  %v4247_v12 = vcombine.high %v4245_v38, %v4245_v38 }
 0x86b   :  { %v4246_v0 = vcombine.high %v4238_v23, %v4238_v23 }
 0x86c   :  { %3986 = vmatmul.mubr.bf16.vlgmr.msra.gmra.mrb[112].mxu1 %v3905_v34 }
 0x86d   :  { %4067 = vmatpush1.bf16.msra.mxu1 %v8221_v33  ;;  %5301 = vmatprep.mubr.msk.bf16.mxu1 %vm309_vm0, %v4019_v16 }
 0x86e   :  { %4068 = vmatprep.subr.bf16.mxu1 %v6465_v1 }
 0x871   :  { %4069 = vmatpush1.bf16.msra.mxu1 %v8229_v43 }
 0x872   :  { %4070 = vmatprep.subr.bf16.mxu1 %v6465_v1 }
 0x875   :  { %4071 = vmatpush1.bf16.msra.mxu1 %v8335_v49 }
 0x876   :  { %4072 = vmatprep.subr.bf16.mxu1 %v6465_v1 }
 0x879   :  { %4073 = vmatpush1.bf16.msra.mxu1 %v8342_v50 }
 0x87a   :  { %4074 = vmatprep.subr.bf16.mxu1 %v6465_v1 }
 0x87d   :  { %4075 = vmatpush1.bf16.msra.mxu1 %v8349_v52 }
 0x87e   :  { %4076 = vmatprep.subr.bf16.mxu1 %v6465_v1 }
 0x881   :  { %4077 = vmatpush1.bf16.msra.mxu1 %v8356_v53 }
 0x882   :  { %4078 = vmatprep.subr.bf16.mxu1 %v6465_v1 }
 0x885   :  { %4079 = vmatpush1.bf16.msra.mxu1 %v8363_v54 }
 0x886   :  { %4080 = vmatprep.subr.bf16.mxu1 %v6465_v1 }
 0x887   :  { %v5907_v26 = vpop.f32.mrb[120].mxu0 }
 0x888   :  { %v5908_v6 = vpop.f32.mrb[121].mxu0 }
 0x889   :  { %v5909_v19 = vadd.f32 %v5908_v6, %v5907_v26  ;;  %v5910_v39 = vpop.f32.mrb[122].mxu0  ;;  %4081 = vmatpush1.bf16.msra.mxu1 %v8370_v55 }
 0x88a   :  { %v5911_v40 = vpop.f32.mrb[123].mxu0  ;;  %4082 = vmatprep.subr.bf16.mxu1 %v6465_v1 }
 0x88b   :  { %v8429_v3 = vadd.f32 %v5909_v19, %v8320_v63  ;;  %v8479_v63 = vld [vmem:[%s8977_s4 + $0x10] sm:$0xff]  }
 0x88d   :  { %4083 = vmatpush1.bf16.msra.mxu1 %v8377_v21 }
 0x88e   :  { %6048 = vmatprep.subr.bf16.mxu1 %v8414_v22 }
 0x890   :  { %4099 = vmatmul.mubr.bf16.vlgmr.msra.gmra.mrb[116].mxu1 %v4018_v11 }
 0x891   :  { %6049 = vmatpush3.bf16.msra.mxu1 %v8455_v4  ;;  %4286 = vmatprep.mubr.bf16.mxu1 %v4245_v38 }
 0x892   :  { %6050 = vmatprep.subr.bf16.mxu1 %v8461_v10 }
 0x895   :  { %6051 = vmatpush3.bf16.msra.mxu1 %v8467_v59 }
 0x896   :  { %6052 = vmatprep.subr.bf16.mxu1 %v8473_v61 }
 0x899   :  { %6053 = vmatpush3.bf16.msra.mxu1 %v8479_v63 }
 0x89a   :  { %6054 = vmatprep.subr.bf16.mxu1 %v8485_v27 }
 0x89d   :  { %6055 = vmatpush3.bf16.msra.mxu1 %v8491_v45 }
 0x89e   :  { %6056 = vmatprep.subr.bf16.mxu1 %v8497_v48 }
 0x8a1   :  { %6057 = vmatpush3.bf16.msra.mxu1 %v8506_v31 }
 0x8a2   :  { %6058 = vmatprep.subr.bf16.mxu1 %v8512_v46 }
 0x8a7   :  { %v5929_v44 = vpop.f32.mrb[124].mxu0 }
 0x8a8   :  { %v5930_v8 = vpop.f32.mrb[125].mxu0 }
 0x8a9   :  { %v5931_v56 = vadd.f32 %v5930_v8, %v5929_v44  ;;  %v5932_v37 = vpop.f32.mrb[126].mxu0 }
 0x8aa   :  { %v5933_v41 = vpop.f32.mrb[127].mxu0 }
 0x8ab   :  { %v8501_v14 = vadd.f32 %v5931_v56, %v8383_v57  ;;  %v8520_v57 = vld [vmem:[%s8977_s4 + $0x28] sm:$0xff]  }
 0x8ac   :  { %6059 = vmatpush3.bf16.msra.mxu1 %v8520_v57 }
 0x8ad   :  { %v3592_v29 = vmax.f32 %v8429_v3, %v8501_v14  ;;  %6060 = vmatprep.subr.bf16.mxu1 %v8526_v60 }
 0x8b0   :  { %6061 = vmatpush3.bf16.msra.mxu1 %v8532_v13 }
 0x8b1   :  { %6062 = vmatprep.subr.bf16.mxu1 %v8538_v2 }
 0x8b4   :  { %6063 = vmatpush3.bf16.msra.mxu1 %v8547_v7 }
 0x8b5   :  { %4294 = vmatprep.subr.bf16.mxu1 %v6465_v1 }
 0x8b7   :  { %4287 = vmatmul.mubr.bf16.vlgmr.msra.gmra.mrb[120].mxu1 %v4238_v23 }
 0x8b8   :  { %4295 = vmatpush1.bf16.msra.mxu1 %v8221_v33  ;;  %5307 = vmatprep.mubr.msk.bf16.mxu1 %vm309_vm0, %v4247_v12 }
 0x8b9   :  { %4296 = vmatprep.subr.bf16.mxu1 %v6465_v1 }
 0x8bc   :  { %4297 = vmatpush1.bf16.msra.mxu1 %v8229_v43 }
 0x8bd   :  { %4298 = vmatprep.subr.bf16.mxu1 %v6465_v1 }
 0x8c0   :  { %4299 = vmatpush1.bf16.msra.mxu1 %v8335_v49 }
 0x8c1   :  { %4300 = vmatprep.subr.bf16.mxu1 %v6465_v1 }
 0x8c4   :  { %4301 = vmatpush1.bf16.msra.mxu1 %v8342_v50 }
 0x8c5   :  { %4302 = vmatprep.subr.bf16.mxu1 %v6465_v1 }
 0x8c7   :  { %v5951_v30 = vpop.f32.mrb[128].mxu0 }
 0x8c8   :  { %v5952_v32 = vpop.f32.mrb[129].mxu0  ;;  %4303 = vmatpush1.bf16.msra.mxu1 %v8349_v52 }
 0x8c9   :  { %v5953_v36 = vadd.f32 %v5952_v32, %v5951_v30  ;;  %v5954_v15 = vpop.f32.mrb[130].mxu0  ;;  %4304 = vmatprep.subr.bf16.mxu1 %v6465_v1 }
 0x8ca   :  { %v5955_v42 = vpop.f32.mrb[131].mxu0 }
 0x8cc   :  { %4305 = vmatpush1.bf16.msra.mxu1 %v8356_v53 }
 0x8cd   :  { %4306 = vmatprep.subr.bf16.mxu1 %v6465_v1 }
 0x8d0   :  { %4307 = vmatpush1.bf16.msra.mxu1 %v8363_v54 }
 0x8d1   :  { %4308 = vmatprep.subr.bf16.mxu1 %v6465_v1 }
 0x8d4   :  { %4309 = vmatpush1.bf16.msra.mxu1 %v8370_v55 }
 0x8d5   :  { %4310 = vmatprep.subr.bf16.mxu1 %v6465_v1 }
 0x8d8   :  { %4311 = vmatpush1.bf16.msra.mxu1 %v8377_v21 }
 0x8d9   :  { %4467 = vmatprep.subr.bf16.mxu1 %v6465_v1 }
 0x8db   :  { %4327 = vmatmul.mubr.bf16.vlgmr.msra.gmra.mrb[124].mxu1 %v4246_v0 }
 0x8dc   :  { %4468 = vmatpush1.bf16.msra.mxu1 %v8221_v33 }
 0x8dd   :  { %4469 = vmatprep.subr.bf16.mxu1 %v6465_v1 }
 0x8e0   :  { %4470 = vmatpush1.bf16.msra.mxu1 %v8229_v43 }
 0x8e1   :  { %4471 = vmatprep.subr.bf16.mxu1 %v6465_v1 }
 0x8e4   :  { %4472 = vmatpush1.bf16.msra.mxu1 %v8335_v49 }
 0x8e5   :  { %4473 = vmatprep.subr.bf16.mxu1 %v6465_v1 }
 0x8e8   :  { %4474 = vmatpush1.bf16.msra.mxu1 %v8342_v50 }
 0x8e9   :  { %4475 = vmatprep.subr.bf16.mxu1 %v6465_v1 }
 0x8eb   :  { %v3700_v34 = vpop.f32.mrb[132].mxu0 }
 0x8ec   :  { %v3701_v26 = vadd.f32 %v5953_v36, %v3700_v34  ;;  %v3702_v6 = vpop.f32.mrb[133].mxu0  ;;  %4476 = vmatpush1.bf16.msra.mxu1 %v8349_v52 }
 0x8ed   :  { %v3703_v19 = vpop.f32.mrb[134].mxu0  ;;  %4477 = vmatprep.subr.bf16.mxu1 %v6465_v1 }
 0x8ee   :  { %v3706_v39 = vmax.f32 %v3592_v29, %v3701_v26  ;;  %v3704_v40 = vpop.f32.mrb[135].mxu0 }
 0x8ef   :  { %v6338_v40 = vld [vmem:[%s8979_s6 + $0x70] sm:$0xff]  }
 0x8f0   :  { %v3820_v3 = vmax.f32 %v3706_v39, %v8385_v62  ;;  %4478 = vmatpush1.bf16.msra.mxu1 %v8356_v53  ;;  %v5312_v39 = vld.sshfl [vmem:[%s8973_s0 + $0x20] sm:$0x33 pattern:$0x75316420] }
 0x8f1   :  { %4479 = vmatprep.subr.bf16.mxu1 %v6465_v1 }
 0x8f2   :  { %v3821_v58 = vadd.f32 %v8039_v51, %v3820_v3  ;;  %v5303_v51 = vld.sshfl [vmem:[%s8975_s2 + $0x1c] sm:$0x33 pattern:$0x75316420]  ;;  %v4404_v3 = vcombine.high %v5312_v39, %v5312_v39 }
 0x8f3   :  { %v4117_v62 = vcombine.high %v5303_v51, %v5303_v51  ;;  %v4124_v44 = vrot.slane %v5303_v51, %v6696_v35 }
 0x8f4   :  { %v3822_v9 = vmax.f32 %v3821_v58, 0.0  ;;  %4480 = vmatpush1.bf16.msra.mxu1 %v8363_v54  ;;  %v8687_v58 = vrot.slane %v4404_v3, %v6696_v35 }
 0x8f5   :  { %4481 = vmatprep.subr.bf16.mxu1 %v6465_v1  ;;  %v4132_v56 = vcombine.high %v4124_v44, %v4124_v44 }
 0x8f6   :  { %v3823_v16 = vpack.c.bf16 %v3822_v9, %v3822_v9  ;;  %v6339_v9 = vld [vmem:[%s8979_s6 + $0x78] sm:$0xff]  }
 0x8f8   :  { %6235 = vmatmul.mubr.msk.bf16.vlgmr.msra.gmra.mrb[136].mxu0 %vm1211_vm2, %v3823_v16  ;;  %4482 = vmatpush1.bf16.msra.mxu1 %v8370_v55  ;;  %v4420_v16 = vcombine.high %v8687_v58, %v8687_v58 }
 0x8f9   :  { %5983 = vmatpush3.bf16.msra.mxu0 %v8455_v4  ;;  %3945 = vmatprep.mubr.bf16.mxu0 %v8397_v18  ;;  %v4131_v18 = vrot.slane %v4117_v62, %v6696_v35 }
 0x8fa   :  { %5984 = vmatprep.subr.bf16.mxu0 %v8461_v10  ;;  %4483 = vmatprep.subr.bf16.mxu1 %v6465_v1 }
 0x8fb   :  { %v4133_v8 = vcombine.high %v4131_v18, %v4131_v18  ;;  %5313 = vmatprep.mubr.msk.bf16.mxu1 %vm309_vm0, %v4420_v16 }
 0x8fc   :  { %4484 = vmatpush1.bf16.msra.mxu1 %v8377_v21 }
 0x8fd   :  { %5985 = vmatpush3.bf16.msra.mxu0 %v8467_v59  ;;  %4580 = vmatprep.subr.bf16.mxu1 %v6465_v1 }
 0x8fe   :  { %5986 = vmatprep.subr.bf16.mxu0 %v8473_v61 }
 0x901   :  { %5987 = vmatpush3.bf16.msra.mxu0 %v8479_v63 }
 0x902   :  { %5988 = vmatprep.subr.bf16.mxu0 %v8485_v27 }
 0x905   :  { %5989 = vmatpush3.bf16.msra.mxu0 %v8491_v45 }
 0x906   :  { %5990 = vmatprep.subr.bf16.mxu0 %v8497_v48 }
 0x909   :  { %5991 = vmatpush3.bf16.msra.mxu0 %v8506_v31 }
 0x90a   :  { %5992 = vmatprep.subr.bf16.mxu0 %v8512_v46 }
 0x90d   :  { %5993 = vmatpush3.bf16.msra.mxu0 %v8520_v57 }
 0x90e   :  { %5994 = vmatprep.subr.bf16.mxu0 %v8526_v60 }
 0x911   :  { %5995 = vmatpush3.bf16.msra.mxu0 %v8532_v13 }
 0x912   :  { %5996 = vmatprep.subr.bf16.mxu0 %v8538_v2 }
 0x915   :  { %5997 = vmatpush3.bf16.msra.mxu0 %v8547_v7 }
 0x916   :  { %6004 = vmatprep.subr.bf16.mxu0 %v8414_v22 }
 0x918   :  { %3946 = vmatmul.mubr.bf16.vlgmr.msra.gmra.mrb[140].mxu0 %v8401_v5 }
 0x919   :  { %6005 = vmatpush3.bf16.msra.mxu0 %v8455_v4  ;;  %4058 = vmatprep.mubr.bf16.mxu0 %v8440_v47 }
 0x91a   :  { %6006 = vmatprep.subr.bf16.mxu0 %v8461_v10 }
 0x91d   :  { %6007 = vmatpush3.bf16.msra.mxu0 %v8467_v59 }
 0x91e   :  { %6008 = vmatprep.subr.bf16.mxu0 %v8473_v61 }
 0x921   :  { %6009 = vmatpush3.bf16.msra.mxu0 %v8479_v63 }
 0x922   :  { %6010 = vmatprep.subr.bf16.mxu0 %v8485_v27 }
 0x925   :  { %6011 = vmatpush3.bf16.msra.mxu0 %v8491_v45 }
 0x926   :  { %6012 = vmatprep.subr.bf16.mxu0 %v8497_v48 }
 0x929   :  { %6013 = vmatpush3.bf16.msra.mxu0 %v8506_v31 }
 0x92a   :  { %6014 = vmatprep.subr.bf16.mxu0 %v8512_v46 }
 0x92d   :  { %6015 = vmatpush3.bf16.msra.mxu0 %v8520_v57 }
 0x92e   :  { %6016 = vmatprep.subr.bf16.mxu0 %v8526_v60 }
 0x931   :  { %6017 = vmatpush3.bf16.msra.mxu0 %v8532_v13 }
 0x932   :  { %6018 = vmatprep.subr.bf16.mxu0 %v8538_v2 }
 0x935   :  { %6019 = vmatpush3.bf16.msra.mxu0 %v8547_v7 }
 0x936   :  { %6026 = vmatprep.subr.bf16.mxu0 %v8414_v22 }
 0x938   :  { %4059 = vmatmul.mubr.bf16.vlgmr.msra.gmra.mrb[144].mxu0 %v8444_v17 }
 0x939   :  { %6027 = vmatpush3.bf16.msra.mxu0 %v8455_v4  ;;  %4172 = vmatprep.mubr.bf16.mxu0 %v4131_v18 }
 0x93a   :  { %6028 = vmatprep.subr.bf16.mxu0 %v8461_v10 }
 0x93d   :  { %6029 = vmatpush3.bf16.msra.mxu0 %v8467_v59 }
 0x93e   :  { %6030 = vmatprep.subr.bf16.mxu0 %v8473_v61 }
 0x93f   :  { %v8645_v5 = vpop.f32.mrb[112].mxu1 }
 0x940   :  { %v3989_v47 = vpop.f32.mrb[113].mxu1 }
 0x941   :  { %6031 = vmatpush3.bf16.msra.mxu0 %v8479_v63  ;;  %v3990_v17 = vpop.f32.mrb[114].mxu1 }
 0x942   :  { %6032 = vmatprep.subr.bf16.mxu0 %v8485_v27  ;;  %v3991_v11 = vpop.f32.mrb[115].mxu1 }
 0x945   :  { %6033 = vmatpush3.bf16.msra.mxu0 %v8491_v45 }
 0x946   :  { %6034 = vmatprep.subr.bf16.mxu0 %v8497_v48 }
 0x949   :  { %6035 = vmatpush3.bf16.msra.mxu0 %v8506_v31 }
 0x94a   :  { %6036 = vmatprep.subr.bf16.mxu0 %v8512_v46 }
 0x94d   :  { %6037 = vmatpush3.bf16.msra.mxu0 %v8520_v57 }
 0x94e   :  { %6038 = vmatprep.subr.bf16.mxu0 %v8526_v60 }
 0x951   :  { %6039 = vmatpush3.bf16.msra.mxu0 %v8532_v13 }
 0x952   :  { %6040 = vmatprep.subr.bf16.mxu0 %v8538_v2 }
 0x955   :  { %6041 = vmatpush3.bf16.msra.mxu0 %v8547_v7 }
 0x956   :  { %4180 = vmatprep.subr.bf16.mxu0 %v6465_v1 }
 0x958   :  { %4173 = vmatmul.mubr.bf16.vlgmr.msra.gmra.mrb[148].mxu0 %v4124_v44 }
 0x959   :  { %4181 = vmatpush1.bf16.msra.mxu0 %v8221_v33  ;;  %5304 = vmatprep.mubr.msk.bf16.mxu0 %vm309_vm0, %v4133_v8  ;;  %v5315_v8 = vld.sshfl [vmem:[%s8974_s1 + $0x20] sm:$0x33 pattern:$0x75316420] }
 0x95a   :  { %4182 = vmatprep.subr.bf16.mxu0 %v6465_v1 }
 0x95d   :  { %4183 = vmatpush1.bf16.msra.mxu0 %v8229_v43 }
 0x95e   :  { %4184 = vmatprep.subr.bf16.mxu0 %v6465_v1 }
 0x961   :  { %4185 = vmatpush1.bf16.msra.mxu0 %v8335_v49 }
 0x962   :  { %4186 = vmatprep.subr.bf16.mxu0 %v6465_v1 }
 0x963   :  { %v8673_v37 = vpop.f32.mrb[116].mxu1 }
 0x964   :  { %v4102_v41 = vpop.f32.mrb[117].mxu1 }
 0x965   :  { %4187 = vmatpush1.bf16.msra.mxu0 %v8342_v50  ;;  %v4103_v14 = vpop.f32.mrb[118].mxu1 }
 0x966   :  { %4188 = vmatprep.subr.bf16.mxu0 %v6465_v1  ;;  %v4104_v29 = vpop.f32.mrb[119].mxu1 }
 0x969   :  { %4189 = vmatpush1.bf16.msra.mxu0 %v8349_v52 }
 0x96a   :  { %4190 = vmatprep.subr.bf16.mxu0 %v6465_v1 }
 0x96d   :  { %4191 = vmatpush1.bf16.msra.mxu0 %v8356_v53 }
 0x96e   :  { %4192 = vmatprep.subr.bf16.mxu0 %v6465_v1 }
 0x971   :  { %4193 = vmatpush1.bf16.msra.mxu0 %v8363_v54 }
 0x972   :  { %4194 = vmatprep.subr.bf16.mxu0 %v6465_v1 }
 0x975   :  { %4195 = vmatpush1.bf16.msra.mxu0 %v8370_v55 }
 0x976   :  { %4196 = vmatprep.subr.bf16.mxu0 %v6465_v1 }
 0x979   :  { %4197 = vmatpush1.bf16.msra.mxu0 %v8377_v21 }
 0x97a   :  { %6238 = vmatprep.subr.bf16.mxu0 %v6467_v24 }
 0x97c   :  { %4213 = vmatmul.mubr.bf16.vlgmr.msra.gmra.mrb[152].mxu0 %v4132_v56  ;;  %v4517_v56 = vcombine.high %v5315_v8, %v5315_v8 }
 0x97d   :  { %6242 = vmatprep.mubr.msk.bf16.mxu0 %vm6468_vm1, %v6467_v24  ;;  %6239 = vmatpush3.bf16.msra.mxu0 %v6338_v40 }
 0x97e   :  { %6240 = vmatprep.subr.bf16.mxu0 %v6467_v24  ;;  %v8725_v41 = vrot.slane %v4517_v56, %v6696_v35 }
 0x980   :  { %v4533_v14 = vcombine.high %v8725_v41, %v8725_v41 }
 0x981   :  { %6241 = vmatpush3.bf16.msra.mxu0 %v6339_v9 }
 0x982   :  { %6073 = vmatprep.subr.bf16.mxu0 %v8414_v22 }
 0x98a   :  { %v6064_v25 = vpop.f32.mrb[120].mxu1 }
 0x98b   :  { %v6065_v20 = vpop.f32.mrb[121].mxu1 }
 0x98c   :  { %v6066_v38 = vadd.f32 %v6065_v20, %v6064_v25  ;;  %v6067_v23 = vpop.f32.mrb[122].mxu1 }
 0x98d   :  { %v6068_v12 = vpop.f32.mrb[123].mxu1 }
 0x9ae   :  { %v4328_v30 = vpop.f32.mrb[124].mxu1 }
 0x9af   :  { %v8675_v32 = vadd.f32 %v6066_v38, %v4328_v30  ;;  %v4330_v36 = vpop.f32.mrb[125].mxu1 }
 0x9b0   :  { %v4331_v15 = vpop.f32.mrb[126].mxu1 }
 0x9b1   :  { %v4332_v42 = vpop.f32.mrb[127].mxu1  ;;  %v5321_v15 = vld.sshfl [vmem:[%s8976_s3 + $0x20] sm:$0x33 pattern:$0x75316420] }
 0x9b2   :  { %v4745_v42 = vcombine.high %v5321_v15, %v5321_v15 }
 0x9cb   :  { %v3873_v0 = vpop.f32.mrb[136].mxu0 }
 0x9cc   :  { %v8678_v34 = vadd.f32 %v3873_v0, %v8388_v28  ;;  %v6236_v26 = vpop.f32.mrb[137].mxu0  ;;  %v8691_v28 = vrot.slane %v5312_v39, %v6696_v35  ;;  %v4752_v0 = vrot.slane %v5321_v15, %v6696_v35 }
 0x9cd   :  { %v3876_v6 = vpop.f32.mrb[138].mxu0 }
 0x9ce   :  { %v6237_v19 = vpop.f32.mrb[139].mxu0  ;;  %v4419_v51 = vcombine.high %v8691_v28, %v8691_v28 }
 0x9d0   :  { %4500 = vmatmul.mubr.bf16.vlgmr.msra.gmra.mrb[128].mxu1 %v4419_v51 }
 0x9d1   :  { %4581 = vmatpush1.bf16.msra.mxu1 %v8221_v33  ;;  %5316 = vmatprep.mubr.msk.bf16.mxu1 %vm309_vm0, %v4533_v14  ;;  %v6340_v14 = vld [vmem:[%s8979_s6 + $0x80] sm:$0xff]  }
 0x9d2   :  { %4582 = vmatprep.subr.bf16.mxu1 %v6465_v1 }
 0x9d5   :  { %4583 = vmatpush1.bf16.msra.mxu1 %v8229_v43 }
 0x9d6   :  { %4584 = vmatprep.subr.bf16.mxu1 %v6465_v1 }
 0x9d9   :  { %4585 = vmatpush1.bf16.msra.mxu1 %v8335_v49 }
 0x9da   :  { %4586 = vmatprep.subr.bf16.mxu1 %v6465_v1 }
 0x9dd   :  { %4587 = vmatpush1.bf16.msra.mxu1 %v8342_v50 }
 0x9de   :  { %4588 = vmatprep.subr.bf16.mxu1 %v6465_v1 }
 0x9e1   :  { %4589 = vmatpush1.bf16.msra.mxu1 %v8349_v52 }
 0x9e2   :  { %4590 = vmatprep.subr.bf16.mxu1 %v6465_v1 }
 0x9e5   :  { %4591 = vmatpush1.bf16.msra.mxu1 %v8356_v53 }
 0x9e6   :  { %4592 = vmatprep.subr.bf16.mxu1 %v6465_v1 }
 0x9e9   :  { %4593 = vmatpush1.bf16.msra.mxu1 %v8363_v54 }
 0x9ea   :  { %4594 = vmatprep.subr.bf16.mxu1 %v6465_v1 }
 0x9eb   :  { %v5998_v62 = vpop.f32.mrb[140].mxu0 }
 0x9ec   :  { %v5999_v18 = vpop.f32.mrb[141].mxu0 }
 0x9ed   :  { %v6000_v47 = vadd.f32 %v5999_v18, %v5998_v62  ;;  %v6001_v17 = vpop.f32.mrb[142].mxu0  ;;  %4595 = vmatpush1.bf16.msra.mxu1 %v8370_v55 }
 0x9ee   :  { %v6002_v11 = vpop.f32.mrb[143].mxu0  ;;  %4596 = vmatprep.subr.bf16.mxu1 %v6465_v1  ;;  %v8785_v17 = vld [vmem:[%s8978_s5] ss:$0 sm:$0xff] }
 0x9ef   :  { %v8714_v44 = vadd.f32 %v6000_v47, %v8645_v5  ;;  %v8729_v5 = vrot.slane %v5315_v8, %v6696_v35 }
 0x9f1   :  { %4597 = vmatpush1.bf16.msra.mxu1 %v8377_v21  ;;  %v4532_v29 = vcombine.high %v8729_v5, %v8729_v5 }
 0x9f2   :  { %6139 = vmatprep.subr.bf16.mxu1 %v8414_v22 }
 0x9f4   :  { %4613 = vmatmul.mubr.bf16.vlgmr.msra.gmra.mrb[132].mxu1 %v4532_v29  ;;  %v6341_v29 = vld [vmem:[%s8979_s6 + $0x88] sm:$0xff]  }
 0x9f5   :  { %6140 = vmatpush3.bf16.msra.mxu1 %v8455_v4 }
 0x9f6   :  { %6141 = vmatprep.subr.bf16.mxu1 %v8461_v10 }
 0x9f9   :  { %6142 = vmatpush3.bf16.msra.mxu1 %v8467_v59 }
 0x9fa   :  { %6143 = vmatprep.subr.bf16.mxu1 %v8473_v61 }
 0x9fd   :  { %6144 = vmatpush3.bf16.msra.mxu1 %v8479_v63 }
 0x9fe   :  { %6145 = vmatprep.subr.bf16.mxu1 %v8485_v27 }
 0xa01   :  { %6146 = vmatpush3.bf16.msra.mxu1 %v8491_v45 }
 0xa02   :  { %6147 = vmatprep.subr.bf16.mxu1 %v8497_v48 }
 0xa05   :  { %6148 = vmatpush3.bf16.msra.mxu1 %v8506_v31 }
 0xa06   :  { %6149 = vmatprep.subr.bf16.mxu1 %v8512_v46 }
 0xa09   :  { %6150 = vmatpush3.bf16.msra.mxu1 %v8520_v57 }
 0xa0a   :  { %6151 = vmatprep.subr.bf16.mxu1 %v8526_v60 }
 0xa0b   :  { %v6020_v25 = vpop.f32.mrb[144].mxu0 }
 0xa0c   :  { %v6021_v20 = vpop.f32.mrb[145].mxu0 }
 0xa0d   :  { %v6022_v38 = vadd.f32 %v6021_v20, %v6020_v25  ;;  %v6023_v23 = vpop.f32.mrb[146].mxu0  ;;  %6152 = vmatpush3.bf16.msra.mxu1 %v8532_v13 }
 0xa0e   :  { %v6024_v12 = vpop.f32.mrb[147].mxu0  ;;  %6153 = vmatprep.subr.bf16.mxu1 %v8538_v2 }
 0xa0f   :  { %v4101_v30 = vadd.f32 %v6022_v38, %v8673_v37  ;;  %v4759_v37 = vrot.slane %v4745_v42, %v6696_v35 }
 0xa11   :  { %v4106_v36 = vmax.f32 %v8714_v44, %v4101_v30  ;;  %6154 = vmatpush3.bf16.msra.mxu1 %v8547_v7  ;;  %v4761_v26 = vcombine.high %v4759_v37, %v4759_v37  ;;  %4800 = vmatprep.mubr.bf16.mxu1 %v4759_v37 }
 0xa12   :  { %4808 = vmatprep.subr.bf16.mxu1 %v6465_v1 }
 0xa14   :  { %4801 = vmatmul.mubr.bf16.vlgmr.msra.gmra.mrb[136].mxu1 %v4752_v0 }
 0xa15   :  { %4809 = vmatpush1.bf16.msra.mxu1 %v8221_v33  ;;  %5322 = vmatprep.mubr.msk.bf16.mxu1 %vm309_vm0, %v4761_v26 }
 0xa16   :  { %4810 = vmatprep.subr.bf16.mxu1 %v6465_v1 }
 0xa19   :  { %4811 = vmatpush1.bf16.msra.mxu1 %v8229_v43  ;;  %v4760_v43 = vcombine.high %v4752_v0, %v4752_v0 }
 0xa1a   :  { %4812 = vmatprep.subr.bf16.mxu1 %v6465_v1 }
 0xa1d   :  { %4813 = vmatpush1.bf16.msra.mxu1 %v8335_v49 }
 0xa1e   :  { %4814 = vmatprep.subr.bf16.mxu1 %v6465_v1 }
 0xa21   :  { %4815 = vmatpush1.bf16.msra.mxu1 %v8342_v50 }
 0xa22   :  { %4816 = vmatprep.subr.bf16.mxu1 %v6465_v1 }
 0xa25   :  { %4817 = vmatpush1.bf16.msra.mxu1 %v8349_v52 }
 0xa26   :  { %4818 = vmatprep.subr.bf16.mxu1 %v6465_v1 }
 0xa29   :  { %4819 = vmatpush1.bf16.msra.mxu1 %v8356_v53 }
 0xa2a   :  { %4820 = vmatprep.subr.bf16.mxu1 %v6465_v1 }
 0xa2b   :  { %v6042_v6 = vpop.f32.mrb[148].mxu0 }
 0xa2c   :  { %v6043_v19 = vpop.f32.mrb[149].mxu0 }
 0xa2d   :  { %v6044_v39 = vadd.f32 %v6043_v19, %v6042_v6  ;;  %v6045_v33 = vpop.f32.mrb[150].mxu0  ;;  %4821 = vmatpush1.bf16.msra.mxu1 %v8363_v54 }
 0xa2e   :  { %v6046_v40 = vpop.f32.mrb[151].mxu0  ;;  %4822 = vmatprep.subr.bf16.mxu1 %v6465_v1 }
 0xa31   :  { %4823 = vmatpush1.bf16.msra.mxu1 %v8370_v55 }
 0xa32   :  { %4824 = vmatprep.subr.bf16.mxu1 %v6465_v1 }
 0xa35   :  { %4825 = vmatpush1.bf16.msra.mxu1 %v8377_v21 }
 0xa36   :  { %6274 = vmatprep.subr.bf16.mxu1 %v6467_v24 }
 0xa38   :  { %4841 = vmatmul.mubr.bf16.vlgmr.msra.gmra.mrb[140].mxu1 %v4760_v43 }
 0xa39   :  { %6290 = vmatprep.mubr.msk.bf16.mxu1 %vm6468_vm1, %v6467_v24 }
 0xa4f   :  { %v4214_v3 = vpop.f32.mrb[152].mxu0 }
 0xa50   :  { %v4215_v9 = vadd.f32 %v6044_v39, %v4214_v3  ;;  %v4216_v16 = vpop.f32.mrb[153].mxu0 }
 0xa51   :  { %v4217_v51 = vpop.f32.mrb[154].mxu0 }
 0xa52   :  { %v4220_v62 = vmax.f32 %v4106_v36, %v4215_v9  ;;  %v4218_v18 = vpop.f32.mrb[155].mxu0 }
 0xa54   :  { %v4334_v47 = vmax.f32 %v4220_v62, %v8675_v32  ;;  %v5318_v32 = vld.sshfl [vmem:[%s8975_s2 + $0x20] sm:$0x33 pattern:$0x75316420] }
 0xa56   :  { %v4335_v11 = vadd.f32 %v8785_v17, %v4334_v47 }
 0xa58   :  { %v4336_v44 = vmax.f32 %v4335_v11, 0.0 }
 0xa5a   :  { %v4337_v8 = vpack.c.bf16 %v4336_v44, %v4336_v44  ;;  %v6342_v44 = vld [vmem:[%s8981_s8] sm:$0xff]  }
 0xa5c   :  { %6243 = vmatmul.mubr.msk.bf16.vlgmr.msra.gmra.mrb[156].mxu0 %vm1211_vm2, %v4337_v8 }
 0xa5d   :  { %6074 = vmatpush3.bf16.msra.mxu0 %v8455_v4  ;;  %4459 = vmatprep.mubr.bf16.mxu0 %v8687_v58  ;;  %v4631_v58 = vcombine.high %v5318_v32, %v5318_v32 }
 0xa5e   :  { %6075 = vmatprep.subr.bf16.mxu0 %v8461_v10 }
 0xa61   :  { %6076 = vmatpush3.bf16.msra.mxu0 %v8467_v59 }
 0xa62   :  { %6077 = vmatprep.subr.bf16.mxu0 %v8473_v61 }
 0xa65   :  { %6078 = vmatpush3.bf16.msra.mxu0 %v8479_v63 }
 0xa66   :  { %6079 = vmatprep.subr.bf16.mxu0 %v8485_v27 }
 0xa69   :  { %6080 = vmatpush3.bf16.msra.mxu0 %v8491_v45 }
 0xa6a   :  { %6081 = vmatprep.subr.bf16.mxu0 %v8497_v48 }
 0xa6d   :  { %6082 = vmatpush3.bf16.msra.mxu0 %v8506_v31 }
 0xa6e   :  { %6083 = vmatprep.subr.bf16.mxu0 %v8512_v46 }
 0xa71   :  { %6084 = vmatpush3.bf16.msra.mxu0 %v8520_v57 }
 0xa72   :  { %6085 = vmatprep.subr.bf16.mxu0 %v8526_v60 }
 0xa75   :  { %6086 = vmatpush3.bf16.msra.mxu0 %v8532_v13 }
 0xa76   :  { %6087 = vmatprep.subr.bf16.mxu0 %v8538_v2 }
 0xa79   :  { %6088 = vmatpush3.bf16.msra.mxu0 %v8547_v7 }
 0xa7a   :  { %6095 = vmatprep.subr.bf16.mxu0 %v8414_v22 }
 0xa7c   :  { %4460 = vmatmul.mubr.bf16.vlgmr.msra.gmra.mrb[160].mxu0 %v8691_v28  ;;  %v4645_v28 = vrot.slane %v4631_v58, %v6696_v35  ;;  %v6345_v58 = vld [vmem:[%s8981_s8 + $0x18] sm:$0xff]  }
 0xa7d   :  { %6096 = vmatpush3.bf16.msra.mxu0 %v8455_v4  ;;  %4572 = vmatprep.mubr.bf16.mxu0 %v8725_v41 }
 0xa7e   :  { %6097 = vmatprep.subr.bf16.mxu0 %v8461_v10 }
 0xa81   :  { %6098 = vmatpush3.bf16.msra.mxu0 %v8467_v59 }
 0xa82   :  { %6099 = vmatprep.subr.bf16.mxu0 %v8473_v61 }
 0xa85   :  { %6100 = vmatpush3.bf16.msra.mxu0 %v8479_v63 }
 0xa86   :  { %6101 = vmatprep.subr.bf16.mxu0 %v8485_v27 }
 0xa89   :  { %6102 = vmatpush3.bf16.msra.mxu0 %v8491_v45 }
 0xa8a   :  { %6103 = vmatprep.subr.bf16.mxu0 %v8497_v48 }
 0xa8d   :  { %6104 = vmatpush3.bf16.msra.mxu0 %v8506_v31 }
 0xa8e   :  { %6105 = vmatprep.subr.bf16.mxu0 %v8512_v46 }
 0xa91   :  { %6106 = vmatpush3.bf16.msra.mxu0 %v8520_v57 }
 0xa92   :  { %6107 = vmatprep.subr.bf16.mxu0 %v8526_v60 }
 0xa95   :  { %6108 = vmatpush3.bf16.msra.mxu0 %v8532_v13 }
 0xa96   :  { %6109 = vmatprep.subr.bf16.mxu0 %v8538_v2 }
 0xa99   :  { %6110 = vmatpush3.bf16.msra.mxu0 %v8547_v7 }
 0xa9a   :  { %6117 = vmatprep.subr.bf16.mxu0 %v8414_v22 }
 0xa9c   :  { %4573 = vmatmul.mubr.bf16.vlgmr.msra.gmra.mrb[164].mxu0 %v8729_v5 }
 0xa9d   :  { %6118 = vmatpush3.bf16.msra.mxu0 %v8455_v4  ;;  %4686 = vmatprep.mubr.bf16.mxu0 %v4645_v28 }
 0xa9e   :  { %6119 = vmatprep.subr.bf16.mxu0 %v8461_v10 }
 0xaa1   :  { %6120 = vmatpush3.bf16.msra.mxu0 %v8467_v59 }
 0xaa2   :  { %6121 = vmatprep.subr.bf16.mxu0 %v8473_v61  ;;  %v4638_v61 = vrot.slane %v5318_v32, %v6696_v35  ;;  %v6343_v32 = vld [vmem:[%s8981_s8 + $0x8] sm:$0xff]  }
 0xaa3   :  { %v8841_v22 = vpop.f32.mrb[128].mxu1 }
 0xaa4   :  { %v4503_v4 = vpop.f32.mrb[129].mxu1  ;;  %v4646_v35 = vcombine.high %v4638_v61, %v4638_v61 }
 0xaa5   :  { %6122 = vmatpush3.bf16.msra.mxu0 %v8479_v63  ;;  %v4504_v10 = vpop.f32.mrb[130].mxu1  ;;  %v4647_v63 = vcombine.high %v4645_v28, %v4645_v28  ;;  %v6346_v28 = vld [vmem:[%s8981_s8 + $0x20] sm:$0xff]   ;;  %v6348_v4 = vld [vmem:[%s8981_s8 + $0x30] sm:$0xff]  }
 0xaa6   :  { %6123 = vmatprep.subr.bf16.mxu0 %v8485_v27  ;;  %v4505_v59 = vpop.f32.mrb[131].mxu1  ;;  %v6439_v27 = vld [vmem:[%s8977_s4 + $0x80] sm:$0xff]   ;;  %v6349_v10 = vld [vmem:[%s8981_s8 + $0x38] sm:$0xff]  }
 0xaa7   :  { %v6350_v59 = vld [vmem:[%s8983_s10] sm:$0xff]  }
 0xaa8   :  { %6275 = vmatpush3.bf16.msra.mxu1 %v6350_v59 }
 0xaa9   :  { %6124 = vmatpush3.bf16.msra.mxu0 %v8491_v45  ;;  %v6440_v45 = vld [vmem:[%s8977_s4 + $0x88] sm:$0xff]   ;;  %6276 = vmatprep.subr.bf16.mxu1 %v6467_v24 }
 0xaaa   :  { %6125 = vmatprep.subr.bf16.mxu0 %v8497_v48 }
 0xaad   :  { %6126 = vmatpush3.bf16.msra.mxu0 %v8506_v31 }
 0xaae   :  { %6127 = vmatprep.subr.bf16.mxu0 %v8512_v46 }
 0xab1   :  { %6128 = vmatpush3.bf16.msra.mxu0 %v8520_v57 }
 0xab2   :  { %6129 = vmatprep.subr.bf16.mxu0 %v8526_v60 }
 0xab5   :  { %6130 = vmatpush3.bf16.msra.mxu0 %v8532_v13 }
 0xab6   :  { %6131 = vmatprep.subr.bf16.mxu0 %v8538_v2 }
 0xab9   :  { %6132 = vmatpush3.bf16.msra.mxu0 %v8547_v7 }
 0xaba   :  { %4694 = vmatprep.subr.bf16.mxu0 %v6465_v1 }
 0xabc   :  { %4687 = vmatmul.mubr.bf16.vlgmr.msra.gmra.mrb[168].mxu0 %v4638_v61  ;;  %v6351_v61 = vld [vmem:[%s8983_s10 + $0x8] sm:$0xff]  }
 0xabd   :  { %4695 = vmatpush1.bf16.msra.mxu0 %v6439_v27  ;;  %5319 = vmatprep.mubr.msk.bf16.mxu0 %vm309_vm0, %v4647_v63  ;;  %v6352_v63 = vld [vmem:[%s8983_s10 + $0x10] sm:$0xff]   ;;  %v6353_v27 = vld [vmem:[%s8983_s10 + $0x18] sm:$0xff]  }
 0xabe   :  { %4696 = vmatprep.subr.bf16.mxu0 %v6465_v1  ;;  %6277 = vmatpush3.bf16.msra.mxu1 %v6351_v61 }
 0xabf   :  { %6278 = vmatprep.subr.bf16.mxu1 %v6467_v24 }
 0xac1   :  { %4697 = vmatpush1.bf16.msra.mxu0 %v6440_v45  ;;  %v6354_v45 = vld [vmem:[%s8983_s10 + $0x20] sm:$0xff]  }
 0xac2   :  { %4698 = vmatprep.subr.bf16.mxu0 %v6465_v1  ;;  %6279 = vmatpush3.bf16.msra.mxu1 %v6352_v63 }
 0xac3   :  { %6280 = vmatprep.subr.bf16.mxu1 %v6467_v24 }
 0xac5   :  { %4699 = vmatpush1.bf16.msra.mxu0 %v8335_v49 }
 0xac6   :  { %4700 = vmatprep.subr.bf16.mxu0 %v6465_v1  ;;  %6281 = vmatpush3.bf16.msra.mxu1 %v6353_v27 }
 0xac7   :  { %v4614_v49 = vpop.f32.mrb[132].mxu1  ;;  %6282 = vmatprep.subr.bf16.mxu1 %v6467_v24 }
 0xac9   :  { %4701 = vmatpush1.bf16.msra.mxu0 %v8342_v50  ;;  %v4616_v50 = vpop.f32.mrb[133].mxu1 }
 0xaca   :  { %4702 = vmatprep.subr.bf16.mxu0 %v6465_v1  ;;  %6283 = vmatpush3.bf16.msra.mxu1 %v6354_v45  ;;  %v5326_v50 = vld [vmem:[%s8980_s7] ss:$0 sm:$0xff] }
 0xacb   :  { %6284 = vmatprep.subr.bf16.mxu1 %v6467_v24 }
 0xacd   :  { %4703 = vmatpush1.bf16.msra.mxu0 %v8349_v52  ;;  %v4617_v52 = vpop.f32.mrb[134].mxu1 }
 0xace   :  { %4704 = vmatprep.subr.bf16.mxu0 %v6465_v1 }
 0xad1   :  { %4705 = vmatpush1.bf16.msra.mxu0 %v8356_v53  ;;  %v4618_v53 = vpop.f32.mrb[135].mxu1 }
 0xad2   :  { %4706 = vmatprep.subr.bf16.mxu0 %v6465_v1 }
 0xad5   :  { %4707 = vmatpush1.bf16.msra.mxu0 %v8363_v54 }
 0xad6   :  { %4708 = vmatprep.subr.bf16.mxu0 %v6465_v1 }
 0xad9   :  { %4709 = vmatpush1.bf16.msra.mxu0 %v8370_v55 }
 0xada   :  { %4710 = vmatprep.subr.bf16.mxu0 %v6465_v1 }
 0xadd   :  { %4711 = vmatpush1.bf16.msra.mxu0 %v8377_v21 }
 0xade   :  { %6246 = vmatprep.subr.bf16.mxu0 %v6467_v24 }
 0xae0   :  { %4727 = vmatmul.mubr.bf16.vlgmr.msra.gmra.mrb[172].mxu0 %v4646_v35  ;;  %v6355_v35 = vld [vmem:[%s8983_s10 + $0x28] sm:$0xff]  }
 0xae1   :  { %6250 = vmatprep.mubr.msk.bf16.mxu0 %vm6468_vm1, %v6467_v24  ;;  %6247 = vmatpush3.bf16.msra.mxu0 %v6340_v14 }
 0xae2   :  { %6248 = vmatprep.subr.bf16.mxu0 %v6467_v24  ;;  %6285 = vmatpush3.bf16.msra.mxu1 %v6355_v35 }
 0xae3   :  { %6286 = vmatprep.subr.bf16.mxu1 %v6467_v24 }
 0xae5   :  { %6249 = vmatpush3.bf16.msra.mxu0 %v6341_v29 }
 0xae6   :  { %6254 = vmatprep.subr.bf16.mxu0 %v6467_v24 }
 0xae7   :  { %v6155_v54 = vpop.f32.mrb[136].mxu1 }
 0xae8   :  { %v6156_v48 = vpop.f32.mrb[137].mxu1 }
 0xae9   :  { %v6157_v31 = vadd.f32 %v6156_v48, %v6155_v54  ;;  %v6158_v46 = vpop.f32.mrb[138].mxu1 }
 0xaea   :  { %v6159_v55 = vpop.f32.mrb[139].mxu1 }
 0xb0b   :  { %v4842_v57 = vpop.f32.mrb[140].mxu1 }
 0xb0c   :  { %v4843_v1 = vadd.f32 %v6157_v31, %v4842_v57  ;;  %v4844_v60 = vpop.f32.mrb[141].mxu1  ;;  %v6356_v57 = vld [vmem:[%s8983_s10 + $0x30] sm:$0xff]  }
 0xb0d   :  { %v4845_v13 = vpop.f32.mrb[142].mxu1  ;;  %6287 = vmatpush3.bf16.msra.mxu1 %v6356_v57  ;;  %v5327_v60 = vld [vmem:[%s8982_s9] ss:$0 sm:$0xff]  ;;  %s6469_s9 = smov [#allocation2]  }
 0xb0e   :  { %v4846_v21 = vpop.f32.mrb[143].mxu1  ;;  %6288 = vmatprep.subr.bf16.mxu1 %v6467_v24 }
 0xb2f   :  { %v4387_v2 = vpop.f32.mrb[156].mxu0 }
 0xb30   :  { %v8874_v7 = vadd.f32 %v4387_v2, %v8678_v34  ;;  %v6244_v56 = vpop.f32.mrb[157].mxu0 }
 0xb31   :  { %v4390_v41 = vpop.f32.mrb[158].mxu0 }
 0xb32   :  { %v6245_v5 = vpop.f32.mrb[159].mxu0 }
 0xb4f   :  { %v6089_v25 = vpop.f32.mrb[160].mxu0 }
 0xb50   :  { %v6090_v34 = vpop.f32.mrb[161].mxu0 }
 0xb51   :  { %v6091_v20 = vadd.f32 %v6090_v34, %v6089_v25  ;;  %v6092_v38 = vpop.f32.mrb[162].mxu0 }
 0xb52   :  { %v6093_v23 = vpop.f32.mrb[163].mxu0 }
 0xb53   :  { %v4502_v12 = vadd.f32 %v6091_v20, %v8841_v22  ;;  %v6347_v22 = vld [vmem:[%s8981_s8 + $0x28] sm:$0xff]  }
 0xb6f   :  { %v6111_v30 = vpop.f32.mrb[164].mxu0 }
 0xb70   :  { %v6112_v36 = vpop.f32.mrb[165].mxu0 }
 0xb71   :  { %v6113_v15 = vadd.f32 %v6112_v36, %v6111_v30  ;;  %v6114_v42 = vpop.f32.mrb[166].mxu0 }
 0xb72   :  { %v6115_v37 = vpop.f32.mrb[167].mxu0 }
 0xb73   :  { %v4615_v0 = vadd.f32 %v6113_v15, %v4614_v49 }
 0xb75   :  { %v4620_v26 = vmax.f32 %v4502_v12, %v4615_v0 }
 0xb8f   :  { %v6133_v6 = vpop.f32.mrb[168].mxu0 }
 0xb90   :  { %v6134_v19 = vpop.f32.mrb[169].mxu0 }
 0xb91   :  { %v6135_v39 = vadd.f32 %v6134_v19, %v6133_v6  ;;  %v6136_v33 = vpop.f32.mrb[170].mxu0 }
 0xb92   :  { %v6137_v40 = vpop.f32.mrb[171].mxu0 }
 0xbb3   :  { %v4728_v43 = vpop.f32.mrb[172].mxu0 }
 0xbb4   :  { %v4729_v3 = vadd.f32 %v6135_v39, %v4728_v43  ;;  %v4730_v9 = vpop.f32.mrb[173].mxu0 }
 0xbb5   :  { %v4731_v16 = vpop.f32.mrb[174].mxu0 }
 0xbb6   :  { %v4734_v51 = vmax.f32 %v4620_v26, %v4729_v3  ;;  %v4732_v62 = vpop.f32.mrb[175].mxu0 }
 0xbb8   :  { %v4848_v18 = vmax.f32 %v4734_v51, %v4843_v1  ;;  %v6357_v1 = vld [vmem:[%s8983_s10 + $0x38] sm:$0xff]   ;;  %s5161_s10 = sshll.u32 %s6469_s9, 4  ;;  %s5162_s10 = int_to_ptr.vmem [resolvable:$true] %s5161_s10 }
 0xbb9   :  { %6289 = vmatpush3.bf16.msra.mxu1 %v6357_v1  ;;  %p6446_p1 = scmp.lt.s32.totalorder %s5162_s10, %s5162_s10 }
 0xbba   :  { %v4849_v47 = vadd.f32 %v8785_v17, %v4848_v18  ;;  %v6344_v17 = vld [vmem:[%s8981_s8 + $0x10] sm:$0xff]  }
 0xbbc   :  { %v4850_v11 = vmax.f32 %v4849_v47, 0.0 }
 0xbbe   :  { %v4851_v8 = vpack.c.bf16 %v4850_v11, %v4850_v11 }
 0xbc0   :  { %6251 = vmatmul.mubr.msk.bf16.vlgmr.msra.gmra.mrb[176].mxu0 %vm1211_vm2, %v4851_v8 }
 0xbc1   :  { %6255 = vmatpush3.bf16.msra.mxu0 %v6342_v44  ;;  %6270 = vmatprep.mubr.msk.bf16.mxu0 %vm6468_vm1, %v6467_v24 }
 0xbc2   :  { %6256 = vmatprep.subr.bf16.mxu0 %v6467_v24 }
 0xbc5   :  { %6257 = vmatpush3.bf16.msra.mxu0 %v6343_v32 }
 0xbc6   :  { %6258 = vmatprep.subr.bf16.mxu0 %v6467_v24 }
 0xbc9   :  { %6259 = vmatpush3.bf16.msra.mxu0 %v6344_v17 }
 0xbca   :  { %6260 = vmatprep.subr.bf16.mxu0 %v6467_v24 }
 0xbcd   :  { %6261 = vmatpush3.bf16.msra.mxu0 %v6345_v58 }
 0xbce   :  { %6262 = vmatprep.subr.bf16.mxu0 %v6467_v24 }
 0xbd1   :  { %6263 = vmatpush3.bf16.msra.mxu0 %v6346_v28 }
 0xbd2   :  { %6264 = vmatprep.subr.bf16.mxu0 %v6467_v24 }
 0xbd5   :  { %6265 = vmatpush3.bf16.msra.mxu0 %v6347_v22 }
 0xbd6   :  { %6266 = vmatprep.subr.bf16.mxu0 %v6467_v24 }
 0xbd9   :  { %6267 = vmatpush3.bf16.msra.mxu0 %v6348_v4 }
 0xbda   :  { %6268 = vmatprep.subr.bf16.mxu0 %v6467_v24  ;;  %v5336_v24 = vld [vmem:[%s8984_s11] ss:$0 sm:$0xff]  ;;  %s6441_s11 = scalar_lea.vmem %s5162_s10, 32 }
 0xbdb   :  { %p6442_p0 = scmp.ne.s32.totalorder %s5162_s10, %s6441_s11  ;;  %p6447_p2 = scmp.lt.s32.totalorder %s6441_s11, %s6441_s11 }
 0xbdd   :  { %6269 = vmatpush3.bf16.msra.mxu0 %v6349_v10  ;;  %p6448_p3 = por %p6447_p2, %p6446_p1 }
 0xbdf   :  { %p6449_p4 = pnand %p6448_p3, %p6442_p0 }
 0xc93   :  { %v4901_v49 = vpop.f32.mrb[176].mxu0 }
 0xc94   :  { %v4907_v52 = vadd.f32 %v4901_v49, %v8874_v7  ;;  %v6252_v53 = vpop.f32.mrb[177].mxu0 }
 0xc95   :  { %v4904_v54 = vpop.f32.mrb[178].mxu0 }
 0xc96   :  { %v4915_v48 = vadd.f32 %v5326_v50, %v4907_v52  ;;  %v6253_v31 = vpop.f32.mrb[179].mxu0 }
 0xc98   :  { %v4916_v46 = vmax.f32 %v4915_v48, 0.0 }
 0xc9a   :  { %v4917_v55 = vpack.c.bf16 %v4916_v46, %v4916_v46 }
 0xc9c   :  { %6271 = vmatmul.mubr.bf16.vlgmr.msra.gmra.mrb[180].mxu0 %v4917_v55 }
 0xd6f   :  { %v5023_v13 = vpop.f32.mrb[180].mxu0 }
 0xd70   :  { %v5024_v21 = vadd.f32 %v5327_v60, %v5023_v13  ;;  %v6272_v2 = vpop.f32.mrb[181].mxu0 }
 0xd71   :  { %v5026_v7 = vpop.f32.mrb[182].mxu0 }
 0xd72   :  { %v5029_v56 = vmax.f32 %v5024_v21, 0.0  ;;  %v6273_v41 = vpop.f32.mrb[183].mxu0 }
 0xd74   :  { %v5030_v5 = vpack.c.bf16 %v5029_v56, %v5029_v56 }
 0xd76   :  { %6291 = vmatmul.mubr.bf16.vlgmr.msra.gmra.mrb[144].mxu1 %v5030_v5 }
 0xe49   :  { %v5136_v14 = vpop.f32.mrb[144].mxu1 }
 0xe4a   :  { %v5137_v29 = vadd.f32 %v5336_v24, %v5136_v14  ;;  %v6292_v25 = vpop.f32.mrb[145].mxu1 }
 0xe4b   :  { %v5139_v34 = vpop.f32.mrb[146].mxu1 }
 0xe4c   :  { %v6293_v20 = vpop.f32.mrb[147].mxu1  ;;  %v5143_v38 = vsel %vm5142_vm3, %v5137_v29, -inf }
 0xe4d   :  { %5144 = vmax.xlane.f32.xlu0 %v5143_v38 }
 0xeda   :  { %v5145_v23 = vpop.xlane.xlu0 %5144 }
 0xedb   :  { %v5146_v12 = vsub.f32 %v5137_v29, %v5145_v23 }
 0xedd   :  { %v5147_v30 = vmul.f32 1.442695, %v5146_v12 }
 0xedf   :  { %6358 = vpow2.f32 %v5147_v30 }
 0xee9   :  { %v6359_v36 = vpop.eup %6358 }
 0xeea   :  { %v5149_v15 = vsel %vm5142_vm3, %v6359_v36, 0.0 }
 0xeeb   :  { %5150 = vadd.xlane.f32.xlu0 %v5149_v15 }
 0xf78   :  { %v5151_v42 = vpop.xlane.xlu0 %5150 }
 0xf79   :  { %6360 = vrcp.f32 %v5151_v42 }
 0xf83   :  { %v6361_v37 = vpop.eup %6360 }
 0xf84   :  { %v5153_v0 = vmul.f32 %v6361_v37, %v6359_v36 }
 0xf86   :  { %5154 = vst [vmem:[#allocation2] sm:$0x3] %v5153_v0 }
 0xf87   :  { %6452 = shalt.err (!%p6449_p4)
}
 0xf88   :  { %s6453_s3 = scalar_lea.hbm %s8985_s12, 32 }
 0xf89   :  { %p6454_p5 = scmp.ne.s32.totalorder %s8985_s12, %s6453_s3  ;;  %p6457_p6 = scmp.lt.u32.totalorder %s6453_s3, %s8985_s12 }
 0xf8b   :  { %p6459_p7 = pnand %p6457_p6, %p6454_p5 }
 0xf8d   :  { %6462 = shalt.err (!%p6459_p7)
}
 0xf8e   :  { %5164 = dma.vmem_to_hbm [thread:$0]  %s5162_s10, 32, %s8985_s12, [#allocation3]  }
 0xf8f   :  { %6463 = dma.done.wait [#allocation3], 32  }
 0xf90   :  { %6464 = vsyncadd [#allocation3], 4294967264 }
 0xf91   :  { %5168 = vsyncpa [#allocation3], 1 }

</bundles_post_ra>
